<compile_context>
chip_gen: v6e
topology: v6e:2x2x1
jax: 0.10.0
libtpu: 0.0.40
codegen_flags: <defaults>
</compile_context>

<pallas_src>
import jax
import jax.numpy as jnp
from jax.experimental import pallas as pl
from jax.experimental.pallas import tpu as pltpu

HIDDEN = 1024
TILE_R = 256  # ROI rows per grid step; fills the 256-wide MXU on v6e/v7x


def _round_up(x, m):
    return (x + m - 1) // m * m


def _roi_box_head_kernel(x_ref, w1_ref, b1_ref, w2_ref, b2_ref,
                         wh_ref, bh_ref, out_ref):
    # x_ref: (TILE_R, d_in) bf16.  Weights bf16, b1/b2 bf16, bh f32.
    # MXU matmuls accumulate in f32; bias+ReLU epilogue in bf16.
    a1 = jnp.dot(x_ref[...], w1_ref[...], preferred_element_type=jnp.float32)
    h1 = jnp.maximum(a1.astype(jnp.bfloat16) + b1_ref[...], 0)

    a2 = jnp.dot(h1, w2_ref[...], preferred_element_type=jnp.float32)
    h2 = jnp.maximum(a2.astype(jnp.bfloat16) + b2_ref[...], 0)

    # Fused (class | bbox) head -> one lane-dense (TILE_R, h_pad) bf16 store.
    a3 = jnp.dot(h2, wh_ref[...], preferred_element_type=jnp.float32)
    out_ref[...] = (a3 + bh_ref[...]).astype(out_ref.dtype)


def init_params(key, in_channels, n_classes, hidden=HIDDEN):
    """Deterministic synthetic parameters (same shapes as the nn.Module),
    stored transposed as (in_features, out_features)."""
    d_in = in_channels * 7 * 7
    ks = jax.random.split(key, 8)

    def lin(kw, kb, fan_in, fan_out):
        bound = 1.0 / jnp.sqrt(fan_in)
        w = jax.random.uniform(kw, (fan_in, fan_out), jnp.float32, -bound, bound)
        b = jax.random.uniform(kb, (1, fan_out), jnp.float32, -bound, bound)
        return w, b

    w1, b1 = lin(ks[0], ks[1], d_in, hidden)
    w2, b2 = lin(ks[2], ks[3], hidden, hidden)
    wc, bc = lin(ks[4], ks[5], hidden, n_classes)
    wb, bb = lin(ks[6], ks[7], hidden, n_classes * 4)
    return {"w1": w1, "b1": b1, "w2": w2, "b2": b2,
            "wc": wc, "bc": bc, "wb": wb, "bb": bb}


def pack_params(raw):
    """Fuse + lane-pad the two heads, cast weights and the fc biases to bf16.
    fc1 keeps its natural contraction dim (no K padding)."""
    w1, b1 = raw["w1"], raw["b1"]
    w2, b2 = raw["w2"], raw["b2"]
    wc, bc = raw["wc"], raw["bc"]
    wb, bb = raw["wb"], raw["bb"]

    d_in = w1.shape[0]
    n_cls = wc.shape[1]
    h_out = 5 * n_cls
    h_pad = _round_up(h_out, 128)

    wh = jnp.concatenate([wc, wb], axis=1)                 # (1024, 5*n_cls)
    whp = jnp.zeros((HIDDEN, h_pad), jnp.float32).at[:, :h_out].set(wh)
    bh = jnp.concatenate([bc, bb], axis=1)
    bhp = jnp.zeros((1, h_pad), jnp.float32).at[:, :h_out].set(bh)

    return {
        "w1": w1.astype(jnp.bfloat16),                     # (d_in, 1024)
        "b1": b1.reshape(1, HIDDEN).astype(jnp.bfloat16),
        "w2": w2.astype(jnp.bfloat16),                     # (1024, 1024)
        "b2": b2.reshape(1, HIDDEN).astype(jnp.bfloat16),
        "wh": whp.astype(jnp.bfloat16),                    # (1024, h_pad)
        "bh": bhp.astype(jnp.float32),                     # (1, h_pad)
        "d_in": d_in,
        "n_cls": n_cls,
    }


def roi_box_head(x, packed):
    """x: (C,7,7) single ROI (PyTorch forward semantics, returns 1-D outputs)
          or (R,C,7,7) batch of ROIs (returns (R,n_cls), (R,4*n_cls))."""
    single = (x.ndim == 3)
    x_rois = x[None] if single else x
    r = x_rois.shape[0]

    d_in, n_cls = packed["d_in"], packed["n_cls"]
    w1, b1 = packed["w1"], packed["b1"]
    w2, b2 = packed["w2"], packed["b2"]
    wh, bh = packed["wh"], packed["bh"]
    h_pad = wh.shape[1]

    # Flatten + bf16 cast + row pad (single fused pass over x; no lane pad).
    # Pad to an EVEN number of tiles so v7x's 2 TensorCores split evenly.
    x_flat = x_rois.reshape(r, d_in).astype(jnp.bfloat16)
    n_tiles = pl.cdiv(r, TILE_R)
    n_tiles += n_tiles % 2
    r_pad = n_tiles * TILE_R
    x_p = jnp.pad(x_flat, ((0, r_pad - r), (0, 0)))

    # Cost hint for XLA's scheduler.
    flops = 2 * r_pad * (d_in * HIDDEN + HIDDEN * HIDDEN + HIDDEN * h_pad)
    bytes_accessed = (x_p.size * 2
                      + (w1.size + w2.size + wh.size) * 2
                      + (b1.size + b2.size) * 2 + bh.size * 4
                      + r_pad * h_pad * 2)

    # VMEM budget: double-buffered resident weights + double-buffered per-step
    # x/out tiles + compiler-materialized intermediates (a1/h1/a2/h2/a3),
    # plus headroom; capped at 48 MiB (safe on v7x's 64 MiB per-TC VMEM).
    weight_bytes = 2 * ((w1.size + w2.size + wh.size) * 2
                        + (b1.size + b2.size) * 2 + bh.size * 4)
    io_bytes = 2 * (TILE_R * d_in * 2) + 2 * (TILE_R * h_pad * 2)
    interm_bytes = (2 * TILE_R * HIDDEN * 4      # a1, a2 (f32)
                    + 2 * TILE_R * HIDDEN * 2    # h1, h2 (bf16)
                    + TILE_R * h_pad * 4)        # a3 (f32)
    vmem_limit = min(weight_bytes + io_bytes + interm_bytes + (8 << 20),
                     48 << 20)

    # Weights/biases: constant block index over the ROI grid -> DMA'd once,
    # resident in VMEM across all ROI tiles.
    const = lambda a: pl.BlockSpec(a.shape, lambda i: (0,) * a.ndim)

    out = pl.pallas_call(
        _roi_box_head_kernel,
        out_shape=jax.ShapeDtypeStruct((r_pad, h_pad), jnp.bfloat16),
        grid=(n_tiles,),
        in_specs=[
            pl.BlockSpec((TILE_R, d_in), lambda i: (i, 0)),   # x tiles stream
            const(w1), const(b1), const(w2), const(b2),
            const(wh), const(bh),
        ],
        out_specs=pl.BlockSpec((TILE_R, h_pad), lambda i: (i, 0)),
        compiler_params=pltpu.CompilerParams(
            dimension_semantics=("parallel",),
            vmem_limit_bytes=int(vmem_limit)),
        cost_estimate=pl.CostEstimate(flops=int(flops), transcendentals=0,
                                      bytes_accessed=int(bytes_accessed)),
    )(x_p, w1, b1, w2, b2, wh, bh)

    cls = out[:r, :n_cls].astype(jnp.float32)
    bbox = out[:r, n_cls:5 * n_cls].astype(jnp.float32)
    if single:
        return cls.reshape(n_cls), bbox.reshape(4 * n_cls)
    return cls, bbox


def _reference(x, packed):
    """Pure-JAX reference mirroring the kernel's bf16-weight / f32-accum /
    bf16-epilogue math (differences are accumulation order only)."""
    single = (x.ndim == 3)
    x_rois = x[None] if single else x
    r = x_rois.shape[0]
    d_in, n_cls = packed["d_in"], packed["n_cls"]

    xf = x_rois.reshape(r, d_in).astype(jnp.bfloat16)
    a1 = jnp.dot(xf, packed["w1"], preferred_element_type=jnp.float32)
    h1 = jnp.maximum(a1.astype(jnp.bfloat16) + packed["b1"], 0)
    a2 = jnp.dot(h1, packed["w2"], preferred_element_type=jnp.float32)
    h2 = jnp.maximum(a2.astype(jnp.bfloat16) + packed["b2"], 0)
    out = (jnp.dot(h2, packed["wh"], preferred_element_type=jnp.float32)
           + packed["bh"]).astype(jnp.bfloat16)

    cls = out[:, :n_cls].astype(jnp.float32)
    bbox = out[:, n_cls:5 * n_cls].astype(jnp.float32)
    if single:
        return cls.reshape(n_cls), bbox.reshape(4 * n_cls)
    return cls, bbox


if __name__ == "__main__":
    in_channels = 4
    n_classes = 8
    n_rois = 8

    key = jax.random.PRNGKey(0)
    k_x, k_p, k_b = jax.random.split(key, 3)

    params = init_params(k_p, in_channels, n_classes)
    packed = pack_params(params)

    # Single ROI — matches the PyTorch module's forward(x) exactly (1-D outputs).
    x_single = jax.random.normal(k_x, (in_channels, 7, 7), dtype=jnp.float32)
    cls1, box1 = roi_box_head(x_single, packed)
    jax.block_until_ready((cls1, box1))
    rc1, rb1 = _reference(x_single, packed)
    assert cls1.shape == (n_classes,)
    assert box1.shape == (4 * n_classes,)
    assert jnp.allclose(cls1, rc1, atol=1e-2, rtol=1e-2)
    assert jnp.allclose(box1, rb1, atol=1e-2, rtol=1e-2)

    # Batched ROIs — the performance-relevant path (real FRCNN proposal counts
    # fill many 256-row tiles).
    x_batch = jax.random.normal(k_b, (n_rois, in_channels, 7, 7), dtype=jnp.float32)
    clsb, boxb = roi_box_head(x_batch, packed)
    jax.block_until_ready((clsb, boxb))
    rcb, rbb = _reference(x_batch, packed)
    assert clsb.shape == (n_rois, n_classes)
    assert boxb.shape == (n_rois, 4 * n_classes)
    assert jnp.allclose(clsb, rcb, atol=1e-2, rtol=1e-2)
    assert jnp.allclose(boxb, rbb, atol=1e-2, rtol=1e-2)

    print("KERNEL_OK")
</pallas_src>

<mosaic_0001>
module attributes {stable_mosaic.version = 11 : i64} {
  func.func @_roi_box_head_kernel(%arg0: i32, %arg1: memref<256x196xbf16, #tpu.memory_space<vmem>>, %arg2: memref<196x1024xbf16, #tpu.memory_space<vmem>>, %arg3: memref<1x1024xbf16, #tpu.memory_space<vmem>>, %arg4: memref<1024x1024xbf16, #tpu.memory_space<vmem>>, %arg5: memref<1x1024xbf16, #tpu.memory_space<vmem>>, %arg6: memref<1024x128xbf16, #tpu.memory_space<vmem>>, %arg7: memref<1x128xf32, #tpu.memory_space<vmem>>, %arg8: memref<256x128xbf16, #tpu.memory_space<vmem>>) attributes {dimension_semantics = [#tpu.dimension_semantics<parallel>], iteration_bounds = array<i64: 2>, scalar_prefetch = 0 : i64, scratch_operands = 0 : i64, tpu.core_type = #tpu.core_type<tc>, window_params = [{transform_indices = @transform_0, window_bounds = array<i64: 256, 196>}, {pipeline_mode = #tpu.pipeline_mode<synchronous>, transform_indices = @transform_1, window_bounds = array<i64: 196, 1024>}, {pipeline_mode = #tpu.pipeline_mode<synchronous>, transform_indices = @transform_2, window_bounds = array<i64: 1, 1024>}, {pipeline_mode = #tpu.pipeline_mode<synchronous>, transform_indices = @transform_3, window_bounds = array<i64: 1024, 1024>}, {pipeline_mode = #tpu.pipeline_mode<synchronous>, transform_indices = @transform_4, window_bounds = array<i64: 1, 1024>}, {pipeline_mode = #tpu.pipeline_mode<synchronous>, transform_indices = @transform_5, window_bounds = array<i64: 1024, 128>}, {pipeline_mode = #tpu.pipeline_mode<synchronous>, transform_indices = @transform_6, window_bounds = array<i64: 1, 128>}, {transform_indices = @transform_7, window_bounds = array<i64: 256, 128>}]} {
    %c0 = arith.constant 0 : index
    %c0_0 = arith.constant 0 : index
    %0 = vector.load %arg1[%c0, %c0_0] : memref<256x196xbf16, #tpu.memory_space<vmem>>, vector<256x196xbf16>
    %c0_1 = arith.constant 0 : index
    %c0_2 = arith.constant 0 : index
    %1 = vector.load %arg2[%c0_1, %c0_2] : memref<196x1024xbf16, #tpu.memory_space<vmem>>, vector<196x1024xbf16>
    %cst = arith.constant dense<0.000000e+00> : vector<256x1024xf32>
    %2 = tpu.matmul %0, %1, %cst {dimension_numbers = #tpu.dot_dimension_numbers<[1], [0], [0], [1], [0, 0, 1, 1], [], []>} : vector<256x196xbf16>, vector<196x1024xbf16>, vector<256x1024xf32> -> vector<256x1024xf32>
    %3 = arith.truncf %2 : vector<256x1024xf32> to vector<256x1024xbf16>
    %c0_3 = arith.constant 0 : index
    %c0_4 = arith.constant 0 : index
    %4 = vector.load %arg3[%c0_3, %c0_4] : memref<1x1024xbf16, #tpu.memory_space<vmem>>, vector<1x1024xbf16>
    %5 = vector.broadcast %4 : vector<1x1024xbf16> to vector<256x1024xbf16>
    %6 = arith.addf %3, %5 : vector<256x1024xbf16>
    %cst_5 = arith.constant 0.000000e+00 : bf16
    %7 = vector.broadcast %cst_5 : bf16 to vector<256x1024xbf16>
    %8 = arith.maximumf %6, %7 : vector<256x1024xbf16>
    %c0_6 = arith.constant 0 : index
    %c0_7 = arith.constant 0 : index
    %9 = vector.load %arg4[%c0_6, %c0_7] : memref<1024x1024xbf16, #tpu.memory_space<vmem>>, vector<1024x1024xbf16>
    %cst_8 = arith.constant dense<0.000000e+00> : vector<256x1024xf32>
    %10 = tpu.matmul %8, %9, %cst_8 {dimension_numbers = #tpu.dot_dimension_numbers<[1], [0], [0], [1], [0, 0, 1, 1], [], []>} : vector<256x1024xbf16>, vector<1024x1024xbf16>, vector<256x1024xf32> -> vector<256x1024xf32>
    %11 = arith.truncf %10 : vector<256x1024xf32> to vector<256x1024xbf16>
    %c0_9 = arith.constant 0 : index
    %c0_10 = arith.constant 0 : index
    %12 = vector.load %arg5[%c0_9, %c0_10] : memref<1x1024xbf16, #tpu.memory_space<vmem>>, vector<1x1024xbf16>
    %13 = vector.broadcast %12 : vector<1x1024xbf16> to vector<256x1024xbf16>
    %14 = arith.addf %11, %13 : vector<256x1024xbf16>
    %cst_11 = arith.constant 0.000000e+00 : bf16
    %15 = vector.broadcast %cst_11 : bf16 to vector<256x1024xbf16>
    %16 = arith.maximumf %14, %15 : vector<256x1024xbf16>
    %c0_12 = arith.constant 0 : index
    %c0_13 = arith.constant 0 : index
    %17 = vector.load %arg6[%c0_12, %c0_13] : memref<1024x128xbf16, #tpu.memory_space<vmem>>, vector<1024x128xbf16>
    %cst_14 = arith.constant dense<0.000000e+00> : vector<256x128xf32>
    %18 = tpu.matmul %16, %17, %cst_14 {dimension_numbers = #tpu.dot_dimension_numbers<[1], [0], [0], [1], [0, 0, 1, 1], [], []>} : vector<256x1024xbf16>, vector<1024x128xbf16>, vector<256x128xf32> -> vector<256x128xf32>
    %c0_15 = arith.constant 0 : index
    %c0_16 = arith.constant 0 : index
    %19 = vector.load %arg7[%c0_15, %c0_16] : memref<1x128xf32, #tpu.memory_space<vmem>>, vector<1x128xf32>
    %20 = vector.broadcast %19 : vector<1x128xf32> to vector<256x128xf32>
    %21 = arith.addf %18, %20 : vector<256x128xf32>
    %22 = arith.truncf %21 : vector<256x128xf32> to vector<256x128xbf16>
    %c0_17 = arith.constant 0 : index
    %c0_18 = arith.constant 0 : index
    %23 = vector.load %arg8[%c0_17, %c0_18] : memref<256x128xbf16, #tpu.memory_space<vmem>>, vector<256x128xbf16>
    tpu.vector_store %arg8[%c0_17, %c0_18], %22 {strides = array<i32>} : memref<256x128xbf16, #tpu.memory_space<vmem>>, vector<256x128xbf16>,
    return
  }
  func.func @transform_0(%arg0: i32) -> (i32, i32) {
    %c0_i32 = arith.constant 0 : i32
    %c0_i32_0 = arith.constant 0 : i32
    return %arg0, %c0_i32 : i32, i32
  }
  func.func @transform_1(%arg0: i32) -> (i32, i32) {
    %c0_i32 = arith.constant 0 : i32
    %c0_i32_0 = arith.constant 0 : i32
    %c0_i32_1 = arith.constant 0 : i32
    return %c0_i32, %c0_i32_0 : i32, i32
  }
  func.func @transform_2(%arg0: i32) -> (i32, i32) {
    %c0_i32 = arith.constant 0 : i32
    %c0_i32_0 = arith.constant 0 : i32
    %c0_i32_1 = arith.constant 0 : i32
    return %c0_i32, %c0_i32_0 : i32, i32
  }
  func.func @transform_3(%arg0: i32) -> (i32, i32) {
    %c0_i32 = arith.constant 0 : i32
    %c0_i32_0 = arith.constant 0 : i32
    %c0_i32_1 = arith.constant 0 : i32
    return %c0_i32, %c0_i32_0 : i32, i32
  }
  func.func @transform_4(%arg0: i32) -> (i32, i32) {
    %c0_i32 = arith.constant 0 : i32
    %c0_i32_0 = arith.constant 0 : i32
    %c0_i32_1 = arith.constant 0 : i32
    return %c0_i32, %c0_i32_0 : i32, i32
  }
  func.func @transform_5(%arg0: i32) -> (i32, i32) {
    %c0_i32 = arith.constant 0 : i32
    %c0_i32_0 = arith.constant 0 : i32
    %c0_i32_1 = arith.constant 0 : i32
    return %c0_i32, %c0_i32_0 : i32, i32
  }
  func.func @transform_6(%arg0: i32) -> (i32, i32) {
    %c0_i32 = arith.constant 0 : i32
    %c0_i32_0 = arith.constant 0 : i32
    %c0_i32_1 = arith.constant 0 : i32
    return %c0_i32, %c0_i32_0 : i32, i32
  }
  func.func @transform_7(%arg0: i32) -> (i32, i32) {
    %c0_i32 = arith.constant 0 : i32
    %c0_i32_0 = arith.constant 0 : i32
    return %arg0, %c0_i32 : i32, i32
  }
}

</mosaic_0001>

<bundles_post_ra>
// kernel: tpu_custom_call.1
= control target key start
LH: loop header
LB: loop body
LE: loop exit
PB: predicated region body
PF: predicated region fallthrough
CT: control target
= control target key end

     0   :  { %12 = vsyncpa [#allocation3], 0  ;;  %s17489_s0 = inlined_call_operand.vmem [shape: bf16[512,196], index: 0, kind: input, shape index: {}]   ;;  %s17490_s1 = inlined_call_operand.hbm [shape: bf16[196,1024], index: 1, kind: input, shape index: {}]   ;;  %s17491_s2 = inlined_call_operand.hbm [shape: bf16[1,1024], index: 2, kind: input, shape index: {}]   ;;  %s17492_s3 = inlined_call_operand.hbm [shape: bf16[1024,1024], index: 3, kind: input, shape index: {}]   ;;  %s17493_s4 = inlined_call_operand.hbm [shape: bf16[1,1024], index: 4, kind: input, shape index: {}]   ;;  %s17494_s5 = inlined_call_operand.hbm [shape: bf16[1024,128], index: 5, kind: input, shape index: {}]   ;;  %s17495_s6 = inlined_call_operand.hbm [shape: f32[1,128], index: 6, kind: input, shape index: {}]   ;;  %s17496_s7 = inlined_call_operand.hbm [shape: bf16[512,128], index: 7, kind: output, shape index: {}]  }
   0x1   :  { %13 = vsyncpa [#allocation6], 0 }
   0x2   :  { %14 = vsyncpa [#allocation9], 0 }
   0x3   :  { %15 = vsyncpa [#allocation12], 0 }
   0x4   :  { %16 = vsyncpa [#allocation4], 0 }
   0x5   :  { %18 = vsyncpa [#allocation4 + $0x1], 0  ;;  %s12526_s24 = smov 0   ;;  %s12528_s25 = smov 0  }
   0x6   :  { %s12530_s26 = smov 0   ;;  %s12532_s27 = smov 0  }
   0x7 LB: > { %s12547_s28 = sadd.s32 4294967295, %s12469_s27   ;;  %s10589_s29 = sadd.s32 4294967294, %s12469_s27   ;;  %s12469_s27 = sphi %s12532_s27, %s19381_s27   ;;  %s12465_s26 = sphi %s12530_s26, %s19380_s26   ;;  %s12461_s25 = sphi %s12528_s25, %s19379_s25   ;;  %s12457_s24 = sphi %s12526_s24, %s19378_s24  }
   0x8   : > { %s12551_s30 = sadd.s32 1, %s12469_s27   ;;  %s183_s8 = sadd.s32 1, %s12465_s26 }
   0x9   : > { %s180_s9 = ssub.s32 %s12469_s27, %s12551_s30  ;;  %p193_p0 = scmp.ne.s32.totalorder %s12465_s26, %s12461_s25 }
   0xa   : > { %p181_p1 = scmp.eq.s32.totalorder %s180_s9, 0  ;;  %p194_p2 = scmp.eq.s32.totalorder %s12547_s28, 1 }
   0xb   : > { %p199_p3 = scmp.ne.s32.totalorder %s12461_s25, %s12457_s24  ;;  %p200_p4 = scmp.eq.s32.totalorder %s10589_s29, 1 }
   0xc   : > { %s12562_s10 = scalar_select %p181_p1, %s12465_s26, %s183_s8  }
   0xd   : > { %p12564_p5 = por %p194_p2, %p193_p0  ;;  %p12568_p6 = por %p200_p4, %p199_p3 }
   0xe   : > { %p10590_p7 = scmp.ge.s32.totalorder %s12469_s27, 1  ;;  %p207_p8 = scmp.lt.s32.totalorder %s12469_s27, 3 }
   0xf   : > { %s17963_s11 = scalar_select %p12564_p5, 1, 0 }
  0x10   : > { %s17964_s12 = scalar_select %p12568_p6, 1, 0 }
  0x11   : > { %p17497_p9 = scmp.eq.s32.totalorder %s12547_s28, 0  ;;  %p12575_p10 = pnand %p10590_p7, %p207_p8 }
  0x12   : > { %s12471_s14 = smov [#allocation5]   ;;  %s12472_s16 = smov [#allocation8]  }
  0x13   : > { %s17965_s13 = scalar_select %p12575_p10, 1, 0 }
  0x14   : > { %s233_s15 = sshll.u32 %s12471_s14, 4  ;;  %p12030_p11 = pneg %p12575_p10  ;;  %s234_s15 = int_to_ptr.vmem [resolvable:$true] %s233_s15 }
  0x15   : > { %s257_s17 = sshll.u32 %s12472_s16, 4  ;;  %s12473_s19 = smov [#allocation2]   ;;  %s258_s17 = int_to_ptr.vmem [resolvable:$true] %s257_s17 }
  0x16   : > { %p12583_p12 = pnand %p17497_p9, %p12030_p11  ;;  %s219_s20 = sshll.u32 %s12473_s19, 4  ;;  %s12587_s20 = int_to_ptr.vmem [resolvable:$true] %s219_s20 }
  0x17   : > { %s12248_s22 = scalar_lea.vmem %s234_s15, 128  ;;  %p12256_p3 = scmp.lt.s32.totalorder %s234_s15, %s234_s15 }
  0x18   : > { %p12591_p13 = pneg %p12583_p12  ;;  %p12249_p0 = scmp.ne.s32.totalorder %s234_s15, %s12248_s22 }
  0x19   : > { %p12257_p4 = scmp.lt.s32.totalorder %s12248_s22, %s12248_s22 }
  0x1a   : > { %p12251_p1 = pnand %p12249_p0, %p12591_p13 }
  0x1b   : > { %p12258_p7 = por %p12257_p4, %p12256_p3 }
  0x1c   : > { %p12252_p2 = pneg %p12251_p1 }
  0x1e   : > { %p12259_p8 = pnand %p12258_p7, %p12252_p2 }
  0x20   : > { %12262 = shalt.err (!%p12259_p8)
}
  0x21   : > { %12036 = dma.hbm_to_vmem [thread:$0]  (!%p12583_p12), %s17491_s2, 128, %s234_s15, [#allocation6]  }
  0x22   : > { %s12274_s8 = scalar_lea.vmem %s258_s17, 128  ;;  %p12282_p5 = scmp.lt.s32.totalorder %s258_s17, %s258_s17 }
  0x23   : > { %p12275_p11 = scmp.ne.s32.totalorder %s258_s17, %s12274_s8  ;;  %p12283_p0 = scmp.lt.s32.totalorder %s12274_s8, %s12274_s8 }
  0x25   : > { %p12277_p9 = pnand %p12275_p11, %p12591_p13  ;;  %p12284_p1 = por %p12283_p0, %p12282_p5 }
  0x27   : > { %p12278_p6 = pneg %p12277_p9 }
  0x29   : > { %p12285_p10 = pnand %p12284_p1, %p12278_p6 }
  0x2b   : > { %12288 = shalt.err (!%p12285_p10)
}
  0x2c   : > { %12042 = dma.hbm_to_vmem [thread:$0]  (!%p12583_p12), %s17493_s4, 128, %s258_s17, [#allocation9]  }
  0x2d   : > { %s12300_s15 = scalar_lea.vmem %s12587_s20, 12800  ;;  %p12308_p4 = scmp.lt.s32.totalorder %s12587_s20, %s12587_s20 }
  0x2e   : > { %p12301_p2 = scmp.ne.s32.totalorder %s12587_s20, %s12300_s15  ;;  %p12309_p5 = scmp.lt.s32.totalorder %s12300_s15, %s12300_s15 }
  0x30   : > { %p12303_p3 = pnand %p12301_p2, %p12591_p13  ;;  %p12310_p6 = por %p12309_p5, %p12308_p4 }
  0x32   : > { %p12304_p9 = pneg %p12303_p3 }
  0x34   : > { %p12311_p10 = pnand %p12310_p6, %p12304_p9 }
  0x36   : > { %12314 = shalt.err (!%p12311_p10)
}
  0x37   : > { %s12474_s16 = smov 512   ;;  %s12475_s19 = smov 32  }
  0x38   : > { %12033 = dma.hbm_to_vmem [thread:$0]  (!%p12583_p12), %s17490_s1, 12800, %s12587_s20, [#allocation3], %s12474_s16, %s12474_s16, %s12475_s19  }
  0x39   : > { %s12476_s17 = smov [#allocation7]   ;;  %s12477_s8 = smov [#allocation10]  }
  0x3a   : > { %s243_s29 = sshll.u32 %s12476_s17, 4  ;;  %s267_s9 = sshll.u32 %s12477_s8, 4  ;;  %s244_s29 = int_to_ptr.vmem [resolvable:$true] %s243_s29  ;;  %s268_s9 = int_to_ptr.vmem [resolvable:$true] %s267_s9 }
  0x3b   : > { %s12326_s14 = scalar_lea.vmem %s244_s29, 65536  ;;  %p12334_p0 = scmp.lt.s32.totalorder %s244_s29, %s244_s29 }
  0x3c   : > { %p12327_p7 = scmp.ne.s32.totalorder %s244_s29, %s12326_s14  ;;  %p12335_p1 = scmp.lt.s32.totalorder %s12326_s14, %s12326_s14 }
  0x3e   : > { %p12329_p8 = pnand %p12327_p7, %p12591_p13  ;;  %p12336_p2 = por %p12335_p1, %p12334_p0 }
  0x40   : > { %p12330_p11 = pneg %p12329_p8 }
  0x42   : > { %p12337_p3 = pnand %p12336_p2, %p12330_p11 }
  0x44   : > { %12340 = shalt.err (!%p12337_p3)
}
  0x45   : > { %12039 = dma.hbm_to_vmem [thread:$0]  (!%p12583_p12), %s17492_s3, 65536, %s244_s29, [#allocation6], %s12474_s16, %s12474_s16, %s12475_s19  }
  0x46   : > { %s12352_s20 = scalar_lea.vmem %s268_s9, 8192  ;;  %p12360_p6 = scmp.lt.s32.totalorder %s268_s9, %s268_s9 }
  0x47   : > { %p12353_p9 = scmp.ne.s32.totalorder %s268_s9, %s12352_s20  ;;  %p12361_p10 = scmp.lt.s32.totalorder %s12352_s20, %s12352_s20 }
  0x49   : > { %p12355_p4 = pnand %p12353_p9, %p12591_p13  ;;  %p12362_p7 = por %p12361_p10, %p12360_p6 }
  0x4b   : > { %p12356_p5 = pneg %p12355_p4 }
  0x4d   : > { %p12363_p8 = pnand %p12362_p7, %p12356_p5 }
  0x4f   : > { %12366 = shalt.err (!%p12363_p8)
}
  0x50   : > { %s12478_s23 = smov 64   ;;  %s12479_s17 = smov 4  }
  0x51   : > { %12045 = dma.hbm_to_vmem [thread:$0]  (!%p12583_p12), %s17494_s5, 8192, %s268_s9, [#allocation9], %s12478_s23, %s12478_s23, %s12479_s17  }
  0x52   : > { %s12480_s16 = smov [#allocation11]  }
  0x53   : > { %s281_s19 = sshll.u32 %s12480_s16, 4  ;;  %s282_s19 = int_to_ptr.vmem [resolvable:$true] %s281_s19 }
  0x54   : > { %s12378_s29 = scalar_lea.vmem %s282_s19, 16  ;;  %s12385_s15 = scalar_lea.vmem %s282_s19, 32 }
  0x55   : > { %p12379_p11 = scmp.ne.s32.totalorder %s282_s19, %s12378_s29  ;;  %p12386_p2 = scmp.lt.s32.totalorder %s282_s19, %s282_s19 }
  0x56   : > { %p12387_p3 = scmp.lt.s32.totalorder %s12385_s15, %s12378_s29 }
  0x57   : > { %p12381_p0 = pnand %p12379_p11, %p12591_p13 }
  0x58   : > { %p12388_p9 = por %p12387_p3, %p12386_p2 }
  0x59   : > { %p12382_p1 = pneg %p12381_p0 }
  0x5b   : > { %p12389_p4 = pnand %p12388_p9, %p12382_p1 }
  0x5d   : > { %12392 = shalt.err (!%p12389_p4)
}
  0x5e   : > { %12048 = dma.hbm_to_vmem [thread:$0]  (!%p12583_p12), %s17495_s6, 16, %s282_s19, [#allocation12]  }
  0x5f   : > { %p17968_p5 = scmp.ne.s32.totalorder %s17965_s13, 0 }
  0x61   : > { %304 = sbr.rel (%p17968_p5) target bundleno = 1946 (0x79a), region = 48 }
  0x66   : > { %p17969_p6 = scmp.eq.s32.totalorder %s12547_s28, 0 }
  0x68   : > { %12436 = dma.done.wait (%p17969_p6), [#allocation3], 12800   ;;  %p17970_p13 = pmov %p17969_p6 }
  0x69   : > { %p17971_p10 = pmov %p17969_p6 }
  0x6a   : > { %12438 = vsyncadd (%p17970_p13), [#allocation3], 4294954496 }
  0x6b   : > { %12440 = dma.done.wait (%p17971_p10), [#allocation6], 65664   ;;  %p17972_p7 = pmov %p17969_p6 }
  0x6c   : > { %p17973_p8 = pmov %p17969_p6 }
  0x6d   : > { %12442 = vsyncadd (%p17972_p7), [#allocation6], 4294901632 }
  0x6e   : > { %12444 = dma.done.wait (%p17973_p8), [#allocation9], 8320   ;;  %p17974_p12 = pmov %p17969_p6 }
  0x6f   : > { %p17975_p11 = pmov %p17969_p6 }
  0x70   : > { %12446 = vsyncadd (%p17974_p12), [#allocation9], 4294958976 }
  0x71   : > { %12448 = dma.done.wait (%p17975_p11), [#allocation12], 16   ;;  %p17976_p0 = pmov %p17969_p6 }
  0x72   : > { %v454_v0 = vld [vmem:[#allocation2 + $0x1c0] sm:$0xff]  ;;  %v455_v2 = vld [vmem:[#allocation2 + $0x1c8] sm:$0xff]  ;;  %s10606_s13 = sshll.u32 %s12547_s28, 5  ;;  %vm1142_vm0 = vcmask 556032   ;;  %vm1191_vm1 = vcmask 1041408   ;;  %s354_s8 = sand.u32 1, %s12461_s25  }
  0x73   : > { %12450 = vsyncadd (%p17976_p0), [#allocation12], 4294967280  ;;  %v458_v1 = vld [vmem:[#allocation2 + $0x1e0] sm:$0xff]  ;;  %v459_v4 = vld [vmem:[#allocation2 + $0x1e8] sm:$0xff]  ;;  %p12663_p1 = scmp.lt.s32.totalorder %s10606_s13, 63  ;;  %s10605_s14 = sshll.u32 %s354_s8, 7 }
  0x74   : > { %v10698_v3 = vcombine.high %v454_v0, %v458_v1  ;;  %v10697_v5 = vcombine.low %v454_v0, %v458_v1  ;;  %v446_v6 = vld [vmem:[#allocation2 + $0x180] sm:$0xff]  ;;  %v10700_v8 = vcombine.high %v455_v2, %v459_v4  ;;  %v10699_v9 = vcombine.low %v455_v2, %v459_v4  ;;  %v447_v11 = vld [vmem:[#allocation2 + $0x188] sm:$0xff]  ;;  %s17390_s16 = scalar_lea.vmem [#allocation13], %s10605_s14  ;;  %s11460_s19 = sshll.u32 %s12547_s28, 11 }
  0x75   : > { %v450_v7 = vld [vmem:[#allocation2 + $0x1a0] sm:$0xff]  ;;  %v451_v12 = vld [vmem:[#allocation2 + $0x1a8] sm:$0xff]  ;;  %s19383_s13 = smov (!%p12663_p1, %s10606_s13), 63  ;;  %s10467_s29 = sshll.u32 %s17390_s16, 4  ;;  %s17444_s29 = int_to_ptr.vmem [resolvable:$true] %s10467_s29 }
  0x76   : > { %v10690_v10 = vcombine.high %v446_v6, %v450_v7  ;;  %v438_v13 = vld [vmem:[#allocation2 + $0x140] sm:$0xff]  ;;  %1216 = vmatprep.subr.bf16.mxu0 %v10698_v3  ;;  %v10692_v14 = vcombine.high %v447_v11, %v451_v12  ;;  %v439_v16 = vld [vmem:[#allocation2 + $0x148] sm:$0xff]  ;;  %1409 = vmatprep.subr.bf16.mxu1 %v10700_v8  ;;  %v10689_v18 = vcombine.low %v446_v6, %v450_v7  ;;  %s11427_s21 = sshll.u32 %s19383_s13, 3  ;;  %s17442_s20 = scalar_lea.hbm %s17496_s7, %s11460_s19 }
  0x77   : > { %v442_v15 = vld [vmem:[#allocation2 + $0x160] sm:$0xff]  ;;  %v443_v17 = vld [vmem:[#allocation2 + $0x168] sm:$0xff]  ;;  %1217 = vmatpush1.bf16.msra.mxu0 %v10697_v5  ;;  %1410 = vmatpush1.bf16.msra.mxu1 %v10699_v9  ;;  %v10691_v19 = vcombine.low %v447_v11, %v451_v12  ;;  %s12674_s17 = scalar_lea.vmem %s17489_s0, %s11427_s21  ;;  %s17449_s13 = scalar_lea.sflag [#allocation4], %s354_s8 }
  0x78   : > { %1218 = vmatprep.subr.bf16.mxu0 %v10690_v10  ;;  %v10682_v20 = vcombine.high %v438_v13, %v442_v15  ;;  %1411 = vmatprep.subr.bf16.mxu1 %v10692_v14  ;;  %v10684_v21 = vcombine.high %v439_v16, %v443_v17  ;;  %v430_v22 = vld [vmem:[#allocation2 + $0x100] sm:$0xff]  ;;  %v431_v24 = vld [vmem:[#allocation2 + $0x108] sm:$0xff]  ;;  %v10681_v26 = vcombine.low %v438_v13, %v442_v15  ;;  %s12393_s18 = scalar_lea.vmem %s17444_s29, 2048  ;;  %p19376_p3 = scmp.ne.s32.totalorder %s17963_s11, 0 }
  0x79   : > { %v434_v23 = vld [vmem:[#allocation2 + $0x120] sm:$0xff]  ;;  %v435_v25 = vld [vmem:[#allocation2 + $0x128] sm:$0xff]  ;;  %v10683_v27 = vcombine.low %v439_v16, %v443_v17  ;;  %p12394_p2 = scmp.ne.s32.totalorder %s17444_s29, %s12393_s18  ;;  %s12483_s28 = smov [#allocation13]  }
  0x7a   : > { %v10674_v28 = vcombine.high %v430_v22, %v434_v23  ;;  %v10676_v29 = vcombine.high %v431_v24, %v435_v25  ;;  %v422_v30 = vld [vmem:[#allocation2 + $0xc0] sm:$0xff]  ;;  %v423_v32 = vld [vmem:[#allocation2 + $0xc8] sm:$0xff]  ;;  %v10673_v34 = vcombine.low %v430_v22, %v434_v23  ;;  %v10675_v35 = vcombine.low %v431_v24, %v435_v25  ;;  %s12397_s21 = sshll.u32 %s12483_s28, 4  ;;  %s12398_s21 = int_to_ptr.vmem [resolvable:$false] %s12397_s21 }
  0x7b   : > { %1219 = vmatpush1.bf16.msra.mxu0 %v10689_v18  ;;  %1412 = vmatpush1.bf16.msra.mxu1 %v10691_v19  ;;  %v426_v31 = vld [vmem:[#allocation2 + $0xe0] sm:$0xff]  ;;  %v427_v33 = vld [vmem:[#allocation2 + $0xe8] sm:$0xff]  ;;  %p12395_p9 = pnand %p12394_p2, %p19376_p3  ;;  %s12399_s9 = scalar_lea.vmem %s12398_s21, 4096 }
  0x7c   : > { %1220 = vmatprep.subr.bf16.mxu0 %v10682_v20  ;;  %1413 = vmatprep.subr.bf16.mxu1 %v10684_v21  ;;  %v10666_v36 = vcombine.high %v422_v30, %v426_v31  ;;  %v10668_v37 = vcombine.high %v423_v32, %v427_v33  ;;  %v414_v38 = vld [vmem:[#allocation2 + $0x80] sm:$0xff]  ;;  %v415_v40 = vld [vmem:[#allocation2 + $0x88] sm:$0xff]  ;;  %v10665_v42 = vcombine.low %v422_v30, %v426_v31  ;;  %p12400_p5 = scmp.lt.s32.totalorder %s17444_s29, %s12398_s21  ;;  %p12401_p6 = scmp.lt.s32.totalorder %s12399_s9, %s12393_s18 }
  0x7d   : > { %v418_v39 = vld [vmem:[#allocation2 + $0xa0] sm:$0xff]  ;;  %v419_v41 = vld [vmem:[#allocation2 + $0xa8] sm:$0xff]  ;;  %v10667_v43 = vcombine.low %v423_v32, %v427_v33  ;;  %p12396_p4 = pneg %p12395_p9 }
  0x7e   : > { %v10658_v44 = vcombine.high %v414_v38, %v418_v39  ;;  %v12116_v45 = vld [vmem:[%s12674_s17 + $0x4] ss:$8 sps:$4 sm:$0xff]   ;;  %v10660_v46 = vcombine.high %v415_v40, %v419_v41  ;;  %v10657_v51 = vcombine.low %v414_v38, %v418_v39  ;;  %v10659_v52 = vcombine.low %v415_v40, %v419_v41  ;;  %v456_v39 = vld [vmem:[#allocation2 + $0x1d0] sm:$0xff]  ;;  %v457_v41 = vld [vmem:[#allocation2 + $0x1d8] sm:$0xff]  ;;  %p12402_p13 = por %p12401_p6, %p12400_p5 }
  0x7f   : > { %1221 = vmatpush1.bf16.msra.mxu0 %v10681_v26  ;;  %1414 = vmatpush1.bf16.msra.mxu1 %v10683_v27  ;;  %v406_v47 = vld [vmem:[#allocation2 + $0x40] sm:$0xff]  ;;  %v407_v49 = vld [vmem:[#allocation2 + $0x48] sm:$0xff]  ;;  %v460_v40 = vld [vmem:[#allocation2 + $0x1f0] sm:$0xff] }
  0x80   : > { %1222 = vmatprep.subr.bf16.mxu0 %v10674_v28  ;;  %1415 = vmatprep.subr.bf16.mxu1 %v10676_v29  ;;  %v410_v48 = vld [vmem:[#allocation2 + $0x60] sm:$0xff]  ;;  %v411_v50 = vld [vmem:[#allocation2 + $0x68] sm:$0xff]  ;;  %p12403_p10 = pnand %p12402_p13, %p12396_p4 }
  0x81   : > { %10746 = vmatprep.mubr.msk.bf16.mxu0 %vm1142_vm0, %v12116_v45  ;;  %10763 = vmatprep.mubr.msk.bf16.mxu1 %vm1142_vm0, %v12116_v45  ;;  %v10650_v53 = vcombine.high %v406_v47, %v410_v48  ;;  %v398_v54 = vld [vmem:[#allocation2] sm:$0xff]  ;;  %v10652_v55 = vcombine.high %v407_v49, %v411_v50  ;;  %v399_v57 = vld [vmem:[#allocation2 + $0x8] sm:$0xff]  ;;  %v10649_v59 = vcombine.low %v406_v47, %v410_v48  ;;  %v448_v48 = vld [vmem:[#allocation2 + $0x190] sm:$0xff] }
  0x82   : > { %v402_v56 = vld [vmem:[#allocation2 + $0x20] sm:$0xff]  ;;  %v403_v58 = vld [vmem:[#allocation2 + $0x28] sm:$0xff]  ;;  %v10651_v60 = vcombine.low %v407_v49, %v411_v50  ;;  %v10702_v45 = vcombine.high %v456_v39, %v460_v40  ;;  %v452_v49 = vld [vmem:[#allocation2 + $0x1b0] sm:$0xff] }
  0x83   : > { %1223 = vmatpush1.bf16.msra.mxu0 %v10673_v34  ;;  %1416 = vmatpush1.bf16.msra.mxu1 %v10675_v35  ;;  %v10642_v61 = vcombine.high %v398_v54, %v402_v56  ;;  %v10644_v62 = vcombine.high %v399_v57, %v403_v58  ;;  %v494_v63 = vld [vmem:[#allocation2 + $0x300] sm:$0x33]  ;;  %v495_v0 = vld [vmem:[#allocation2 + $0x308] sm:$0x33]  ;;  %v10641_v1 = vcombine.low %v398_v54, %v402_v56  ;;  %v449_v50 = vld [vmem:[#allocation2 + $0x198] sm:$0xff] }
  0x84   : > { %1224 = vmatprep.subr.bf16.mxu0 %v10666_v36  ;;  %1417 = vmatprep.subr.bf16.mxu1 %v10668_v37  ;;  %v10643_v2 = vcombine.low %v399_v57, %v403_v58  ;;  %v10738_v3 = vcombine.high %v494_v63, %v494_v63  ;;  %v10737_v4 = vcombine.low %v494_v63, %v494_v63  ;;  %v486_v7 = vld [vmem:[#allocation2 + $0x2c0] sm:$0xff]  ;;  %v487_v9 = vld [vmem:[#allocation2 + $0x2c8] sm:$0xff]  ;;  %v12687_v54 = vld [vmem:[%s12674_s17 + $0x14] ss:$8 sps:$4 sm:$0xff]  }
  0x85   : > { %v10740_v5 = vcombine.high %v495_v0, %v495_v0  ;;  %v10739_v6 = vcombine.low %v495_v0, %v495_v0  ;;  %v490_v8 = vld [vmem:[#allocation2 + $0x2e0] sm:$0xff]  ;;  %v491_v10 = vld [vmem:[#allocation2 + $0x2e8] sm:$0xff]  ;;  %v444_v56 = vld [vmem:[#allocation2 + $0x170] sm:$0xff]  ;;  %v10694_v57 = vcombine.high %v448_v48, %v452_v49 }
  0x86   : > { %v1193_v11 = vsel %vm1191_vm1, %v10737_v4, 0  ;;  %v10730_v12 = vcombine.high %v486_v7, %v490_v8  ;;  %v478_v13 = vld [vmem:[#allocation2 + $0x280] sm:$0xff]  ;;  %v10732_v15 = vcombine.high %v487_v9, %v491_v10  ;;  %v479_v17 = vld [vmem:[#allocation2 + $0x288] sm:$0xff]  ;;  %v10729_v19 = vcombine.low %v486_v7, %v490_v8  ;;  %v441_v58 = vld [vmem:[#allocation2 + $0x158] sm:$0xff] }
  0x87   : > { %1225 = vmatpush1.bf16.msra.mxu0 %v10665_v42  ;;  %1418 = vmatpush1.bf16.msra.mxu1 %v10667_v43  ;;  %v1199_v14 = vsel %vm1191_vm1, %v10739_v6, 0  ;;  %v482_v16 = vld [vmem:[#allocation2 + $0x2a0] sm:$0xff]  ;;  %v483_v18 = vld [vmem:[#allocation2 + $0x2a8] sm:$0xff]  ;;  %v10731_v20 = vcombine.low %v487_v9, %v491_v10  ;;  %v461_v42 = vld [vmem:[#allocation2 + $0x1f8] sm:$0xff] }
  0x88   : > { %1226 = vmatprep.subr.bf16.mxu0 %v10658_v44  ;;  %1419 = vmatprep.subr.bf16.mxu1 %v10660_v46  ;;  %v10722_v21 = vcombine.high %v478_v13, %v482_v16  ;;  %v10724_v22 = vcombine.high %v479_v17, %v483_v18  ;;  %v470_v23 = vld [vmem:[#allocation2 + $0x240] sm:$0xff]  ;;  %v471_v25 = vld [vmem:[#allocation2 + $0x248] sm:$0xff]  ;;  %v10721_v27 = vcombine.low %v478_v13, %v482_v16  ;;  %v432_v4 = vld [vmem:[#allocation2 + $0x110] sm:$0xff] }
  0x89   : > { %v474_v24 = vld [vmem:[#allocation2 + $0x260] sm:$0xff]  ;;  %v475_v26 = vld [vmem:[#allocation2 + $0x268] sm:$0xff]  ;;  %v10723_v28 = vcombine.low %v479_v17, %v483_v18  ;;  %v10704_v47 = vcombine.high %v457_v41, %v461_v42  ;;  %v433_v10 = vld [vmem:[#allocation2 + $0x118] sm:$0xff] }
  0x8a   : > { %v10714_v29 = vcombine.high %v470_v23, %v474_v24  ;;  %v10716_v30 = vcombine.high %v471_v25, %v475_v26  ;;  %v462_v31 = vld [vmem:[#allocation2 + $0x200] sm:$0xff]  ;;  %v463_v33 = vld [vmem:[#allocation2 + $0x208] sm:$0xff]  ;;  %v10713_v35 = vcombine.low %v470_v23, %v474_v24  ;;  %v10715_v36 = vcombine.low %v471_v25, %v475_v26  ;;  %v416_v23 = vld [vmem:[#allocation2 + $0x90] sm:$0xff] }
  0x8b   : > { %1227 = vmatpush1.bf16.msra.mxu0 %v10657_v51  ;;  %1420 = vmatpush1.bf16.msra.mxu1 %v10659_v52  ;;  %v466_v32 = vld [vmem:[#allocation2 + $0x220] sm:$0xff]  ;;  %v467_v34 = vld [vmem:[#allocation2 + $0x228] sm:$0xff]  ;;  %v10701_v51 = vcombine.low %v456_v39, %v460_v40  ;;  %v453_v52 = vld [vmem:[#allocation2 + $0x1b8] sm:$0xff] }
  0x8c   : > { %1228 = vmatprep.subr.bf16.mxu0 %v10650_v53  ;;  %1421 = vmatprep.subr.bf16.mxu1 %v10652_v55  ;;  %v10706_v37 = vcombine.high %v462_v31, %v466_v32  ;;  %v10708_v38 = vcombine.high %v463_v33, %v467_v34  ;;  %v10705_v43 = vcombine.low %v462_v31, %v466_v32  ;;  %v12684_v46 = vld [vmem:[%s12674_s17] ss:$8 sps:$4 sm:$0xff]   ;;  %v440_v55 = vld [vmem:[#allocation2 + $0x150] sm:$0xff]  ;;  %v12709_v8 = vld [vmem:[%s12674_s17 + $0x24] ss:$8 sps:$4 sm:$0xff]  }
  0x8d   : > { %v10707_v44 = vcombine.low %v463_v33, %v467_v34  ;;  %v10703_v53 = vcombine.low %v457_v41, %v461_v42  ;;  %v12693_v63 = vld [vmem:[#allocation7 + $0x1e0] sm:$0xff]  ;;  %v10685_v13 = vcombine.low %v440_v55, %v444_v56  ;;  %v420_v24 = vld [vmem:[#allocation2 + $0xb0] sm:$0xff] }
  0x8e   : > { %v12695_v0 = vld [vmem:[#allocation7 + $0x5c0] sm:$0xff]  ;;  %v12723_v25 = vld [vmem:[%s12674_s17 + $0x34] ss:$8 sps:$4 sm:$0xff]   ;;  %v12732_v40 = vld [vmem:[%s12674_s17 + $0x30] ss:$8 sps:$4 sm:$0xff]   ;;  %v10661_v41 = vcombine.low %v416_v23, %v420_v24 }
  0x8f   : > { %1229 = vmatpush1.bf16.msra.mxu0 %v10649_v59  ;;  %1422 = vmatpush1.bf16.msra.mxu1 %v10651_v60  ;;  %v445_v59 = vld [vmem:[#allocation2 + $0x178] sm:$0xff]  ;;  %v10696_v60 = vcombine.high %v449_v50, %v453_v52  ;;  %v12704_v7 = vld [vmem:[#allocation7 + $0x5e0] sm:$0xff]  ;;  %v408_v32 = vld [vmem:[#allocation2 + $0x50] sm:$0xff] }
  0x90   : > { %1230 = vmatprep.subr.bf16.mxu0 %v10642_v61  ;;  %1423 = vmatprep.subr.bf16.mxu1 %v10644_v62  ;;  %v10693_v61 = vcombine.low %v448_v48, %v452_v49  ;;  %v12691_v62 = vld [vmem:[#allocation7 + $0x1c0] sm:$0xff]  ;;  %v10688_v9 = vcombine.high %v441_v58, %v445_v59  ;;  %v10687_v16 = vcombine.low %v441_v58, %v445_v59  ;;  %v412_v33 = vld [vmem:[#allocation2 + $0x70] sm:$0xff]  ;;  %v401_v49 = vld [vmem:[#allocation2 + $0x18] sm:$0xff] }
  0x91   : > { %v10869_v6 = vcombine.low %v12691_v62, %v12693_v63  ;;  %v496_v39 = vld [vmem:[#allocation2 + $0x310] sm:$0x33]  ;;  %v10654_v48 = vcombine.high %v408_v32, %v412_v33 }
  0x92   : > { %v400_v42 = vld [vmem:[#allocation2 + $0x10] sm:$0xff] }
  0x93   : > { %1231 = vmatpush1.bf16.msra.mxu0 %v10641_v1  ;;  %1424 = vmatpush1.bf16.msra.mxu1 %v10643_v2  ;;  %v12700_v1 = vld [vmem:[%s12674_s17 + $0x10] ss:$8 sps:$4 sm:$0xff]   ;;  %v10695_v2 = vcombine.low %v449_v50, %v453_v52  ;;  %v10741_v52 = vcombine.low %v496_v39, %v496_v39 }
  0x94   : > { %10745 = vmatprep.subr.msk.bf16.mxu0 %vm1191_vm1, %v10738_v3  ;;  %10762 = vmatprep.subr.msk.bf16.mxu1 %vm1191_vm1, %v10740_v5  ;;  %v10686_v3 = vcombine.high %v440_v55, %v444_v56  ;;  %v436_v5 = vld [vmem:[#allocation2 + $0x130] sm:$0xff]  ;;  %v405_v50 = vld [vmem:[#allocation2 + $0x38] sm:$0xff] }
  0x95   : > { %v10678_v17 = vcombine.high %v432_v4, %v436_v5  ;;  %v10648_v58 = vcombine.high %v401_v49, %v405_v50  ;;  %v1205_v59 = vsel %vm1191_vm1, %v10741_v52, 0  ;;  %v10870_v52 = vcombine.high %v12691_v62, %v12693_v63  ;;  %v12903_v62 = vld [vmem:[#allocation7 + $0x9c0] sm:$0xff] }
  0x96   : > { %v12905_v63 = vld [vmem:[#allocation7 + $0x9e0] sm:$0xff] }
  0x97   : > { %1239 = vmatpush2.bf16.msra.mxu0 %v1193_v11  ;;  %1432 = vmatpush2.bf16.msra.mxu1 %v1199_v14  ;;  %v437_v11 = vld [vmem:[#allocation2 + $0x138] sm:$0xff]  ;;  %v424_v14 = vld [vmem:[#allocation2 + $0xd0] sm:$0xff] }
  0x98   : > { %1240 = vmatprep.subr.bf16.mxu0 %v10730_v12  ;;  %1433 = vmatprep.subr.bf16.mxu1 %v10732_v15  ;;  %v10997_v12 = vcombine.low %v12695_v0, %v12704_v7  ;;  %v428_v15 = vld [vmem:[#allocation2 + $0xf0] sm:$0xff]  ;;  %v10680_v18 = vcombine.high %v433_v10, %v437_v11  ;;  %v10679_v26 = vcombine.low %v433_v10, %v437_v11  ;;  %v489_v11 = vld [vmem:[#allocation2 + $0x2d8] sm:$0xff] }
  0x99   : > { %v10669_v31 = vcombine.low %v424_v14, %v428_v15  ;;  %v10742_v10 = vcombine.high %v496_v39, %v496_v39  ;;  %v465_v39 = vld [vmem:[#allocation2 + $0x218] sm:$0xff] }
  0x9b   : > { %1241 = vmatpush2.bf16.msra.mxu0 %v10729_v19  ;;  %1434 = vmatpush2.bf16.msra.mxu1 %v10731_v20  ;;  %v425_v19 = vld [vmem:[#allocation2 + $0xd8] sm:$0xff] }
  0x9c   : > { %1242 = vmatprep.subr.bf16.mxu0 %v10722_v21  ;;  %1435 = vmatprep.subr.bf16.mxu1 %v10724_v22  ;;  %v429_v20 = vld [vmem:[#allocation2 + $0xf8] sm:$0xff]  ;;  %v12720_v21 = vld [vmem:[%s12674_s17 + $0x20] ss:$8 sps:$4 sm:$0xff]   ;;  %v10677_v22 = vcombine.low %v432_v4, %v436_v5  ;;  %v492_v4 = vld [vmem:[#allocation2 + $0x2f0] sm:$0xff] }
  0x9d   : > { %v10671_v34 = vcombine.low %v425_v19, %v429_v20  ;;  %v12749_v5 = vld [vmem:[%s12674_s17 + $0x54] ss:$8 sps:$4 sm:$0xff]  }
  0x9f   : > { %1243 = vmatpush2.bf16.msra.mxu0 %v10721_v27  ;;  %1436 = vmatpush2.bf16.msra.mxu1 %v10723_v28  ;;  %v10670_v27 = vcombine.high %v424_v14, %v428_v15  ;;  %v417_v28 = vld [vmem:[#allocation2 + $0x98] sm:$0xff]  ;;  %v480_v15 = vld [vmem:[#allocation2 + $0x290] sm:$0xff] }
  0xa0   : > { %1244 = vmatprep.subr.bf16.mxu0 %v10714_v29  ;;  %1437 = vmatprep.subr.bf16.mxu1 %v10716_v30  ;;  %v421_v29 = vld [vmem:[#allocation2 + $0xb8] sm:$0xff]  ;;  %v10672_v30 = vcombine.high %v425_v19, %v429_v20 }
  0xa1   : > { %v481_v19 = vld [vmem:[#allocation2 + $0x298] sm:$0xff] }
  0xa2   : > { %v485_v20 = vld [vmem:[#allocation2 + $0x2b8] sm:$0xff] }
  0xa3   : > { %1245 = vmatpush2.bf16.msra.mxu0 %v10713_v35  ;;  %1438 = vmatpush2.bf16.msra.mxu1 %v10715_v36  ;;  %v10662_v35 = vcombine.high %v416_v23, %v420_v24  ;;  %v10664_v36 = vcombine.high %v417_v28, %v421_v29  ;;  %v472_v24 = vld [vmem:[#allocation2 + $0x250] sm:$0xff] }
  0xa4   : > { %1246 = vmatprep.subr.bf16.mxu0 %v10706_v37  ;;  %1439 = vmatprep.subr.bf16.mxu1 %v10708_v38  ;;  %v409_v37 = vld [vmem:[#allocation2 + $0x58] sm:$0xff] }
  0xa5   : > { %v413_v38 = vld [vmem:[#allocation2 + $0x78] sm:$0xff] }
  0xa6   : > { %v10655_v56 = vcombine.low %v409_v37, %v413_v38 }
  0xa7   : > { %1247 = vmatpush2.bf16.msra.mxu0 %v10705_v43  ;;  %1440 = vmatpush2.bf16.msra.mxu1 %v10707_v44  ;;  %v404_v43 = vld [vmem:[#allocation2 + $0x30] sm:$0xff]  ;;  %v497_v44 = vld [vmem:[#allocation2 + $0x318] sm:$0x33] }
  0xa8   : > { %1602 = vmatprep.subr.bf16.mxu0 %v10702_v45  ;;  %1795 = vmatprep.subr.bf16.mxu1 %v10704_v47  ;;  %v12735_v45 = vld [vmem:[%s12674_s17 + $0x44] ss:$8 sps:$4 sm:$0xff]   ;;  %v10663_v47 = vcombine.low %v417_v28, %v421_v29  ;;  %v10743_v55 = vcombine.low %v497_v44, %v497_v44  ;;  %v10744_v14 = vcombine.high %v497_v44, %v497_v44  ;;  %v12775_v44 = vld [vmem:[%s12674_s17 + $0x74] ss:$8 sps:$4 sm:$0xff]  }
  0xaa   : > { %1249 = vmatmul.mubr.bf16.vlgmr.msra.gmra.mxu0 %v12684_v46  ;;  %1442 = vmatmul.mubr.bf16.vlgmr.msra.gmra.mxu1 %v12684_v46 }
  0xab   : > { %1603 = vmatpush1.bf16.msra.mxu0 %v10701_v51  ;;  %1796 = vmatpush1.bf16.msra.mxu1 %v10703_v53  ;;  %v10656_v51 = vcombine.high %v409_v37, %v413_v38  ;;  %v10653_v53 = vcombine.low %v408_v32, %v412_v33  ;;  %v10728_v32 = vcombine.high %v481_v19, %v485_v20 }
  0xac   : > { %10747 = vmatprep.mubr.msk.bf16.mxu0 %vm1142_vm0, %v12687_v54  ;;  %10764 = vmatprep.mubr.msk.bf16.mxu1 %vm1142_vm0, %v12687_v54 }
  0xad   : > { %1604 = vmatprep.subr.bf16.mxu0 %v10694_v57  ;;  %1797 = vmatprep.subr.bf16.mxu1 %v10696_v60  ;;  %v10646_v57 = vcombine.high %v400_v42, %v404_v43  ;;  %v12745_v60 = vld [vmem:[%s12674_s17 + $0x40] ss:$8 sps:$4 sm:$0xff]  }
  0xaf   : > { %1605 = vmatpush1.bf16.msra.mxu0 %v10693_v61  ;;  %1798 = vmatpush1.bf16.msra.mxu1 %v10695_v2  ;;  %v10645_v61 = vcombine.low %v400_v42, %v404_v43  ;;  %v1211_v2 = vsel %vm1191_vm1, %v10743_v55, 0  ;;  %v12772_v42 = vld [vmem:[%s12674_s17 + $0x60] ss:$8 sps:$4 sm:$0xff]   ;;  %v12788_v55 = vld [vmem:[%s12674_s17 + $0x70] ss:$8 sps:$4 sm:$0xff]  }
  0xb0   : > { %1606 = vmatprep.subr.bf16.mxu0 %v10686_v3  ;;  %1799 = vmatprep.subr.bf16.mxu1 %v10688_v9  ;;  %v488_v3 = vld [vmem:[#allocation2 + $0x2d0] sm:$0xff]  ;;  %v10647_v9 = vcombine.low %v401_v49, %v405_v50 }
  0xb1   : > { %v10733_v23 = vcombine.low %v488_v3, %v492_v4 }
  0xb2   : > { %1259 = vmatmul.mubr.bf16.gmra.mxu0 %v12700_v1  ;;  %1452 = vmatmul.mubr.bf16.gmra.mxu1 %v12700_v1 }
  0xb3   : > { %10748 = vmatprep.mubr.msk.bf16.mxu0 %vm1142_vm0, %v12709_v8  ;;  %10765 = vmatprep.mubr.msk.bf16.mxu1 %vm1142_vm0, %v12709_v8 }
  0xb4   : > { %1607 = vmatpush1.bf16.msra.mxu0 %v10685_v13  ;;  %1800 = vmatpush1.bf16.msra.mxu1 %v10687_v16  ;;  %v493_v13 = vld [vmem:[#allocation2 + $0x2f8] sm:$0xff]  ;;  %v484_v16 = vld [vmem:[#allocation2 + $0x2b0] sm:$0xff] }
  0xb5   : > { %1608 = vmatprep.subr.bf16.mxu0 %v10678_v17  ;;  %1801 = vmatprep.subr.bf16.mxu1 %v10680_v18  ;;  %v10734_v17 = vcombine.high %v488_v3, %v492_v4  ;;  %v10736_v18 = vcombine.high %v489_v11, %v493_v13  ;;  %v10735_v28 = vcombine.low %v489_v11, %v493_v13  ;;  %v12827_v3 = vld [vmem:[%s12674_s17 + $0xb4] ss:$8 sps:$4 sm:$0xff]   ;;  %v12836_v4 = vld [vmem:[%s12674_s17 + $0xb0] ss:$8 sps:$4 sm:$0xff]  }
  0xb6   : > { %v10726_v29 = vcombine.high %v480_v15, %v484_v16  ;;  %v10725_v33 = vcombine.low %v480_v15, %v484_v16  ;;  %v12851_v11 = vld [vmem:[%s12674_s17 + $0xd4] ss:$8 sps:$4 sm:$0xff]   ;;  %v12860_v13 = vld [vmem:[%s12674_s17 + $0xd0] ss:$8 sps:$4 sm:$0xff]   ;;  %v12872_v15 = vld [vmem:[%s12674_s17 + $0xe0] ss:$8 sps:$4 sm:$0xff]  }
  0xb7   : > { %v12875_v16 = vld [vmem:[%s12674_s17 + $0xf4] ss:$8 sps:$4 sm:$0xff]  }
  0xb8   : > { %1609 = vmatpush1.bf16.msra.mxu0 %v10677_v22  ;;  %1802 = vmatpush1.bf16.msra.mxu1 %v10679_v26  ;;  %v12760_v22 = vld [vmem:[%s12674_s17 + $0x50] ss:$8 sps:$4 sm:$0xff]  }
  0xb9   : > { %1610 = vmatprep.subr.bf16.mxu0 %v10670_v27  ;;  %1803 = vmatprep.subr.bf16.mxu1 %v10672_v30  ;;  %v476_v26 = vld [vmem:[#allocation2 + $0x270] sm:$0xff]  ;;  %v12763_v27 = vld [vmem:[%s12674_s17 + $0x64] ss:$8 sps:$4 sm:$0xff]   ;;  %v473_v30 = vld [vmem:[#allocation2 + $0x258] sm:$0xff] }
  0xba   : > { %1269 = vmatmul.mubr.bf16.gmra.mxu0 %v12720_v21  ;;  %1462 = vmatmul.mubr.bf16.gmra.mxu1 %v12720_v21  ;;  %v10718_v37 = vcombine.high %v472_v24, %v476_v26  ;;  %v10717_v43 = vcombine.low %v472_v24, %v476_v26  ;;  %v2659_v24 = vld [vmem:[#allocation7 + $0x5a0] sm:$0xff] }
  0xbb   : > { %10749 = vmatprep.mubr.msk.bf16.mxu0 %vm1142_vm0, %v12723_v25  ;;  %10766 = vmatprep.mubr.msk.bf16.mxu1 %vm1142_vm0, %v12723_v25 }
  0xbc   : > { %1611 = vmatpush1.bf16.msra.mxu0 %v10669_v31  ;;  %1804 = vmatpush1.bf16.msra.mxu1 %v10671_v34  ;;  %v477_v31 = vld [vmem:[#allocation2 + $0x278] sm:$0xff]  ;;  %v464_v34 = vld [vmem:[#allocation2 + $0x210] sm:$0xff] }
  0xbd   : > { %1612 = vmatprep.subr.bf16.mxu0 %v10662_v35  ;;  %1805 = vmatprep.subr.bf16.mxu1 %v10664_v36  ;;  %v468_v35 = vld [vmem:[#allocation2 + $0x230] sm:$0xff]  ;;  %v10727_v36 = vcombine.low %v481_v19, %v485_v20  ;;  %v10720_v38 = vcombine.high %v473_v30, %v477_v31  ;;  %v2527_v19 = vld [vmem:[#allocation7 + $0x180] sm:$0xff] }
  0xbe   : > { %v10709_v50 = vcombine.low %v464_v34, %v468_v35  ;;  %v2531_v20 = vld [vmem:[#allocation7 + $0x1a0] sm:$0xff] }
  0xbf   : > { %v10862_v26 = vcombine.high %v2527_v19, %v2531_v20 }
  0xc0   : > { %1613 = vmatpush1.bf16.msra.mxu0 %v10661_v41  ;;  %1806 = vmatpush1.bf16.msra.mxu1 %v10663_v47  ;;  %v469_v41 = vld [vmem:[#allocation2 + $0x238] sm:$0xff]  ;;  %v10719_v47 = vcombine.low %v473_v30, %v477_v31  ;;  %v2647_v31 = vld [vmem:[#allocation7 + $0x540] sm:$0xff] }
  0xc1   : > { %1614 = vmatprep.subr.bf16.mxu0 %v10654_v48  ;;  %1807 = vmatprep.subr.bf16.mxu1 %v10656_v51  ;;  %v10710_v48 = vcombine.high %v464_v34, %v468_v35  ;;  %v10712_v49 = vcombine.high %v465_v39, %v469_v41  ;;  %v10711_v51 = vcombine.low %v465_v39, %v469_v41 }
  0xc2   : > { %1279 = vmatmul.mubr.bf16.gmra.mxu0 %v12732_v40  ;;  %1472 = vmatmul.mubr.bf16.gmra.mxu1 %v12732_v40 }
  0xc3   : > { %10750 = vmatprep.mubr.msk.bf16.mxu0 %vm1142_vm0, %v12735_v45  ;;  %10767 = vmatprep.mubr.msk.bf16.mxu1 %vm1142_vm0, %v12735_v45 }
  0xc4   : > { %1615 = vmatpush1.bf16.msra.mxu0 %v10653_v53  ;;  %1808 = vmatpush1.bf16.msra.mxu1 %v10655_v56  ;;  %v10998_v53 = vcombine.high %v12695_v0, %v12704_v7  ;;  %v12791_v56 = vld [vmem:[%s12674_s17 + $0x84] ss:$8 sps:$4 sm:$0xff]  }
  0xc5   : > { %1616 = vmatprep.subr.bf16.mxu0 %v10646_v57  ;;  %1809 = vmatprep.subr.bf16.mxu1 %v10648_v58  ;;  %v12800_v57 = vld [vmem:[%s12674_s17 + $0x80] ss:$8 sps:$4 sm:$0xff]   ;;  %v12803_v58 = vld [vmem:[%s12674_s17 + $0x94] ss:$8 sps:$4 sm:$0xff]  }
  0xc6   : > { %v2639_v0 = vld [vmem:[#allocation7 + $0x500] sm:$0xff] }
  0xc7   : > { %v2643_v7 = vld [vmem:[#allocation7 + $0x520] sm:$0xff] }
  0xc8   : > { %1617 = vmatpush1.bf16.msra.mxu0 %v10645_v61  ;;  %1810 = vmatpush1.bf16.msra.mxu1 %v10647_v9  ;;  %v12815_v61 = vld [vmem:[%s12674_s17 + $0xa4] ss:$8 sps:$4 sm:$0xff]  }
  0xc9   : > { %10779 = vmatprep.subr.msk.bf16.mxu0 %vm1191_vm1, %v10742_v10  ;;  %10796 = vmatprep.subr.msk.bf16.mxu1 %vm1191_vm1, %v10744_v14  ;;  %v12839_v9 = vld [vmem:[%s12674_s17 + $0xc4] ss:$8 sps:$4 sm:$0xff]   ;;  %v12848_v10 = vld [vmem:[%s12674_s17 + $0xc0] ss:$8 sps:$4 sm:$0xff]  }
  0xca   : > { %1289 = vmatmul.mubr.bf16.gmra.mxu0 %v12745_v60  ;;  %1482 = vmatmul.mubr.bf16.gmra.mxu1 %v12745_v60  ;;  %v12863_v14 = vld [vmem:[%s12674_s17 + $0xe4] ss:$8 sps:$4 sm:$0xff]  }
  0xcb   : > { %10751 = vmatprep.mubr.msk.bf16.mxu0 %vm1142_vm0, %v12749_v5  ;;  %10768 = vmatprep.mubr.msk.bf16.mxu1 %vm1142_vm0, %v12749_v5 }
  0xcc   : > { %1625 = vmatpush2.bf16.msra.mxu0 %v1205_v59  ;;  %1818 = vmatpush2.bf16.msra.mxu1 %v1211_v2  ;;  %v12812_v59 = vld [vmem:[%s12674_s17 + $0x90] ss:$8 sps:$4 sm:$0xff]   ;;  %v12824_v2 = vld [vmem:[%s12674_s17 + $0xa0] ss:$8 sps:$4 sm:$0xff]  }
  0xcd   : > { %1626 = vmatprep.subr.bf16.mxu0 %v10734_v17  ;;  %1819 = vmatprep.subr.bf16.mxu1 %v10736_v18  ;;  %v12884_v17 = vld [vmem:[%s12674_s17 + $0xf0] ss:$8 sps:$4 sm:$0xff]   ;;  %v12234_v18 = vld [vmem:[%s12674_s17 + $0x4] ss:$8 sps:$4 sm:$0xff]  }
  0xd0   : > { %1627 = vmatpush2.bf16.msra.mxu0 %v10733_v23  ;;  %1820 = vmatpush2.bf16.msra.mxu1 %v10735_v28  ;;  %v2655_v23 = vld [vmem:[#allocation7 + $0x580] sm:$0xff] }
  0xd1   : > { %1628 = vmatprep.subr.bf16.mxu0 %v10726_v29  ;;  %1821 = vmatprep.subr.bf16.mxu1 %v10728_v32  ;;  %v2519_v28 = vld [vmem:[#allocation7 + $0x140] sm:$0xff]  ;;  %v10990_v30 = vcombine.high %v2655_v23, %v2659_v24  ;;  %v10989_v34 = vcombine.low %v2655_v23, %v2659_v24 }
  0xd2   : > { %1299 = vmatmul.mubr.bf16.gmra.mxu0 %v12760_v22  ;;  %1492 = vmatmul.mubr.bf16.gmra.mxu1 %v12760_v22  ;;  %v2523_v29 = vld [vmem:[#allocation7 + $0x160] sm:$0xff] }
  0xd3   : > { %10752 = vmatprep.mubr.msk.bf16.mxu0 %vm1142_vm0, %v12763_v27  ;;  %10769 = vmatprep.mubr.msk.bf16.mxu1 %vm1142_vm0, %v12763_v27  ;;  %v2651_v32 = vld [vmem:[#allocation7 + $0x560] sm:$0xff]  ;;  %v10854_v35 = vcombine.high %v2519_v28, %v2523_v29 }
  0xd4   : > { %1629 = vmatpush2.bf16.msra.mxu0 %v10725_v33  ;;  %1822 = vmatpush2.bf16.msra.mxu1 %v10727_v36  ;;  %v10861_v33 = vcombine.low %v2527_v19, %v2531_v20  ;;  %v10982_v36 = vcombine.high %v2647_v31, %v2651_v32  ;;  %v10981_v41 = vcombine.low %v2647_v31, %v2651_v32  ;;  %v2495_v20 = vld [vmem:[#allocation7 + $0x80] sm:$0xff] }
  0xd5   : > { %1630 = vmatprep.subr.bf16.mxu0 %v10718_v37  ;;  %1823 = vmatprep.subr.bf16.mxu1 %v10720_v38  ;;  %v2515_v37 = vld [vmem:[#allocation7 + $0x120] sm:$0xff] }
  0xd6   : > { %v12911_v38 = vld [vmem:[#allocation7 + $0xde0] sm:$0xff] }
  0xd7   : > { %v2499_v23 = vld [vmem:[#allocation7 + $0xa0] sm:$0xff] }
  0xd8   : > { %1631 = vmatpush2.bf16.msra.mxu0 %v10717_v43  ;;  %1824 = vmatpush2.bf16.msra.mxu1 %v10719_v47  ;;  %v10974_v47 = vcombine.high %v2639_v0, %v2643_v7  ;;  %v2623_v24 = vld [vmem:[#allocation7 + $0x480] sm:$0xff] }
  0xd9   : > { %1632 = vmatprep.subr.bf16.mxu0 %v10710_v48  ;;  %1825 = vmatprep.subr.bf16.mxu1 %v10712_v49  ;;  %v2503_v48 = vld [vmem:[#allocation7 + $0xc0] sm:$0xff] }
  0xda   : > { %1309 = vmatmul.mubr.bf16.gmra.mxu0 %v12772_v42  ;;  %1502 = vmatmul.mubr.bf16.gmra.mxu1 %v12772_v42  ;;  %v2507_v49 = vld [vmem:[#allocation7 + $0xe0] sm:$0xff] }
  0xdb   : > { %10753 = vmatprep.mubr.msk.bf16.mxu0 %vm1142_vm0, %v12775_v44  ;;  %10770 = vmatprep.mubr.msk.bf16.mxu1 %vm1142_vm0, %v12775_v44  ;;  %v2491_v31 = vld [vmem:[#allocation7 + $0x60] sm:$0xff] }
  0xdc   : > { %1633 = vmatpush2.bf16.msra.mxu0 %v10709_v50  ;;  %1826 = vmatpush2.bf16.msra.mxu1 %v10711_v51  ;;  %v2631_v50 = vld [vmem:[#allocation7 + $0x4c0] sm:$0xff] }
  0xdd   : > { %5551 = vmatprep.subr.bf16.mxu0 %v10870_v52  ;;  %5744 = vmatprep.subr.bf16.mxu1 %v10998_v53  ;;  %v2635_v51 = vld [vmem:[#allocation7 + $0x4e0] sm:$0xff]  ;;  %v10973_v53 = vcombine.low %v2639_v0, %v2643_v7 }
  0xde   : > { %v10966_v19 = vcombine.high %v2631_v50, %v2635_v51  ;;  %v2615_v32 = vld [vmem:[#allocation7 + $0x440] sm:$0xff] }
  0xdf   : > { %v2483_v0 = vld [vmem:[#allocation7 + $0x20] sm:$0xff] }
  0xe0   : > { %v2607_v7 = vld [vmem:[#allocation7 + $0x400] sm:$0xff] }
  0xe2   : > { %1319 = vmatmul.mubr.bf16.gmra.mxu0 %v12788_v55  ;;  %1512 = vmatmul.mubr.bf16.gmra.mxu1 %v12788_v55 }
  0xe3   : > { %10754 = vmatprep.mubr.msk.bf16.mxu0 %vm1142_vm0, %v12791_v56  ;;  %10771 = vmatprep.mubr.msk.bf16.mxu1 %vm1142_vm0, %v12791_v56 }
  0xea   : > { %1329 = vmatmul.mubr.bf16.gmra.mxu0 %v12800_v57  ;;  %1522 = vmatmul.mubr.bf16.gmra.mxu1 %v12800_v57 }
  0xeb   : > { %10755 = vmatprep.mubr.msk.bf16.mxu0 %vm1142_vm0, %v12803_v58  ;;  %10772 = vmatprep.mubr.msk.bf16.mxu1 %vm1142_vm0, %v12803_v58 }
  0xf2   : > { %1339 = vmatmul.mubr.bf16.gmra.mxu0 %v12812_v59  ;;  %1532 = vmatmul.mubr.bf16.gmra.mxu1 %v12812_v59 }
  0xf3   : > { %10756 = vmatprep.mubr.msk.bf16.mxu0 %vm1142_vm0, %v12815_v61  ;;  %10773 = vmatprep.mubr.msk.bf16.mxu1 %vm1142_vm0, %v12815_v61 }
  0xfa   : > { %1349 = vmatmul.mubr.bf16.gmra.mxu0 %v12824_v2  ;;  %1542 = vmatmul.mubr.bf16.gmra.mxu1 %v12824_v2 }
  0xfb   : > { %10757 = vmatprep.mubr.msk.bf16.mxu0 %vm1142_vm0, %v12827_v3  ;;  %10774 = vmatprep.mubr.msk.bf16.mxu1 %vm1142_vm0, %v12827_v3 }
 0x102   : > { %1359 = vmatmul.mubr.bf16.gmra.mxu0 %v12836_v4  ;;  %1552 = vmatmul.mubr.bf16.gmra.mxu1 %v12836_v4 }
 0x103   : > { %10758 = vmatprep.mubr.msk.bf16.mxu0 %vm1142_vm0, %v12839_v9  ;;  %10775 = vmatprep.mubr.msk.bf16.mxu1 %vm1142_vm0, %v12839_v9 }
 0x10a   : > { %1369 = vmatmul.mubr.bf16.gmra.mxu0 %v12848_v10  ;;  %1562 = vmatmul.mubr.bf16.gmra.mxu1 %v12848_v10 }
 0x10b   : > { %10759 = vmatprep.mubr.msk.bf16.mxu0 %vm1142_vm0, %v12851_v11  ;;  %10776 = vmatprep.mubr.msk.bf16.mxu1 %vm1142_vm0, %v12851_v11 }
 0x112   : > { %1379 = vmatmul.mubr.bf16.gmra.mxu0 %v12860_v13  ;;  %1572 = vmatmul.mubr.bf16.gmra.mxu1 %v12860_v13 }
 0x113   : > { %10760 = vmatprep.mubr.msk.bf16.mxu0 %vm1142_vm0, %v12863_v14  ;;  %10777 = vmatprep.mubr.msk.bf16.mxu1 %vm1142_vm0, %v12863_v14 }
 0x11a   : > { %1389 = vmatmul.mubr.bf16.gmra.mxu0 %v12872_v15  ;;  %1582 = vmatmul.mubr.bf16.gmra.mxu1 %v12872_v15 }
 0x11b   : > { %10761 = vmatprep.mubr.msk.bf16.mxu0 %vm1142_vm0, %v12875_v16  ;;  %10778 = vmatprep.mubr.msk.bf16.mxu1 %vm1142_vm0, %v12875_v16 }
 0x122   : > { %1399 = vmatmul.mubr.bf16.gmra.mxu0 %v12884_v17  ;;  %1592 = vmatmul.mubr.bf16.gmra.mxu1 %v12884_v17 }
 0x123   : > { %10780 = vmatprep.mubr.msk.bf16.mxu0 %vm1142_vm0, %v12234_v18  ;;  %10797 = vmatprep.mubr.msk.bf16.mxu1 %vm1142_vm0, %v12234_v18  ;;  %v10838_v18 = vcombine.high %v2503_v48, %v2507_v49 }
 0x12a   : > { %1635 = vmatmul.mubr.bf16.vlgmr.msra.gmra.mxu0 %v12684_v46  ;;  %1828 = vmatmul.mubr.bf16.vlgmr.msra.gmra.mxu1 %v12684_v46  ;;  %v2511_v46 = vld [vmem:[#allocation7 + $0x100] sm:$0xff] }
 0x12b   : > { %5552 = vmatpush1.bf16.msra.mxu0 %v10869_v6  ;;  %5745 = vmatpush1.bf16.msra.mxu1 %v10997_v12  ;;  %v12907_v6 = vld [vmem:[#allocation7 + $0xdc0] sm:$0xff]  ;;  %v10846_v43 = vcombine.high %v2511_v46, %v2515_v37  ;;  %v10845_v52 = vcombine.low %v2511_v46, %v2515_v37 }
 0x12c   : > { %10781 = vmatprep.mubr.msk.bf16.mxu0 %vm1142_vm0, %v12687_v54  ;;  %10798 = vmatprep.mubr.msk.bf16.mxu1 %vm1142_vm0, %v12687_v54  ;;  %v10853_v54 = vcombine.low %v2519_v28, %v2523_v29  ;;  %v10965_v28 = vcombine.low %v2631_v50, %v2635_v51  ;;  %v10830_v29 = vcombine.high %v2495_v20, %v2499_v23  ;;  %v2479_v37 = vld [vmem:[#allocation7] sm:$0xff] }
 0x12d   : > { %5553 = vmatprep.subr.bf16.mxu0 %v10862_v26  ;;  %5746 = vmatprep.subr.bf16.mxu1 %v10990_v30  ;;  %v10837_v26 = vcombine.low %v2503_v48, %v2507_v49  ;;  %v2487_v30 = vld [vmem:[#allocation7 + $0x40] sm:$0xff]  ;;  %v10813_v51 = vcombine.low %v2479_v37, %v2483_v0 }
 0x12e   : > { %v2603_v48 = vld [vmem:[#allocation7 + $0x3e0] sm:$0xff] }
 0x12f   : > { %5554 = vmatpush1.bf16.msra.mxu0 %v10861_v33  ;;  %5747 = vmatpush1.bf16.msra.mxu1 %v10989_v34  ;;  %v2619_v33 = vld [vmem:[#allocation7 + $0x460] sm:$0xff]  ;;  %v10829_v34 = vcombine.low %v2495_v20, %v2499_v23 }
 0x130   : > { %5555 = vmatprep.subr.bf16.mxu0 %v10854_v35  ;;  %5748 = vmatprep.subr.bf16.mxu1 %v10982_v36  ;;  %v10822_v36 = vcombine.high %v2487_v30, %v2491_v31  ;;  %v10950_v46 = vcombine.high %v2615_v32, %v2619_v33  ;;  %v2727_v49 = vld [vmem:[#allocation7 + $0x7c0] sm:$0xff] }
 0x131   : > { %v2731_v50 = vld [vmem:[#allocation7 + $0x7e0] sm:$0xff] }
 0x132   : > { %1645 = vmatmul.mubr.bf16.gmra.mxu0 %v12700_v1  ;;  %1838 = vmatmul.mubr.bf16.gmra.mxu1 %v12700_v1  ;;  %v2627_v1 = vld [vmem:[#allocation7 + $0x4a0] sm:$0xff] }
 0x133   : > { %10782 = vmatprep.mubr.msk.bf16.mxu0 %vm1142_vm0, %v12709_v8  ;;  %10799 = vmatprep.mubr.msk.bf16.mxu1 %vm1142_vm0, %v12709_v8  ;;  %v10958_v8 = vcombine.high %v2623_v24, %v2627_v1  ;;  %v10957_v35 = vcombine.low %v2623_v24, %v2627_v1  ;;  %v2595_v20 = vld [vmem:[#allocation7 + $0x3a0] sm:$0xff]  ;;  %v11061_v1 = vcombine.low %v2727_v49, %v2731_v50 }
 0x134   : > { %5556 = vmatpush1.bf16.msra.mxu0 %v10853_v54  ;;  %5749 = vmatpush1.bf16.msra.mxu1 %v10981_v41  ;;  %v10821_v54 = vcombine.low %v2487_v30, %v2491_v31  ;;  %v10949_v41 = vcombine.low %v2615_v32, %v2619_v33  ;;  %v2719_v23 = vld [vmem:[#allocation7 + $0x780] sm:$0xff] }
 0x135   : > { %5557 = vmatprep.subr.bf16.mxu0 %v10846_v43  ;;  %5750 = vmatprep.subr.bf16.mxu1 %v10974_v47  ;;  %v10814_v43 = vcombine.high %v2479_v37, %v2483_v0  ;;  %v2599_v47 = vld [vmem:[#allocation7 + $0x3c0] sm:$0xff] }
 0x136   : > { %v10933_v24 = vcombine.low %v2599_v47, %v2603_v48  ;;  %v2715_v30 = vld [vmem:[#allocation7 + $0x760] sm:$0xff] }
 0x138   : > { %5558 = vmatpush1.bf16.msra.mxu0 %v10845_v52  ;;  %5751 = vmatpush1.bf16.msra.mxu1 %v10973_v53  ;;  %v10934_v53 = vcombine.high %v2599_v47, %v2603_v48 }
 0x139   : > { %5559 = vmatprep.subr.bf16.mxu0 %v10838_v18  ;;  %5752 = vmatprep.subr.bf16.mxu1 %v10966_v19  ;;  %v11062_v18 = vcombine.high %v2727_v49, %v2731_v50  ;;  %v2591_v19 = vld [vmem:[#allocation7 + $0x380] sm:$0xff] }
 0x13a   : > { %1655 = vmatmul.mubr.bf16.gmra.mxu0 %v12720_v21  ;;  %1848 = vmatmul.mubr.bf16.gmra.mxu1 %v12720_v21  ;;  %v2611_v21 = vld [vmem:[#allocation7 + $0x420] sm:$0xff]  ;;  %v10925_v31 = vcombine.low %v2591_v19, %v2595_v20 }
 0x13b   : > { %10783 = vmatprep.mubr.msk.bf16.mxu0 %vm1142_vm0, %v12723_v25  ;;  %10800 = vmatprep.mubr.msk.bf16.mxu1 %vm1142_vm0, %v12723_v25  ;;  %v10942_v25 = vcombine.high %v2607_v7, %v2611_v21  ;;  %v10941_v52 = vcombine.low %v2607_v7, %v2611_v21  ;;  %v2567_v21 = vld [vmem:[#allocation7 + $0x2c0] sm:$0xff] }
 0x13c   : > { %5560 = vmatpush1.bf16.msra.mxu0 %v10837_v26  ;;  %5753 = vmatpush1.bf16.msra.mxu1 %v10965_v28  ;;  %v10926_v26 = vcombine.high %v2591_v19, %v2595_v20  ;;  %v2583_v28 = vld [vmem:[#allocation7 + $0x340] sm:$0xff] }
 0x13d   : > { %5561 = vmatprep.subr.bf16.mxu0 %v10830_v29  ;;  %5754 = vmatprep.subr.bf16.mxu1 %v10958_v8  ;;  %v2587_v29 = vld [vmem:[#allocation7 + $0x360] sm:$0xff] }
 0x13e   : > { %v2711_v8 = vld [vmem:[#allocation7 + $0x740] sm:$0xff]  ;;  %v10918_v33 = vcombine.high %v2583_v28, %v2587_v29  ;;  %v10917_v37 = vcombine.low %v2583_v28, %v2587_v29 }
 0x13f   : > { %v11045_v0 = vcombine.low %v2711_v8, %v2715_v30  ;;  %v2559_v50 = vld [vmem:[#allocation7 + $0x280] sm:$0xff] }
 0x140   : > { %5562 = vmatpush1.bf16.msra.mxu0 %v10829_v34  ;;  %5755 = vmatpush1.bf16.msra.mxu1 %v10957_v35  ;;  %v11046_v34 = vcombine.high %v2711_v8, %v2715_v30  ;;  %v2575_v35 = vld [vmem:[#allocation7 + $0x300] sm:$0xff] }
 0x141   : > { %5563 = vmatprep.subr.bf16.mxu0 %v10822_v36  ;;  %5756 = vmatprep.subr.bf16.mxu1 %v10950_v46  ;;  %v2579_v36 = vld [vmem:[#allocation7 + $0x320] sm:$0xff] }
 0x142   : > { %1665 = vmatmul.mubr.bf16.gmra.mxu0 %v12732_v40  ;;  %1858 = vmatmul.mubr.bf16.gmra.mxu1 %v12732_v40  ;;  %v2723_v40 = vld [vmem:[#allocation7 + $0x7a0] sm:$0xff]  ;;  %v10910_v7 = vcombine.high %v2575_v35, %v2579_v36 }
 0x143   : > { %10784 = vmatprep.mubr.msk.bf16.mxu0 %vm1142_vm0, %v12735_v45  ;;  %10801 = vmatprep.mubr.msk.bf16.mxu1 %vm1142_vm0, %v12735_v45  ;;  %v11054_v45 = vcombine.high %v2719_v23, %v2723_v40  ;;  %v11053_v32 = vcombine.low %v2719_v23, %v2723_v40  ;;  %v2703_v46 = vld [vmem:[#allocation7 + $0x700] sm:$0xff] }
 0x144   : > { %5564 = vmatpush1.bf16.msra.mxu0 %v10821_v54  ;;  %5757 = vmatpush1.bf16.msra.mxu1 %v10949_v41  ;;  %v2571_v54 = vld [vmem:[#allocation7 + $0x2e0] sm:$0xff] }
 0x145   : > { %5565 = vmatprep.subr.bf16.mxu0 %v10814_v43  ;;  %5758 = vmatprep.subr.bf16.mxu1 %v10942_v25  ;;  %v2695_v41 = vld [vmem:[#allocation7 + $0x6c0] sm:$0xff]  ;;  %v10909_v25 = vcombine.low %v2575_v35, %v2579_v36  ;;  %v10902_v48 = vcombine.high %v2567_v21, %v2571_v54  ;;  %v11126_v36 = vcombine.high %v12903_v62, %v12905_v63 }
 0x146   : > { %v2699_v43 = vld [vmem:[#allocation7 + $0x6e0] sm:$0xff] }
 0x147   : > { %v11030_v49 = vcombine.high %v2695_v41, %v2699_v43  ;;  %v2551_v20 = vld [vmem:[#allocation7 + $0x240] sm:$0xff] }
 0x148   : > { %5566 = vmatpush1.bf16.msra.mxu0 %v10813_v51  ;;  %5759 = vmatpush1.bf16.msra.mxu1 %v10941_v52  ;;  %v2563_v51 = vld [vmem:[#allocation7 + $0x2a0] sm:$0xff] }
 0x149   : > { %5567 = vmatprep.subr.bf16.mxu0 %v10934_v53  ;;  %5760 = vmatprep.subr.bf16.mxu1 %v11062_v18  ;;  %v2687_v52 = vld [vmem:[#allocation7 + $0x680] sm:$0xff]  ;;  %v10901_v53 = vcombine.low %v2567_v21, %v2571_v54  ;;  %v11029_v18 = vcombine.low %v2695_v41, %v2699_v43  ;;  %v10894_v19 = vcombine.high %v2559_v50, %v2563_v51 }
 0x14a   : > { %1675 = vmatmul.mubr.bf16.gmra.mxu0 %v12745_v60  ;;  %1868 = vmatmul.mubr.bf16.gmra.mxu1 %v12745_v60  ;;  %v2707_v60 = vld [vmem:[#allocation7 + $0x720] sm:$0xff] }
 0x14b   : > { %10785 = vmatprep.mubr.msk.bf16.mxu0 %vm1142_vm0, %v12749_v5  ;;  %10802 = vmatprep.mubr.msk.bf16.mxu1 %vm1142_vm0, %v12749_v5  ;;  %v11038_v5 = vcombine.high %v2703_v46, %v2707_v60  ;;  %v11037_v47 = vcombine.low %v2703_v46, %v2707_v60  ;;  %v2555_v23 = vld [vmem:[#allocation7 + $0x260] sm:$0xff]  ;;  %v11254_v46 = vcombine.high %v12907_v6, %v12911_v38 }
 0x14c   : > { %5568 = vmatpush2.bf16.msra.mxu0 %v10933_v24  ;;  %5761 = vmatpush2.bf16.msra.mxu1 %v11061_v1  ;;  %v2679_v40 = vld [vmem:[#allocation7 + $0x640] sm:$0xff]  ;;  %v10893_v1 = vcombine.low %v2559_v50, %v2563_v51  ;;  %v2122_v50 = vlaneseq }
 0x14d   : > { %5569 = vmatprep.subr.bf16.mxu0 %v10926_v26  ;;  %5762 = vmatprep.subr.bf16.mxu1 %v11054_v45  ;;  %v2683_v24 = vld [vmem:[#allocation7 + $0x660] sm:$0xff]  ;;  %v10886_v45 = vcombine.high %v2551_v20, %v2555_v23 }
 0x14e   : > { %v11014_v28 = vcombine.high %v2679_v40, %v2683_v24  ;;  %v2543_v29 = vld [vmem:[#allocation7 + $0x200] sm:$0xff] }
 0x14f   : > { %v2547_v8 = vld [vmem:[#allocation7 + $0x220] sm:$0xff] }
 0x150   : > { %5570 = vmatpush2.bf16.msra.mxu0 %v10925_v31  ;;  %5763 = vmatpush2.bf16.msra.mxu1 %v11053_v32  ;;  %v2671_v30 = vld [vmem:[#allocation7 + $0x600] sm:$0xff]  ;;  %v10885_v31 = vcombine.low %v2551_v20, %v2555_v23  ;;  %v11013_v32 = vcombine.low %v2679_v40, %v2683_v24  ;;  %v12236_v24 = vld.sshfl [vmem:[#allocation5] sm:$0xff pattern:$0x75316420] }
 0x151   : > { %5571 = vmatprep.subr.bf16.mxu0 %v10918_v33  ;;  %5764 = vmatprep.subr.bf16.mxu1 %v11046_v34  ;;  %v10878_v33 = vcombine.high %v2543_v29, %v2547_v8  ;;  %v10877_v34 = vcombine.low %v2543_v29, %v2547_v8 }
 0x152   : > { %1685 = vmatmul.mubr.bf16.gmra.mxu0 %v12760_v22  ;;  %1878 = vmatmul.mubr.bf16.gmra.mxu1 %v12760_v22  ;;  %v2691_v22 = vld [vmem:[#allocation7 + $0x6a0] sm:$0xff] }
 0x153   : > { %10786 = vmatprep.mubr.msk.bf16.mxu0 %vm1142_vm0, %v12763_v27  ;;  %10803 = vmatprep.mubr.msk.bf16.mxu1 %vm1142_vm0, %v12763_v27  ;;  %v11022_v27 = vcombine.high %v2687_v52, %v2691_v22  ;;  %v11021_v26 = vcombine.low %v2687_v52, %v2691_v22 }
 0x154   : > { %5572 = vmatpush2.bf16.msra.mxu0 %v10917_v37  ;;  %5765 = vmatpush2.bf16.msra.mxu1 %v11045_v0 }
 0x155   : > { %5573 = vmatprep.subr.bf16.mxu0 %v10910_v7  ;;  %5766 = vmatprep.subr.bf16.mxu1 %v11038_v5 }
 0x158   : > { %5574 = vmatpush2.bf16.msra.mxu0 %v10909_v25  ;;  %5767 = vmatpush2.bf16.msra.mxu1 %v11037_v47 }
 0x159   : > { %5575 = vmatprep.subr.bf16.mxu0 %v10902_v48  ;;  %5768 = vmatprep.subr.bf16.mxu1 %v11030_v49  ;;  %v12481_v49 = vmov 1966171168  }
 0x15a   : > { %1695 = vmatmul.mubr.bf16.gmra.mxu0 %v12772_v42  ;;  %1888 = vmatmul.mubr.bf16.gmra.mxu1 %v12772_v42  ;;  %v2675_v42 = vld [vmem:[#allocation7 + $0x620] sm:$0xff] }
 0x15b   : > { %10787 = vmatprep.mubr.msk.bf16.mxu0 %vm1142_vm0, %v12775_v44  ;;  %10804 = vmatprep.mubr.msk.bf16.mxu1 %vm1142_vm0, %v12775_v44  ;;  %v11006_v44 = vcombine.high %v2671_v30, %v2675_v42  ;;  %v11005_v35 = vcombine.low %v2671_v30, %v2675_v42  ;;  %v2133_v30 = vcombine.high %v12236_v24, %v12236_v24 }
 0x15c   : > { %5576 = vmatpush2.bf16.msra.mxu0 %v10901_v53  ;;  %5769 = vmatpush2.bf16.msra.mxu1 %v11029_v18  ;;  %v2123_v18 = vshrl.u32 %v2122_v50, 7 }
 0x15d   : > { %5577 = vmatprep.subr.bf16.mxu0 %v10894_v19  ;;  %5770 = vmatprep.subr.bf16.mxu1 %v11022_v27 }
 0x15e   : > { %v13091_v39 = vsub.s32 0, %v2123_v18 }
 0x160   : > { %5578 = vmatpush2.bf16.msra.mxu0 %v10893_v1  ;;  %5771 = vmatpush2.bf16.msra.mxu1 %v11021_v26  ;;  %17981 = vst [vmem:[#allocation22_spill] sm:$0xff] %v13091_v39 }
 0x161   : > { %5579 = vmatprep.subr.bf16.mxu0 %v10886_v45  ;;  %5772 = vmatprep.subr.bf16.mxu1 %v11014_v28 }
 0x162   : > { %1705 = vmatmul.mubr.bf16.gmra.mxu0 %v12788_v55  ;;  %1898 = vmatmul.mubr.bf16.gmra.mxu1 %v12788_v55 }
 0x163   : > { %10788 = vmatprep.mubr.msk.bf16.mxu0 %vm1142_vm0, %v12791_v56  ;;  %10805 = vmatprep.mubr.msk.bf16.mxu1 %vm1142_vm0, %v12791_v56 }
 0x164   : > { %5580 = vmatpush2.bf16.msra.mxu0 %v10885_v31  ;;  %5773 = vmatpush2.bf16.msra.mxu1 %v11013_v32 }
 0x165   : > { %5581 = vmatprep.subr.bf16.mxu0 %v10878_v33  ;;  %5774 = vmatprep.subr.bf16.mxu1 %v11006_v44 }
 0x168   : > { %5582 = vmatpush2.bf16.msra.mxu0 %v10877_v34  ;;  %5775 = vmatpush2.bf16.msra.mxu1 %v11005_v35 }
 0x169   : > { %5937 = vmatprep.subr.bf16.mxu0 %v11126_v36  ;;  %6130 = vmatprep.subr.bf16.mxu1 %v11254_v46 }
 0x16a   : > { %v12961_v55 = vpop.f32.mrf.mxu0  ;;  %1715 = vmatmul.mubr.bf16.gmra.mxu0 %v12800_v57  ;;  %v12964_v56 = vpop.f32.mrf.mxu1  ;;  %1908 = vmatmul.mubr.bf16.gmra.mxu1 %v12800_v57 }
 0x16b   : > { %10789 = vmatprep.mubr.msk.bf16.mxu0 %vm1142_vm0, %v12803_v58  ;;  %10806 = vmatprep.mubr.msk.bf16.mxu1 %vm1142_vm0, %v12803_v58 }
 0x16c   : > { %v12969_v60 = vpop.f32.mrf.mxu0  ;;  %v12973_v37 = vpop.f32.mrf.mxu1 }
 0x16e   : > { %v12975_v0 = vpop.f32.mrf.mxu0  ;;  %v12977_v7 = vpop.f32.mrf.mxu1 }
 0x170   : > { %v12979_v5 = vpop.f32.mrf.mxu0  ;;  %v12981_v21 = vpop.f32.mrf.mxu1 }
 0x172   : > { %v12983_v54 = vpop.f32.mrf.mxu0  ;;  %1725 = vmatmul.mubr.bf16.gmra.mxu0 %v12812_v59  ;;  %v12986_v57 = vpop.f32.mrf.mxu1  ;;  %1918 = vmatmul.mubr.bf16.gmra.mxu1 %v12812_v59  ;;  %v2120_v59 = vunpack.c.l.s4 %v12481_v49 }
 0x173   : > { %10790 = vmatprep.mubr.msk.bf16.mxu0 %vm1142_vm0, %v12815_v61  ;;  %10807 = vmatprep.mubr.msk.bf16.mxu1 %vm1142_vm0, %v12815_v61 }
 0x174   : > { %v12991_v58 = vpop.f32.mrf.mxu0  ;;  %v12995_v41 = vpop.f32.mrf.mxu1  ;;  %v2121_v53 = vunpack.c.0.s8 %v2120_v59 }
 0x176   : > { %v12997_v43 = vpop.f32.mrf.mxu0  ;;  %v12999_v25 = vpop.f32.mrf.mxu1 }
 0x178   : > { %v13001_v47 = vpop.f32.mrf.mxu0  ;;  %v13003_v48 = vpop.f32.mrf.mxu1 }
 0x17a   : > { %v13005_v51 = vpop.f32.mrf.mxu0  ;;  %1735 = vmatmul.mubr.bf16.gmra.mxu0 %v12824_v2  ;;  %v13008_v52 = vpop.f32.mrf.mxu1  ;;  %1928 = vmatmul.mubr.bf16.gmra.mxu1 %v12824_v2  ;;  %v13027_v2 = vsub.s32 %v2121_v53, %v2123_v18 }
 0x17b   : > { %10791 = vmatprep.mubr.msk.bf16.mxu0 %vm1142_vm0, %v12827_v3  ;;  %10808 = vmatprep.mubr.msk.bf16.mxu1 %vm1142_vm0, %v12827_v3 }
 0x17c   : > { %v13013_v61 = vpop.f32.mrf.mxu0  ;;  %v13017_v22 = vpop.f32.mrf.mxu1  ;;  %17978 = vst [vmem:[#allocation19_spill] sm:$0xff] %v13027_v2  ;;  %v2155_v32 = vrot.slane %v2133_v30, %v13027_v2  ;;  %v2141_v49 = vrot.slane %v12236_v24, %v13027_v2 }
 0x17e   : > { %v13019_v19 = vpop.f32.mrf.mxu0  ;;  %v13021_v27 = vpop.f32.mrf.mxu1  ;;  %v2175_v59 = vpack.i.b16 %v2155_v32, %v2155_v32 }
 0x180   : > { %v13023_v20 = vpop.f32.mrf.mxu0  ;;  %v13025_v23 = vpop.f32.mrf.mxu1 }
 0x182   : > { %v13029_v40 = vpop.f32.mrf.mxu0  ;;  %1745 = vmatmul.mubr.bf16.gmra.mxu0 %v12836_v4  ;;  %v13032_v3 = vpop.f32.mrf.mxu1  ;;  %1938 = vmatmul.mubr.bf16.gmra.mxu1 %v12836_v4 }
 0x183   : > { %10792 = vmatprep.mubr.msk.bf16.mxu0 %vm1142_vm0, %v12839_v9  ;;  %10809 = vmatprep.mubr.msk.bf16.mxu1 %vm1142_vm0, %v12839_v9 }
 0x184   : > { %v13037_v1 = vpop.f32.mrf.mxu0  ;;  %v13041_v26 = vpop.f32.mrf.mxu1 }
 0x186   : > { %v13043_v45 = vpop.f32.mrf.mxu0  ;;  %v13045_v28 = vpop.f32.mrf.mxu1 }
 0x188   : > { %v13047_v29 = vpop.f32.mrf.mxu0  ;;  %v13049_v8 = vpop.f32.mrf.mxu1 }
 0x18a   : > { %v13051_v4 = vpop.f32.mrf.mxu0  ;;  %1755 = vmatmul.mubr.bf16.gmra.mxu0 %v12848_v10  ;;  %v13054_v42 = vpop.f32.mrf.mxu1  ;;  %1948 = vmatmul.mubr.bf16.gmra.mxu1 %v12848_v10  ;;  %v2165_v10 = vcombine.high %v2155_v32, %v2155_v32  ;;  %v1991_v32 = vpack.c.bf16 %v12981_v21, %v12973_v37 }
 0x18b   : > { %10793 = vmatprep.mubr.msk.bf16.mxu0 %vm1142_vm0, %v12851_v11  ;;  %10810 = vmatprep.mubr.msk.bf16.mxu1 %vm1142_vm0, %v12851_v11 }
 0x18c   : > { %v13059_v9 = vpop.f32.mrf.mxu0  ;;  %v13063_v31 = vpop.f32.mrf.mxu1  ;;  %v2189_v53 = vpack.i.b16 %v2165_v10, %v2165_v10 }
 0x18e   : > { %v13066_v33 = vpop.f32.mrf.mxu0  ;;  %v13068_v44 = vpop.f32.mrf.mxu1  ;;  %v13107_v10 = vrot.slane %v2189_v53, %v13091_v39 }
 0x190   : > { %v13070_v34 = vpop.f32.mrf.mxu0  ;;  %v13072_v35 = vpop.f32.mrf.mxu1  ;;  %v2226_v53 = vadd.bf16 %v13107_v10, %v1991_v32 }
 0x192   : > { %v13074_v36 = vpop.f32.mrf.mxu0  ;;  %1765 = vmatmul.mubr.bf16.gmra.mxu0 %v12860_v13  ;;  %v13077_v46 = vpop.f32.mrf.mxu1  ;;  %1958 = vmatmul.mubr.bf16.gmra.mxu1 %v12860_v13 }
 0x193   : > { %17979 = vst [vmem:[#allocation20_spill] sm:$0xff] %v13074_v36  ;;  %17980 = vst [vmem:[#allocation21_spill] sm:$0xff] %v13077_v46  ;;  %10794 = vmatprep.mubr.msk.bf16.mxu0 %vm1142_vm0, %v12863_v14  ;;  %10811 = vmatprep.mubr.msk.bf16.mxu1 %vm1142_vm0, %v12863_v14  ;;  %v2163_v46 = vcombine.high %v2141_v49, %v2141_v49  ;;  %v1989_v36 = vpack.c.bf16 %v12979_v5, %v12969_v60 }
 0x194   : > { %v13082_v11 = vpop.f32.mrf.mxu0  ;;  %v13087_v50 = vpop.f32.mrf.mxu1  ;;  %v13100_v14 = vrot.slane %v2175_v59, %v13091_v39  ;;  %v2168_v60 = vpack.i.b16 %v2141_v49, %v2141_v49 }
 0x195   : > { %v2182_v37 = vpack.i.b16 %v2163_v46, %v2163_v46  ;;  %v17502_v46 = vmov 0  }
 0x196   : > { %v13089_v30 = vpop.f32.mrf.mxu0  ;;  %v13093_v12 = vpop.f32.mrf.mxu1  ;;  %v2224_v21 = vadd.bf16 %v13100_v14, %v1989_v36  ;;  %v13132_v49 = vrot.slane %v2168_v60, %v13091_v39 }
 0x197   : > { %v13139_v36 = vrot.slane %v2182_v37, %v13091_v39  ;;  %v2783_v37 = vld [vmem:[#allocation7 + $0x980] sm:$0xff]  ;;  %v17994_v39 = vmov 0  }
 0x198   : > { %v13095_v13 = vpop.f32.mrf.mxu0  ;;  %v13102_v24 = vpop.f32.mrf.mxu1  ;;  %v13142_v32 = vmax.bf16 %v17502_v46, %v2224_v21  ;;  %v2787_v21 = vld [vmem:[#allocation7 + $0x9a0] sm:$0xff] }
 0x19a   : > { %v13109_v18 = vpop.f32.mrf.mxu0  ;;  %1775 = vmatmul.mubr.bf16.gmra.mxu0 %v12872_v15  ;;  %v13112_v2 = vpop.f32.mrf.mxu1  ;;  %1968 = vmatmul.mubr.bf16.gmra.mxu1 %v12872_v15  ;;  %v1988_v15 = vpack.c.bf16 %v12975_v0, %v12961_v55  ;;  %17987 = vst [vmem:[#allocation28_spill] sm:$0xff] %v13142_v32  ;;  %v13149_v55 = vmax.bf16 %v17502_v46, %v2226_v53 }
 0x19b   : > { %17982 = vst [vmem:[#allocation23_spill] sm:$0xff] %v13109_v18  ;;  %17983 = vst [vmem:[#allocation24_spill] sm:$0xff] %v13112_v2  ;;  %10795 = vmatprep.mubr.msk.bf16.mxu0 %vm1142_vm0, %v12875_v16  ;;  %10812 = vmatprep.mubr.msk.bf16.mxu1 %vm1142_vm0, %v12875_v16  ;;  %v1990_v16 = vpack.c.bf16 %v12977_v7, %v12964_v56  ;;  %v1999_v0 = vpack.c.bf16 %v13003_v48, %v12995_v41 }
 0x19c   : > { %v13117_v5 = vpop.f32.mrf.mxu0  ;;  %v13122_v59 = vpop.f32.mrf.mxu1  ;;  %17988 = vst [vmem:[#allocation29_spill] sm:$0xff] %v13149_v55  ;;  %v2223_v7 = vadd.bf16 %v13132_v49, %v1988_v15  ;;  %v2915_v15 = vld [vmem:[#allocation7 + $0xda0] sm:$0xff] }
 0x19d   : > { %17984 = vst [vmem:[#allocation25_spill] sm:$0xff] %v13117_v5  ;;  %v2234_v53 = vadd.bf16 %v13107_v10, %v1999_v0  ;;  %v1998_v0 = vpack.c.bf16 %v12999_v25, %v12986_v57  ;;  %v13200_v57 = vld [vmem:[#allocation7 + $0x940] sm:$0xff] }
 0x19e   : > { %v13125_v18 = vpop.f32.mrf.mxu0  ;;  %v13127_v2 = vpop.f32.mrf.mxu1  ;;  %v13202_v25 = vld [vmem:[#allocation7 + $0x960] sm:$0xff] }
 0x19f   : > { %17985 = vst [vmem:[#allocation26_spill] sm:$0xff] %v13125_v18  ;;  %17986 = vst [vmem:[#allocation27_spill] sm:$0xff] %v13127_v2  ;;  %v1997_v2 = vpack.c.bf16 %v13001_v47, %v12991_v58  ;;  %v2225_v47 = vadd.bf16 %v13139_v36, %v1990_v16  ;;  %v1996_v16 = vpack.c.bf16 %v12997_v43, %v12983_v54 }
 0x1a0   : > { %v13134_v5 = vpop.f32.mrf.mxu0  ;;  %v13146_v18 = vpop.f32.mrf.mxu1  ;;  %v2007_v54 = vpack.c.bf16 %v13025_v23, %v13017_v22  ;;  %v18003_v23 = vcombine.low %v12903_v62, %v12905_v63  ;;  %v11110_v62 = vcombine.high %v13200_v57, %v13202_v25 }
 0x1a1   : > { %v2232_v41 = vadd.bf16 %v13100_v14, %v1997_v2  ;;  %v11118_v2 = vcombine.high %v2783_v37, %v2787_v21  ;;  %v2231_v22 = vadd.bf16 %v13132_v49, %v1996_v16  ;;  %v18004_v16 = vcombine.low %v12907_v6, %v12911_v38 }
 0x1a2   : > { %v13153_v60 = vpop.f32.mrf.mxu0  ;;  %1785 = vmatmul.mubr.bf16.gmra.mxu0 %v12884_v17  ;;  %v13156_v56 = vpop.f32.mrf.mxu1  ;;  %1978 = vmatmul.mubr.bf16.gmra.mxu1 %v12884_v17  ;;  %v2242_v63 = vadd.bf16 %v13107_v10, %v2007_v54  ;;  %v11109_v38 = vcombine.low %v13200_v57, %v13202_v25  ;;  %v2895_v54 = vld [vmem:[#allocation7 + $0xd00] sm:$0xff]  ;;  %v2006_v57 = vpack.c.bf16 %v13021_v27, %v13008_v52 }
 0x1a3   : > { %17989 = vst [vmem:[#allocation30_spill] sm:$0xff] %v13153_v60  ;;  %17990 = vst [vmem:[#allocation31_spill] sm:$0xff] %v13156_v56  ;;  %5583 = vmatprep.mubr.bf16.mxu0 %v13142_v32  ;;  %5776 = vmatprep.mubr.bf16.mxu1 %v13149_v55  ;;  %v2911_v32 = vld [vmem:[#allocation7 + $0xd80] sm:$0xff]  ;;  %v13174_v55 = vmax.bf16 %v17994_v39, %v2223_v7  ;;  %v13181_v60 = vmax.bf16 %v17994_v39, %v2225_v47 }
 0x1a4   : > { %v13162_v58 = vpop.f32.mrf.mxu0  ;;  %v13166_v48 = vpop.f32.mrf.mxu1  ;;  %v11246_v47 = vcombine.high %v2911_v32, %v2915_v15  ;;  %v2015_v52 = vpack.c.bf16 %v13049_v8, %v13041_v26  ;;  %v2241_v26 = vadd.bf16 %v13139_v36, %v2006_v57 }
 0x1a5   : > { %17991 = vst [vmem:[#allocation32_spill] sm:$0xff] %v13166_v48  ;;  %17995 = vst [vmem:[#allocation35_spill] sm:$0xff] %v13174_v55  ;;  %v13193_v48 = vmax.bf16 %v17994_v39, %v2234_v53 }
 0x1a6   : > { %v13169_v46 = vpop.f32.mrf.mxu0  ;;  %v13171_v17 = vpop.f32.mrf.mxu1  ;;  %17997 = vst [vmem:[#allocation37_spill] sm:$0xff] %v13181_v60  ;;  %v2250_v57 = vadd.bf16 %v13107_v10, %v2015_v52 }
 0x1a7   : > { %17992 = vst [vmem:[#allocation33_spill] sm:$0xff] %v13169_v46  ;;  %17993 = vst [vmem:[#allocation34_spill] sm:$0xff] %v13171_v17  ;;  %v13186_v46 = vmax.bf16 %v17994_v39, %v2232_v41  ;;  %v2005_v17 = vpack.c.bf16 %v13023_v20, %v13013_v61  ;;  %v13208_v61 = vld [vmem:[#allocation7 + $0xd40] sm:$0xff] }
 0x1a8   : > { %v13178_v56 = vpop.f32.mrf.mxu0  ;;  %v13190_v7 = vpop.f32.mrf.mxu1  ;;  %18000 = vst [vmem:[#allocation40_spill] sm:$0xff] %v13193_v48  ;;  %v13210_v20 = vld [vmem:[#allocation7 + $0xd60] sm:$0xff] }
 0x1a9   : > { %17996 = vst [vmem:[#allocation36_spill] sm:$0xff] %v13178_v56  ;;  %17998 = vst [vmem:[#allocation38_spill] sm:$0xff] %v13186_v46 }
 0x1aa   : > { %17999 = vst [vmem:[#allocation39_spill] sm:$0xff] %v13190_v7  ;;  %v13197_v43 = vpop.f32.mrf.mxu0  ;;  %5584 = vmatmul.mubr.bf16.vlgmr.msra.gmra.mxu0 %v13174_v55  ;;  %v13204_v41 = vpop.f32.mrf.mxu1  ;;  %5777 = vmatmul.mubr.bf16.vlgmr.msra.gmra.mxu1 %v13181_v60  ;;  %v11117_v55 = vcombine.low %v2783_v37, %v2787_v21  ;;  %v13221_v60 = vld [vmem:[#allocation7 + $0x920] sm:$0xff]  ;;  %v2240_v7 = vadd.bf16 %v13100_v14, %v2005_v17  ;;  %v13237_v21 = vld [vmem:[#allocation7 + $0x1c8] sm:$0xff] }
 0x1ab   : > { %18001 = vst [vmem:[#allocation41_spill] sm:$0xff] %v13197_v43  ;;  %18002 = vst [vmem:[#allocation42_spill] sm:$0xff] %v13204_v41  ;;  %5593 = vmatprep.mubr.bf16.mxu0 %v13186_v46  ;;  %5786 = vmatprep.mubr.bf16.mxu1 %v13193_v48  ;;  %v11245_v41 = vcombine.low %v2911_v32, %v2915_v15  ;;  %v13219_v43 = vld [vmem:[#allocation7 + $0x900] sm:$0xff]  ;;  %v2233_v46 = vadd.bf16 %v13139_v36, %v1998_v0  ;;  %v13239_v17 = vld [vmem:[#allocation7 + $0x1e8] sm:$0xff] }
 0x1ac   : > { %5938 = vmatpush1.bf16.msra.mxu0 %v18003_v23  ;;  %v13217_v53 = vpop.f32.mrf.mxu0  ;;  %v13225_v56 = vpop.f32.mrf.mxu1  ;;  %6131 = vmatpush1.bf16.msra.mxu1 %v18004_v16  ;;  %v11238_v37 = vcombine.high %v13208_v61, %v13210_v20  ;;  %18005 = vst [vmem:[#allocation43_spill] sm:$0xff] %v13237_v21  ;;  %v13241_v15 = vld [vmem:[#allocation7 + $0x5c8] sm:$0xff]  ;;  %v11102_v0 = vcombine.high %v13219_v43, %v13221_v60 }
 0x1ad   : > { %5939 = vmatprep.subr.bf16.mxu0 %v11118_v2  ;;  %6132 = vmatprep.subr.bf16.mxu1 %v11246_v47  ;;  %v11237_v2 = vcombine.low %v13208_v61, %v13210_v20  ;;  %v2899_v47 = vld [vmem:[#allocation7 + $0xd20] sm:$0xff]  ;;  %v13253_v16 = vld [vmem:[#allocation7 + $0x5e8] sm:$0xff]  ;;  %v13256_v48 = vmax.bf16 %v17994_v39, %v2231_v22  ;;  %v13267_v20 = vmax.bf16 %v17994_v39, %v2233_v46 }
 0x1ae   : > { %v13233_v32 = vpop.f32.mrf.mxu0  ;;  %v13243_v6 = vpop.f32.mrf.mxu1  ;;  %v13270_v23 = vmax.bf16 %v17994_v39, %v2240_v7  ;;  %v2013_v22 = vpack.c.bf16 %v13047_v29, %v13037_v1  ;;  %v11230_v27 = vcombine.high %v2895_v54, %v2899_v47  ;;  %v2759_v46 = vld [vmem:[#allocation7 + $0x8c0] sm:$0xff]  ;;  %v11229_v61 = vcombine.low %v2895_v54, %v2899_v47 }
 0x1af   : > { %18006 = vst [vmem:[#allocation44_spill] sm:$0xff] %v13243_v6  ;;  %18007 = vst [vmem:[#allocation45_spill] sm:$0xff] %v13256_v48  ;;  %v2004_v6 = vpack.c.bf16 %v13019_v19, %v13005_v51  ;;  %v13277_v51 = vmax.bf16 %v17994_v39, %v2242_v63  ;;  %v2887_v1 = vld [vmem:[#allocation7 + $0xcc0] sm:$0xff]  ;;  %v2012_v54 = vpack.c.bf16 %v13043_v45, %v13029_v40 }
 0x1b0   : > { %v13262_v25 = vpop.f32.mrf.mxu0  ;;  %5940 = vmatpush1.bf16.msra.mxu0 %v11117_v55  ;;  %18008 = vst [vmem:[#allocation46_spill] sm:$0xff] %v13267_v20  ;;  %18009 = vst [vmem:[#allocation47_spill] sm:$0xff] %v13270_v23  ;;  %v13274_v21 = vpop.f32.mrf.mxu1  ;;  %6133 = vmatpush1.bf16.msra.mxu1 %v11245_v41  ;;  %v2763_v55 = vld [vmem:[#allocation7 + $0x8e0] sm:$0xff]  ;;  %v2248_v63 = vadd.bf16 %v13100_v14, %v2013_v22  ;;  %v13326_v40 = vmax.bf16 %v17994_v39, %v2250_v57 }
 0x1b1   : > { %5941 = vmatprep.subr.bf16.mxu0 %v11110_v62  ;;  %18010 = vst [vmem:[#allocation48_spill] sm:$0xff] %v13277_v51  ;;  %6134 = vmatprep.subr.bf16.mxu1 %v11238_v37  ;;  %v2891_v29 = vld [vmem:[#allocation7 + $0xce0] sm:$0xff]  ;;  %v2239_v41 = vadd.bf16 %v13132_v49, %v2004_v6  ;;  %v11101_v62 = vcombine.low %v13219_v43, %v13221_v60 }
 0x1b2   : > { %v13281_v19 = vpop.f32.mrf.mxu0  ;;  %5594 = vmatmul.mubr.bf16.gmra.mxu0 %v13256_v48  ;;  %v13284_v7 = vpop.f32.mrf.mxu1  ;;  %5787 = vmatmul.mubr.bf16.gmra.mxu1 %v13267_v20  ;;  %v13298_v20 = vld [vmem:[#allocation7 + $0x880] sm:$0xff]  ;;  %v11093_v60 = vcombine.low %v2759_v46, %v2763_v55  ;;  %v11221_v43 = vcombine.low %v2887_v1, %v2891_v29  ;;  %18015 = vst [vmem:[#allocation53_spill] sm:$0xff] %v13326_v40 }
 0x1b3   : > { %18011 = vst [vmem:[#allocation49_spill] sm:$0xff] %v13284_v7  ;;  %5603 = vmatprep.mubr.bf16.mxu0 %v13270_v23  ;;  %5796 = vmatprep.mubr.bf16.mxu1 %v13277_v51  ;;  %v11094_v23 = vcombine.high %v2759_v46, %v2763_v55  ;;  %v2755_v6 = vld [vmem:[#allocation7 + $0x8a0] sm:$0xff]  ;;  %v13319_v46 = vmax.bf16 %v17994_v39, %v2248_v63 }
 0x1b4   : > { %v13291_v8 = vpop.f32.mrf.mxu0  ;;  %5942 = vmatpush1.bf16.msra.mxu0 %v11109_v38  ;;  %v13296_v37 = vpop.f32.mrf.mxu1  ;;  %6135 = vmatpush1.bf16.msra.mxu1 %v11237_v2  ;;  %v11222_v38 = vcombine.high %v2887_v1, %v2891_v29  ;;  %v2879_v22 = vld [vmem:[#allocation7 + $0xc80] sm:$0xff]  ;;  %v13306_v2 = vmax.bf16 %v17994_v39, %v2239_v41  ;;  %v11086_v52 = vcombine.high %v13298_v20, %v2755_v6 }
 0x1b5   : > { %5943 = vmatprep.subr.bf16.mxu0 %v11102_v0  ;;  %6136 = vmatprep.subr.bf16.mxu1 %v11230_v27  ;;  %v2883_v7 = vld [vmem:[#allocation7 + $0xca0] sm:$0xff]  ;;  %v13309_v0 = vmax.bf16 %v17994_v39, %v2241_v26  ;;  %v2014_v27 = vpack.c.bf16 %v13045_v28, %v13032_v3  ;;  %18014 = vst [vmem:[#allocation52_spill] sm:$0xff] %v13319_v46 }
 0x1b6   : > { %v13301_v51 = vpop.f32.mrf.mxu0  ;;  %v13303_v48 = vpop.f32.mrf.mxu1  ;;  %18012 = vst [vmem:[#allocation50_spill] sm:$0xff] %v13306_v2  ;;  %v2021_v55 = vpack.c.bf16 %v13070_v34, %v13059_v9  ;;  %v2023_v45 = vpack.c.bf16 %v13072_v35, %v13063_v31  ;;  %v11214_v3 = vcombine.high %v2879_v22, %v2883_v7  ;;  %v2743_v28 = vld [vmem:[#allocation7 + $0x840] sm:$0xff]  ;;  %v11085_v35 = vcombine.low %v13298_v20, %v2755_v6 }
 0x1b7   : > { %18013 = vst [vmem:[#allocation51_spill] sm:$0xff] %v13309_v0  ;;  %v2747_v41 = vld [vmem:[#allocation7 + $0x860] sm:$0xff] }
 0x1b8   : > { %v13313_v47 = vpop.f32.mrf.mxu0  ;;  %5944 = vmatpush1.bf16.msra.mxu0 %v11101_v62  ;;  %v13323_v1 = vpop.f32.mrf.mxu1  ;;  %6137 = vmatpush1.bf16.msra.mxu1 %v11229_v61  ;;  %v2871_v9 = vld [vmem:[#allocation7 + $0xc40] sm:$0xff]  ;;  %v11213_v61 = vcombine.low %v2879_v22, %v2883_v7  ;;  %v2249_v62 = vadd.bf16 %v13139_v36, %v2014_v27  ;;  %v2256_v63 = vadd.bf16 %v13100_v14, %v2021_v55 }
 0x1b9   : > { %5945 = vmatprep.subr.bf16.mxu0 %v11094_v23  ;;  %6138 = vmatprep.subr.bf16.mxu1 %v11222_v38  ;;  %v2875_v34 = vld [vmem:[#allocation7 + $0xc60] sm:$0xff]  ;;  %v2247_v23 = vadd.bf16 %v13132_v49, %v2012_v54  ;;  %v11078_v38 = vcombine.high %v2743_v28, %v2747_v41  ;;  %v11077_v7 = vcombine.low %v2743_v28, %v2747_v41 }
 0x1ba   : > { %v13330_v29 = vpop.f32.mrf.mxu0  ;;  %5604 = vmatmul.mubr.bf16.gmra.mxu0 %v13306_v2  ;;  %v13333_v26 = vpop.f32.mrf.mxu1  ;;  %5797 = vmatmul.mubr.bf16.gmra.mxu1 %v13309_v0  ;;  %v2739_v54 = vld [vmem:[#allocation7 + $0x820] sm:$0xff]  ;;  %v11205_v6 = vcombine.low %v2871_v9, %v2875_v34  ;;  %v13364_v2 = vmax.bf16 %v17994_v39, %v2249_v62  ;;  %v13367_v28 = vmax.bf16 %v17994_v39, %v2256_v63 }
 0x1bb   : > { %5613 = vmatprep.mubr.bf16.mxu0 %v13319_v46  ;;  %5806 = vmatprep.mubr.bf16.mxu1 %v13326_v40  ;;  %v13346_v46 = vld [vmem:[#allocation7 + $0x800] sm:$0xff]  ;;  %v2258_v40 = vadd.bf16 %v13107_v10, %v2023_v45  ;;  %v13354_v55 = vmax.bf16 %v17994_v39, %v2247_v23  ;;  %v2029_v41 = vpack.c.bf16 %v13095_v13, %v13082_v11 }
 0x1bc   : > { %v13339_v31 = vpop.f32.mrf.mxu0  ;;  %5946 = vmatpush1.bf16.msra.mxu0 %v11093_v60  ;;  %v13344_v57 = vpop.f32.mrf.mxu1  ;;  %6139 = vmatpush1.bf16.msra.mxu1 %v11221_v43  ;;  %v11206_v60 = vcombine.high %v2871_v9, %v2875_v34  ;;  %v2863_v22 = vld [vmem:[#allocation7 + $0xc00] sm:$0xff]  ;;  %v2020_v43 = vpack.c.bf16 %v13066_v33, %v13051_v4  ;;  %18017 = vst [vmem:[#allocation55_spill] sm:$0xff] %v13364_v2  ;;  %18018 = vst [vmem:[#allocation56_spill] sm:$0xff] %v13367_v28 }
 0x1bd   : > { %5947 = vmatprep.subr.bf16.mxu0 %v11086_v52  ;;  %6140 = vmatprep.subr.bf16.mxu1 %v11214_v3  ;;  %v2867_v27 = vld [vmem:[#allocation7 + $0xc20] sm:$0xff]  ;;  %18016 = vst [vmem:[#allocation54_spill] sm:$0xff] %v13354_v55  ;;  %v2022_v52 = vpack.c.bf16 %v13068_v44, %v13054_v42  ;;  %v11070_v3 = vcombine.high %v13346_v46, %v2739_v54 }
 0x1be   : > { %v13349_v0 = vpop.f32.mrf.mxu0  ;;  %v13351_v20 = vpop.f32.mrf.mxu1  ;;  %v13374_v4 = vmax.bf16 %v17994_v39, %v2258_v40  ;;  %v2031_v42 = vpack.c.bf16 %v13102_v24, %v13087_v50  ;;  %v11198_v44 = vcombine.high %v2863_v22, %v2867_v27  ;;  %v2855_v34 = vld [vmem:[#allocation7 + $0xbc0] sm:$0xff]  ;;  %v2255_v40 = vadd.bf16 %v13132_v49, %v2020_v43 }
 0x1bf   : > { %v2859_v23 = vld [vmem:[#allocation7 + $0xbe0] sm:$0xff]  ;;  %v2257_v50 = vadd.bf16 %v13139_v36, %v2022_v52  ;;  %v2264_v62 = vadd.bf16 %v13100_v14, %v2029_v41 }
 0x1c0   : > { %v13360_v45 = vpop.f32.mrf.mxu0  ;;  %5948 = vmatpush1.bf16.msra.mxu0 %v11085_v35  ;;  %v13371_v9 = vpop.f32.mrf.mxu1  ;;  %6141 = vmatpush1.bf16.msra.mxu1 %v11213_v61  ;;  %18019 = vst [vmem:[#allocation57_spill] sm:$0xff] %v13374_v4  ;;  %v2983_v11 = vld [vmem:[#allocation7 + $0xfc0] sm:$0xff]  ;;  %v11069_v61 = vcombine.low %v13346_v46, %v2739_v54  ;;  %v2266_v52 = vadd.bf16 %v13107_v10, %v2031_v42 }
 0x1c1   : > { %5949 = vmatprep.subr.bf16.mxu0 %v11078_v38  ;;  %6142 = vmatprep.subr.bf16.mxu1 %v11206_v60  ;;  %v2987_v13 = vld [vmem:[#allocation7 + $0xfe0] sm:$0xff]  ;;  %v11197_v38 = vcombine.low %v2863_v22, %v2867_v27  ;;  %v11190_v60 = vcombine.high %v2855_v34, %v2859_v23  ;;  %v11189_v46 = vcombine.low %v2855_v34, %v2859_v23  ;;  %v18024_v27 = vld [vmem:[#allocation20_spill] sm:$0xff] }
 0x1c2   : > { %v13378_v33 = vpop.f32.mrf.mxu0  ;;  %5614 = vmatmul.mubr.bf16.gmra.mxu0 %v13354_v55  ;;  %v13381_v35 = vpop.f32.mrf.mxu1  ;;  %5807 = vmatmul.mubr.bf16.gmra.mxu1 %v13364_v2  ;;  %v2851_v43 = vld [vmem:[#allocation7 + $0xba0] sm:$0xff]  ;;  %v11317_v54 = vcombine.low %v2983_v11, %v2987_v13  ;;  %v13405_v22 = vmax.bf16 %v17994_v39, %v2257_v50  ;;  %v13415_v23 = vmax.bf16 %v17994_v39, %v2264_v62 }
 0x1c3   : > { %18020 = vst [vmem:[#allocation58_spill] sm:$0xff] %v13381_v35  ;;  %5623 = vmatprep.mubr.bf16.mxu0 %v13367_v28  ;;  %5816 = vmatprep.mubr.bf16.mxu1 %v13374_v4  ;;  %v13394_v28 = vld [vmem:[#allocation7 + $0xb80] sm:$0xff]  ;;  %v11318_v4 = vcombine.high %v2983_v11, %v2987_v13  ;;  %v2039_v50 = vpack.c.bf16 %v13146_v18, %v13122_v59 }
 0x1c4   : > { %v13388_v24 = vpop.f32.mrf.mxu0  ;;  %5950 = vmatpush1.bf16.msra.mxu0 %v11077_v7  ;;  %v13392_v63 = vpop.f32.mrf.mxu1  ;;  %6143 = vmatpush1.bf16.msra.mxu1 %v11205_v6  ;;  %v2975_v41 = vld [vmem:[#allocation7 + $0xf80] sm:$0xff]  ;;  %v13402_v6 = vmax.bf16 %v17994_v39, %v2255_v40  ;;  %18023 = vst [vmem:[#allocation61_spill] sm:$0xff] %v13405_v22  ;;  %18026 = vst [vmem:[#allocation20_spill] sm:$0xff] %v13415_v23  ;;  %v11181_v59 = vcombine.low %v13394_v28, %v2851_v43 }
 0x1c5   : > { %5951 = vmatprep.subr.bf16.mxu0 %v11070_v3  ;;  %6144 = vmatprep.subr.bf16.mxu1 %v11198_v44  ;;  %v2979_v55 = vld [vmem:[#allocation7 + $0xfa0] sm:$0xff]  ;;  %v2028_v3 = vpack.c.bf16 %v13089_v30, %v18024_v27  ;;  %v11182_v44 = vcombine.high %v13394_v28, %v2851_v43  ;;  %v13422_v30 = vmax.bf16 %v17994_v39, %v2266_v52 }
 0x1c6   : > { %v13397_v2 = vpop.f32.mrf.mxu0  ;;  %v13399_v7 = vpop.f32.mrf.mxu1  ;;  %18022 = vst [vmem:[#allocation60_spill] sm:$0xff] %v13402_v6  ;;  %v18025_v35 = vld [vmem:[#allocation21_spill] sm:$0xff] }
 0x1c7   : > { %18021 = vst [vmem:[#allocation59_spill] sm:$0xff] %v13399_v7  ;;  %v2030_v34 = vpack.c.bf16 %v13093_v12, %v18025_v35  ;;  %v18027_v11 = vld [vmem:[#allocation25_spill] sm:$0xff]  ;;  %18028 = vst [vmem:[#allocation21_spill] sm:$0xff] %v13422_v30  ;;  %v11310_v12 = vcombine.high %v2975_v41, %v2979_v55 }
 0x1c8   : > { %v13409_v42 = vpop.f32.mrf.mxu0  ;;  %5952 = vmatpush1.bf16.msra.mxu0 %v11069_v61  ;;  %v2037_v13 = vpack.c.bf16 %v13134_v5, %v18027_v11  ;;  %v13419_v40 = vpop.f32.mrf.mxu1  ;;  %6145 = vmatpush1.bf16.msra.mxu1 %v11197_v38  ;;  %v2839_v35 = vld [vmem:[#allocation7 + $0xb40] sm:$0xff] }
 0x1c9   : > { %5953 = vmatprep.subr.bf16.mxu0 %v11190_v60  ;;  %6146 = vmatprep.subr.bf16.mxu1 %v11318_v4  ;;  %v2843_v62 = vld [vmem:[#allocation7 + $0xb60] sm:$0xff]  ;;  %v2263_v60 = vadd.bf16 %v13132_v49, %v2028_v3  ;;  %v11309_v4 = vcombine.low %v2975_v41, %v2979_v55  ;;  %v2265_v52 = vadd.bf16 %v13139_v36, %v2030_v34 }
 0x1ca   : > { %v13426_v61 = vpop.f32.mrf.mxu0  ;;  %5624 = vmatmul.mubr.bf16.gmra.mxu0 %v13402_v6  ;;  %v13429_v27 = vpop.f32.mrf.mxu1  ;;  %5817 = vmatmul.mubr.bf16.gmra.mxu1 %v13405_v22  ;;  %v2967_v5 = vld [vmem:[#allocation7 + $0xf40] sm:$0xff]  ;;  %v2272_v11 = vadd.bf16 %v13100_v14, %v2037_v13  ;;  %v11173_v55 = vcombine.low %v2839_v35, %v2843_v62 }
 0x1cb   : > { %18029 = vst [vmem:[#allocation25_spill] sm:$0xff] %v13426_v61  ;;  %18030 = vst [vmem:[#allocation62_spill] sm:$0xff] %v13429_v27  ;;  %5633 = vmatprep.mubr.bf16.mxu0 %v13415_v23  ;;  %v2971_v38 = vld [vmem:[#allocation7 + $0xf60] sm:$0xff]  ;;  %5826 = vmatprep.mubr.bf16.mxu1 %v13422_v30  ;;  %v11174_v23 = vcombine.high %v2839_v35, %v2843_v62  ;;  %v2274_v30 = vadd.bf16 %v13107_v10, %v2039_v50  ;;  %v18042_v62 = vld [vmem:[#allocation36_spill] sm:$0xff] }
 0x1cc   : > { %v13435_v18 = vpop.f32.mrf.mxu0  ;;  %5954 = vmatpush2.bf16.msra.mxu0 %v11189_v46  ;;  %v13440_v6 = vpop.f32.mrf.mxu1  ;;  %6147 = vmatpush2.bf16.msra.mxu1 %v11317_v54  ;;  %v13442_v22 = vld [vmem:[#allocation7 + $0xb00] sm:$0xff]  ;;  %v11302_v46 = vcombine.high %v2967_v5, %v2971_v38  ;;  %v11301_v43 = vcombine.low %v2967_v5, %v2971_v38  ;;  %v13450_v13 = vmax.bf16 %v17994_v39, %v2263_v60  ;;  %v18036_v54 = vld [vmem:[#allocation23_spill] sm:$0xff]  ;;  %v18044_v60 = vld [vmem:[#allocation32_spill] sm:$0xff] }
 0x1cd   : > { %18031 = vst [vmem:[#allocation63_spill] sm:$0xff] %v13435_v18  ;;  %18032 = vst [vmem:[#allocation64_spill] sm:$0xff] %v13440_v6  ;;  %5955 = vmatprep.subr.bf16.mxu0 %v11182_v44  ;;  %v2835_v3 = vld [vmem:[#allocation7 + $0xb20] sm:$0xff]  ;;  %6148 = vmatprep.subr.bf16.mxu1 %v11310_v12  ;;  %v18038_v6 = vld [vmem:[#allocation24_spill] sm:$0xff]  ;;  %v13463_v35 = vmax.bf16 %v17994_v39, %v2272_v11  ;;  %v2045_v5 = vpack.c.bf16 %v18042_v62, %v13162_v58 }
 0x1ce   : > { %v13445_v27 = vpop.f32.mrf.mxu0  ;;  %v13447_v28 = vpop.f32.mrf.mxu1  ;;  %v2959_v41 = vld [vmem:[#allocation7 + $0xf00] sm:$0xff]  ;;  %18035 = vst [vmem:[#allocation67_spill] sm:$0xff] %v13450_v13  ;;  %v18039_v18 = vld [vmem:[#allocation27_spill] sm:$0xff]  ;;  %v11166_v12 = vcombine.high %v13442_v22, %v2835_v3 }
 0x1cf   : > { %18033 = vst [vmem:[#allocation65_spill] sm:$0xff] %v13445_v27  ;;  %18034 = vst [vmem:[#allocation66_spill] sm:$0xff] %v13447_v28  ;;  %v2963_v34 = vld [vmem:[#allocation7 + $0xf20] sm:$0xff]  ;;  %v2038_v7 = vpack.c.bf16 %v18039_v18, %v18038_v6  ;;  %v13460_v28 = vmax.bf16 %v17994_v39, %v2265_v52  ;;  %v13470_v6 = vmax.bf16 %v17994_v39, %v2274_v30  ;;  %v18045_v18 = vld [vmem:[#allocation39_spill] sm:$0xff] }
 0x1d0   : > { %v18037_v44 = vld [vmem:[#allocation26_spill] sm:$0xff]  ;;  %v13456_v50 = vpop.f32.mrf.mxu0  ;;  %5956 = vmatpush2.bf16.msra.mxu0 %v11181_v59  ;;  %v13467_v38 = vpop.f32.mrf.mxu1  ;;  %6149 = vmatpush2.bf16.msra.mxu1 %v11309_v4  ;;  %v2047_v59 = vpack.c.bf16 %v18045_v18, %v18044_v60  ;;  %v11294_v52 = vcombine.high %v2959_v41, %v2963_v34  ;;  %v2280_v60 = vadd.bf16 %v13100_v14, %v2045_v5 }
 0x1d1   : > { %v2036_v61 = vpack.c.bf16 %v18037_v44, %v18036_v54  ;;  %18040 = vst [vmem:[#allocation23_spill] sm:$0xff] %v13460_v28  ;;  %18041 = vst [vmem:[#allocation26_spill] sm:$0xff] %v13463_v35  ;;  %5957 = vmatprep.subr.bf16.mxu0 %v11174_v23  ;;  %6150 = vmatprep.subr.bf16.mxu1 %v11302_v46  ;;  %v2823_v11 = vld [vmem:[#allocation7 + $0xac0] sm:$0xff]  ;;  %v2273_v4 = vadd.bf16 %v13139_v36, %v2038_v7 }
 0x1d2   : > { %18043 = vst [vmem:[#allocation24_spill] sm:$0xff] %v13470_v6  ;;  %v13474_v54 = vpop.f32.mrf.mxu0  ;;  %5634 = vmatmul.mubr.bf16.gmra.mxu0 %v13450_v13  ;;  %v2827_v44 = vld [vmem:[#allocation7 + $0xae0] sm:$0xff]  ;;  %v13477_v27 = vpop.f32.mrf.mxu1  ;;  %5827 = vmatmul.mubr.bf16.gmra.mxu1 %v13460_v28  ;;  %v11165_v46 = vcombine.low %v13442_v22, %v2835_v3  ;;  %v2282_v7 = vadd.bf16 %v13107_v10, %v2047_v59 }
 0x1d3   : > { %18046 = vst [vmem:[#allocation27_spill] sm:$0xff] %v13474_v54  ;;  %18047 = vst [vmem:[#allocation36_spill] sm:$0xff] %v13477_v27  ;;  %5643 = vmatprep.mubr.bf16.mxu0 %v13463_v35  ;;  %v2951_v58 = vld [vmem:[#allocation7 + $0xec0] sm:$0xff]  ;;  %v2271_v30 = vadd.bf16 %v13132_v49, %v2036_v61  ;;  %5836 = vmatprep.mubr.bf16.mxu1 %v13470_v6  ;;  %v11293_v35 = vcombine.low %v2959_v41, %v2963_v34 }
 0x1d4   : > { %v2955_v23 = vld [vmem:[#allocation7 + $0xee0] sm:$0xff]  ;;  %v13484_v62 = vpop.f32.mrf.mxu0  ;;  %5958 = vmatpush2.bf16.msra.mxu0 %v11173_v55  ;;  %v13488_v18 = vpop.f32.mrf.mxu1  ;;  %6151 = vmatpush2.bf16.msra.mxu1 %v11301_v43  ;;  %v11158_v28 = vcombine.high %v2823_v11, %v2827_v44  ;;  %v11157_v22 = vcombine.low %v2823_v11, %v2827_v44  ;;  %v13501_v41 = vmax.bf16 %v17994_v39, %v2273_v4 }
 0x1d5   : > { %18048 = vst [vmem:[#allocation32_spill] sm:$0xff] %v13488_v18  ;;  %5959 = vmatprep.subr.bf16.mxu0 %v11166_v12  ;;  %v13490_v13 = vld [vmem:[#allocation7 + $0xa80] sm:$0xff]  ;;  %6152 = vmatprep.subr.bf16.mxu1 %v11294_v52  ;;  %v11286_v6 = vcombine.high %v2951_v58, %v2955_v23  ;;  %v11285_v3 = vcombine.low %v2951_v58, %v2955_v23 }
 0x1d6   : > { %v2819_v61 = vld [vmem:[#allocation7 + $0xaa0] sm:$0xff]  ;;  %v13493_v27 = vpop.f32.mrf.mxu0  ;;  %v13495_v55 = vpop.f32.mrf.mxu1  ;;  %v13498_v43 = vmax.bf16 %v17994_v39, %v2271_v30  ;;  %18052 = vst [vmem:[#allocation70_spill] sm:$0xff] %v13501_v41  ;;  %v13511_v44 = vmax.bf16 %v17994_v39, %v2280_v60  ;;  %v2053_v58 = vpack.c.bf16 %v13262_v25, %v13217_v53  ;;  %v13518_v30 = vmax.bf16 %v17994_v39, %v2282_v7 }
 0x1d7   : > { %18049 = vst [vmem:[#allocation39_spill] sm:$0xff] %v13493_v27  ;;  %18050 = vst [vmem:[#allocation68_spill] sm:$0xff] %v13495_v55  ;;  %v2943_v5 = vld [vmem:[#allocation7 + $0xe80] sm:$0xff]  ;;  %v11150_v52 = vcombine.high %v13490_v13, %v2819_v61  ;;  %v18055_v27 = vld [vmem:[#allocation31_spill] sm:$0xff]  ;;  %v2055_v4 = vpack.c.bf16 %v13274_v21, %v13225_v56  ;;  %v11149_v21 = vcombine.low %v13490_v13, %v2819_v61 }
 0x1d8   : > { %v2947_v54 = vld [vmem:[#allocation7 + $0xea0] sm:$0xff]  ;;  %18051 = vst [vmem:[#allocation69_spill] sm:$0xff] %v13498_v43  ;;  %v13505_v59 = vpop.f32.mrf.mxu0  ;;  %5960 = vmatpush2.bf16.msra.mxu0 %v11165_v46  ;;  %v13515_v23 = vpop.f32.mrf.mxu1  ;;  %6153 = vmatpush2.bf16.msra.mxu1 %v11293_v35  ;;  %v2288_v7 = vadd.bf16 %v13100_v14, %v2053_v58 }
 0x1d9   : > { %v18053_v34 = vld [vmem:[#allocation30_spill] sm:$0xff]  ;;  %v18054_v12 = vld [vmem:[#allocation33_spill] sm:$0xff]  ;;  %5961 = vmatprep.subr.bf16.mxu0 %v11158_v28  ;;  %6154 = vmatprep.subr.bf16.mxu1 %v11286_v6  ;;  %v11277_v35 = vcombine.low %v2943_v5, %v2947_v54 }
 0x1da   : > { %v2044_v18 = vpack.c.bf16 %v18054_v12, %v18053_v34  ;;  %v18056_v55 = vld [vmem:[#allocation34_spill] sm:$0xff]  ;;  %18057 = vst [vmem:[#allocation30_spill] sm:$0xff] %v13511_v44  ;;  %18058 = vst [vmem:[#allocation33_spill] sm:$0xff] %v13518_v30  ;;  %v13522_v46 = vpop.f32.mrf.mxu0  ;;  %5644 = vmatmul.mubr.bf16.gmra.mxu0 %v13498_v43  ;;  %v13525_v34 = vpop.f32.mrf.mxu1  ;;  %5837 = vmatmul.mubr.bf16.gmra.mxu1 %v13501_v41 }
 0x1db   : > { %v2046_v11 = vpack.c.bf16 %v18056_v55, %v18055_v27  ;;  %18059 = vst [vmem:[#allocation31_spill] sm:$0xff] %v13522_v46  ;;  %v11278_v27 = vcombine.high %v2943_v5, %v2947_v54  ;;  %v2807_v60 = vld [vmem:[#allocation7 + $0xa40] sm:$0xff]  ;;  %18060 = vst [vmem:[#allocation34_spill] sm:$0xff] %v13525_v34  ;;  %5653 = vmatprep.mubr.bf16.mxu0 %v13511_v44  ;;  %5846 = vmatprep.mubr.bf16.mxu1 %v13518_v30  ;;  %v18066_v46 = vld [vmem:[#allocation44_spill] sm:$0xff] }
 0x1dc   : > { %v2811_v55 = vld [vmem:[#allocation7 + $0xa60] sm:$0xff]  ;;  %v2279_v28 = vadd.bf16 %v13132_v49, %v2044_v18  ;;  %v13531_v56 = vpop.f32.mrf.mxu0  ;;  %5962 = vmatpush2.bf16.msra.mxu0 %v11157_v22  ;;  %v13536_v12 = vpop.f32.mrf.mxu1  ;;  %6155 = vmatpush2.bf16.msra.mxu1 %v11285_v3  ;;  %v2290_v18 = vadd.bf16 %v13107_v10, %v2055_v4 }
 0x1dd   : > { %v2935_v53 = vld [vmem:[#allocation7 + $0xe40] sm:$0xff]  ;;  %v2281_v6 = vadd.bf16 %v13139_v36, %v2046_v11  ;;  %18061 = vst [vmem:[#allocation71_spill] sm:$0xff] %v13536_v12  ;;  %5963 = vmatprep.subr.bf16.mxu0 %v11150_v52  ;;  %v11142_v44 = vcombine.high %v2807_v60, %v2811_v55  ;;  %6156 = vmatprep.subr.bf16.mxu1 %v11278_v27 }
 0x1de   : > { %v2939_v25 = vld [vmem:[#allocation7 + $0xe60] sm:$0xff]  ;;  %v13539_v30 = vpop.f32.mrf.mxu0  ;;  %v13541_v34 = vpop.f32.mrf.mxu1  ;;  %v11141_v13 = vcombine.low %v2807_v60, %v2811_v55  ;;  %v13544_v11 = vmax.bf16 %v17994_v39, %v2279_v28  ;;  %v13556_v60 = vmax.bf16 %v17994_v39, %v2288_v7  ;;  %v2061_v55 = vpack.c.bf16 %v13313_v47, %v13291_v8  ;;  %v18070_v7 = vld [vmem:[#allocation43_spill] sm:$0xff] }
 0x1df   : > { %v2799_v41 = vld [vmem:[#allocation7 + $0xa00] sm:$0xff]  ;;  %18062 = vst [vmem:[#allocation72_spill] sm:$0xff] %v13539_v30  ;;  %v11270_v22 = vcombine.high %v2935_v53, %v2939_v25  ;;  %v11269_v54 = vcombine.low %v2935_v53, %v2939_v25  ;;  %v13553_v30 = vmax.bf16 %v17994_v39, %v2281_v6 }
 0x1e0   : > { %v2803_v43 = vld [vmem:[#allocation7 + $0xa20] sm:$0xff]  ;;  %18063 = vst [vmem:[#allocation73_spill] sm:$0xff] %v13544_v11  ;;  %v13550_v4 = vpop.f32.mrf.mxu0  ;;  %5964 = vmatpush2.bf16.msra.mxu0 %v11149_v21  ;;  %v13560_v53 = vpop.f32.mrf.mxu1  ;;  %6157 = vmatpush2.bf16.msra.mxu1 %v11277_v35 }
 0x1e1   : > { %v2927_v61 = vld [vmem:[#allocation7 + $0xe00] sm:$0xff]  ;;  %v11134_v27 = vcombine.high %v2799_v41, %v2803_v43  ;;  %5965 = vmatprep.subr.bf16.mxu0 %v11142_v44  ;;  %6158 = vmatprep.subr.bf16.mxu1 %v11270_v22 }
 0x1e2   : > { %v2931_v5 = vld [vmem:[#allocation7 + $0xe20] sm:$0xff]  ;;  %v13567_v25 = vpop.f32.mrf.mxu0  ;;  %5654 = vmatmul.mubr.bf16.gmra.mxu0 %v13544_v11  ;;  %v13570_v21 = vpop.f32.mrf.mxu1  ;;  %5847 = vmatmul.mubr.bf16.gmra.mxu1 %v13553_v30 }
 0x1e3   : > { %v18064_v3 = vld [vmem:[#allocation41_spill] sm:$0xff]  ;;  %v18065_v58 = vld [vmem:[#allocation42_spill] sm:$0xff]  ;;  %v11262_v28 = vcombine.high %v2927_v61, %v2931_v5  ;;  %5663 = vmatprep.mubr.bf16.mxu0 %v13556_v60  ;;  %v11261_v6 = vcombine.low %v2927_v61, %v2931_v5 }
 0x1e4   : > { %v2052_v52 = vpack.c.bf16 %v13233_v32, %v18064_v3  ;;  %v2054_v12 = vpack.c.bf16 %v18066_v46, %v18065_v58  ;;  %18067 = vst [vmem:[#allocation41_spill] sm:$0xff] %v13553_v30  ;;  %18068 = vst [vmem:[#allocation42_spill] sm:$0xff] %v13556_v60  ;;  %v13563_v32 = vmax.bf16 %v17994_v39, %v2290_v18  ;;  %v13577_v44 = vpop.f32.mrf.mxu0  ;;  %5966 = vmatpush2.bf16.msra.mxu0 %v11141_v13  ;;  %v13580_v35 = vpop.f32.mrf.mxu1  ;;  %v18073_v5 = vld [vmem:[#allocation49_spill] sm:$0xff] }
 0x1e5   : > { %v2063_v46 = vpack.c.bf16 %v13323_v1, %v13296_v37  ;;  %v11133_v37 = vcombine.low %v2799_v41, %v2803_v43  ;;  %v2296_v1 = vadd.bf16 %v13100_v14, %v2061_v55  ;;  %6159 = vmatpush2.bf16.msra.mxu1 %v11269_v54  ;;  %5967 = vmatprep.subr.bf16.mxu0 %v11134_v27  ;;  %v12235_v30 = vld [vmem:[#allocation5] sm:$0xff] }
 0x1e6   : > { %18069 = vst [vmem:[#allocation44_spill] sm:$0xff] %v13563_v32  ;;  %v2287_v8 = vadd.bf16 %v13132_v49, %v2052_v52  ;;  %v2289_v47 = vadd.bf16 %v13139_v36, %v2054_v12  ;;  %5856 = vmatprep.mubr.bf16.mxu1 %v13563_v32  ;;  %v10872_v18 = vcombine.high %v18070_v7, %v13239_v17  ;;  %v13585_v3 = vpop.f32.mrf.mxu0  ;;  %v13589_v13 = vpop.f32.mrf.mxu1 }
 0x1e7   : > { %v2298_v22 = vadd.bf16 %v13107_v10, %v2063_v46  ;;  %6160 = vmatprep.subr.bf16.mxu1 %v11262_v28  ;;  %v11000_v12 = vcombine.high %v13241_v15, %v13253_v16  ;;  %v2060_v54 = vpack.c.bf16 %v13301_v51, %v13281_v19  ;;  %v2062_v52 = vpack.c.bf16 %v13303_v48, %v18073_v5 }
 0x1e8   : > { %v13592_v43 = vmax.bf16 %v17994_v39, %v2287_v8  ;;  %v13595_v41 = vmax.bf16 %v17994_v39, %v2289_v47  ;;  %v13599_v61 = vpop.f32.mrf.mxu0  ;;  %5968 = vmatpush2.bf16.msra.mxu0 %v11133_v37  ;;  %v13604_v58 = vmax.bf16 %v17994_v39, %v2296_v1  ;;  %v2069_v27 = vpack.c.bf16 %v13360_v45, %v13339_v31  ;;  %v13608_v55 = vpop.f32.mrf.mxu1 }
 0x1e9   : > { %6161 = vmatpush2.bf16.msra.mxu1 %v11261_v6  ;;  %6323 = vmatprep.subr.bf16.mxu0 %v10872_v18  ;;  %v13611_v46 = vmax.bf16 %v17994_v39, %v2298_v22  ;;  %v2071_v51 = vpack.c.bf16 %v13371_v9, %v13344_v57  ;;  %v2295_v31 = vadd.bf16 %v13132_v49, %v2060_v54 }
 0x1ea   : > { %18071 = vst [vmem:[#allocation43_spill] sm:$0xff] %v13592_v43  ;;  %18072 = vst [vmem:[#allocation74_spill] sm:$0xff] %v13595_v41  ;;  %v13615_v19 = vpop.f32.mrf.mxu0  ;;  %5664 = vmatmul.mubr.bf16.gmra.mxu0 %v13592_v43  ;;  %6516 = vmatprep.subr.bf16.mxu1 %v11000_v12  ;;  %v13618_v48 = vpop.f32.mrf.mxu1  ;;  %v2297_v28 = vadd.bf16 %v13139_v36, %v2062_v52  ;;  %v2304_v57 = vadd.bf16 %v13100_v14, %v2069_v27 }
 0x1eb   : > { %18074 = vst [vmem:[#allocation49_spill] sm:$0xff] %v13604_v58  ;;  %18075 = vst [vmem:[#allocation75_spill] sm:$0xff] %v13611_v46  ;;  %5857 = vmatmul.mubr.bf16.gmra.mxu1 %v13595_v41  ;;  %5673 = vmatprep.mubr.bf16.mxu0 %v13604_v58  ;;  %v2306_v8 = vadd.bf16 %v13107_v10, %v2071_v51  ;;  %v13636_v1 = vmax.bf16 %v17994_v39, %v2295_v31  ;;  %v18093_v41 = vld [vmem:[#allocation66_spill] sm:$0xff] }
 0x1ec   : > { %5866 = vmatprep.mubr.bf16.mxu1 %v13611_v46  ;;  %v13624_v45 = vpop.f32.mrf.mxu0  ;;  %v13628_v9 = vpop.f32.mrf.mxu1  ;;  %v2068_v6 = vpack.c.bf16 %v13349_v0, %v13330_v29  ;;  %v13643_v22 = vmax.bf16 %v17994_v39, %v2297_v28  ;;  %v2070_v12 = vpack.c.bf16 %v13351_v20, %v13333_v26  ;;  %v13648_v54 = vmax.bf16 %v17994_v39, %v2304_v57 }
 0x1ed   : > { %18076 = vst [vmem:[#allocation76_spill] sm:$0xff] %v13636_v1  ;;  %v2077_v5 = vpack.c.bf16 %v13409_v42, %v13388_v24  ;;  %v13655_v27 = vmax.bf16 %v17994_v39, %v2306_v8  ;;  %v2079_v0 = vpack.c.bf16 %v13419_v40, %v13392_v63  ;;  %v2076_v8 = vpack.c.bf16 %v13397_v2, %v13378_v33  ;;  %v18087_v2 = vld [vmem:[#allocation64_spill] sm:$0xff] }
 0x1ee   : > { %v13631_v47 = vpop.f32.mrf.mxu0  ;;  %v13633_v37 = vpop.f32.mrf.mxu1  ;;  %18077 = vst [vmem:[#allocation77_spill] sm:$0xff] %v13643_v22  ;;  %18078 = vst [vmem:[#allocation78_spill] sm:$0xff] %v13648_v54  ;;  %v2303_v26 = vadd.bf16 %v13132_v49, %v2068_v6  ;;  %v2305_v24 = vadd.bf16 %v13139_v36, %v2070_v12  ;;  %v2087_v33 = vpack.c.bf16 %v13467_v38, %v18087_v2 }
 0x1ef   : > { %18079 = vst [vmem:[#allocation79_spill] sm:$0xff] %v13655_v27  ;;  %v2312_v63 = vadd.bf16 %v13100_v14, %v2077_v5  ;;  %v2314_v40 = vadd.bf16 %v13107_v10, %v2079_v0  ;;  %v18082_v5 = vld [vmem:[#allocation58_spill] sm:$0xff]  ;;  %v2093_v32 = vpack.c.bf16 %v13505_v59, %v13484_v62 }
 0x1f0   : > { %v13640_v18 = vpop.f32.mrf.mxu0  ;;  %v13652_v52 = vpop.f32.mrf.mxu1  ;;  %v13680_v57 = vmax.bf16 %v17994_v39, %v2303_v26  ;;  %v13687_v12 = vmax.bf16 %v17994_v39, %v2305_v24 }
 0x1f1   : > { %v13692_v0 = vmax.bf16 %v17994_v39, %v2312_v63  ;;  %v13699_v26 = vmax.bf16 %v17994_v39, %v2314_v40  ;;  %v2322_v40 = vadd.bf16 %v13107_v10, %v2087_v33 }
 0x1f2   : > { %v13659_v29 = vpop.f32.mrf.mxu0  ;;  %5674 = vmatmul.mubr.bf16.gmra.mxu0 %v13636_v1  ;;  %v13662_v51 = vpop.f32.mrf.mxu1  ;;  %18080 = vst [vmem:[#allocation80_spill] sm:$0xff] %v13680_v57  ;;  %18081 = vst [vmem:[#allocation81_spill] sm:$0xff] %v13687_v12 }
 0x1f3   : > { %5867 = vmatmul.mubr.bf16.gmra.mxu1 %v13643_v22  ;;  %5683 = vmatprep.mubr.bf16.mxu0 %v13648_v54  ;;  %18084 = vst [vmem:[#allocation58_spill] sm:$0xff] %v13692_v0  ;;  %v18085_v22 = vld [vmem:[#allocation63_spill] sm:$0xff] }
 0x1f4   : > { %5876 = vmatprep.mubr.bf16.mxu1 %v13655_v27  ;;  %v13668_v20 = vpop.f32.mrf.mxu0  ;;  %v13672_v42 = vpop.f32.mrf.mxu1  ;;  %v18083_v27 = vld [vmem:[#allocation59_spill] sm:$0xff]  ;;  %v2085_v1 = vpack.c.bf16 %v13456_v50, %v18085_v22  ;;  %v2311_v50 = vadd.bf16 %v13132_v49, %v2076_v8  ;;  %v18089_v8 = vld [vmem:[#allocation25_spill] sm:$0xff] }
 0x1f5   : > { %v2078_v54 = vpack.c.bf16 %v18083_v27, %v18082_v5  ;;  %18086 = vst [vmem:[#allocation59_spill] sm:$0xff] %v13699_v26 }
 0x1f6   : > { %v13675_v31 = vpop.f32.mrf.mxu0  ;;  %v13677_v28 = vpop.f32.mrf.mxu1  ;;  %v2320_v38 = vadd.bf16 %v13100_v14, %v2085_v1  ;;  %v18092_v1 = vld [vmem:[#allocation62_spill] sm:$0xff] }
 0x1f7   : > { %v2313_v27 = vadd.bf16 %v13139_v36, %v2078_v54  ;;  %v2086_v43 = vpack.c.bf16 %v18093_v41, %v18092_v1  ;;  %v18100_v1 = vld [vmem:[#allocation19_spill] sm:$0xff] }
 0x1f8   : > { %v13684_v6 = vpop.f32.mrf.mxu0  ;;  %v13696_v46 = vpop.f32.mrf.mxu1  ;;  %v13736_v33 = vmax.bf16 %v17994_v39, %v2320_v38 }
 0x1f9   : > { %v13731_v54 = vmax.bf16 %v17994_v39, %v2313_v27  ;;  %v2118_v27 = vcombine.high %v12235_v30, %v12235_v30  ;;  %v2328_v30 = vadd.bf16 %v13100_v14, %v2093_v32 }
 0x1fa   : > { %v13703_v58 = vpop.f32.mrf.mxu0  ;;  %5684 = vmatmul.mubr.bf16.gmra.mxu0 %v13680_v57  ;;  %v13706_v24 = vpop.f32.mrf.mxu1  ;;  %18094 = vst [vmem:[#allocation25_spill] sm:$0xff] %v13736_v33 }
 0x1fb   : > { %5877 = vmatmul.mubr.bf16.gmra.mxu1 %v13687_v12  ;;  %5693 = vmatprep.mubr.bf16.mxu0 %v13692_v0  ;;  %v13724_v0 = vmax.bf16 %v17994_v39, %v2311_v50  ;;  %v18090_v12 = vld [vmem:[#allocation65_spill] sm:$0xff]  ;;  %18091 = vst [vmem:[#allocation64_spill] sm:$0xff] %v13731_v54  ;;  %v13743_v50 = vmax.bf16 %v17994_v39, %v2322_v40 }
 0x1fc   : > { %5886 = vmatprep.mubr.bf16.mxu1 %v13699_v26  ;;  %v13712_v22 = vpop.f32.mrf.mxu0  ;;  %v13716_v63 = vpop.f32.mrf.mxu1  ;;  %v2084_v26 = vpack.c.bf16 %v18090_v12, %v18089_v8  ;;  %v18096_v12 = vld [vmem:[#allocation32_spill] sm:$0xff] }
 0x1fd   : > { %18088 = vst [vmem:[#allocation63_spill] sm:$0xff] %v13724_v0  ;;  %18095 = vst [vmem:[#allocation65_spill] sm:$0xff] %v13743_v50  ;;  %v2095_v8 = vpack.c.bf16 %v13515_v23, %v18096_v12  ;;  %v2321_v23 = vadd.bf16 %v13139_v36, %v2086_v43  ;;  %v2132_v12 = vrot.slane %v2118_v27, %v18100_v1  ;;  %v18108_v43 = vld [vmem:[#allocation36_spill] sm:$0xff] }
 0x1fe   : > { %v13719_v5 = vpop.f32.mrf.mxu0  ;;  %v13721_v2 = vpop.f32.mrf.mxu1  ;;  %v2319_v62 = vadd.bf16 %v13132_v49, %v2084_v26  ;;  %v13781_v27 = vmax.bf16 %v17994_v39, %v2328_v30 }
 0x1ff   : > { %v2330_v40 = vadd.bf16 %v13107_v10, %v2095_v8  ;;  %v13776_v32 = vmax.bf16 %v17994_v39, %v2321_v23 }
 0x200   : > { %v13728_v57 = vpop.f32.mrf.mxu0  ;;  %v13740_v60 = vpop.f32.mrf.mxu1  ;;  %v13769_v26 = vmax.bf16 %v17994_v39, %v2319_v62  ;;  %18110 = vst [vmem:[#allocation36_spill] sm:$0xff] %v13781_v27 }
 0x201   : > { %v13788_v62 = vmax.bf16 %v17994_v39, %v2330_v40 }
 0x202   : > { %v13747_v11 = vpop.f32.mrf.mxu0  ;;  %5694 = vmatmul.mubr.bf16.gmra.mxu0 %v13724_v0  ;;  %v13750_v41 = vpop.f32.mrf.mxu1  ;;  %18103 = vst [vmem:[#allocation84_spill] sm:$0xff] %v13769_v26 }
 0x203   : > { %18097 = vst [vmem:[#allocation62_spill] sm:$0xff] %v13747_v11  ;;  %18098 = vst [vmem:[#allocation66_spill] sm:$0xff] %v13750_v41  ;;  %5887 = vmatmul.mubr.bf16.gmra.mxu1 %v13731_v54  ;;  %5703 = vmatprep.mubr.bf16.mxu0 %v13736_v33  ;;  %v18105_v33 = vld [vmem:[#allocation39_spill] sm:$0xff] }
 0x204   : > { %5896 = vmatprep.mubr.bf16.mxu1 %v13743_v50  ;;  %v13756_v59 = vpop.f32.mrf.mxu0  ;;  %v13760_v38 = vpop.f32.mrf.mxu1  ;;  %v18104_v50 = vld [vmem:[#allocation27_spill] sm:$0xff]  ;;  %18107 = vst [vmem:[#allocation39_spill] sm:$0xff] %v13776_v32 }
 0x205   : > { %18099 = vst [vmem:[#allocation32_spill] sm:$0xff] %v13760_v38  ;;  %v2092_v41 = vpack.c.bf16 %v18105_v33, %v18104_v50  ;;  %v18109_v38 = vld [vmem:[#allocation68_spill] sm:$0xff]  ;;  %v18112_v33 = vld [vmem:[#allocation71_spill] sm:$0xff] }
 0x206   : > { %v13764_v0 = vpop.f32.mrf.mxu0  ;;  %v13766_v54 = vpop.f32.mrf.mxu1  ;;  %v2094_v8 = vpack.c.bf16 %v18109_v38, %v18108_v43  ;;  %18111 = vst [vmem:[#allocation68_spill] sm:$0xff] %v13788_v62  ;;  %v2103_v50 = vpack.c.bf16 %v13560_v53, %v18112_v33 }
 0x207   : > { %18101 = vst [vmem:[#allocation82_spill] sm:$0xff] %v13764_v0  ;;  %18102 = vst [vmem:[#allocation83_spill] sm:$0xff] %v13766_v54  ;;  %v2101_v54 = vpack.c.bf16 %v13550_v4, %v13531_v56  ;;  %v2327_v56 = vadd.bf16 %v13132_v49, %v2092_v41 }
 0x208   : > { %v13773_v11 = vpop.f32.mrf.mxu0  ;;  %v13785_v0 = vpop.f32.mrf.mxu1  ;;  %v2329_v30 = vadd.bf16 %v13139_v36, %v2094_v8  ;;  %v2338_v43 = vadd.bf16 %v13107_v10, %v2103_v50  ;;  %v18121_v8 = vld [vmem:[#allocation34_spill] sm:$0xff] }
 0x209   : > { %18106 = vst [vmem:[#allocation27_spill] sm:$0xff] %v13773_v11  ;;  %v2134_v11 = vcombine.high %v2132_v12, %v2132_v12  ;;  %v2336_v53 = vadd.bf16 %v13100_v14, %v2101_v54  ;;  %v13814_v41 = vmax.bf16 %v17994_v39, %v2327_v56  ;;  %v2102_v50 = vpack.c.bf16 %v13541_v34, %v18121_v8 }
 0x20a   : > { %v13792_v23 = vpop.f32.mrf.mxu0  ;;  %5704 = vmatmul.mubr.bf16.gmra.mxu0 %v13769_v26  ;;  %v13795_v38 = vpop.f32.mrf.mxu1  ;;  %v13821_v54 = vmax.bf16 %v17994_v39, %v2329_v30  ;;  %v13833_v56 = vmax.bf16 %v17994_v39, %v2338_v43 }
 0x20b   : > { %18113 = vst [vmem:[#allocation71_spill] sm:$0xff] %v13792_v23  ;;  %18114 = vst [vmem:[#allocation85_spill] sm:$0xff] %v13795_v38  ;;  %5897 = vmatmul.mubr.bf16.gmra.mxu1 %v13776_v32  ;;  %5713 = vmatprep.mubr.bf16.mxu0 %v13781_v27  ;;  %v2162_v33 = vrot.slane %v2134_v11, %v18100_v1  ;;  %v18119_v27 = vld [vmem:[#allocation72_spill] sm:$0xff]  ;;  %v13826_v11 = vmax.bf16 %v17994_v39, %v2336_v53 }
 0x20c   : > { %5906 = vmatprep.mubr.bf16.mxu1 %v13788_v62  ;;  %v13801_v4 = vpop.f32.mrf.mxu0  ;;  %v13805_v40 = vpop.f32.mrf.mxu1  ;;  %18117 = vst [vmem:[#allocation88_spill] sm:$0xff] %v13814_v41  ;;  %v18118_v62 = vld [vmem:[#allocation31_spill] sm:$0xff]  ;;  %18123 = vst [vmem:[#allocation34_spill] sm:$0xff] %v13833_v56 }
 0x20d   : > { %v2100_v38 = vpack.c.bf16 %v18119_v27, %v18118_v62  ;;  %18120 = vst [vmem:[#allocation31_spill] sm:$0xff] %v13821_v54  ;;  %18122 = vst [vmem:[#allocation72_spill] sm:$0xff] %v13826_v11  ;;  %v2111_v27 = vpack.c.bf16 %v13608_v55, %v13580_v35  ;;  %v2166_v62 = vcombine.high %v2162_v33, %v2162_v33 }
 0x20e   : > { %v13809_v26 = vpop.f32.mrf.mxu0  ;;  %v13811_v32 = vpop.f32.mrf.mxu1  ;;  %v2203_v53 = vpack.i.b16 %v2162_v33, %v2162_v33  ;;  %v2337_v35 = vadd.bf16 %v13139_v36, %v2102_v50 }
 0x20f   : > { %18115 = vst [vmem:[#allocation86_spill] sm:$0xff] %v13809_v26  ;;  %18116 = vst [vmem:[#allocation87_spill] sm:$0xff] %v13811_v32  ;;  %v2109_v32 = vpack.c.bf16 %v13599_v61, %v13577_v44  ;;  %v2335_v44 = vadd.bf16 %v13132_v49, %v2100_v38  ;;  %v2148_v61 = vrot.slane %v2132_v12, %v18100_v1  ;;  %v18126_v1 = vld [vmem:[#allocation22_spill] sm:$0xff] }
 0x210   : > { %v13818_v23 = vpop.f32.mrf.mxu0  ;;  %v13830_v26 = vpop.f32.mrf.mxu1  ;;  %v2108_v38 = vpack.c.bf16 %v13585_v3, %v13567_v25  ;;  %v13864_v50 = vrot.slane %v2203_v53, %v18126_v1  ;;  %v1995_v3 = vpack.c.bf16 %v13652_v52, %v13628_v9 }
 0x211   : > { %v2344_v55 = vadd.bf16 %v13100_v14, %v2109_v32  ;;  %v13859_v12 = vmax.bf16 %v17994_v39, %v2335_v44  ;;  %v2164_v33 = vcombine.high %v2148_v61, %v2148_v61  ;;  %v13869_v32 = vmax.bf16 %v17994_v39, %v2337_v35 }
 0x212   : > { %v13837_v30 = vpop.f32.mrf.mxu0  ;;  %5714 = vmatmul.mubr.bf16.gmra.mxu0 %v13814_v41  ;;  %v13840_v34 = vpop.f32.mrf.mxu1  ;;  %v2346_v41 = vadd.bf16 %v13107_v10, %v2111_v27  ;;  %v2110_v10 = vpack.c.bf16 %v13589_v13, %v13570_v21  ;;  %v2343_v13 = vadd.bf16 %v13132_v49, %v2108_v38 }
 0x213   : > { %18124 = vst [vmem:[#allocation89_spill] sm:$0xff] %v13840_v34  ;;  %5907 = vmatmul.mubr.bf16.gmra.mxu1 %v13821_v54  ;;  %5723 = vmatprep.mubr.bf16.mxu0 %v13826_v11  ;;  %v2217_v54 = vpack.i.b16 %v2166_v62, %v2166_v62  ;;  %18125 = vst [vmem:[#allocation90_spill] sm:$0xff] %v13859_v12  ;;  %v13874_v27 = vmax.bf16 %v17994_v39, %v2344_v55 }
 0x214   : > { %5916 = vmatprep.mubr.bf16.mxu1 %v13833_v56  ;;  %v13847_v43 = vpop.f32.mrf.mxu0  ;;  %v13851_v8 = vpop.f32.mrf.mxu1  ;;  %18127 = vst [vmem:[#allocation91_spill] sm:$0xff] %v13869_v32  ;;  %v1993_v62 = vpack.c.bf16 %v13640_v18, %v13624_v45  ;;  %v13881_v25 = vmax.bf16 %v17994_v39, %v2346_v41  ;;  %v2196_v45 = vpack.i.b16 %v2148_v61, %v2148_v61 }
 0x215   : > { %18128 = vst [vmem:[#allocation92_spill] sm:$0xff] %v13874_v27  ;;  %v13886_v53 = vrot.slane %v2217_v54, %v18126_v1  ;;  %v2210_v18 = vpack.i.b16 %v2164_v33, %v2164_v33  ;;  %v2345_v52 = vadd.bf16 %v13139_v36, %v2110_v10  ;;  %v13909_v49 = vmax.bf16 %v17994_v39, %v2343_v13 }
 0x216   : > { %v13854_v34 = vpop.f32.mrf.mxu0  ;;  %v13856_v11 = vpop.f32.mrf.mxu1  ;;  %18129 = vst [vmem:[#allocation93_spill] sm:$0xff] %v13881_v25  ;;  %v2228_v41 = vadd.bf16 %v13864_v50, %v1993_v62  ;;  %v1992_v61 = vpack.c.bf16 %v13631_v47, %v13615_v19  ;;  %v13914_v38 = vrot.slane %v2196_v45, %v18126_v1  ;;  %v1994_v62 = vpack.c.bf16 %v13633_v37, %v13618_v48 }
 0x217   : > { %v2230_v55 = vadd.bf16 %v13886_v53, %v1995_v3  ;;  %18130 = vst [vmem:[#allocation94_spill] sm:$0xff] %v13909_v49  ;;  %v13917_v36 = vrot.slane %v2210_v18, %v18126_v1  ;;  %v13922_v10 = vmax.bf16 %v17994_v39, %v2345_v52  ;;  %v2001_v19 = vpack.c.bf16 %v13684_v6, %v13668_v20  ;;  %v2528_v6 = vld [vmem:[#allocation7 + $0x188] sm:$0xff] }
 0x218   : > { %v13866_v14 = vpop.f32.mrf.mxu0  ;;  %v13878_v44 = vpop.f32.mrf.mxu1  ;;  %v13927_v3 = vmax.bf16 %v17994_v39, %v2228_v41  ;;  %v2003_v45 = vpack.c.bf16 %v13696_v46, %v13672_v42  ;;  %v2227_v48 = vadd.bf16 %v13914_v38, %v1992_v61  ;;  %v2532_v41 = vld [vmem:[#allocation7 + $0x1a8] sm:$0xff]  ;;  %v2009_v56 = vpack.c.bf16 %v13728_v57, %v13712_v22 }
 0x219   : > { %18131 = vst [vmem:[#allocation95_spill] sm:$0xff] %v13922_v10  ;;  %v13934_v13 = vmax.bf16 %v17994_v39, %v2230_v55  ;;  %v2229_v20 = vadd.bf16 %v13917_v36, %v1994_v62  ;;  %v2236_v46 = vadd.bf16 %v13864_v50, %v2001_v19  ;;  %v2660_v61 = vld [vmem:[#allocation7 + $0x5a8] sm:$0xff]  ;;  %v2000_v62 = vpack.c.bf16 %v13675_v31, %v13659_v29 }
 0x21a   : > { %v13888_v35 = vpop.f32.mrf.mxu0  ;;  %5724 = vmatmul.mubr.bf16.gmra.mxu0 %v13859_v12  ;;  %v13891_v21 = vpop.f32.mrf.mxu1  ;;  %18132 = vst [vmem:[#allocation96_spill] sm:$0xff] %v13927_v3  ;;  %v2238_v55 = vadd.bf16 %v13886_v53, %v2003_v45  ;;  %v10864_v19 = vcombine.high %v2528_v6, %v2532_v41  ;;  %v2002_v45 = vpack.c.bf16 %v13677_v28, %v13662_v51  ;;  %v13979_v29 = vld [vmem:[#allocation7 + $0x168] sm:$0xff] }
 0x21b   : > { %5917 = vmatmul.mubr.bf16.gmra.mxu1 %v13869_v32  ;;  %5733 = vmatprep.mubr.bf16.mxu0 %v13874_v27  ;;  %18133 = vst [vmem:[#allocation97_spill] sm:$0xff] %v13934_v13  ;;  %v13971_v27 = vmax.bf16 %v17994_v39, %v2236_v46  ;;  %v10863_v57 = vcombine.low %v2528_v6, %v2532_v41  ;;  %v13993_v22 = vld [vmem:[#allocation7 + $0x548] sm:$0xff] }
 0x21c   : > { %5926 = vmatprep.mubr.bf16.mxu1 %v13881_v25  ;;  %v13897_v9 = vpop.f32.mrf.mxu0  ;;  %v13901_v54 = vpop.f32.mrf.mxu1  ;;  %v13966_v25 = vmax.bf16 %v17994_v39, %v2229_v20  ;;  %v13982_v31 = vmax.bf16 %v17994_v39, %v2238_v55  ;;  %v2011_v20 = vpack.c.bf16 %v13740_v60, %v13716_v63  ;;  %v2652_v46 = vld [vmem:[#allocation7 + $0x568] sm:$0xff]  ;;  %v2235_v55 = vadd.bf16 %v13914_v38, %v2000_v62 }
 0x21d   : > { %18138 = vst [vmem:[#allocation102_spill] sm:$0xff] %v13971_v27  ;;  %v18142_v60 = vcombine.low %v18070_v7, %v13239_v17  ;;  %v14006_v6 = vld [vmem:[#allocation7 + $0x9e8] sm:$0xff]  ;;  %v2237_v41 = vadd.bf16 %v13917_v36, %v2002_v45  ;;  %v2244_v62 = vadd.bf16 %v13864_v50, %v2009_v56  ;;  %v18145_v17 = vcombine.low %v13241_v15, %v13253_v16 }
 0x21e   : > { %v13904_v12 = vpop.f32.mrf.mxu0  ;;  %v13906_v32 = vpop.f32.mrf.mxu1  ;;  %18137 = vst [vmem:[#allocation101_spill] sm:$0xff] %v13966_v25  ;;  %18139 = vst [vmem:[#allocation103_spill] sm:$0xff] %v13982_v31  ;;  %v14015_v7 = vld [vmem:[#allocation7 + $0x108] sm:$0xff]  ;;  %v10984_v56 = vcombine.high %v13993_v22, %v2652_v46 }
 0x21f   : > { %18144 = vst [vmem:[#allocation107_spill] sm:$0xff] %v14006_v6  ;;  %v14025_v45 = vld [vmem:[#allocation7 + $0xdc8] sm:$0xff]  ;;  %v2010_v6 = vpack.c.bf16 %v13721_v2, %v13706_v24  ;;  %v18154_v24 = vld [vmem:[#allocation32_spill] sm:$0xff] }
 0x220   : > { %v13919_v33 = vpop.f32.mrf.mxu0  ;;  %v13931_v47 = vpop.f32.mrf.mxu1  ;;  %18146 = vst [vmem:[#allocation108_spill] sm:$0xff] %v14025_v45 }
 0x222   : > { %v13938_v18 = vpop.f32.mrf.mxu0  ;;  %5734 = vmatmul.mubr.bf16.gmra.mxu0 %v13909_v49  ;;  %v13941_v52 = vpop.f32.mrf.mxu1 }
 0x223   : > { %18134 = vst [vmem:[#allocation98_spill] sm:$0xff] %v13941_v52  ;;  %5927 = vmatmul.mubr.bf16.gmra.mxu1 %v13922_v10  ;;  %5969 = vmatprep.mubr.bf16.mxu0 %v13927_v3  ;;  %v2656_v3 = vld [vmem:[#allocation7 + $0x588] sm:$0xff] }
 0x224   : > { %6162 = vmatprep.mubr.bf16.mxu1 %v13934_v13  ;;  %v13947_v37 = vpop.f32.mrf.mxu0  ;;  %v13951_v42 = vpop.f32.mrf.mxu1  ;;  %v13959_v13 = vmax.bf16 %v17994_v39, %v2227_v48  ;;  %v10992_v51 = vcombine.high %v2656_v3, %v2660_v61 }
 0x226   : > { %v13954_v1 = vpop.f32.mrf.mxu0  ;;  %v13956_v10 = vpop.f32.mrf.mxu1  ;;  %18136 = vst [vmem:[#allocation100_spill] sm:$0xff] %v13959_v13 }
 0x227   : > { %18135 = vst [vmem:[#allocation99_spill] sm:$0xff] %v13956_v10  ;;  %v13977_v10 = vld [vmem:[#allocation7 + $0x148] sm:$0xff] }
 0x228   : > { %v13963_v49 = vpop.f32.mrf.mxu0  ;;  %v13975_v48 = vpop.f32.mrf.mxu1  ;;  %v10855_v16 = vcombine.low %v13977_v10, %v13979_v29 }
 0x22a   : > { %v13986_v52 = vpop.f32.mrf.mxu0  ;;  %5970 = vmatmul.mubr.bf16.vlgmr.msra.gmra.mxu0 %v13959_v13  ;;  %v13989_v28 = vpop.f32.mrf.mxu1  ;;  %v10991_v13 = vcombine.low %v2656_v3, %v2660_v61  ;;  %v14017_v3 = vld [vmem:[#allocation7 + $0x128] sm:$0xff] }
 0x22b   : > { %18140 = vst [vmem:[#allocation104_spill] sm:$0xff] %v13986_v52  ;;  %18141 = vst [vmem:[#allocation105_spill] sm:$0xff] %v13989_v28  ;;  %6163 = vmatmul.mubr.bf16.vlgmr.msra.gmra.mxu1 %v13966_v25  ;;  %5979 = vmatprep.mubr.bf16.mxu0 %v13971_v27  ;;  %v10856_v25 = vcombine.high %v13977_v10, %v13979_v29  ;;  %v14004_v28 = vld [vmem:[#allocation7 + $0x9c8] sm:$0xff]  ;;  %v10848_v10 = vcombine.high %v14015_v7, %v14017_v3 }
 0x22c   : > { %6172 = vmatprep.mubr.bf16.mxu1 %v13982_v31  ;;  %6324 = vmatpush1.bf16.msra.mxu0 %v18142_v60  ;;  %v14000_v63 = vpop.f32.mrf.mxu0  ;;  %18143 = vst [vmem:[#allocation106_spill] sm:$0xff] %v14004_v28  ;;  %v14010_v27 = vpop.f32.mrf.mxu1  ;;  %v2246_v60 = vadd.bf16 %v13886_v53, %v2011_v20  ;;  %v14027_v52 = vld [vmem:[#allocation7 + $0xde8] sm:$0xff]  ;;  %v2008_v28 = vpack.c.bf16 %v13719_v5, %v13703_v58 }
 0x22d   : > { %6517 = vmatpush1.bf16.msra.mxu1 %v18145_v17  ;;  %6325 = vmatprep.subr.bf16.mxu0 %v10864_v19  ;;  %18147 = vst [vmem:[#allocation109_spill] sm:$0xff] %v14027_v52  ;;  %v10983_v19 = vcombine.low %v13993_v22, %v2652_v46  ;;  %v2640_v17 = vld [vmem:[#allocation7 + $0x508] sm:$0xff]  ;;  %v14048_v29 = vmax.bf16 %v17994_v39, %v2237_v41 }
 0x22e   : > { %v14022_v31 = vpop.f32.mrf.mxu0  ;;  %6518 = vmatprep.subr.bf16.mxu1 %v10992_v51  ;;  %v14029_v15 = vpop.f32.mrf.mxu1  ;;  %v2644_v61 = vld [vmem:[#allocation7 + $0x528] sm:$0xff]  ;;  %v14037_v51 = vmax.bf16 %v17994_v39, %v2235_v55  ;;  %v14051_v22 = vmax.bf16 %v17994_v39, %v2244_v62  ;;  %v14058_v58 = vmax.bf16 %v17994_v39, %v2246_v60  ;;  %v2019_v5 = vpack.c.bf16 %v13785_v0, %v18154_v24 }
 0x22f   : > { %18148 = vst [vmem:[#allocation110_spill] sm:$0xff] %v14029_v15  ;;  %18150 = vst [vmem:[#allocation112_spill] sm:$0xff] %v14048_v29  ;;  %v18152_v46 = vld [vmem:[#allocation27_spill] sm:$0xff]  ;;  %v2245_v0 = vadd.bf16 %v13917_v36, %v2010_v6 }
 0x230   : > { %18149 = vst [vmem:[#allocation111_spill] sm:$0xff] %v14037_v51  ;;  %v14043_v15 = vpop.f32.mrf.mxu0  ;;  %6326 = vmatpush1.bf16.msra.mxu0 %v10863_v57  ;;  %18151 = vst [vmem:[#allocation113_spill] sm:$0xff] %v14051_v22  ;;  %v2017_v55 = vpack.c.bf16 %v18152_v46, %v13756_v59  ;;  %v14055_v20 = vpop.f32.mrf.mxu1  ;;  %v10976_v57 = vcombine.high %v2640_v17, %v2644_v61  ;;  %v2504_v41 = vld [vmem:[#allocation7 + $0xc8] sm:$0xff]  ;;  %v2254_v6 = vadd.bf16 %v13886_v53, %v2019_v5 }
 0x231   : > { %6519 = vmatpush1.bf16.msra.mxu1 %v10991_v13  ;;  %6327 = vmatprep.subr.bf16.mxu0 %v10856_v25  ;;  %18153 = vst [vmem:[#allocation27_spill] sm:$0xff] %v14058_v58  ;;  %v2508_v62 = vld [vmem:[#allocation7 + $0xe8] sm:$0xff]  ;;  %v2243_v13 = vadd.bf16 %v13914_v38, %v2008_v28 }
 0x232   : > { %v14062_v2 = vpop.f32.mrf.mxu0  ;;  %5980 = vmatmul.mubr.bf16.gmra.mxu0 %v14037_v51  ;;  %6520 = vmatprep.subr.bf16.mxu1 %v10984_v56  ;;  %v14065_v45 = vpop.f32.mrf.mxu1  ;;  %v2632_v59 = vld [vmem:[#allocation7 + $0x4c8] sm:$0xff]  ;;  %v10847_v56 = vcombine.low %v14015_v7, %v14017_v3  ;;  %v2252_v46 = vadd.bf16 %v13864_v50, %v2017_v55  ;;  %v10839_v7 = vcombine.low %v2504_v41, %v2508_v62 }
 0x233   : > { %18155 = vst [vmem:[#allocation32_spill] sm:$0xff] %v14062_v2  ;;  %18156 = vst [vmem:[#allocation114_spill] sm:$0xff] %v14065_v45  ;;  %6173 = vmatmul.mubr.bf16.gmra.mxu1 %v14048_v29  ;;  %5989 = vmatprep.mubr.bf16.mxu0 %v14051_v22  ;;  %v2636_v25 = vld [vmem:[#allocation7 + $0x4e8] sm:$0xff]  ;;  %v10975_v22 = vcombine.low %v2640_v17, %v2644_v61  ;;  %v10840_v29 = vcombine.high %v2504_v41, %v2508_v62 }
 0x234   : > { %6182 = vmatprep.mubr.bf16.mxu1 %v14058_v58  ;;  %v14072_v60 = vpop.f32.mrf.mxu0  ;;  %6328 = vmatpush1.bf16.msra.mxu0 %v10855_v16  ;;  %v14077_v24 = vpop.f32.mrf.mxu1  ;;  %v14079_v51 = vld [vmem:[#allocation7 + $0x88] sm:$0xff]  ;;  %v10968_v16 = vcombine.high %v2632_v59, %v2636_v25  ;;  %v10967_v3 = vcombine.low %v2632_v59, %v2636_v25  ;;  %v14090_v61 = vmax.bf16 %v17994_v39, %v2245_v0 }
 0x235   : > { %6521 = vmatpush1.bf16.msra.mxu1 %v10983_v19  ;;  %6329 = vmatprep.subr.bf16.mxu0 %v10848_v10  ;;  %v2500_v28 = vld [vmem:[#allocation7 + $0xa8] sm:$0xff]  ;;  %v14087_v19 = vmax.bf16 %v17994_v39, %v2243_v13  ;;  %v14100_v62 = vmax.bf16 %v17994_v39, %v2252_v46  ;;  %v2025_v59 = vpack.c.bf16 %v13818_v23, %v13801_v4 }
 0x236   : > { %v14082_v58 = vpop.f32.mrf.mxu0  ;;  %6522 = vmatprep.subr.bf16.mxu1 %v10976_v57  ;;  %v14084_v45 = vpop.f32.mrf.mxu1  ;;  %v2624_v55 = vld [vmem:[#allocation7 + $0x488] sm:$0xff]  ;;  %18160 = vst [vmem:[#allocation118_spill] sm:$0xff] %v14090_v61  ;;  %v10832_v57 = vcombine.high %v14079_v51, %v2500_v28  ;;  %v14107_v13 = vmax.bf16 %v17994_v39, %v2254_v6  ;;  %v2027_v0 = vpack.c.bf16 %v13830_v26, %v13805_v40 }
 0x237   : > { %18157 = vst [vmem:[#allocation115_spill] sm:$0xff] %v14082_v58  ;;  %18158 = vst [vmem:[#allocation116_spill] sm:$0xff] %v14084_v45  ;;  %v2628_v2 = vld [vmem:[#allocation7 + $0x4a8] sm:$0xff]  ;;  %v10831_v40 = vcombine.low %v14079_v51, %v2500_v28 }
 0x238   : > { %18159 = vst [vmem:[#allocation117_spill] sm:$0xff] %v14087_v19  ;;  %v18161_v17 = vld [vmem:[#allocation62_spill] sm:$0xff]  ;;  %v14094_v5 = vpop.f32.mrf.mxu0  ;;  %6330 = vmatpush1.bf16.msra.mxu0 %v10847_v56  ;;  %v18164_v45 = vld [vmem:[#allocation83_spill] sm:$0xff]  ;;  %v14104_v25 = vpop.f32.mrf.mxu1 }
 0x239   : > { %v18162_v10 = vld [vmem:[#allocation82_spill] sm:$0xff]  ;;  %18165 = vst [vmem:[#allocation62_spill] sm:$0xff] %v14100_v62  ;;  %6523 = vmatpush1.bf16.msra.mxu1 %v10975_v22  ;;  %6331 = vmatprep.subr.bf16.mxu0 %v10840_v29  ;;  %v10959_v22 = vcombine.low %v2624_v55, %v2628_v2 }
 0x23a   : > { %v2016_v52 = vpack.c.bf16 %v18162_v10, %v18161_v17  ;;  %v18163_v58 = vld [vmem:[#allocation66_spill] sm:$0xff]  ;;  %18166 = vst [vmem:[#allocation82_spill] sm:$0xff] %v14107_v13  ;;  %v14111_v56 = vpop.f32.mrf.mxu0  ;;  %5990 = vmatmul.mubr.bf16.gmra.mxu0 %v14087_v19  ;;  %6524 = vmatprep.subr.bf16.mxu1 %v10968_v16  ;;  %v14114_v17 = vpop.f32.mrf.mxu1  ;;  %v2260_v16 = vadd.bf16 %v13864_v50, %v2025_v59 }
 0x23b   : > { %v2018_v41 = vpack.c.bf16 %v18164_v45, %v18163_v58  ;;  %18167 = vst [vmem:[#allocation66_spill] sm:$0xff] %v14111_v56  ;;  %v10960_v45 = vcombine.high %v2624_v55, %v2628_v2  ;;  %v2488_v58 = vld [vmem:[#allocation7 + $0x48] sm:$0xff]  ;;  %18168 = vst [vmem:[#allocation83_spill] sm:$0xff] %v14114_v17  ;;  %6183 = vmatmul.mubr.bf16.gmra.mxu1 %v14090_v61  ;;  %5999 = vmatprep.mubr.bf16.mxu0 %v14100_v62  ;;  %v18175_v56 = vld [vmem:[#allocation85_spill] sm:$0xff] }
 0x23c   : > { %v2492_v46 = vld [vmem:[#allocation7 + $0x68] sm:$0xff]  ;;  %v2251_v29 = vadd.bf16 %v13914_v38, %v2016_v52  ;;  %6192 = vmatprep.mubr.bf16.mxu1 %v14107_v13  ;;  %v14120_v26 = vpop.f32.mrf.mxu0  ;;  %6332 = vmatpush1.bf16.msra.mxu0 %v10839_v7  ;;  %v14125_v10 = vpop.f32.mrf.mxu1  ;;  %v2262_v13 = vadd.bf16 %v13886_v53, %v2027_v0 }
 0x23d   : > { %v2616_v23 = vld [vmem:[#allocation7 + $0x448] sm:$0xff]  ;;  %18169 = vst [vmem:[#allocation119_spill] sm:$0xff] %v14120_v26  ;;  %v2253_v6 = vadd.bf16 %v13917_v36, %v2018_v41  ;;  %18170 = vst [vmem:[#allocation120_spill] sm:$0xff] %v14125_v10  ;;  %6525 = vmatpush1.bf16.msra.mxu1 %v10967_v3  ;;  %6333 = vmatprep.subr.bf16.mxu0 %v10832_v57  ;;  %v10824_v62 = vcombine.high %v2488_v58, %v2492_v46 }
 0x23e   : > { %v2620_v4 = vld [vmem:[#allocation7 + $0x468] sm:$0xff]  ;;  %v14130_v19 = vpop.f32.mrf.mxu0  ;;  %6526 = vmatprep.subr.bf16.mxu1 %v10960_v45  ;;  %v14132_v51 = vpop.f32.mrf.mxu1  ;;  %v10823_v2 = vcombine.low %v2488_v58, %v2492_v46  ;;  %v14135_v59 = vmax.bf16 %v17994_v39, %v2251_v29  ;;  %v14148_v58 = vmax.bf16 %v17994_v39, %v2260_v16  ;;  %v2033_v46 = vpack.c.bf16 %v13866_v14, %v13847_v43 }
 0x23f   : > { %v14127_v61 = vld [vmem:[#allocation7 + $0x8] sm:$0xff]  ;;  %v10952_v7 = vcombine.high %v2616_v23, %v2620_v4  ;;  %18171 = vst [vmem:[#allocation121_spill] sm:$0xff] %v14132_v51  ;;  %v10951_v28 = vcombine.low %v2616_v23, %v2620_v4  ;;  %v14145_v51 = vmax.bf16 %v17994_v39, %v2253_v6  ;;  %v2035_v4 = vpack.c.bf16 %v13878_v44, %v13851_v8 }
 0x240   : > { %v2484_v52 = vld [vmem:[#allocation7 + $0x28] sm:$0xff]  ;;  %18172 = vst [vmem:[#allocation122_spill] sm:$0xff] %v14135_v59  ;;  %v14141_v0 = vpop.f32.mrf.mxu0  ;;  %6334 = vmatpush1.bf16.msra.mxu0 %v10831_v40  ;;  %v14152_v23 = vpop.f32.mrf.mxu1 }
 0x241   : > { %v2608_v55 = vld [vmem:[#allocation7 + $0x408] sm:$0xff]  ;;  %v10816_v45 = vcombine.high %v14127_v61, %v2484_v52  ;;  %6527 = vmatpush1.bf16.msra.mxu1 %v10959_v22  ;;  %6335 = vmatprep.subr.bf16.mxu0 %v10824_v62  ;;  %v2268_v22 = vadd.bf16 %v13864_v50, %v2033_v46 }
 0x242   : > { %v2612_v41 = vld [vmem:[#allocation7 + $0x428] sm:$0xff]  ;;  %v14159_v29 = vpop.f32.mrf.mxu0  ;;  %6000 = vmatmul.mubr.bf16.gmra.mxu0 %v14135_v59  ;;  %6528 = vmatprep.subr.bf16.mxu1 %v10952_v7 }
 0x243   : > { %v18173_v3 = vld [vmem:[#allocation71_spill] sm:$0xff]  ;;  %v18174_v57 = vld [vmem:[#allocation86_spill] sm:$0xff]  ;;  %v10944_v40 = vcombine.high %v2608_v55, %v2612_v41  ;;  %6193 = vmatmul.mubr.bf16.gmra.mxu1 %v14145_v51  ;;  %6009 = vmatprep.mubr.bf16.mxu0 %v14148_v58 }
 0x244   : > { %v2024_v17 = vpack.c.bf16 %v18174_v57, %v18173_v3  ;;  %v18176_v10 = vld [vmem:[#allocation87_spill] sm:$0xff]  ;;  %18177 = vst [vmem:[#allocation71_spill] sm:$0xff] %v14145_v51  ;;  %18178 = vst [vmem:[#allocation86_spill] sm:$0xff] %v14148_v58  ;;  %v14169_v44 = vpop.f32.mrf.mxu0  ;;  %6336 = vmatpush1.bf16.msra.mxu0 %v10823_v2  ;;  %v10943_v3 = vcombine.low %v2608_v55, %v2612_v41  ;;  %v2032_v41 = vpack.c.bf16 %v13854_v34, %v13837_v30 }
 0x245   : > { %v2026_v26 = vpack.c.bf16 %v18176_v10, %v18175_v56  ;;  %v14155_v56 = vmax.bf16 %v17994_v39, %v2262_v13  ;;  %v2600_v6 = vld [vmem:[#allocation7 + $0x3c8] sm:$0xff]  ;;  %v14162_v10 = vpop.f32.mrf.mxu1  ;;  %v10815_v13 = vcombine.low %v14127_v61, %v2484_v52  ;;  %6529 = vmatpush1.bf16.msra.mxu1 %v10951_v28  ;;  %6337 = vmatprep.subr.bf16.mxu0 %v10816_v45 }
 0x246   : > { %v2604_v16 = vld [vmem:[#allocation7 + $0x3e8] sm:$0xff]  ;;  %v2259_v62 = vadd.bf16 %v13914_v38, %v2024_v17  ;;  %v14178_v51 = vpop.f32.mrf.mxu0  ;;  %6530 = vmatprep.subr.bf16.mxu1 %v10944_v40  ;;  %v18182_v40 = vld [vmem:[#allocation89_spill] sm:$0xff]  ;;  %v2043_v34 = vpack.c.bf16 %v13931_v47, %v13901_v54 }
 0x247   : > { %18179 = vst [vmem:[#allocation85_spill] sm:$0xff] %v14155_v56  ;;  %v2728_v43 = vld [vmem:[#allocation7 + $0x7c8] sm:$0xff]  ;;  %v2261_v8 = vadd.bf16 %v13917_v36, %v2026_v26  ;;  %6202 = vmatprep.mubr.bf16.mxu1 %v14155_v56  ;;  %v14173_v7 = vpop.f32.mrf.mxu1  ;;  %v10936_v57 = vcombine.high %v2600_v6, %v2604_v16  ;;  %v2270_v26 = vadd.bf16 %v13886_v53, %v2035_v4 }
 0x248   : > { %v2732_v14 = vld [vmem:[#allocation7 + $0x7e8] sm:$0xff]  ;;  %v10935_v61 = vcombine.low %v2600_v6, %v2604_v16  ;;  %v14183_v28 = vmax.bf16 %v17994_v39, %v2259_v62  ;;  %v14190_v45 = vpop.f32.mrf.mxu0  ;;  %6338 = vmatpush1.bf16.msra.mxu0 %v10815_v13  ;;  %v2034_v6 = vpack.c.bf16 %v13856_v11, %v18182_v40  ;;  %v14196_v16 = vmax.bf16 %v17994_v39, %v2268_v22 }
 0x249   : > { %v14175_v58 = vld [vmem:[#allocation7 + $0x388] sm:$0xff]  ;;  %v11064_v56 = vcombine.high %v2728_v43, %v2732_v14  ;;  %v14180_v2 = vpop.f32.mrf.mxu1  ;;  %v11063_v52 = vcombine.low %v2728_v43, %v2732_v14  ;;  %v14186_v55 = vmax.bf16 %v17994_v39, %v2261_v8  ;;  %v2041_v43 = vpack.c.bf16 %v13919_v33, %v13897_v9  ;;  %6531 = vmatpush1.bf16.msra.mxu1 %v10943_v3 }
 0x24a   : > { %v2596_v17 = vld [vmem:[#allocation7 + $0x3a8] sm:$0xff]  ;;  %18180 = vst [vmem:[#allocation87_spill] sm:$0xff] %v14183_v28  ;;  %18183 = vst [vmem:[#allocation89_spill] sm:$0xff] %v14196_v16  ;;  %6339 = vmatprep.subr.bf16.mxu0 %v10936_v57  ;;  %v14203_v30 = vmax.bf16 %v17994_v39, %v2270_v26  ;;  %v14207_v62 = vpop.f32.mrf.mxu0  ;;  %6010 = vmatmul.mubr.bf16.gmra.mxu0 %v14183_v28  ;;  %v2267_v3 = vadd.bf16 %v13914_v38, %v2032_v41 }
 0x24b   : > { %v2720_v46 = vld [vmem:[#allocation7 + $0x788] sm:$0xff]  ;;  %18181 = vst [vmem:[#allocation123_spill] sm:$0xff] %v14186_v55  ;;  %v10928_v4 = vcombine.high %v14175_v58, %v2596_v17  ;;  %v14200_v14 = vpop.f32.mrf.mxu1  ;;  %6532 = vmatprep.subr.bf16.mxu1 %v11064_v56  ;;  %6203 = vmatmul.mubr.bf16.gmra.mxu1 %v14186_v55  ;;  %v10927_v47 = vcombine.low %v14175_v58, %v2596_v17 }
 0x24c   : > { %v2724_v59 = vld [vmem:[#allocation7 + $0x7a8] sm:$0xff]  ;;  %18184 = vst [vmem:[#allocation124_spill] sm:$0xff] %v14203_v30  ;;  %6019 = vmatprep.mubr.bf16.mxu0 %v14196_v16  ;;  %6212 = vmatprep.mubr.bf16.mxu1 %v14203_v30  ;;  %v14216_v54 = vpop.f32.mrf.mxu0  ;;  %v2269_v57 = vadd.bf16 %v13917_v36, %v2034_v6  ;;  %v2276_v26 = vadd.bf16 %v13864_v50, %v2041_v43 }
 0x24d   : > { %v11056_v11 = vcombine.high %v2720_v46, %v2724_v59  ;;  %v2584_v8 = vld [vmem:[#allocation7 + $0x348] sm:$0xff]  ;;  %v14210_v22 = vpop.f32.mrf.mxu1  ;;  %6340 = vmatpush2.bf16.msra.mxu0 %v10935_v61  ;;  %v11055_v56 = vcombine.low %v2720_v46, %v2724_v59  ;;  %6533 = vmatpush2.bf16.msra.mxu1 %v11063_v52  ;;  %v2278_v30 = vadd.bf16 %v13886_v53, %v2043_v34 }
 0x24e   : > { %v2588_v13 = vld [vmem:[#allocation7 + $0x368] sm:$0xff]  ;;  %6341 = vmatprep.subr.bf16.mxu0 %v10928_v4  ;;  %v14226_v28 = vpop.f32.mrf.mxu0  ;;  %v14231_v43 = vmax.bf16 %v17994_v39, %v2267_v3  ;;  %v2040_v52 = vpack.c.bf16 %v13904_v12, %v13888_v35  ;;  %v2042_v4 = vpack.c.bf16 %v13906_v32, %v13891_v21  ;;  %v2051_v32 = vpack.c.bf16 %v13975_v48, %v13951_v42 }
 0x24f   : > { %v2712_v9 = vld [vmem:[#allocation7 + $0x748] sm:$0xff]  ;;  %v14221_v40 = vpop.f32.mrf.mxu1  ;;  %v10920_v16 = vcombine.high %v2584_v8, %v2588_v13  ;;  %6534 = vmatprep.subr.bf16.mxu1 %v11056_v11  ;;  %v10919_v59 = vcombine.low %v2584_v8, %v2588_v13  ;;  %v14244_v8 = vmax.bf16 %v17994_v39, %v2276_v26  ;;  %v2049_v13 = vpack.c.bf16 %v13963_v49, %v13947_v37 }
 0x250   : > { %v2716_v33 = vld [vmem:[#allocation7 + $0x768] sm:$0xff]  ;;  %18186 = vst [vmem:[#allocation126_spill] sm:$0xff] %v14231_v43  ;;  %v14237_v34 = vpop.f32.mrf.mxu0  ;;  %v14251_v12 = vmax.bf16 %v17994_v39, %v2278_v30  ;;  %v2277_v42 = vadd.bf16 %v13917_v36, %v2042_v4  ;;  %v2286_v4 = vadd.bf16 %v13886_v53, %v2051_v32 }
 0x251   : > { %v14223_v55 = vld [vmem:[#allocation7 + $0x308] sm:$0xff]  ;;  %v11048_v61 = vcombine.high %v2712_v9, %v2716_v33  ;;  %v14228_v58 = vpop.f32.mrf.mxu1  ;;  %v11047_v17 = vcombine.low %v2712_v9, %v2716_v33  ;;  %6342 = vmatpush2.bf16.msra.mxu0 %v10927_v47  ;;  %18188 = vst [vmem:[#allocation128_spill] sm:$0xff] %v14244_v8  ;;  %6535 = vmatpush2.bf16.msra.mxu1 %v11055_v56 }
 0x252   : > { %v2580_v41 = vld [vmem:[#allocation7 + $0x328] sm:$0xff]  ;;  %18185 = vst [vmem:[#allocation125_spill] sm:$0xff] %v14228_v58  ;;  %v14241_v58 = vmax.bf16 %v17994_v39, %v2269_v57  ;;  %6343 = vmatprep.subr.bf16.mxu0 %v10920_v16  ;;  %18189 = vst [vmem:[#allocation129_spill] sm:$0xff] %v14251_v12  ;;  %v14255_v35 = vpop.f32.mrf.mxu0  ;;  %6020 = vmatmul.mubr.bf16.gmra.mxu0 %v14231_v43  ;;  %v2275_v16 = vadd.bf16 %v13914_v38, %v2040_v52 }
 0x253   : > { %v2704_v46 = vld [vmem:[#allocation7 + $0x708] sm:$0xff]  ;;  %v10912_v11 = vcombine.high %v14223_v55, %v2580_v41  ;;  %v14248_v9 = vpop.f32.mrf.mxu1  ;;  %6536 = vmatprep.subr.bf16.mxu1 %v11048_v61  ;;  %6029 = vmatprep.mubr.bf16.mxu0 %v14244_v8  ;;  %v10911_v30 = vcombine.low %v14223_v55, %v2580_v41  ;;  %v2284_v56 = vadd.bf16 %v13864_v50, %v2049_v13 }
 0x254   : > { %v2708_v6 = vld [vmem:[#allocation7 + $0x728] sm:$0xff]  ;;  %18187 = vst [vmem:[#allocation127_spill] sm:$0xff] %v14241_v58  ;;  %6213 = vmatmul.mubr.bf16.gmra.mxu1 %v14241_v58  ;;  %v14265_v48 = vpop.f32.mrf.mxu0 }
 0x255   : > { %v11040_v21 = vcombine.high %v2704_v46, %v2708_v6  ;;  %v2568_v33 = vld [vmem:[#allocation7 + $0x2c8] sm:$0xff]  ;;  %v14258_v47 = vpop.f32.mrf.mxu1  ;;  %6222 = vmatprep.mubr.bf16.mxu1 %v14251_v12  ;;  %6344 = vmatpush2.bf16.msra.mxu0 %v10919_v59  ;;  %v11039_v26 = vcombine.low %v2704_v46, %v2708_v6  ;;  %v14282_v46 = vmax.bf16 %v17994_v39, %v2277_v42 }
 0x256   : > { %v2572_v3 = vld [vmem:[#allocation7 + $0x2e8] sm:$0xff]  ;;  %6537 = vmatpush2.bf16.msra.mxu1 %v11047_v17  ;;  %6345 = vmatprep.subr.bf16.mxu0 %v10912_v11  ;;  %v14274_v58 = vpop.f32.mrf.mxu0  ;;  %v14279_v17 = vmax.bf16 %v17994_v39, %v2275_v16  ;;  %v2048_v6 = vpack.c.bf16 %v13954_v1, %v13938_v18  ;;  %v14299_v1 = vmax.bf16 %v17994_v39, %v2286_v4 }
 0x257   : > { %v2696_v49 = vld [vmem:[#allocation7 + $0x6c8] sm:$0xff]  ;;  %v14269_v57 = vpop.f32.mrf.mxu1  ;;  %v10904_v61 = vcombine.high %v2568_v33, %v2572_v3  ;;  %6538 = vmatprep.subr.bf16.mxu1 %v11040_v21  ;;  %v10903_v55 = vcombine.low %v2568_v33, %v2572_v3  ;;  %18192 = vst [vmem:[#allocation132_spill] sm:$0xff] %v14282_v46  ;;  %v14292_v3 = vmax.bf16 %v17994_v39, %v2284_v56 }
 0x258   : > { %v2700_v37 = vld [vmem:[#allocation7 + $0x6e8] sm:$0xff]  ;;  %18191 = vst [vmem:[#allocation131_spill] sm:$0xff] %v14279_v17  ;;  %v14286_v11 = vpop.f32.mrf.mxu0  ;;  %v2059_v18 = vpack.c.bf16 %v14055_v20, %v14010_v27 }
 0x259   : > { %v14271_v8 = vld [vmem:[#allocation7 + $0x288] sm:$0xff]  ;;  %v11032_v12 = vcombine.high %v2696_v49, %v2700_v37  ;;  %v14276_v59 = vpop.f32.mrf.mxu1  ;;  %v11031_v41 = vcombine.low %v2696_v49, %v2700_v37  ;;  %6346 = vmatpush2.bf16.msra.mxu0 %v10911_v30  ;;  %v2057_v49 = vpack.c.bf16 %v14043_v15, %v14000_v63 }
 0x25a   : > { %v2564_v52 = vld [vmem:[#allocation7 + $0x2a8] sm:$0xff]  ;;  %18190 = vst [vmem:[#allocation130_spill] sm:$0xff] %v14276_v59  ;;  %6539 = vmatpush2.bf16.msra.mxu1 %v11039_v26  ;;  %6347 = vmatprep.subr.bf16.mxu0 %v10904_v61  ;;  %v14303_v16 = vpop.f32.mrf.mxu0  ;;  %v2283_v26 = vadd.bf16 %v13914_v38, %v2048_v6  ;;  %v2294_v6 = vadd.bf16 %v13886_v53, %v2059_v18 }
 0x25b   : > { %v2688_v13 = vld [vmem:[#allocation7 + $0x688] sm:$0xff]  ;;  %v10896_v32 = vcombine.high %v14271_v8, %v2564_v52  ;;  %v14296_v37 = vpop.f32.mrf.mxu1  ;;  %18197 = vst [vmem:[#allocation133_spill] sm:$0xff] %v14303_v16  ;;  %6030 = vmatmul.mubr.bf16.gmra.mxu0 %v14279_v17  ;;  %6540 = vmatprep.subr.bf16.mxu1 %v11032_v12  ;;  %v10895_v20 = vcombine.low %v14271_v8, %v2564_v52 }
 0x25c   : > { %v2692_v43 = vld [vmem:[#allocation7 + $0x6a8] sm:$0xff]  ;;  %6223 = vmatmul.mubr.bf16.gmra.mxu1 %v14282_v46  ;;  %6039 = vmatprep.mubr.bf16.mxu0 %v14292_v3  ;;  %v14312_v27 = vpop.f32.mrf.mxu0  ;;  %v2292_v4 = vadd.bf16 %v13864_v50, %v2057_v49  ;;  %v18203_v49 = vld [vmem:[#allocation105_spill] sm:$0xff] }
 0x25d   : > { %v18193_v21 = vld [vmem:[#allocation98_spill] sm:$0xff]  ;;  %v18194_v59 = vld [vmem:[#allocation99_spill] sm:$0xff]  ;;  %v11024_v42 = vcombine.high %v2688_v13, %v2692_v43  ;;  %6232 = vmatprep.mubr.bf16.mxu1 %v14299_v1  ;;  %6348 = vmatpush2.bf16.msra.mxu0 %v10903_v55  ;;  %v11023_v12 = vcombine.low %v2688_v13, %v2692_v43 }
 0x25e   : > { %v2050_v33 = vpack.c.bf16 %v18194_v59, %v18193_v21  ;;  %18195 = vst [vmem:[#allocation98_spill] sm:$0xff] %v14292_v3  ;;  %18196 = vst [vmem:[#allocation99_spill] sm:$0xff] %v14299_v1  ;;  %v2552_v30 = vld [vmem:[#allocation7 + $0x248] sm:$0xff]  ;;  %v14306_v59 = vpop.f32.mrf.mxu1  ;;  %6541 = vmatpush2.bf16.msra.mxu1 %v11031_v41  ;;  %6349 = vmatprep.subr.bf16.mxu0 %v10896_v32  ;;  %v14320_v1 = vpop.f32.mrf.mxu0  ;;  %v18202_v41 = vld [vmem:[#allocation104_spill] sm:$0xff] }
 0x25f   : > { %v2556_v56 = vld [vmem:[#allocation7 + $0x268] sm:$0xff]  ;;  %18198 = vst [vmem:[#allocation134_spill] sm:$0xff] %v14306_v59  ;;  %18200 = vst [vmem:[#allocation136_spill] sm:$0xff] %v14320_v1  ;;  %6542 = vmatprep.subr.bf16.mxu1 %v11024_v42  ;;  %v2056_v32 = vpack.c.bf16 %v14022_v31, %v18202_v41  ;;  %v14344_v31 = vmax.bf16 %v17994_v39, %v2294_v6 }
 0x260   : > { %v2680_v63 = vld [vmem:[#allocation7 + $0x648] sm:$0xff]  ;;  %v2285_v61 = vadd.bf16 %v13917_v36, %v2050_v33  ;;  %v14317_v21 = vpop.f32.mrf.mxu1  ;;  %v10888_v3 = vcombine.high %v2552_v30, %v2556_v56  ;;  %v10887_v43 = vcombine.low %v2552_v30, %v2556_v56  ;;  %v14325_v33 = vmax.bf16 %v17994_v39, %v2283_v26  ;;  %v14331_v18 = vpop.f32.mrf.mxu0 }
 0x261   : > { %v2684_v15 = vld [vmem:[#allocation7 + $0x668] sm:$0xff]  ;;  %18199 = vst [vmem:[#allocation135_spill] sm:$0xff] %v14317_v21  ;;  %6350 = vmatpush2.bf16.msra.mxu0 %v10895_v20  ;;  %v14337_v30 = vmax.bf16 %v17994_v39, %v2292_v4  ;;  %v2065_v56 = vpack.c.bf16 %v14094_v5, %v14072_v60  ;;  %v2291_v60 = vadd.bf16 %v13914_v38, %v2056_v32 }
 0x262   : > { %v2544_v46 = vld [vmem:[#allocation7 + $0x208] sm:$0xff]  ;;  %v11016_v55 = vcombine.high %v2680_v63, %v2684_v15  ;;  %v14322_v59 = vpop.f32.mrf.mxu1  ;;  %v11015_v8 = vcombine.low %v2680_v63, %v2684_v15  ;;  %18201 = vst [vmem:[#allocation137_spill] sm:$0xff] %v14325_v33  ;;  %v14334_v1 = vmax.bf16 %v17994_v39, %v2285_v61  ;;  %6543 = vmatpush2.bf16.msra.mxu1 %v11023_v12  ;;  %v14348_v15 = vpop.f32.mrf.mxu0 }
 0x263   : > { %v2548_v17 = vld [vmem:[#allocation7 + $0x228] sm:$0xff]  ;;  %18206 = vst [vmem:[#allocation105_spill] sm:$0xff] %v14337_v30  ;;  %6351 = vmatprep.subr.bf16.mxu0 %v10888_v3  ;;  %6040 = vmatmul.mubr.bf16.gmra.mxu0 %v14325_v33 }
 0x264   : > { %v2672_v52 = vld [vmem:[#allocation7 + $0x608] sm:$0xff]  ;;  %v10880_v42 = vcombine.high %v2544_v46, %v2548_v17  ;;  %18205 = vst [vmem:[#allocation104_spill] sm:$0xff] %v14334_v1  ;;  %v14341_v63 = vpop.f32.mrf.mxu1  ;;  %6544 = vmatprep.subr.bf16.mxu1 %v11016_v55  ;;  %6233 = vmatmul.mubr.bf16.gmra.mxu1 %v14334_v1  ;;  %v14358_v3 = vpop.f32.mrf.mxu0 }
 0x265   : > { %v2676_v13 = vld [vmem:[#allocation7 + $0x628] sm:$0xff]  ;;  %6049 = vmatprep.mubr.bf16.mxu0 %v14337_v30  ;;  %6242 = vmatprep.mubr.bf16.mxu1 %v14344_v31 }
 0x266   : > { %v18204_v16 = vld [vmem:[#allocation110_spill] sm:$0xff]  ;;  %v11008_v26 = vcombine.high %v2672_v52, %v2676_v13  ;;  %v14351_v20 = vpop.f32.mrf.mxu1  ;;  %6352 = vmatpush2.bf16.msra.mxu0 %v10887_v43  ;;  %6545 = vmatpush2.bf16.msra.mxu1 %v11015_v8  ;;  %v11007_v61 = vcombine.low %v2672_v52, %v2676_v13  ;;  %v18208_v4 = vld [vmem:[#allocation107_spill] sm:$0xff]  ;;  %v14366_v32 = vpop.f32.mrf.mxu0  ;;  %v18214_v8 = vld [vmem:[#allocation32_spill] sm:$0xff] }
 0x267   : > { %v2058_v21 = vpack.c.bf16 %v18204_v16, %v18203_v49  ;;  %18207 = vst [vmem:[#allocation110_spill] sm:$0xff] %v14344_v31  ;;  %v2067_v16 = vpack.c.bf16 %v14104_v25, %v14077_v24  ;;  %v10879_v24 = vcombine.low %v2544_v46, %v2548_v17  ;;  %v2300_v25 = vadd.bf16 %v13864_v50, %v2065_v56  ;;  %v18209_v6 = vld [vmem:[#allocation106_spill] sm:$0xff]  ;;  %v18211_v49 = vld [vmem:[#allocation108_spill] sm:$0xff]  ;;  %v18215_v52 = vld [vmem:[#allocation115_spill] sm:$0xff] }
 0x268   : > { %v14361_v12 = vpop.f32.mrf.mxu1  ;;  %6353 = vmatprep.subr.bf16.mxu0 %v10880_v42  ;;  %v11128_v55 = vcombine.high %v18209_v6, %v18208_v4  ;;  %6546 = vmatprep.subr.bf16.mxu1 %v11008_v26  ;;  %v14373_v17 = vmax.bf16 %v17994_v39, %v2291_v60  ;;  %v2064_v13 = vpack.c.bf16 %v18215_v52, %v18214_v8  ;;  %v14380_v42 = vpop.f32.mrf.mxu0  ;;  %v18216_v56 = vld [vmem:[#allocation114_spill] sm:$0xff]  ;;  %v18219_v1 = vld [vmem:[#allocation119_spill] sm:$0xff]  ;;  %v18221_v8 = vld [vmem:[#allocation120_spill] sm:$0xff] }
 0x269   : > { %v2293_v5 = vadd.bf16 %v13917_v36, %v2058_v21  ;;  %v2302_v41 = vadd.bf16 %v13886_v53, %v2067_v16  ;;  %v18210_v21 = vld [vmem:[#allocation109_spill] sm:$0xff]  ;;  %v18217_v16 = vld [vmem:[#allocation116_spill] sm:$0xff]  ;;  %v14385_v30 = vmax.bf16 %v17994_v39, %v2300_v25  ;;  %v2073_v33 = vpack.c.bf16 %v14141_v0, %v18219_v1 }
 0x26a   : > { %v11256_v31 = vcombine.high %v18211_v49, %v18210_v21  ;;  %v14370_v43 = vpop.f32.mrf.mxu1  ;;  %18212 = vst [vmem:[#allocation107_spill] sm:$0xff] %v14373_v17  ;;  %6354 = vmatpush2.bf16.msra.mxu0 %v10879_v24  ;;  %v2066_v26 = vpack.c.bf16 %v18217_v16, %v18216_v56  ;;  %6547 = vmatpush2.bf16.msra.mxu1 %v11007_v61  ;;  %v5585_v24 = vpop.f32.mrf.mxu0 }
 0x26b   : > { %v14376_v46 = vmax.bf16 %v17994_v39, %v2293_v5  ;;  %18218 = vst [vmem:[#allocation109_spill] sm:$0xff] %v14385_v30  ;;  %6709 = vmatprep.subr.bf16.mxu0 %v11128_v55  ;;  %v14392_v5 = vmax.bf16 %v17994_v39, %v2302_v41  ;;  %v2075_v52 = vpack.c.bf16 %v14152_v23, %v18221_v8 }
 0x26c   : > { %v14389_v60 = vpop.f32.mrf.mxu1  ;;  %6050 = vmatmul.mubr.bf16.gmra.mxu0 %v14373_v17  ;;  %6902 = vmatprep.subr.bf16.mxu1 %v11256_v31  ;;  %v2299_v0 = vadd.bf16 %v13914_v38, %v2064_v13  ;;  %v5587_v25 = vpop.f32.mrf.mxu0  ;;  %v2301_v61 = vadd.bf16 %v13917_v36, %v2066_v26  ;;  %v2308_v23 = vadd.bf16 %v13864_v50, %v2073_v33  ;;  %v18223_v13 = vld [vmem:[#allocation66_spill] sm:$0xff]  ;;  %v18225_v33 = vld [vmem:[#allocation83_spill] sm:$0xff] }
 0x26d   : > { %18213 = vst [vmem:[#allocation106_spill] sm:$0xff] %v14376_v46  ;;  %18220 = vst [vmem:[#allocation108_spill] sm:$0xff] %v14392_v5  ;;  %6243 = vmatmul.mubr.bf16.gmra.mxu1 %v14376_v46  ;;  %6059 = vmatprep.mubr.bf16.mxu0 %v14385_v30  ;;  %v2310_v41 = vadd.bf16 %v13886_v53, %v2075_v52  ;;  %v18226_v46 = vld [vmem:[#allocation121_spill] sm:$0xff] }
 0x26e   : > { %v5778_v56 = vpop.f32.mrf.mxu1  ;;  %6252 = vmatprep.mubr.bf16.mxu1 %v14392_v5  ;;  %v5589_v16 = vpop.f32.mrf.mxu0  ;;  %v14409_v30 = vmax.bf16 %v17994_v39, %v2299_v0  ;;  %v14416_v26 = vmax.bf16 %v17994_v39, %v2301_v61  ;;  %v2074_v17 = vpack.c.bf16 %v18226_v46, %v18225_v33  ;;  %v14421_v52 = vmax.bf16 %v17994_v39, %v2308_v23 }
 0x26f   : > { %v14400_v1 = vadd.f32 %v5778_v56, %v5585_v24  ;;  %v2072_v24 = vpack.c.bf16 %v14130_v19, %v18223_v13  ;;  %v2083_v19 = vpack.c.bf16 %v14200_v14, %v14173_v7 }
 0x270   : > { %v5780_v55 = vpop.f32.mrf.mxu1  ;;  %18222 = vst [vmem:[#allocation32_spill] sm:$0xff] %v14409_v30  ;;  %v5591_v5 = vpop.f32.mrf.mxu0  ;;  %18224 = vst [vmem:[#allocation115_spill] sm:$0xff] %v14416_v26  ;;  %v2309_v23 = vadd.bf16 %v13917_v36, %v2074_v17 }
 0x271   : > { %v14406_v31 = vadd.f32 %v5780_v55, %v5587_v25  ;;  %18227 = vst [vmem:[#allocation114_spill] sm:$0xff] %v14421_v52  ;;  %v2081_v25 = vpack.c.bf16 %v14190_v45, %v14169_v44  ;;  %v14426_v55 = vmax.bf16 %v17994_v39, %v2310_v41  ;;  %v2307_v46 = vadd.bf16 %v13914_v38, %v2072_v24 }
 0x272   : > { %v5782_v8 = vpop.f32.mrf.mxu1  ;;  %v5595_v61 = vpop.f32.mrf.mxu0  ;;  %v2080_v24 = vpack.c.bf16 %v14178_v51, %v14159_v29  ;;  %v14452_v17 = vmax.bf16 %v17994_v39, %v2309_v23  ;;  %v2091_v51 = vpack.c.bf16 %v14248_v9, %v14221_v40 }
 0x273   : > { %v14413_v56 = vadd.f32 %v5782_v8, %v5589_v16  ;;  %18228 = vst [vmem:[#allocation116_spill] sm:$0xff] %v14426_v55  ;;  %v2316_v7 = vadd.bf16 %v13864_v50, %v2081_v25  ;;  %v2082_v25 = vpack.c.bf16 %v14180_v2, %v14162_v10 }
 0x274   : > { %v5784_v0 = vpop.f32.mrf.mxu1  ;;  %6060 = vmatmul.mubr.bf16.gmra.mxu0 %v14409_v30  ;;  %v5597_v45 = vpop.f32.mrf.mxu0  ;;  %18230 = vst [vmem:[#allocation120_spill] sm:$0xff] %v14452_v17  ;;  %v2315_v10 = vadd.bf16 %v13914_v38, %v2080_v24  ;;  %v2088_v24 = vpack.c.bf16 %v14226_v28, %v14207_v62  ;;  %v2099_v28 = vpack.c.bf16 %v14296_v37, %v14269_v57 }
 0x275   : > { %v14430_v16 = vadd.f32 %v5784_v0, %v5591_v5  ;;  %6253 = vmatmul.mubr.bf16.gmra.mxu1 %v14416_v26  ;;  %6069 = vmatprep.mubr.bf16.mxu0 %v14421_v52  ;;  %v2318_v5 = vadd.bf16 %v13886_v53, %v2083_v19  ;;  %v14445_v0 = vmax.bf16 %v17994_v39, %v2307_v46  ;;  %v18269_v52 = vld [vmem:[#allocation46_spill] sm:$0xff]  ;;  %v18270_v26 = vld [vmem:[#allocation47_spill] sm:$0xff] }
 0x276   : > { %v5788_v8 = vpop.f32.mrf.mxu1  ;;  %6262 = vmatprep.mubr.bf16.mxu1 %v14426_v55  ;;  %v5599_v13 = vpop.f32.mrf.mxu0  ;;  %v14457_v19 = vmax.bf16 %v17994_v39, %v2316_v7  ;;  %v2326_v7 = vadd.bf16 %v13886_v53, %v2091_v51 }
 0x277   : > { %v14436_v44 = vadd.f32 %v5788_v8, %v5595_v61  ;;  %18229 = vst [vmem:[#allocation119_spill] sm:$0xff] %v14445_v0 }
 0x278   : > { %v5790_v14 = vpop.f32.mrf.mxu1  ;;  %v5601_v8 = vpop.f32.mrf.mxu0  ;;  %18231 = vst [vmem:[#allocation66_spill] sm:$0xff] %v14457_v19 }
 0x279   : > { %v14442_v41 = vadd.f32 %v5790_v14, %v5597_v45  ;;  %v2089_v45 = vpack.c.bf16 %v14237_v34, %v14216_v54  ;;  %v14462_v14 = vmax.bf16 %v17994_v39, %v2318_v5  ;;  %v2317_v34 = vadd.bf16 %v13917_v36, %v2082_v25 }
 0x27a   : > { %v5792_v33 = vpop.f32.mrf.mxu1  ;;  %v5605_v23 = vpop.f32.mrf.mxu0 }
 0x27b   : > { %v14449_v61 = vadd.f32 %v5792_v33, %v5599_v13  ;;  %18232 = vst [vmem:[#allocation83_spill] sm:$0xff] %v14462_v14  ;;  %v2324_v40 = vadd.bf16 %v13864_v50, %v2089_v45  ;;  %v14488_v25 = vmax.bf16 %v17994_v39, %v2317_v34  ;;  %v18235_v45 = vld [vmem:[#allocation125_spill] sm:$0xff] }
 0x27c   : > { %v5794_v46 = vpop.f32.mrf.mxu1  ;;  %6070 = vmatmul.mubr.bf16.gmra.mxu0 %v14445_v0  ;;  %v5607_v54 = vpop.f32.mrf.mxu0  ;;  %v2896_v0 = vld [vmem:[#allocation7 + $0xd08] sm:$0xff] }
 0x27d   : > { %v14466_v29 = vadd.f32 %v5794_v46, %v5601_v8  ;;  %6263 = vmatmul.mubr.bf16.gmra.mxu1 %v14452_v17  ;;  %6079 = vmatprep.mubr.bf16.mxu0 %v14457_v19  ;;  %v14481_v46 = vmax.bf16 %v17994_v39, %v2315_v10  ;;  %18234 = vst [vmem:[#allocation138_spill] sm:$0xff] %v14488_v25  ;;  %v2768_v19 = vld [vmem:[#allocation7 + $0x908] sm:$0xff] }
 0x27e   : > { %v5798_v13 = vpop.f32.mrf.mxu1  ;;  %6272 = vmatprep.mubr.bf16.mxu1 %v14462_v14  ;;  %v5609_v33 = vpop.f32.mrf.mxu0  ;;  %v2090_v14 = vpack.c.bf16 %v18235_v45, %v14210_v22  ;;  %v14493_v51 = vmax.bf16 %v17994_v39, %v2324_v40  ;;  %v2323_v22 = vadd.bf16 %v13914_v38, %v2088_v24  ;;  %v2096_v24 = vpack.c.bf16 %v14274_v58, %v14255_v35  ;;  %v18243_v58 = vld [vmem:[#allocation135_spill] sm:$0xff] }
 0x27f   : > { %v14472_v2 = vadd.f32 %v5798_v13, %v5605_v23  ;;  %18233 = vst [vmem:[#allocation121_spill] sm:$0xff] %v14481_v46  ;;  %v2107_v35 = vpack.c.bf16 %v14341_v63, %v18243_v58 }
 0x280   : > { %v5800_v9 = vpop.f32.mrf.mxu1  ;;  %v5611_v13 = vpop.f32.mrf.mxu0  ;;  %18236 = vst [vmem:[#allocation125_spill] sm:$0xff] %v14493_v51  ;;  %v2325_v40 = vadd.bf16 %v13917_v36, %v2090_v14 }
 0x281   : > { %v14478_v5 = vadd.f32 %v5800_v9, %v5607_v54  ;;  %v2097_v54 = vpack.c.bf16 %v14286_v11, %v14265_v48  ;;  %v14498_v9 = vmax.bf16 %v17994_v39, %v2326_v7  ;;  %v2334_v7 = vadd.bf16 %v13886_v53, %v2099_v28 }
 0x282   : > { %v5802_v8 = vpop.f32.mrf.mxu1  ;;  %v5615_v34 = vpop.f32.mrf.mxu0  ;;  %v14524_v14 = vmax.bf16 %v17994_v39, %v2325_v40 }
 0x283   : > { %v14485_v23 = vadd.f32 %v5802_v8, %v5609_v33  ;;  %18237 = vst [vmem:[#allocation139_spill] sm:$0xff] %v14498_v9  ;;  %v2332_v57 = vadd.bf16 %v13864_v50, %v2097_v54  ;;  %v18240_v54 = vld [vmem:[#allocation130_spill] sm:$0xff] }
 0x284   : > { %v5804_v10 = vpop.f32.mrf.mxu1  ;;  %6080 = vmatmul.mubr.bf16.gmra.mxu0 %v14481_v46  ;;  %v5617_v11 = vpop.f32.mrf.mxu0  ;;  %18239 = vst [vmem:[#allocation141_spill] sm:$0xff] %v14524_v14  ;;  %v18264_v46 = vcombine.low %v18211_v49, %v18210_v21 }
 0x285   : > { %v14502_v62 = vadd.f32 %v5804_v10, %v5611_v13  ;;  %6273 = vmatmul.mubr.bf16.gmra.mxu1 %v14488_v25  ;;  %6089 = vmatprep.mubr.bf16.mxu0 %v14493_v51  ;;  %v14517_v10 = vmax.bf16 %v17994_v39, %v2323_v22  ;;  %v14529_v28 = vmax.bf16 %v17994_v39, %v2332_v57  ;;  %v2908_v51 = vld [vmem:[#allocation7 + $0xd68] sm:$0xff] }
 0x286   : > { %v5808_v33 = vpop.f32.mrf.mxu1  ;;  %6282 = vmatprep.mubr.bf16.mxu1 %v14498_v9  ;;  %v5619_v13 = vpop.f32.mrf.mxu0  ;;  %v2098_v9 = vpack.c.bf16 %v18240_v54, %v14258_v47  ;;  %v2331_v47 = vadd.bf16 %v13914_v38, %v2096_v24  ;;  %v18245_v24 = vld [vmem:[#allocation133_spill] sm:$0xff] }
 0x287   : > { %v14508_v48 = vadd.f32 %v5808_v33, %v5615_v34  ;;  %18238 = vst [vmem:[#allocation140_spill] sm:$0xff] %v14517_v10  ;;  %18241 = vst [vmem:[#allocation130_spill] sm:$0xff] %v14529_v28 }
 0x288   : > { %v5810_v37 = vpop.f32.mrf.mxu1  ;;  %v5621_v33 = vpop.f32.mrf.mxu0  ;;  %v2333_v57 = vadd.bf16 %v13917_v36, %v2098_v9 }
 0x289   : > { %v14514_v8 = vadd.f32 %v5810_v37, %v5617_v11  ;;  %v2105_v11 = vpack.c.bf16 %v14331_v18, %v14312_v27  ;;  %v14534_v37 = vmax.bf16 %v17994_v39, %v2334_v7 }
 0x28a   : > { %v5812_v45 = vpop.f32.mrf.mxu1  ;;  %v5625_v40 = vpop.f32.mrf.mxu0  ;;  %v14560_v9 = vmax.bf16 %v17994_v39, %v2333_v57 }
 0x28b   : > { %v14521_v34 = vadd.f32 %v5812_v45, %v5619_v13  ;;  %18242 = vst [vmem:[#allocation142_spill] sm:$0xff] %v14534_v37  ;;  %v2340_v63 = vadd.bf16 %v13864_v50, %v2105_v11  ;;  %v18248_v11 = vld [vmem:[#allocation134_spill] sm:$0xff] }
 0x28c   : > { %v5814_v22 = vpop.f32.mrf.mxu1  ;;  %6090 = vmatmul.mubr.bf16.gmra.mxu0 %v14517_v10  ;;  %v5627_v18 = vpop.f32.mrf.mxu0  ;;  %18247 = vst [vmem:[#allocation133_spill] sm:$0xff] %v14560_v9  ;;  %v2106_v10 = vpack.c.bf16 %v14322_v59, %v18248_v11 }
 0x28d   : > { %v14538_v13 = vadd.f32 %v5814_v22, %v5621_v33  ;;  %6283 = vmatmul.mubr.bf16.gmra.mxu1 %v14524_v14  ;;  %6099 = vmatprep.mubr.bf16.mxu0 %v14529_v28  ;;  %v2342_v33 = vadd.bf16 %v13886_v53, %v2107_v35  ;;  %v14553_v28 = vmax.bf16 %v17994_v39, %v2331_v47 }
 0x28e   : > { %v5818_v45 = vpop.f32.mrf.mxu1  ;;  %6292 = vmatprep.mubr.bf16.mxu1 %v14534_v37  ;;  %v5629_v22 = vpop.f32.mrf.mxu0  ;;  %v14565_v35 = vmax.bf16 %v17994_v39, %v2340_v63  ;;  %v2341_v63 = vadd.bf16 %v13917_v36, %v2106_v10 }
 0x28f   : > { %v14544_v27 = vadd.f32 %v5818_v45, %v5625_v40  ;;  %18244 = vst [vmem:[#allocation135_spill] sm:$0xff] %v14553_v28  ;;  %v18246_v40 = vld [vmem:[#allocation136_spill] sm:$0xff] }
 0x290   : > { %v5820_v7 = vpop.f32.mrf.mxu1  ;;  %v2104_v45 = vpack.c.bf16 %v18246_v40, %v18245_v24  ;;  %v5631_v37 = vpop.f32.mrf.mxu0  ;;  %18249 = vst [vmem:[#allocation136_spill] sm:$0xff] %v14565_v35  ;;  %v14596_v10 = vmax.bf16 %v17994_v39, %v2341_v63 }
 0x291   : > { %v14550_v54 = vadd.f32 %v5820_v7, %v5627_v18  ;;  %v2113_v18 = vpack.c.bf16 %v14380_v42, %v14358_v3  ;;  %v14570_v7 = vmax.bf16 %v17994_v39, %v2342_v33 }
 0x292   : > { %v5822_v58 = vpop.f32.mrf.mxu1  ;;  %v5635_v57 = vpop.f32.mrf.mxu0  ;;  %v2339_v59 = vadd.bf16 %v13914_v38, %v2104_v45  ;;  %v2112_v45 = vpack.c.bf16 %v14366_v32, %v14348_v15  ;;  %18252 = vst [vmem:[#allocation144_spill] sm:$0xff] %v14596_v10 }
 0x293   : > { %v14557_v14 = vadd.f32 %v5822_v58, %v5629_v22  ;;  %18250 = vst [vmem:[#allocation134_spill] sm:$0xff] %v14570_v7  ;;  %v2115_v22 = vpack.c.bf16 %v14389_v60, %v14361_v12  ;;  %v2348_v12 = vadd.bf16 %v13864_v50, %v2113_v18  ;;  %v2114_v50 = vpack.c.bf16 %v14370_v43, %v14351_v20 }
 0x294   : > { %v5824_v47 = vpop.f32.mrf.mxu1  ;;  %6100 = vmatmul.mubr.bf16.gmra.mxu0 %v14553_v28  ;;  %v5637_v42 = vpop.f32.mrf.mxu0  ;;  %v2347_v32 = vadd.bf16 %v13914_v38, %v2112_v45  ;;  %v2904_v28 = vld [vmem:[#allocation7 + $0xd48] sm:$0xff] }
 0x295   : > { %v14574_v58 = vadd.f32 %v5824_v47, %v5631_v37  ;;  %6293 = vmatmul.mubr.bf16.gmra.mxu1 %v14560_v9  ;;  %6109 = vmatprep.mubr.bf16.mxu0 %v14565_v35  ;;  %v2350_v37 = vadd.bf16 %v13886_v53, %v2115_v22  ;;  %v14589_v47 = vmax.bf16 %v17994_v39, %v2339_v59  ;;  %v18260_v35 = vld [vmem:[#allocation37_spill] sm:$0xff]  ;;  %v18261_v9 = vld [vmem:[#allocation38_spill] sm:$0xff] }
 0x296   : > { %v5828_v24 = vpop.f32.mrf.mxu1  ;;  %6302 = vmatprep.mubr.bf16.mxu1 %v14570_v7  ;;  %v5639_v40 = vpop.f32.mrf.mxu0  ;;  %v14601_v53 = vmax.bf16 %v17994_v39, %v2348_v12  ;;  %v2349_v63 = vadd.bf16 %v13917_v36, %v2114_v50  ;;  %v18257_v50 = vld [vmem:[#allocation28_spill] sm:$0xff]  ;;  %v2776_v7 = vld [vmem:[#allocation7 + $0x948] sm:$0xff] }
 0x297   : > { %v14580_v3 = vadd.f32 %v5828_v24, %v5635_v57  ;;  %18251 = vst [vmem:[#allocation143_spill] sm:$0xff] %v14589_v47  ;;  %v14604_v22 = vmax.bf16 %v17994_v39, %v2350_v37 }
 0x298   : > { %v5830_v60 = vpop.f32.mrf.mxu1  ;;  %v5641_v24 = vpop.f32.mrf.mxu0  ;;  %18253 = vst [vmem:[#allocation145_spill] sm:$0xff] %v14601_v53  ;;  %v14624_v38 = vmax.bf16 %v17994_v39, %v2349_v63 }
 0x299   : > { %v14586_v33 = vadd.f32 %v5830_v60, %v5637_v42  ;;  %18254 = vst [vmem:[#allocation146_spill] sm:$0xff] %v14604_v22 }
 0x29a   : > { %v5832_v11 = vpop.f32.mrf.mxu1  ;;  %v5645_v42 = vpop.f32.mrf.mxu0  ;;  %18256 = vst [vmem:[#allocation148_spill] sm:$0xff] %v14624_v38 }
 0x29b   : > { %v14593_v57 = vadd.f32 %v5832_v11, %v5639_v40  ;;  %v14619_v11 = vmax.bf16 %v17994_v39, %v2347_v32  ;;  %v18258_v32 = vld [vmem:[#allocation29_spill] sm:$0xff]  ;;  %v2784_v39 = vld [vmem:[#allocation7 + $0x988] sm:$0xff] }
 0x29c   : > { %v5834_v18 = vpop.f32.mrf.mxu1  ;;  %6110 = vmatmul.mubr.bf16.gmra.mxu0 %v14589_v47  ;;  %v5647_v43 = vpop.f32.mrf.mxu0 }
 0x29d   : > { %v14606_v59 = vadd.f32 %v5834_v18, %v5641_v24  ;;  %6303 = vmatmul.mubr.bf16.gmra.mxu1 %v14596_v10  ;;  %6119 = vmatprep.mubr.bf16.mxu0 %v14601_v53  ;;  %18255 = vst [vmem:[#allocation147_spill] sm:$0xff] %v14619_v11  ;;  %v2916_v53 = vld [vmem:[#allocation7 + $0xda8] sm:$0xff] }
 0x29e   : > { %v5838_v15 = vpop.f32.mrf.mxu1  ;;  %6312 = vmatprep.mubr.bf16.mxu1 %v14604_v22  ;;  %v5649_v37 = vpop.f32.mrf.mxu0  ;;  %v2912_v22 = vld [vmem:[#allocation7 + $0xd88] sm:$0xff] }
 0x29f   : > { %v14612_v20 = vadd.f32 %v5838_v15, %v5645_v42 }
 0x2a0   : > { %v5840_v12 = vpop.f32.mrf.mxu1  ;;  %v5651_v18 = vpop.f32.mrf.mxu0 }
 0x2a1   : > { %v14616_v60 = vadd.f32 %v5840_v12, %v5647_v43 }
 0x2a2   : > { %v5842_v40 = vpop.f32.mrf.mxu1  ;;  %v5655_v15 = vpop.f32.mrf.mxu0 }
 0x2a3   : > { %v14621_v24 = vadd.f32 %v5842_v40, %v5649_v37 }
 0x2a4   : > { %v5844_v45 = vpop.f32.mrf.mxu1  ;;  %6120 = vmatmul.mubr.bf16.gmra.mxu0 %v14619_v11  ;;  %v5657_v12 = vpop.f32.mrf.mxu0 }
 0x2a5   : > { %v14626_v42 = vadd.f32 %v5844_v45, %v5651_v18  ;;  %6313 = vmatmul.mubr.bf16.gmra.mxu1 %v14624_v38  ;;  %6355 = vmatprep.mubr.bf16.mxu0 %v18257_v50  ;;  %v2788_v18 = vld [vmem:[#allocation7 + $0x9a8] sm:$0xff] }
 0x2a6   : > { %v5848_v36 = vpop.f32.mrf.mxu1  ;;  %6548 = vmatprep.mubr.bf16.mxu1 %v18258_v32  ;;  %v5659_v63 = vpop.f32.mrf.mxu0  ;;  %v11120_v47 = vcombine.high %v2784_v39, %v2788_v18  ;;  %v11248_v32 = vcombine.high %v2912_v22, %v2916_v53 }
 0x2a7   : > { %v14631_v43 = vadd.f32 %v5848_v36, %v5655_v15  ;;  %v18259_v36 = vld [vmem:[#allocation35_spill] sm:$0xff] }
 0x2a8   : > { %v5850_v37 = vpop.f32.mrf.mxu1  ;;  %v5661_v10 = vpop.f32.mrf.mxu0 }
 0x2a9   : > { %v14634_v40 = vadd.f32 %v5850_v37, %v5657_v12  ;;  %v2780_v12 = vld [vmem:[#allocation7 + $0x968] sm:$0xff] }
 0x2aa   : > { %v5852_v45 = vpop.f32.mrf.mxu1  ;;  %v5665_v15 = vpop.f32.mrf.mxu0 }
 0x2ab   : > { %v14636_v11 = vadd.f32 %v5852_v45, %v5659_v63  ;;  %v18262_v45 = vld [vmem:[#allocation40_spill] sm:$0xff] }
 0x2ac   : > { %v5854_v38 = vpop.f32.mrf.mxu1  ;;  %6356 = vmatmul.mubr.bf16.vlgmr.msra.gmra.mxu0 %v18259_v36  ;;  %v11119_v36 = vcombine.low %v2784_v39, %v2788_v18  ;;  %v14656_v39 = vld [vmem:[#allocation7 + $0x1f0] sm:$0xff] }
 0x2ad   : > { %v14638_v50 = vadd.f32 %v5854_v38, %v5661_v10  ;;  %6549 = vmatmul.mubr.bf16.vlgmr.msra.gmra.mxu1 %v18260_v35  ;;  %6365 = vmatprep.mubr.bf16.mxu0 %v18261_v9  ;;  %v18263_v10 = vcombine.low %v18209_v6, %v18208_v4  ;;  %v5667_v38 = vpop.f32.mrf.mxu0  ;;  %v11247_v35 = vcombine.low %v2912_v22, %v2916_v53  ;;  %v2900_v4 = vld [vmem:[#allocation7 + $0xd28] sm:$0xff]  ;;  %v14658_v18 = vld [vmem:[#allocation7 + $0x5d0] sm:$0xff] }
 0x2ae   : > { %v5858_v37 = vpop.f32.mrf.mxu1  ;;  %6558 = vmatprep.mubr.bf16.mxu1 %v18262_v45  ;;  %6903 = vmatpush1.bf16.msra.mxu1 %v18264_v46  ;;  %v11112_v9 = vcombine.high %v2776_v7, %v2780_v12  ;;  %v2772_v45 = vld [vmem:[#allocation7 + $0x928] sm:$0xff]  ;;  %v11111_v46 = vcombine.low %v2776_v7, %v2780_v12  ;;  %v11239_v22 = vcombine.low %v2904_v28, %v2908_v51 }
 0x2af   : > { %v14643_v63 = vadd.f32 %v5858_v37, %v5665_v15  ;;  %6710 = vmatpush1.bf16.msra.mxu0 %v18263_v10  ;;  %v5669_v15 = vpop.f32.mrf.mxu0  ;;  %6904 = vmatprep.subr.bf16.mxu1 %v11248_v32  ;;  %v11240_v37 = vcombine.high %v2904_v28, %v2908_v51  ;;  %v14654_v10 = vld [vmem:[#allocation7 + $0x1d0] sm:$0xff]  ;;  %v11104_v32 = vcombine.high %v2768_v19, %v2772_v45  ;;  %v2764_v12 = vld [vmem:[#allocation7 + $0x8e8] sm:$0xff] }
 0x2b0   : > { %v5860_v25 = vpop.f32.mrf.mxu1  ;;  %6711 = vmatprep.subr.bf16.mxu0 %v11120_v47  ;;  %v14664_v47 = vld [vmem:[#allocation7 + $0x5f0] sm:$0xff]  ;;  %v11232_v7 = vcombine.high %v2896_v0, %v2900_v4  ;;  %v2892_v51 = vld [vmem:[#allocation7 + $0xce8] sm:$0xff] }
 0x2b1   : > { %v14652_v17 = vadd.f32 %v5860_v25, %v5667_v38  ;;  %v5671_v49 = vpop.f32.mrf.mxu0 }
 0x2b2   : > { %v5862_v6 = vpop.f32.mrf.mxu1  ;;  %6905 = vmatpush1.bf16.msra.mxu1 %v11247_v35  ;;  %v18272_v35 = vld [vmem:[#allocation48_spill] sm:$0xff] }
 0x2b3   : > { %18265 = vst [vmem:[#allocation149_spill] sm:$0xff] %v14652_v17  ;;  %v14660_v21 = vadd.f32 %v5862_v6, %v5669_v15  ;;  %6712 = vmatpush1.bf16.msra.mxu0 %v11119_v36  ;;  %v5675_v15 = vpop.f32.mrf.mxu0  ;;  %v18268_v6 = vld [vmem:[#allocation45_spill] sm:$0xff]  ;;  %6906 = vmatprep.subr.bf16.mxu1 %v11240_v37  ;;  %v2760_v36 = vld [vmem:[#allocation7 + $0x8c8] sm:$0xff]  ;;  %v11231_v37 = vcombine.low %v2896_v0, %v2900_v4 }
 0x2b4   : > { %v5864_v53 = vpop.f32.mrf.mxu1  ;;  %6713 = vmatprep.subr.bf16.mxu0 %v11112_v9  ;;  %6366 = vmatmul.mubr.bf16.gmra.mxu0 %v18268_v6  ;;  %v2888_v9 = vld [vmem:[#allocation7 + $0xcc8] sm:$0xff]  ;;  %v11096_v6 = vcombine.high %v2760_v36, %v2764_v12 }
 0x2b5   : > { %18266 = vst [vmem:[#allocation150_spill] sm:$0xff] %v14660_v21  ;;  %v14668_v55 = vadd.f32 %v5864_v53, %v5671_v49  ;;  %6559 = vmatmul.mubr.bf16.gmra.mxu1 %v18269_v52  ;;  %6375 = vmatprep.mubr.bf16.mxu0 %v18270_v26  ;;  %v5677_v49 = vpop.f32.mrf.mxu0  ;;  %v11103_v53 = vcombine.low %v2768_v19, %v2772_v45  ;;  %v2752_v26 = vld [vmem:[#allocation7 + $0x888] sm:$0xff] }
 0x2b6   : > { %v5868_v25 = vpop.f32.mrf.mxu1  ;;  %6568 = vmatprep.mubr.bf16.mxu1 %v18272_v35  ;;  %6907 = vmatpush1.bf16.msra.mxu1 %v11239_v22  ;;  %v11224_v52 = vcombine.high %v2888_v9, %v2892_v51  ;;  %v2756_v21 = vld [vmem:[#allocation7 + $0x8a8] sm:$0xff]  ;;  %v11095_v19 = vcombine.low %v2760_v36, %v2764_v12  ;;  %v11223_v0 = vcombine.low %v2888_v9, %v2892_v51 }
 0x2b7   : > { %18267 = vst [vmem:[#allocation151_spill] sm:$0xff] %v14668_v55  ;;  %v14673_v28 = vadd.f32 %v5868_v25, %v5675_v15  ;;  %6714 = vmatpush1.bf16.msra.mxu0 %v11111_v46  ;;  %v5679_v55 = vpop.f32.mrf.mxu0  ;;  %6908 = vmatprep.subr.bf16.mxu1 %v11232_v7  ;;  %v2880_v25 = vld [vmem:[#allocation7 + $0xc88] sm:$0xff]  ;;  %v11088_v4 = vcombine.high %v2752_v26, %v2756_v21 }
 0x2b8   : > { %v5870_v38 = vpop.f32.mrf.mxu1  ;;  %6715 = vmatprep.subr.bf16.mxu0 %v11104_v32  ;;  %v2884_v15 = vld [vmem:[#allocation7 + $0xca8] sm:$0xff]  ;;  %v11087_v51 = vcombine.low %v2752_v26, %v2756_v21 }
 0x2b9   : > { %18271 = vst [vmem:[#allocation152_spill] sm:$0xff] %v14673_v28  ;;  %v14676_v30 = vadd.f32 %v5870_v38, %v5677_v49  ;;  %v5681_v35 = vpop.f32.mrf.mxu0  ;;  %v18276_v32 = vld [vmem:[#allocation50_spill] sm:$0xff]  ;;  %v11216_v38 = vcombine.high %v2880_v25, %v2884_v15 }
 0x2ba   : > { %v5872_v17 = vpop.f32.mrf.mxu1  ;;  %6909 = vmatpush1.bf16.msra.mxu1 %v11231_v37  ;;  %v2744_v7 = vld [vmem:[#allocation7 + $0x848] sm:$0xff] }
 0x2bb   : > { %18273 = vst [vmem:[#allocation153_spill] sm:$0xff] %v14676_v30  ;;  %v14678_v28 = vadd.f32 %v5872_v17, %v5679_v55  ;;  %6716 = vmatpush1.bf16.msra.mxu0 %v11103_v53  ;;  %v5685_v22 = vpop.f32.mrf.mxu0  ;;  %6910 = vmatprep.subr.bf16.mxu1 %v11224_v52  ;;  %v2748_v49 = vld [vmem:[#allocation7 + $0x868] sm:$0xff]  ;;  %v18278_v17 = vld [vmem:[#allocation52_spill] sm:$0xff]  ;;  %v11215_v52 = vcombine.low %v2880_v25, %v2884_v15 }
 0x2bc   : > { %v5874_v45 = vpop.f32.mrf.mxu1  ;;  %6717 = vmatprep.subr.bf16.mxu0 %v11096_v6  ;;  %6376 = vmatmul.mubr.bf16.gmra.mxu0 %v18276_v32  ;;  %v18277_v55 = vld [vmem:[#allocation51_spill] sm:$0xff]  ;;  %v18280_v6 = vld [vmem:[#allocation53_spill] sm:$0xff]  ;;  %v11080_v37 = vcombine.high %v2744_v7, %v2748_v49  ;;  %v11079_v26 = vcombine.low %v2744_v7, %v2748_v49 }
 0x2bd   : > { %18274 = vst [vmem:[#allocation154_spill] sm:$0xff] %v14678_v28  ;;  %v14680_v46 = vadd.f32 %v5874_v45, %v5681_v35  ;;  %6569 = vmatmul.mubr.bf16.gmra.mxu1 %v18277_v55  ;;  %6385 = vmatprep.mubr.bf16.mxu0 %v18278_v17  ;;  %v2872_v36 = vld [vmem:[#allocation7 + $0xc48] sm:$0xff]  ;;  %v5687_v9 = vpop.f32.mrf.mxu0 }
 0x2be   : > { %v5878_v30 = vpop.f32.mrf.mxu1  ;;  %v2876_v12 = vld [vmem:[#allocation7 + $0xc68] sm:$0xff]  ;;  %6578 = vmatprep.mubr.bf16.mxu1 %v18280_v6  ;;  %6911 = vmatpush1.bf16.msra.mxu1 %v11223_v0 }
 0x2bf   : > { %18275 = vst [vmem:[#allocation155_spill] sm:$0xff] %v14680_v46  ;;  %v14685_v53 = vadd.f32 %v5878_v30, %v5685_v22  ;;  %6718 = vmatpush1.bf16.msra.mxu0 %v11095_v19  ;;  %v5689_v32 = vpop.f32.mrf.mxu0  ;;  %6912 = vmatprep.subr.bf16.mxu1 %v11216_v38  ;;  %v11208_v55 = vcombine.high %v2872_v36, %v2876_v12  ;;  %v2736_v17 = vld [vmem:[#allocation7 + $0x808] sm:$0xff] }
 0x2c0   : > { %v5880_v35 = vpop.f32.mrf.mxu1  ;;  %6719 = vmatprep.subr.bf16.mxu0 %v11088_v4  ;;  %v2740_v46 = vld [vmem:[#allocation7 + $0x828] sm:$0xff]  ;;  %v11207_v25 = vcombine.low %v2872_v36, %v2876_v12  ;;  %v18288_v36 = vld [vmem:[#allocation57_spill] sm:$0xff] }
 0x2c1   : > { %18279 = vst [vmem:[#allocation156_spill] sm:$0xff] %v14685_v53  ;;  %v14688_v45 = vadd.f32 %v5880_v35, %v5687_v9  ;;  %v2864_v30 = vld [vmem:[#allocation7 + $0xc08] sm:$0xff]  ;;  %v5691_v6 = vpop.f32.mrf.mxu0  ;;  %v11072_v15 = vcombine.high %v2736_v17, %v2740_v46 }
 0x2c2   : > { %v5882_v28 = vpop.f32.mrf.mxu1  ;;  %v2868_v22 = vld [vmem:[#allocation7 + $0xc28] sm:$0xff]  ;;  %6913 = vmatpush1.bf16.msra.mxu1 %v11215_v52 }
 0x2c3   : > { %18281 = vst [vmem:[#allocation157_spill] sm:$0xff] %v14688_v45  ;;  %v14690_v53 = vadd.f32 %v5882_v28, %v5689_v32  ;;  %6720 = vmatpush1.bf16.msra.mxu0 %v11087_v51  ;;  %v5695_v0 = vpop.f32.mrf.mxu0  ;;  %v18284_v4 = vld [vmem:[#allocation54_spill] sm:$0xff]  ;;  %6914 = vmatprep.subr.bf16.mxu1 %v11208_v55  ;;  %v11200_v38 = vcombine.high %v2864_v30, %v2868_v22  ;;  %v18285_v28 = vld [vmem:[#allocation55_spill] sm:$0xff]  ;;  %v18286_v32 = vld [vmem:[#allocation56_spill] sm:$0xff] }
 0x2c4   : > { %v5884_v21 = vpop.f32.mrf.mxu1  ;;  %6721 = vmatprep.subr.bf16.mxu0 %v11080_v37  ;;  %6386 = vmatmul.mubr.bf16.gmra.mxu0 %v18284_v4  ;;  %v2856_v9 = vld [vmem:[#allocation7 + $0xbc8] sm:$0xff]  ;;  %v11199_v55 = vcombine.low %v2864_v30, %v2868_v22 }
 0x2c5   : > { %18282 = vst [vmem:[#allocation158_spill] sm:$0xff] %v14690_v53  ;;  %v14692_v19 = vadd.f32 %v5884_v21, %v5691_v6  ;;  %v2860_v35 = vld [vmem:[#allocation7 + $0xbe8] sm:$0xff]  ;;  %6579 = vmatmul.mubr.bf16.gmra.mxu1 %v18285_v28  ;;  %6395 = vmatprep.mubr.bf16.mxu0 %v18286_v32  ;;  %v5697_v12 = vpop.f32.mrf.mxu0  ;;  %v11071_v6 = vcombine.low %v2736_v17, %v2740_v46 }
 0x2c6   : > { %v5888_v45 = vpop.f32.mrf.mxu1  ;;  %v2984_v7 = vld [vmem:[#allocation7 + $0xfc8] sm:$0xff]  ;;  %6588 = vmatprep.mubr.bf16.mxu1 %v18288_v36  ;;  %6915 = vmatpush1.bf16.msra.mxu1 %v11207_v25  ;;  %v11192_v37 = vcombine.high %v2856_v9, %v2860_v35  ;;  %v11191_v46 = vcombine.low %v2856_v9, %v2860_v35 }
 0x2c7   : > { %18283 = vst [vmem:[#allocation159_spill] sm:$0xff] %v14692_v19  ;;  %v2988_v49 = vld [vmem:[#allocation7 + $0xfe8] sm:$0xff]  ;;  %v14697_v51 = vadd.f32 %v5888_v45, %v5695_v0  ;;  %6722 = vmatpush1.bf16.msra.mxu0 %v11079_v26  ;;  %v5699_v4 = vpop.f32.mrf.mxu0  ;;  %6916 = vmatprep.subr.bf16.mxu1 %v11200_v38 }
 0x2c8   : > { %v5890_v52 = vpop.f32.mrf.mxu1  ;;  %6723 = vmatprep.subr.bf16.mxu0 %v11072_v15  ;;  %v11320_v28 = vcombine.high %v2984_v7, %v2988_v49  ;;  %v2848_v32 = vld [vmem:[#allocation7 + $0xb88] sm:$0xff]  ;;  %v11319_v30 = vcombine.low %v2984_v7, %v2988_v49  ;;  %v18292_v15 = vld [vmem:[#allocation60_spill] sm:$0xff]  ;;  %v18296_v7 = vld [vmem:[#allocation21_spill] sm:$0xff] }
 0x2c9   : > { %18287 = vst [vmem:[#allocation160_spill] sm:$0xff] %v14697_v51  ;;  %v14700_v21 = vadd.f32 %v5890_v52, %v5697_v12  ;;  %v2852_v19 = vld [vmem:[#allocation7 + $0xba8] sm:$0xff]  ;;  %v5701_v36 = vpop.f32.mrf.mxu0 }
 0x2ca   : > { %v5892_v53 = vpop.f32.mrf.mxu1  ;;  %v2976_v45 = vld [vmem:[#allocation7 + $0xf88] sm:$0xff]  ;;  %6917 = vmatpush1.bf16.msra.mxu1 %v11199_v55  ;;  %v11184_v22 = vcombine.high %v2848_v32, %v2852_v19 }
 0x2cb   : > { %18289 = vst [vmem:[#allocation161_spill] sm:$0xff] %v14700_v21  ;;  %v2980_v0 = vld [vmem:[#allocation7 + $0xfa8] sm:$0xff]  ;;  %v14702_v51 = vadd.f32 %v5892_v53, %v5699_v4  ;;  %6724 = vmatpush1.bf16.msra.mxu0 %v11071_v6  ;;  %v5705_v25 = vpop.f32.mrf.mxu0  ;;  %6918 = vmatprep.subr.bf16.mxu1 %v11320_v28  ;;  %v18293_v53 = vld [vmem:[#allocation61_spill] sm:$0xff]  ;;  %v18294_v4 = vld [vmem:[#allocation20_spill] sm:$0xff] }
 0x2cc   : > { %v5894_v17 = vpop.f32.mrf.mxu1  ;;  %6725 = vmatprep.subr.bf16.mxu0 %v11192_v37  ;;  %6396 = vmatmul.mubr.bf16.gmra.mxu0 %v18292_v15  ;;  %v11312_v38 = vcombine.high %v2976_v45, %v2980_v0  ;;  %v2840_v12 = vld [vmem:[#allocation7 + $0xb48] sm:$0xff]  ;;  %v11311_v28 = vcombine.low %v2976_v45, %v2980_v0 }
 0x2cd   : > { %18290 = vst [vmem:[#allocation162_spill] sm:$0xff] %v14702_v51  ;;  %v14704_v26 = vadd.f32 %v5894_v17, %v5701_v36  ;;  %v2844_v52 = vld [vmem:[#allocation7 + $0xb68] sm:$0xff]  ;;  %6589 = vmatmul.mubr.bf16.gmra.mxu1 %v18293_v53  ;;  %6405 = vmatprep.mubr.bf16.mxu0 %v18294_v4  ;;  %v5707_v49 = vpop.f32.mrf.mxu0  ;;  %v11183_v36 = vcombine.low %v2848_v32, %v2852_v19 }
 0x2ce   : > { %v5898_v21 = vpop.f32.mrf.mxu1  ;;  %v2968_v9 = vld [vmem:[#allocation7 + $0xf48] sm:$0xff]  ;;  %6598 = vmatprep.mubr.bf16.mxu1 %v18296_v7  ;;  %6919 = vmatpush2.bf16.msra.mxu1 %v11319_v30  ;;  %v11176_v37 = vcombine.high %v2840_v12, %v2844_v52  ;;  %v11175_v19 = vcombine.low %v2840_v12, %v2844_v52 }
 0x2cf   : > { %18291 = vst [vmem:[#allocation163_spill] sm:$0xff] %v14704_v26  ;;  %v2972_v35 = vld [vmem:[#allocation7 + $0xf68] sm:$0xff]  ;;  %v14709_v6 = vadd.f32 %v5898_v21, %v5705_v25  ;;  %6726 = vmatpush2.bf16.msra.mxu0 %v11191_v46  ;;  %v5709_v15 = vpop.f32.mrf.mxu0  ;;  %6920 = vmatprep.subr.bf16.mxu1 %v11312_v38 }
 0x2d0   : > { %v5900_v55 = vpop.f32.mrf.mxu1  ;;  %6727 = vmatprep.subr.bf16.mxu0 %v11184_v22  ;;  %v11304_v53 = vcombine.high %v2968_v9, %v2972_v35  ;;  %v2832_v4 = vld [vmem:[#allocation7 + $0xb08] sm:$0xff]  ;;  %v11303_v45 = vcombine.low %v2968_v9, %v2972_v35  ;;  %v18304_v9 = vld [vmem:[#allocation24_spill] sm:$0xff] }
 0x2d1   : > { %18295 = vst [vmem:[#allocation164_spill] sm:$0xff] %v14709_v6  ;;  %v14712_v17 = vadd.f32 %v5900_v55, %v5707_v49  ;;  %v2836_v26 = vld [vmem:[#allocation7 + $0xb28] sm:$0xff]  ;;  %v5711_v7 = vpop.f32.mrf.mxu0 }
 0x2d2   : > { %v5902_v51 = vpop.f32.mrf.mxu1  ;;  %v2960_v21 = vld [vmem:[#allocation7 + $0xf08] sm:$0xff]  ;;  %6921 = vmatpush2.bf16.msra.mxu1 %v11311_v28  ;;  %v11168_v0 = vcombine.high %v2832_v4, %v2836_v26 }
 0x2d3   : > { %18297 = vst [vmem:[#allocation165_spill] sm:$0xff] %v14712_v17  ;;  %v2964_v25 = vld [vmem:[#allocation7 + $0xf28] sm:$0xff]  ;;  %v14714_v6 = vadd.f32 %v5902_v51, %v5709_v15  ;;  %6728 = vmatpush2.bf16.msra.mxu0 %v11183_v36  ;;  %v5715_v30 = vpop.f32.mrf.mxu0  ;;  %6922 = vmatprep.subr.bf16.mxu1 %v11304_v53 }
 0x2d4   : > { %v5904_v32 = vpop.f32.mrf.mxu1  ;;  %6729 = vmatprep.subr.bf16.mxu0 %v11176_v37  ;;  %v18300_v22 = vld [vmem:[#allocation67_spill] sm:$0xff]  ;;  %v11296_v38 = vcombine.high %v2960_v21, %v2964_v25  ;;  %v18302_v15 = vld [vmem:[#allocation26_spill] sm:$0xff]  ;;  %v11295_v53 = vcombine.low %v2960_v21, %v2964_v25 }
 0x2d5   : > { %18298 = vst [vmem:[#allocation166_spill] sm:$0xff] %v14714_v6  ;;  %v14716_v46 = vadd.f32 %v5904_v32, %v5711_v7  ;;  %6406 = vmatmul.mubr.bf16.gmra.mxu0 %v18300_v22  ;;  %v2824_v49 = vld [vmem:[#allocation7 + $0xac8] sm:$0xff]  ;;  %v5717_v35 = vpop.f32.mrf.mxu0  ;;  %v11167_v7 = vcombine.low %v2832_v4, %v2836_v26 }
 0x2d6   : > { %v2828_v55 = vld [vmem:[#allocation7 + $0xae8] sm:$0xff]  ;;  %v5908_v17 = vpop.f32.mrf.mxu1  ;;  %6415 = vmatprep.mubr.bf16.mxu0 %v18302_v15  ;;  %6923 = vmatpush2.bf16.msra.mxu1 %v11303_v45 }
 0x2d7   : > { %18299 = vst [vmem:[#allocation167_spill] sm:$0xff] %v14716_v46  ;;  %v18301_v51 = vld [vmem:[#allocation23_spill] sm:$0xff]  ;;  %v14721_v36 = vadd.f32 %v5908_v17, %v5715_v30  ;;  %6730 = vmatpush2.bf16.msra.mxu0 %v11175_v19  ;;  %v11160_v37 = vcombine.high %v2824_v49, %v2828_v55  ;;  %v5719_v22 = vpop.f32.mrf.mxu0  ;;  %6924 = vmatprep.subr.bf16.mxu1 %v11296_v38 }
 0x2d8   : > { %6599 = vmatmul.mubr.bf16.gmra.mxu1 %v18301_v51  ;;  %v2952_v12 = vld [vmem:[#allocation7 + $0xec8] sm:$0xff]  ;;  %v5910_v28 = vpop.f32.mrf.mxu1  ;;  %6731 = vmatprep.subr.bf16.mxu0 %v11168_v0  ;;  %v11159_v26 = vcombine.low %v2824_v49, %v2828_v55  ;;  %v18308_v0 = vld [vmem:[#allocation69_spill] sm:$0xff] }
 0x2d9   : > { %v2956_v52 = vld [vmem:[#allocation7 + $0xee8] sm:$0xff]  ;;  %18303 = vst [vmem:[#allocation168_spill] sm:$0xff] %v14721_v36  ;;  %6608 = vmatprep.mubr.bf16.mxu1 %v18304_v9  ;;  %v14724_v32 = vadd.f32 %v5910_v28, %v5717_v35  ;;  %v5721_v9 = vpop.f32.mrf.mxu0 }
 0x2da   : > { %v11288_v51 = vcombine.high %v2952_v12, %v2956_v52  ;;  %v2816_v15 = vld [vmem:[#allocation7 + $0xa88] sm:$0xff]  ;;  %v5912_v6 = vpop.f32.mrf.mxu1  ;;  %6925 = vmatpush2.bf16.msra.mxu1 %v11295_v53  ;;  %v11287_v21 = vcombine.low %v2952_v12, %v2956_v52  ;;  %v18312_v12 = vld [vmem:[#allocation33_spill] sm:$0xff] }
 0x2db   : > { %18305 = vst [vmem:[#allocation169_spill] sm:$0xff] %v14724_v32  ;;  %v2820_v46 = vld [vmem:[#allocation7 + $0xaa8] sm:$0xff]  ;;  %v14726_v36 = vadd.f32 %v5912_v6, %v5719_v22  ;;  %6732 = vmatpush2.bf16.msra.mxu0 %v11167_v7  ;;  %v5725_v45 = vpop.f32.mrf.mxu0 }
 0x2dc   : > { %v2944_v17 = vld [vmem:[#allocation7 + $0xe88] sm:$0xff]  ;;  %v5914_v4 = vpop.f32.mrf.mxu1  ;;  %6733 = vmatprep.subr.bf16.mxu0 %v11160_v37  ;;  %v11152_v25 = vcombine.high %v2816_v15, %v2820_v46  ;;  %6926 = vmatprep.subr.bf16.mxu1 %v11288_v51 }
 0x2dd   : > { %v2948_v30 = vld [vmem:[#allocation7 + $0xea8] sm:$0xff]  ;;  %18306 = vst [vmem:[#allocation170_spill] sm:$0xff] %v14726_v36  ;;  %v14728_v19 = vadd.f32 %v5914_v4, %v5721_v9  ;;  %6416 = vmatmul.mubr.bf16.gmra.mxu0 %v18308_v0  ;;  %v5727_v52 = vpop.f32.mrf.mxu0  ;;  %v11151_v9 = vcombine.low %v2816_v15, %v2820_v46 }
 0x2de   : > { %v11280_v38 = vcombine.high %v2944_v17, %v2948_v30  ;;  %v2808_v35 = vld [vmem:[#allocation7 + $0xa48] sm:$0xff]  ;;  %v5918_v32 = vpop.f32.mrf.mxu1  ;;  %6927 = vmatpush2.bf16.msra.mxu1 %v11287_v21  ;;  %v11279_v51 = vcombine.low %v2944_v17, %v2948_v30 }
 0x2df   : > { %18307 = vst [vmem:[#allocation171_spill] sm:$0xff] %v14728_v19  ;;  %v2812_v28 = vld [vmem:[#allocation7 + $0xa68] sm:$0xff]  ;;  %v14733_v7 = vadd.f32 %v5918_v32, %v5725_v45  ;;  %6734 = vmatpush2.bf16.msra.mxu0 %v11159_v26  ;;  %v5729_v0 = vpop.f32.mrf.mxu0 }
 0x2e0   : > { %v18309_v6 = vld [vmem:[#allocation70_spill] sm:$0xff]  ;;  %v5920_v53 = vpop.f32.mrf.mxu1  ;;  %6735 = vmatprep.subr.bf16.mxu0 %v11152_v25  ;;  %v11144_v37 = vcombine.high %v2808_v35, %v2812_v28  ;;  %6928 = vmatprep.subr.bf16.mxu1 %v11280_v38  ;;  %v11143_v46 = vcombine.low %v2808_v35, %v2812_v28  ;;  %v18313_v25 = vld [vmem:[#allocation73_spill] sm:$0xff]  ;;  %v18316_v35 = vld [vmem:[#allocation44_spill] sm:$0xff] }
 0x2e1   : > { %6609 = vmatmul.mubr.bf16.gmra.mxu1 %v18309_v6  ;;  %v18310_v22 = vld [vmem:[#allocation30_spill] sm:$0xff]  ;;  %18311 = vst [vmem:[#allocation172_spill] sm:$0xff] %v14733_v7  ;;  %v14736_v4 = vadd.f32 %v5920_v53, %v5727_v52  ;;  %v18314_v53 = vld [vmem:[#allocation41_spill] sm:$0xff] }
 0x2e2   : > { %6425 = vmatprep.mubr.bf16.mxu0 %v18310_v22  ;;  %v2936_v49 = vld [vmem:[#allocation7 + $0xe48] sm:$0xff]  ;;  %6618 = vmatprep.mubr.bf16.mxu1 %v18312_v12  ;;  %v5922_v36 = vpop.f32.mrf.mxu1  ;;  %v5731_v12 = vpop.f32.mrf.mxu0 }
 0x2e3   : > { %v2940_v55 = vld [vmem:[#allocation7 + $0xe68] sm:$0xff]  ;;  %v14738_v7 = vadd.f32 %v5922_v36, %v5729_v0  ;;  %6736 = vmatpush2.bf16.msra.mxu0 %v11151_v9  ;;  %6929 = vmatpush2.bf16.msra.mxu1 %v11279_v51 }
 0x2e4   : > { %v11272_v6 = vcombine.high %v2936_v49, %v2940_v55  ;;  %v2800_v22 = vld [vmem:[#allocation7 + $0xa08] sm:$0xff]  ;;  %v5924_v15 = vpop.f32.mrf.mxu1  ;;  %6737 = vmatprep.subr.bf16.mxu0 %v11144_v37  ;;  %v11271_v17 = vcombine.low %v2936_v49, %v2940_v55  ;;  %v5735_v21 = vpop.f32.mrf.mxu0  ;;  %v11002_v37 = vcombine.high %v14658_v18, %v14664_v47 }
 0x2e5   : > { %v2804_v19 = vld [vmem:[#allocation7 + $0xa28] sm:$0xff]  ;;  %v14740_v26 = vadd.f32 %v5924_v15, %v5731_v12  ;;  %6426 = vmatmul.mubr.bf16.gmra.mxu0 %v18313_v25 }
 0x2e6   : > { %v2928_v32 = vld [vmem:[#allocation7 + $0xe08] sm:$0xff]  ;;  %v11136_v30 = vcombine.high %v2800_v22, %v2804_v19  ;;  %6930 = vmatprep.subr.bf16.mxu1 %v11272_v6  ;;  %v5928_v52 = vpop.f32.mrf.mxu1  ;;  %v5737_v28 = vpop.f32.mrf.mxu0  ;;  %v11135_v49 = vcombine.low %v2800_v22, %v2804_v19  ;;  %v10874_v6 = vcombine.high %v14654_v10, %v14656_v39 }
 0x2e7   : > { %v2932_v45 = vld [vmem:[#allocation7 + $0xe28] sm:$0xff]  ;;  %v14745_v0 = vadd.f32 %v5928_v52, %v5735_v21  ;;  %6738 = vmatpush2.bf16.msra.mxu0 %v11143_v46  ;;  %6931 = vmatpush2.bf16.msra.mxu1 %v11271_v17 }
 0x2e8   : > { %v11264_v38 = vcombine.high %v2928_v32, %v2932_v45  ;;  %v18315_v36 = vld [vmem:[#allocation42_spill] sm:$0xff]  ;;  %v5930_v55 = vpop.f32.mrf.mxu1  ;;  %6739 = vmatprep.subr.bf16.mxu0 %v11136_v30  ;;  %v11263_v12 = vcombine.low %v2928_v32, %v2932_v45  ;;  %v5739_v51 = vpop.f32.mrf.mxu0  ;;  %v18317_v45 = vld [vmem:[#allocation43_spill] sm:$0xff] }
 0x2e9   : > { %6619 = vmatmul.mubr.bf16.gmra.mxu1 %v18314_v53  ;;  %6435 = vmatprep.mubr.bf16.mxu0 %v18315_v36  ;;  %v14750_v9 = vadd.f32 %v5930_v55, %v5737_v28  ;;  %v18318_v30 = vld [vmem:[#allocation74_spill] sm:$0xff]  ;;  %v18320_v28 = vld [vmem:[#allocation75_spill] sm:$0xff] }
 0x2ea   : > { %6628 = vmatprep.mubr.bf16.mxu1 %v18316_v35  ;;  %6932 = vmatprep.subr.bf16.mxu1 %v11264_v38  ;;  %v5932_v15 = vpop.f32.mrf.mxu1  ;;  %v5741_v52 = vpop.f32.mrf.mxu0  ;;  %v18319_v38 = vld [vmem:[#allocation49_spill] sm:$0xff] }
 0x2eb   : > { %v14754_v21 = vadd.f32 %v5932_v15, %v5739_v51  ;;  %6740 = vmatpush2.bf16.msra.mxu0 %v11135_v49  ;;  %6933 = vmatpush2.bf16.msra.mxu1 %v11263_v12 }
 0x2ec   : > { %v5934_v19 = vpop.f32.mrf.mxu1  ;;  %7095 = vmatprep.subr.bf16.mxu0 %v10874_v6  ;;  %v5971_v32 = vpop.f32.mrf.mxu0  ;;  %7288 = vmatprep.subr.bf16.mxu1 %v11002_v37 }
 0x2ed   : > { %v14756_v22 = vadd.f32 %v5934_v19, %v5741_v52  ;;  %6436 = vmatmul.mubr.bf16.gmra.mxu0 %v18317_v45  ;;  %v5972_v46 = vadd.f32 %v5971_v32, %v14400_v1 }
 0x2ee   : > { %v6164_v17 = vpop.f32.mrf.mxu1  ;;  %6445 = vmatprep.mubr.bf16.mxu0 %v18319_v38  ;;  %v5973_v55 = vpop.f32.mrf.mxu0 }
 0x2ef   : > { %v14763_v49 = vadd.f32 %v6164_v17, %v5972_v46  ;;  %v5974_v12 = vadd.f32 %v5973_v55, %v14406_v31 }
 0x2f0   : > { %v6166_v6 = vpop.f32.mrf.mxu1  ;;  %v5975_v51 = vpop.f32.mrf.mxu0 }
 0x2f1   : > { %6629 = vmatmul.mubr.bf16.gmra.mxu1 %v18318_v30  ;;  %18321 = vst [vmem:[#allocation73_spill] sm:$0xff] %v14763_v49  ;;  %v14766_v15 = vadd.f32 %v6166_v6, %v5974_v12  ;;  %v5976_v37 = vadd.f32 %v5975_v51, %v14413_v56  ;;  %v18326_v12 = vld [vmem:[#allocation77_spill] sm:$0xff]  ;;  %v18327_v56 = vld [vmem:[#allocation78_spill] sm:$0xff]  ;;  %v18328_v6 = vld [vmem:[#allocation79_spill] sm:$0xff] }
 0x2f2   : > { %6638 = vmatprep.mubr.bf16.mxu1 %v18320_v28  ;;  %v6168_v52 = vpop.f32.mrf.mxu1  ;;  %v5977_v1 = vpop.f32.mrf.mxu0  ;;  %v18324_v28 = vld [vmem:[#allocation76_spill] sm:$0xff] }
 0x2f3   : > { %18322 = vst [vmem:[#allocation41_spill] sm:$0xff] %v14766_v15  ;;  %v14769_v19 = vadd.f32 %v6168_v52, %v5976_v37  ;;  %v5978_v32 = vadd.f32 %v5977_v1, %v14430_v16 }
 0x2f4   : > { %v6170_v38 = vpop.f32.mrf.mxu1  ;;  %v5981_v30 = vpop.f32.mrf.mxu0 }
 0x2f5   : > { %18323 = vst [vmem:[#allocation42_spill] sm:$0xff] %v14769_v19  ;;  %6446 = vmatmul.mubr.bf16.gmra.mxu0 %v18324_v28  ;;  %v14775_v31 = vadd.f32 %v6170_v38, %v5978_v32  ;;  %v5982_v17 = vadd.f32 %v5981_v30, %v14436_v44 }
 0x2f6   : > { %v6174_v55 = vpop.f32.mrf.mxu1  ;;  %6455 = vmatprep.mubr.bf16.mxu0 %v18327_v56  ;;  %v5983_v51 = vpop.f32.mrf.mxu0 }
 0x2f7   : > { %18325 = vst [vmem:[#allocation44_spill] sm:$0xff] %v14775_v31  ;;  %v14783_v37 = vadd.f32 %v6174_v55, %v5982_v17  ;;  %v5984_v52 = vadd.f32 %v5983_v51, %v14442_v41  ;;  %v18340_v31 = vld [vmem:[#allocation63_spill] sm:$0xff] }
 0x2f8   : > { %v6176_v1 = vpop.f32.mrf.mxu1  ;;  %v5985_v38 = vpop.f32.mrf.mxu0 }
 0x2f9   : > { %6639 = vmatmul.mubr.bf16.gmra.mxu1 %v18326_v12  ;;  %18329 = vst [vmem:[#allocation43_spill] sm:$0xff] %v14783_v37  ;;  %v14786_v32 = vadd.f32 %v6176_v1, %v5984_v52  ;;  %v5986_v44 = vadd.f32 %v5985_v38, %v14449_v61  ;;  %v18332_v12 = vld [vmem:[#allocation80_spill] sm:$0xff]  ;;  %v18334_v52 = vld [vmem:[#allocation81_spill] sm:$0xff]  ;;  %v18335_v61 = vld [vmem:[#allocation58_spill] sm:$0xff] }
 0x2fa   : > { %6648 = vmatprep.mubr.bf16.mxu1 %v18328_v6  ;;  %v6178_v30 = vpop.f32.mrf.mxu1  ;;  %v5987_v46 = vpop.f32.mrf.mxu0  ;;  %v18336_v1 = vld [vmem:[#allocation59_spill] sm:$0xff] }
 0x2fb   : > { %18330 = vst [vmem:[#allocation76_spill] sm:$0xff] %v14786_v32  ;;  %v14789_v49 = vadd.f32 %v6178_v30, %v5986_v44  ;;  %v5988_v19 = vadd.f32 %v5987_v46, %v14466_v29 }
 0x2fc   : > { %v6180_v6 = vpop.f32.mrf.mxu1  ;;  %v5991_v56 = vpop.f32.mrf.mxu0 }
 0x2fd   : > { %18331 = vst [vmem:[#allocation173_spill] sm:$0xff] %v14789_v49  ;;  %6456 = vmatmul.mubr.bf16.gmra.mxu0 %v18332_v12  ;;  %v14795_v41 = vadd.f32 %v6180_v6, %v5988_v19  ;;  %v5992_v55 = vadd.f32 %v5991_v56, %v14472_v2 }
 0x2fe   : > { %v6184_v51 = vpop.f32.mrf.mxu1  ;;  %6465 = vmatprep.mubr.bf16.mxu0 %v18335_v61  ;;  %v5993_v38 = vpop.f32.mrf.mxu0 }
 0x2ff   : > { %18333 = vst [vmem:[#allocation80_spill] sm:$0xff] %v14795_v41  ;;  %v14803_v46 = vadd.f32 %v6184_v51, %v5992_v55  ;;  %v5994_v44 = vadd.f32 %v5993_v38, %v14478_v5  ;;  %v18348_v41 = vld [vmem:[#allocation84_spill] sm:$0xff] }
 0x300   : > { %v6186_v30 = vpop.f32.mrf.mxu1  ;;  %v5995_v19 = vpop.f32.mrf.mxu0 }
 0x301   : > { %6649 = vmatmul.mubr.bf16.gmra.mxu1 %v18334_v52  ;;  %18337 = vst [vmem:[#allocation81_spill] sm:$0xff] %v14803_v46  ;;  %v14806_v6 = vadd.f32 %v6186_v30, %v5994_v44  ;;  %v5996_v2 = vadd.f32 %v5995_v19, %v14485_v23  ;;  %v18342_v44 = vld [vmem:[#allocation64_spill] sm:$0xff]  ;;  %v18343_v23 = vld [vmem:[#allocation25_spill] sm:$0xff] }
 0x302   : > { %6658 = vmatprep.mubr.bf16.mxu1 %v18336_v1  ;;  %v6188_v56 = vpop.f32.mrf.mxu1  ;;  %v5997_v17 = vpop.f32.mrf.mxu0  ;;  %v18344_v30 = vld [vmem:[#allocation65_spill] sm:$0xff] }
 0x303   : > { %18338 = vst [vmem:[#allocation58_spill] sm:$0xff] %v14806_v6  ;;  %v14809_v16 = vadd.f32 %v6188_v56, %v5996_v2  ;;  %v5998_v37 = vadd.f32 %v5997_v17, %v14502_v62 }
 0x304   : > { %v6190_v49 = vpop.f32.mrf.mxu1  ;;  %v6001_v15 = vpop.f32.mrf.mxu0 }
 0x305   : > { %18339 = vst [vmem:[#allocation59_spill] sm:$0xff] %v14809_v16  ;;  %6466 = vmatmul.mubr.bf16.gmra.mxu0 %v18340_v31  ;;  %v14815_v5 = vadd.f32 %v6190_v49, %v5998_v37  ;;  %v6002_v51 = vadd.f32 %v6001_v15, %v14508_v48 }
 0x306   : > { %v6194_v38 = vpop.f32.mrf.mxu1  ;;  %6475 = vmatprep.mubr.bf16.mxu0 %v18343_v23  ;;  %v6003_v19 = vpop.f32.mrf.mxu0 }
 0x307   : > { %18341 = vst [vmem:[#allocation63_spill] sm:$0xff] %v14815_v5  ;;  %v14823_v17 = vadd.f32 %v6194_v38, %v6002_v51  ;;  %v6004_v2 = vadd.f32 %v6003_v19, %v14514_v8  ;;  %v18356_v5 = vld [vmem:[#allocation88_spill] sm:$0xff] }
 0x308   : > { %v6196_v56 = vpop.f32.mrf.mxu1  ;;  %v6005_v49 = vpop.f32.mrf.mxu0 }
 0x309   : > { %6659 = vmatmul.mubr.bf16.gmra.mxu1 %v18342_v44  ;;  %18345 = vst [vmem:[#allocation64_spill] sm:$0xff] %v14823_v17  ;;  %v14826_v37 = vadd.f32 %v6196_v56, %v6004_v2  ;;  %v6006_v48 = vadd.f32 %v6005_v49, %v14521_v34  ;;  %v18350_v2 = vld [vmem:[#allocation39_spill] sm:$0xff]  ;;  %v18351_v34 = vld [vmem:[#allocation36_spill] sm:$0xff] }
 0x30a   : > { %6668 = vmatprep.mubr.bf16.mxu1 %v18344_v30  ;;  %v6198_v15 = vpop.f32.mrf.mxu1  ;;  %v6007_v55 = vpop.f32.mrf.mxu0  ;;  %v18352_v56 = vld [vmem:[#allocation68_spill] sm:$0xff] }
 0x30b   : > { %18346 = vst [vmem:[#allocation25_spill] sm:$0xff] %v14826_v37  ;;  %v14829_v29 = vadd.f32 %v6198_v15, %v6006_v48  ;;  %v6008_v46 = vadd.f32 %v6007_v55, %v14538_v13 }
 0x30c   : > { %v6200_v16 = vpop.f32.mrf.mxu1  ;;  %v6011_v32 = vpop.f32.mrf.mxu0 }
 0x30d   : > { %18347 = vst [vmem:[#allocation65_spill] sm:$0xff] %v14829_v29  ;;  %6476 = vmatmul.mubr.bf16.gmra.mxu0 %v18348_v41  ;;  %v14835_v8 = vadd.f32 %v6200_v16, %v6008_v46  ;;  %v6012_v38 = vadd.f32 %v6011_v32, %v14544_v27 }
 0x30e   : > { %v6204_v19 = vpop.f32.mrf.mxu1  ;;  %6485 = vmatprep.mubr.bf16.mxu0 %v18351_v34  ;;  %v6013_v49 = vpop.f32.mrf.mxu0 }
 0x30f   : > { %18349 = vst [vmem:[#allocation84_spill] sm:$0xff] %v14835_v8  ;;  %v14843_v55 = vadd.f32 %v6204_v19, %v6012_v38  ;;  %v6014_v48 = vadd.f32 %v6013_v49, %v14550_v54  ;;  %v18364_v8 = vld [vmem:[#allocation90_spill] sm:$0xff] }
 0x310   : > { %v6206_v15 = vpop.f32.mrf.mxu1  ;;  %v6015_v16 = vpop.f32.mrf.mxu0 }
 0x311   : > { %6669 = vmatmul.mubr.bf16.gmra.mxu1 %v18350_v2  ;;  %18353 = vst [vmem:[#allocation174_spill] sm:$0xff] %v14843_v55  ;;  %v14846_v46 = vadd.f32 %v6206_v15, %v6014_v48  ;;  %v6016_v27 = vadd.f32 %v6015_v16, %v14557_v14  ;;  %v18358_v48 = vld [vmem:[#allocation31_spill] sm:$0xff]  ;;  %v18359_v14 = vld [vmem:[#allocation72_spill] sm:$0xff]  ;;  %v18360_v15 = vld [vmem:[#allocation34_spill] sm:$0xff] }
 0x312   : > { %6678 = vmatprep.mubr.bf16.mxu1 %v18352_v56  ;;  %v6208_v32 = vpop.f32.mrf.mxu1  ;;  %v6017_v51 = vpop.f32.mrf.mxu0  ;;  %v2757_v56 = vld [vmem:[#allocation7 + $0x8b0] sm:$0xff] }
 0x313   : > { %18354 = vst [vmem:[#allocation175_spill] sm:$0xff] %v14846_v46  ;;  %v14849_v62 = vadd.f32 %v6208_v32, %v6016_v27  ;;  %v6018_v17 = vadd.f32 %v6017_v51, %v14574_v58 }
 0x314   : > { %v6210_v29 = vpop.f32.mrf.mxu1  ;;  %v6021_v6 = vpop.f32.mrf.mxu0 }
 0x315   : > { %18355 = vst [vmem:[#allocation176_spill] sm:$0xff] %v14849_v62  ;;  %6486 = vmatmul.mubr.bf16.gmra.mxu0 %v18356_v5  ;;  %v14855_v54 = vadd.f32 %v6210_v29, %v6018_v17  ;;  %v6022_v19 = vadd.f32 %v6021_v6, %v14580_v3  ;;  %v2769_v5 = vld [vmem:[#allocation7 + $0x910] sm:$0xff] }
 0x316   : > { %v6214_v49 = vpop.f32.mrf.mxu1  ;;  %6495 = vmatprep.mubr.bf16.mxu0 %v18359_v14  ;;  %v6023_v16 = vpop.f32.mrf.mxu0  ;;  %v18520_v14 = vld [vmem:[#allocation38_spill] sm:$0xff] }
 0x317   : > { %18357 = vst [vmem:[#allocation177_spill] sm:$0xff] %v14855_v54  ;;  %v14863_v51 = vadd.f32 %v6214_v49, %v6022_v19  ;;  %v6024_v27 = vadd.f32 %v6023_v16, %v14586_v33  ;;  %v18372_v54 = vld [vmem:[#allocation94_spill] sm:$0xff] }
 0x318   : > { %v6216_v32 = vpop.f32.mrf.mxu1  ;;  %v6025_v29 = vpop.f32.mrf.mxu0 }
 0x319   : > { %6679 = vmatmul.mubr.bf16.gmra.mxu1 %v18358_v48  ;;  %18361 = vst [vmem:[#allocation178_spill] sm:$0xff] %v14863_v51  ;;  %v14866_v17 = vadd.f32 %v6216_v32, %v6024_v27  ;;  %v6026_v3 = vadd.f32 %v6025_v29, %v14593_v57  ;;  %v18366_v27 = vld [vmem:[#allocation91_spill] sm:$0xff]  ;;  %v18367_v57 = vld [vmem:[#allocation92_spill] sm:$0xff]  ;;  %v18368_v32 = vld [vmem:[#allocation93_spill] sm:$0xff] }
 0x31a   : > { %6688 = vmatprep.mubr.bf16.mxu1 %v18360_v15  ;;  %v6218_v6 = vpop.f32.mrf.mxu1  ;;  %v6027_v38 = vpop.f32.mrf.mxu0  ;;  %v2905_v48 = vld [vmem:[#allocation7 + $0xd50] sm:$0xff] }
 0x31b   : > { %18362 = vst [vmem:[#allocation179_spill] sm:$0xff] %v14866_v17  ;;  %v14869_v13 = vadd.f32 %v6218_v6, %v6026_v3  ;;  %v6028_v55 = vadd.f32 %v6027_v38, %v14606_v59  ;;  %v2533_v59 = vld [vmem:[#allocation7 + $0x1b0] sm:$0xff] }
 0x31c   : > { %v6220_v62 = vpop.f32.mrf.mxu1  ;;  %v6031_v37 = vpop.f32.mrf.mxu0 }
 0x31d   : > { %18363 = vst [vmem:[#allocation180_spill] sm:$0xff] %v14869_v13  ;;  %6496 = vmatmul.mubr.bf16.gmra.mxu0 %v18364_v8  ;;  %v14875_v33 = vadd.f32 %v6220_v62, %v6028_v55  ;;  %v6032_v49 = vadd.f32 %v6031_v37, %v14612_v20 }
 0x31e   : > { %v6224_v16 = vpop.f32.mrf.mxu1  ;;  %6505 = vmatprep.mubr.bf16.mxu0 %v18367_v57  ;;  %v6033_v29 = vpop.f32.mrf.mxu0 }
 0x31f   : > { %18365 = vst [vmem:[#allocation181_spill] sm:$0xff] %v14875_v33  ;;  %v14883_v38 = vadd.f32 %v6224_v16, %v6032_v49  ;;  %v6034_v3 = vadd.f32 %v6033_v29, %v14616_v60 }
 0x320   : > { %v6226_v6 = vpop.f32.mrf.mxu1  ;;  %v6035_v62 = vpop.f32.mrf.mxu0 }
 0x321   : > { %6689 = vmatmul.mubr.bf16.gmra.mxu1 %v18366_v27  ;;  %18369 = vst [vmem:[#allocation182_spill] sm:$0xff] %v14883_v38  ;;  %v14886_v55 = vadd.f32 %v6226_v6, %v6034_v3  ;;  %v6036_v20 = vadd.f32 %v6035_v62, %v14621_v24  ;;  %v18374_v3 = vld [vmem:[#allocation95_spill] sm:$0xff]  ;;  %v18375_v24 = vld [vmem:[#allocation96_spill] sm:$0xff]  ;;  %v18376_v6 = vld [vmem:[#allocation97_spill] sm:$0xff] }
 0x322   : > { %6698 = vmatprep.mubr.bf16.mxu1 %v18368_v32  ;;  %v6228_v37 = vpop.f32.mrf.mxu1  ;;  %v6037_v19 = vpop.f32.mrf.mxu0  ;;  %v2657_v38 = vld [vmem:[#allocation7 + $0x590] sm:$0xff] }
 0x323   : > { %18370 = vst [vmem:[#allocation183_spill] sm:$0xff] %v14886_v55  ;;  %v14889_v58 = vadd.f32 %v6228_v37, %v6036_v20  ;;  %v6038_v51 = vadd.f32 %v6037_v19, %v14626_v42  ;;  %v18380_v55 = vld [vmem:[#allocation100_spill] sm:$0xff] }
 0x324   : > { %v6230_v13 = vpop.f32.mrf.mxu1  ;;  %v6041_v46 = vpop.f32.mrf.mxu0  ;;  %v2505_v32 = vld [vmem:[#allocation7 + $0xd0] sm:$0xff] }
 0x325   : > { %18371 = vst [vmem:[#allocation184_spill] sm:$0xff] %v14889_v58  ;;  %6506 = vmatmul.mubr.bf16.gmra.mxu0 %v18372_v54  ;;  %v14895_v60 = vadd.f32 %v6230_v13, %v6038_v51  ;;  %v6042_v16 = vadd.f32 %v6041_v46, %v14631_v43  ;;  %v2529_v51 = vld [vmem:[#allocation7 + $0x190] sm:$0xff] }
 0x326   : > { %v6234_v29 = vpop.f32.mrf.mxu1  ;;  %6741 = vmatprep.mubr.bf16.mxu0 %v18375_v24  ;;  %v6043_v62 = vpop.f32.mrf.mxu0  ;;  %v2661_v58 = vld [vmem:[#allocation7 + $0x5b0] sm:$0xff]  ;;  %v18385_v24 = vcombine.low %v14654_v10, %v14656_v39 }
 0x327   : > { %18373 = vst [vmem:[#allocation185_spill] sm:$0xff] %v14895_v60  ;;  %v14903_v19 = vadd.f32 %v6234_v29, %v6042_v16  ;;  %v6044_v20 = vadd.f32 %v6043_v62, %v14634_v40  ;;  %v10866_v40 = vcombine.high %v2529_v51, %v2533_v59  ;;  %v10994_v62 = vcombine.high %v2657_v38, %v2661_v58  ;;  %v14913_v60 = vld [vmem:[#allocation7 + $0x150] sm:$0xff] }
 0x328   : > { %v6236_v37 = vpop.f32.mrf.mxu1  ;;  %v6045_v13 = vpop.f32.mrf.mxu0 }
 0x329   : > { %6699 = vmatmul.mubr.bf16.gmra.mxu1 %v18374_v3  ;;  %18377 = vst [vmem:[#allocation186_spill] sm:$0xff] %v14903_v19  ;;  %v14906_v49 = vadd.f32 %v6236_v37, %v6044_v20  ;;  %v6046_v43 = vadd.f32 %v6045_v13, %v14636_v11  ;;  %v14915_v20 = vld [vmem:[#allocation7 + $0x170] sm:$0xff]  ;;  %v10865_v11 = vcombine.low %v2529_v51, %v2533_v59 }
 0x32a   : > { %6934 = vmatprep.mubr.bf16.mxu1 %v18376_v6  ;;  %v6238_v46 = vpop.f32.mrf.mxu1  ;;  %v6047_v17 = vpop.f32.mrf.mxu0  ;;  %v18384_v6 = vld [vmem:[#allocation103_spill] sm:$0xff]  ;;  %v10858_v10 = vcombine.high %v14913_v60, %v14915_v20 }
 0x32b   : > { %18378 = vst [vmem:[#allocation187_spill] sm:$0xff] %v14906_v49  ;;  %v14909_v33 = vadd.f32 %v6238_v46, %v6046_v43  ;;  %v6048_v42 = vadd.f32 %v6047_v17, %v14638_v50  ;;  %v18382_v46 = vld [vmem:[#allocation101_spill] sm:$0xff]  ;;  %v18383_v50 = vld [vmem:[#allocation102_spill] sm:$0xff]  ;;  %v14924_v17 = vld [vmem:[#allocation7 + $0x550] sm:$0xff] }
 0x32c   : > { %v6240_v16 = vpop.f32.mrf.mxu1  ;;  %v6051_v29 = vpop.f32.mrf.mxu0  ;;  %v2513_v59 = vld [vmem:[#allocation7 + $0x110] sm:$0xff] }
 0x32d   : > { %18379 = vst [vmem:[#allocation188_spill] sm:$0xff] %v14909_v33  ;;  %6742 = vmatmul.mubr.bf16.vlgmr.msra.gmra.mxu0 %v18380_v55  ;;  %v14919_v37 = vadd.f32 %v6240_v16, %v6048_v42  ;;  %v6052_v13 = vadd.f32 %v6051_v29, %v14643_v63  ;;  %v2653_v55 = vld [vmem:[#allocation7 + $0x570] sm:$0xff]  ;;  %v10993_v42 = vcombine.low %v2657_v38, %v2661_v58  ;;  %v18387_v33 = vld [vmem:[#allocation149_spill] sm:$0xff] }
 0x32e   : > { %v6244_v43 = vpop.f32.mrf.mxu1  ;;  %6751 = vmatprep.mubr.bf16.mxu0 %v18383_v50  ;;  %7096 = vmatpush1.bf16.msra.mxu0 %v18385_v24  ;;  %v6053_v3 = vpop.f32.mrf.mxu0  ;;  %v14930_v16 = vld [vmem:[#allocation7 + $0x9d0] sm:$0xff]  ;;  %v10986_v58 = vcombine.high %v14924_v17, %v2653_v55 }
 0x32f   : > { %18381 = vst [vmem:[#allocation189_spill] sm:$0xff] %v14919_v37  ;;  %v14932_v63 = vld [vmem:[#allocation7 + $0x9f0] sm:$0xff]  ;;  %v14936_v19 = vadd.f32 %v6244_v43, %v6052_v13  ;;  %v6054_v50 = vadd.f32 %v6053_v3, %v18387_v33  ;;  %7097 = vmatprep.subr.bf16.mxu0 %v10866_v40 }
 0x330   : > { %v6055_v39 = vpop.f32.mrf.mxu0  ;;  %v14947_v24 = vld [vmem:[#allocation7 + $0xdd0] sm:$0xff] }
 0x331   : > { %6935 = vmatmul.mubr.bf16.vlgmr.msra.gmra.mxu1 %v18382_v46  ;;  %18386 = vst [vmem:[#allocation190_spill] sm:$0xff] %v14936_v19  ;;  %v6246_v46 = vpop.f32.mrf.mxu1  ;;  %v14949_v33 = vld [vmem:[#allocation7 + $0xdf0] sm:$0xff] }
 0x332   : > { %6944 = vmatprep.mubr.bf16.mxu1 %v18384_v6  ;;  %v18388_v6 = vcombine.low %v14658_v18, %v14664_v47  ;;  %v14951_v3 = vadd.f32 %v6246_v46, %v6054_v50  ;;  %v18390_v18 = vld [vmem:[#allocation150_spill] sm:$0xff]  ;;  %v2517_v51 = vld [vmem:[#allocation7 + $0x130] sm:$0xff]  ;;  %v6057_v40 = vpop.f32.mrf.mxu0  ;;  %7098 = vmatpush1.bf16.msra.mxu0 %v10865_v11  ;;  %v10985_v50 = vcombine.low %v14924_v17, %v2653_v55 }
 0x333   : > { %v6056_v47 = vadd.f32 %v6055_v39, %v18390_v18  ;;  %v2641_v13 = vld [vmem:[#allocation7 + $0x510] sm:$0xff]  ;;  %7099 = vmatprep.subr.bf16.mxu0 %v10858_v10  ;;  %v10850_v11 = vcombine.high %v2513_v59, %v2517_v51  ;;  %v18397_v10 = vld [vmem:[#allocation113_spill] sm:$0xff] }
 0x334   : > { %7289 = vmatpush1.bf16.msra.mxu1 %v18388_v6  ;;  %18389 = vst [vmem:[#allocation149_spill] sm:$0xff] %v14951_v3  ;;  %v6248_v6 = vpop.f32.mrf.mxu1  ;;  %v2645_v43 = vld [vmem:[#allocation7 + $0x530] sm:$0xff]  ;;  %v6061_v39 = vpop.f32.mrf.mxu0 }
 0x335   : > { %7290 = vmatprep.subr.bf16.mxu1 %v10994_v62  ;;  %v10857_v62 = vcombine.low %v14913_v60, %v14915_v20  ;;  %v14958_v38 = vadd.f32 %v6248_v6, %v6056_v47  ;;  %v18392_v49 = vld [vmem:[#allocation151_spill] sm:$0xff]  ;;  %v10978_v54 = vcombine.high %v2641_v13, %v2645_v43  ;;  %v18395_v6 = vld [vmem:[#allocation152_spill] sm:$0xff]  ;;  %v10977_v57 = vcombine.low %v2641_v13, %v2645_v43 }
 0x336   : > { %v6058_v37 = vadd.f32 %v6057_v40, %v18392_v49  ;;  %v6250_v46 = vpop.f32.mrf.mxu1  ;;  %v18393_v18 = vld [vmem:[#allocation111_spill] sm:$0xff]  ;;  %v6062_v49 = vadd.f32 %v6061_v39, %v18395_v6 }
 0x337   : > { %18391 = vst [vmem:[#allocation150_spill] sm:$0xff] %v14958_v38  ;;  %6752 = vmatmul.mubr.bf16.gmra.mxu0 %v18393_v18  ;;  %v2509_v60 = vld [vmem:[#allocation7 + $0xf0] sm:$0xff]  ;;  %v10849_v18 = vcombine.low %v2513_v59, %v2517_v51 }
 0x338   : > { %7291 = vmatpush1.bf16.msra.mxu1 %v10993_v42  ;;  %v14965_v47 = vadd.f32 %v6250_v46, %v6058_v37  ;;  %v6254_v40 = vpop.f32.mrf.mxu1  ;;  %v18396_v42 = vld [vmem:[#allocation112_spill] sm:$0xff]  ;;  %6761 = vmatprep.mubr.bf16.mxu0 %v18397_v10  ;;  %v18398_v29 = vld [vmem:[#allocation27_spill] sm:$0xff]  ;;  %v18400_v46 = vld [vmem:[#allocation153_spill] sm:$0xff]  ;;  %v10842_v19 = vcombine.high %v2505_v32, %v2509_v60 }
 0x339   : > { %7292 = vmatprep.subr.bf16.mxu1 %v10986_v58  ;;  %6945 = vmatmul.mubr.bf16.gmra.mxu1 %v18396_v42  ;;  %v2633_v55 = vld [vmem:[#allocation7 + $0x4d0] sm:$0xff]  ;;  %v6063_v58 = vpop.f32.mrf.mxu0  ;;  %v14973_v37 = vadd.f32 %v6254_v40, %v6062_v49  ;;  %v10841_v40 = vcombine.low %v2505_v32, %v2509_v60 }
 0x33a   : > { %18394 = vst [vmem:[#allocation151_spill] sm:$0xff] %v14965_v47  ;;  %v2637_v17 = vld [vmem:[#allocation7 + $0x4f0] sm:$0xff]  ;;  %6954 = vmatprep.mubr.bf16.mxu1 %v18398_v29  ;;  %7100 = vmatpush1.bf16.msra.mxu0 %v10857_v62  ;;  %v6064_v39 = vadd.f32 %v6063_v58, %v18400_v46  ;;  %v6256_v6 = vpop.f32.mrf.mxu1  ;;  %v18402_v62 = vld [vmem:[#allocation154_spill] sm:$0xff] }
 0x33b   : > { %18399 = vst [vmem:[#allocation152_spill] sm:$0xff] %v14973_v37  ;;  %v6065_v38 = vpop.f32.mrf.mxu0  ;;  %7101 = vmatprep.subr.bf16.mxu0 %v10850_v11  ;;  %v10970_v10 = vcombine.high %v2633_v55, %v2637_v17  ;;  %v2497_v42 = vld [vmem:[#allocation7 + $0x90] sm:$0xff] }
 0x33c   : > { %7293 = vmatpush1.bf16.msra.mxu1 %v10985_v50  ;;  %v14976_v29 = vadd.f32 %v6256_v6, %v6064_v39  ;;  %v6066_v59 = vadd.f32 %v6065_v38, %v18402_v62  ;;  %v6258_v51 = vpop.f32.mrf.mxu1  ;;  %v2501_v13 = vld [vmem:[#allocation7 + $0xb0] sm:$0xff]  ;;  %v18405_v39 = vld [vmem:[#allocation117_spill] sm:$0xff] }
 0x33d   : > { %7294 = vmatprep.subr.bf16.mxu1 %v10978_v54  ;;  %v2625_v43 = vld [vmem:[#allocation7 + $0x490] sm:$0xff]  ;;  %v6067_v49 = vpop.f32.mrf.mxu0  ;;  %v10969_v54 = vcombine.low %v2633_v55, %v2637_v17  ;;  %v10834_v38 = vcombine.high %v2497_v42, %v2501_v13  ;;  %v18410_v17 = vld [vmem:[#allocation82_spill] sm:$0xff] }
 0x33e   : > { %18401 = vst [vmem:[#allocation153_spill] sm:$0xff] %v14976_v29  ;;  %v2629_v20 = vld [vmem:[#allocation7 + $0x4b0] sm:$0xff]  ;;  %7102 = vmatpush1.bf16.msra.mxu0 %v10849_v18  ;;  %v14979_v58 = vadd.f32 %v6258_v51, %v6066_v59  ;;  %v6260_v3 = vpop.f32.mrf.mxu1 }
 0x33f   : > { %v18404_v50 = vld [vmem:[#allocation155_spill] sm:$0xff]  ;;  %7103 = vmatprep.subr.bf16.mxu0 %v10842_v19  ;;  %v6071_v11 = vpop.f32.mrf.mxu0  ;;  %6762 = vmatmul.mubr.bf16.gmra.mxu0 %v18405_v39  ;;  %v10962_v6 = vcombine.high %v2625_v43, %v2629_v20  ;;  %v18407_v60 = vld [vmem:[#allocation156_spill] sm:$0xff]  ;;  %v10961_v39 = vcombine.low %v2625_v43, %v2629_v20 }
 0x340   : > { %18403 = vst [vmem:[#allocation154_spill] sm:$0xff] %v14979_v58  ;;  %v6068_v46 = vadd.f32 %v6067_v49, %v18404_v50  ;;  %7295 = vmatpush1.bf16.msra.mxu1 %v10977_v57  ;;  %v2489_v62 = vld [vmem:[#allocation7 + $0x50] sm:$0xff]  ;;  %v6072_v59 = vadd.f32 %v6071_v11, %v18407_v60  ;;  %v6264_v51 = vpop.f32.mrf.mxu1  ;;  %v18408_v49 = vld [vmem:[#allocation118_spill] sm:$0xff]  ;;  %v10833_v50 = vcombine.low %v2497_v42, %v2501_v13 }
 0x341   : > { %7296 = vmatprep.subr.bf16.mxu1 %v10970_v10  ;;  %v2493_v47 = vld [vmem:[#allocation7 + $0x70] sm:$0xff]  ;;  %6955 = vmatmul.mubr.bf16.gmra.mxu1 %v18408_v49  ;;  %v18409_v57 = vld [vmem:[#allocation62_spill] sm:$0xff]  ;;  %v6073_v10 = vpop.f32.mrf.mxu0 }
 0x342   : > { %v14985_v32 = vadd.f32 %v6260_v3, %v6068_v46  ;;  %6771 = vmatprep.mubr.bf16.mxu0 %v18409_v57  ;;  %v2617_v19 = vld [vmem:[#allocation7 + $0x450] sm:$0xff]  ;;  %6964 = vmatprep.mubr.bf16.mxu1 %v18410_v17  ;;  %v14993_v3 = vadd.f32 %v6264_v51, %v6072_v59  ;;  %v18412_v46 = vld [vmem:[#allocation157_spill] sm:$0xff]  ;;  %v6266_v60 = vpop.f32.mrf.mxu1  ;;  %v10826_v37 = vcombine.high %v2489_v62, %v2493_v47 }
 0x343   : > { %v2621_v55 = vld [vmem:[#allocation7 + $0x470] sm:$0xff]  ;;  %7104 = vmatpush1.bf16.msra.mxu0 %v10841_v40  ;;  %v6074_v11 = vadd.f32 %v6073_v10, %v18412_v46  ;;  %v6075_v58 = vpop.f32.mrf.mxu0  ;;  %v18414_v40 = vld [vmem:[#allocation158_spill] sm:$0xff]  ;;  %v10825_v51 = vcombine.low %v2489_v62, %v2493_v47 }
 0x344   : > { %18406 = vst [vmem:[#allocation155_spill] sm:$0xff] %v14985_v32  ;;  %18411 = vst [vmem:[#allocation156_spill] sm:$0xff] %v14993_v3  ;;  %7297 = vmatpush1.bf16.msra.mxu1 %v10969_v54  ;;  %7105 = vmatprep.subr.bf16.mxu0 %v10834_v38  ;;  %v10954_v57 = vcombine.high %v2617_v19, %v2621_v55  ;;  %v2481_v49 = vld [vmem:[#allocation7 + $0x10] sm:$0xff]  ;;  %v6076_v42 = vadd.f32 %v6075_v58, %v18414_v40  ;;  %v6268_v20 = vpop.f32.mrf.mxu1 }
 0x345   : > { %7298 = vmatprep.subr.bf16.mxu1 %v10962_v6  ;;  %v14996_v17 = vadd.f32 %v6266_v60, %v6074_v11  ;;  %v2485_v13 = vld [vmem:[#allocation7 + $0x30] sm:$0xff]  ;;  %v6077_v59 = vpop.f32.mrf.mxu0  ;;  %v10953_v38 = vcombine.low %v2617_v19, %v2621_v55  ;;  %v18417_v11 = vld [vmem:[#allocation122_spill] sm:$0xff]  ;;  %v18422_v55 = vld [vmem:[#allocation85_spill] sm:$0xff] }
 0x346   : > { %v2609_v43 = vld [vmem:[#allocation7 + $0x410] sm:$0xff]  ;;  %v14999_v10 = vadd.f32 %v6268_v20, %v6076_v42  ;;  %v6270_v29 = vpop.f32.mrf.mxu1  ;;  %v10818_v58 = vcombine.high %v2481_v49, %v2485_v13 }
 0x347   : > { %18413 = vst [vmem:[#allocation157_spill] sm:$0xff] %v14996_v17  ;;  %v2613_v18 = vld [vmem:[#allocation7 + $0x430] sm:$0xff]  ;;  %7106 = vmatpush1.bf16.msra.mxu0 %v10833_v50  ;;  %v6081_v6 = vpop.f32.mrf.mxu0 }
 0x348   : > { %18415 = vst [vmem:[#allocation158_spill] sm:$0xff] %v14999_v10  ;;  %v18416_v54 = vld [vmem:[#allocation159_spill] sm:$0xff]  ;;  %7299 = vmatpush1.bf16.msra.mxu1 %v10961_v39  ;;  %7107 = vmatprep.subr.bf16.mxu0 %v10826_v37  ;;  %v10946_v60 = vcombine.high %v2609_v43, %v2613_v18  ;;  %v18419_v62 = vld [vmem:[#allocation160_spill] sm:$0xff]  ;;  %v6274_v20 = vpop.f32.mrf.mxu1  ;;  %v18421_v37 = vld [vmem:[#allocation86_spill] sm:$0xff] }
 0x349   : > { %v6078_v46 = vadd.f32 %v6077_v59, %v18416_v54  ;;  %6772 = vmatmul.mubr.bf16.gmra.mxu0 %v18417_v11  ;;  %7300 = vmatprep.subr.bf16.mxu1 %v10954_v57  ;;  %v2601_v40 = vld [vmem:[#allocation7 + $0x3d0] sm:$0xff]  ;;  %v6082_v42 = vadd.f32 %v6081_v6, %v18419_v62  ;;  %v6083_v57 = vpop.f32.mrf.mxu0  ;;  %v10817_v54 = vcombine.low %v2481_v49, %v2485_v13 }
 0x34a   : > { %v2605_v32 = vld [vmem:[#allocation7 + $0x3f0] sm:$0xff]  ;;  %6781 = vmatprep.mubr.bf16.mxu0 %v18421_v37  ;;  %v10945_v11 = vcombine.low %v2609_v43, %v2613_v18  ;;  %v6276_v62 = vpop.f32.mrf.mxu1 }
 0x34b   : > { %v15005_v47 = vadd.f32 %v6270_v29, %v6078_v46  ;;  %v18420_v59 = vld [vmem:[#allocation71_spill] sm:$0xff]  ;;  %7108 = vmatpush1.bf16.msra.mxu0 %v10825_v51  ;;  %v15013_v29 = vadd.f32 %v6274_v20, %v6082_v42  ;;  %v18424_v46 = vld [vmem:[#allocation161_spill] sm:$0xff]  ;;  %v10938_v3 = vcombine.high %v2601_v40, %v2605_v32  ;;  %v6085_v10 = vpop.f32.mrf.mxu0  ;;  %v18426_v51 = vld [vmem:[#allocation162_spill] sm:$0xff]  ;;  %v10937_v20 = vcombine.low %v2601_v40, %v2605_v32 }
 0x34c   : > { %6965 = vmatmul.mubr.bf16.gmra.mxu1 %v18420_v59  ;;  %v2729_v39 = vld [vmem:[#allocation7 + $0x7d0] sm:$0xff]  ;;  %v6084_v6 = vadd.f32 %v6083_v57, %v18424_v46  ;;  %7109 = vmatprep.subr.bf16.mxu0 %v10818_v58  ;;  %v6086_v49 = vadd.f32 %v6085_v10, %v18426_v51  ;;  %v6278_v18 = vpop.f32.mrf.mxu1 }
 0x34d   : > { %18418 = vst [vmem:[#allocation159_spill] sm:$0xff] %v15005_v47  ;;  %v2733_v19 = vld [vmem:[#allocation7 + $0x7f0] sm:$0xff]  ;;  %6974 = vmatprep.mubr.bf16.mxu1 %v18422_v55  ;;  %18423 = vst [vmem:[#allocation160_spill] sm:$0xff] %v15013_v29  ;;  %7301 = vmatpush1.bf16.msra.mxu1 %v10953_v38  ;;  %v6087_v42 = vpop.f32.mrf.mxu0 }
 0x34e   : > { %7302 = vmatprep.subr.bf16.mxu1 %v10946_v60  ;;  %v11066_v37 = vcombine.high %v2729_v39, %v2733_v19  ;;  %v2593_v59 = vld [vmem:[#allocation7 + $0x390] sm:$0xff]  ;;  %v15016_v55 = vadd.f32 %v6276_v62, %v6084_v6  ;;  %v15019_v57 = vadd.f32 %v6278_v18, %v6086_v49  ;;  %v6280_v17 = vpop.f32.mrf.mxu1  ;;  %v11065_v58 = vcombine.low %v2729_v39, %v2733_v19 }
 0x34f   : > { %v2597_v13 = vld [vmem:[#allocation7 + $0x3b0] sm:$0xff]  ;;  %7110 = vmatpush1.bf16.msra.mxu0 %v10817_v54  ;;  %v6091_v60 = vpop.f32.mrf.mxu0 }
 0x350   : > { %18425 = vst [vmem:[#allocation161_spill] sm:$0xff] %v15016_v55  ;;  %v2721_v43 = vld [vmem:[#allocation7 + $0x790] sm:$0xff]  ;;  %18427 = vst [vmem:[#allocation162_spill] sm:$0xff] %v15019_v57  ;;  %7111 = vmatprep.subr.bf16.mxu0 %v10938_v3  ;;  %v10930_v10 = vcombine.high %v2593_v59, %v2597_v13  ;;  %v6284_v18 = vpop.f32.mrf.mxu1  ;;  %v18433_v3 = vld [vmem:[#allocation89_spill] sm:$0xff] }
 0x351   : > { %v2725_v50 = vld [vmem:[#allocation7 + $0x7b0] sm:$0xff]  ;;  %7303 = vmatpush1.bf16.msra.mxu1 %v10945_v11 }
 0x352   : > { %v18428_v38 = vld [vmem:[#allocation163_spill] sm:$0xff]  ;;  %7304 = vmatprep.subr.bf16.mxu1 %v11066_v37  ;;  %v11058_v62 = vcombine.high %v2721_v43, %v2725_v50  ;;  %v18431_v40 = vld [vmem:[#allocation164_spill] sm:$0xff]  ;;  %v6093_v37 = vpop.f32.mrf.mxu0 }
 0x353   : > { %v6088_v46 = vadd.f32 %v6087_v42, %v18428_v38  ;;  %v18429_v6 = vld [vmem:[#allocation87_spill] sm:$0xff]  ;;  %v6092_v49 = vadd.f32 %v6091_v60, %v18431_v40  ;;  %v18434_v19 = vld [vmem:[#allocation124_spill] sm:$0xff]  ;;  %7112 = vmatpush2.bf16.msra.mxu0 %v10937_v20  ;;  %v10929_v38 = vcombine.low %v2593_v59, %v2597_v13  ;;  %v6286_v40 = vpop.f32.mrf.mxu1  ;;  %v18438_v20 = vld [vmem:[#allocation166_spill] sm:$0xff] }
 0x354   : > { %6782 = vmatmul.mubr.bf16.gmra.mxu0 %v18429_v6  ;;  %v2585_v51 = vld [vmem:[#allocation7 + $0x350] sm:$0xff]  ;;  %v11057_v6 = vcombine.low %v2721_v43, %v2725_v50  ;;  %v6095_v57 = vpop.f32.mrf.mxu0  ;;  %7113 = vmatprep.subr.bf16.mxu0 %v10930_v10 }
 0x355   : > { %v2589_v47 = vld [vmem:[#allocation7 + $0x370] sm:$0xff]  ;;  %v15025_v32 = vadd.f32 %v6280_v17, %v6088_v46  ;;  %6791 = vmatprep.mubr.bf16.mxu0 %v18433_v3  ;;  %v15033_v17 = vadd.f32 %v6284_v18, %v6092_v49  ;;  %v18436_v46 = vld [vmem:[#allocation165_spill] sm:$0xff]  ;;  %7305 = vmatpush2.bf16.msra.mxu1 %v11065_v58  ;;  %v6096_v59 = vadd.f32 %v6095_v57, %v18438_v20  ;;  %v6288_v50 = vpop.f32.mrf.mxu1 }
 0x356   : > { %v18432_v42 = vld [vmem:[#allocation123_spill] sm:$0xff]  ;;  %v6094_v60 = vadd.f32 %v6093_v37, %v18436_v46  ;;  %v10922_v29 = vcombine.high %v2585_v51, %v2589_v47  ;;  %7306 = vmatprep.subr.bf16.mxu1 %v11058_v62  ;;  %v6097_v49 = vpop.f32.mrf.mxu0  ;;  %v10921_v18 = vcombine.low %v2585_v51, %v2589_v47  ;;  %v18443_v51 = vld [vmem:[#allocation168_spill] sm:$0xff] }
 0x357   : > { %18430 = vst [vmem:[#allocation163_spill] sm:$0xff] %v15025_v32  ;;  %6975 = vmatmul.mubr.bf16.gmra.mxu1 %v18432_v42  ;;  %v2713_v11 = vld [vmem:[#allocation7 + $0x750] sm:$0xff]  ;;  %18435 = vst [vmem:[#allocation164_spill] sm:$0xff] %v15033_v17  ;;  %7114 = vmatpush2.bf16.msra.mxu0 %v10929_v38  ;;  %v15039_v37 = vadd.f32 %v6288_v50, %v6096_v59  ;;  %v6290_v55 = vpop.f32.mrf.mxu1 }
 0x358   : > { %v2717_v39 = vld [vmem:[#allocation7 + $0x770] sm:$0xff]  ;;  %6984 = vmatprep.mubr.bf16.mxu1 %v18434_v19  ;;  %v15036_v19 = vadd.f32 %v6286_v40, %v6094_v60  ;;  %7115 = vmatprep.subr.bf16.mxu0 %v10922_v29  ;;  %v6101_v62 = vpop.f32.mrf.mxu0  ;;  %v18441_v60 = vld [vmem:[#allocation126_spill] sm:$0xff] }
 0x359   : > { %v11050_v3 = vcombine.high %v2713_v11, %v2717_v39  ;;  %v2577_v42 = vld [vmem:[#allocation7 + $0x310] sm:$0xff]  ;;  %18439 = vst [vmem:[#allocation166_spill] sm:$0xff] %v15039_v37  ;;  %7307 = vmatpush2.bf16.msra.mxu1 %v11057_v6  ;;  %v11049_v10 = vcombine.low %v2713_v11, %v2717_v39  ;;  %v6102_v59 = vadd.f32 %v6101_v62, %v18443_v51  ;;  %v6294_v50 = vpop.f32.mrf.mxu1  ;;  %v18446_v39 = vld [vmem:[#allocation129_spill] sm:$0xff] }
 0x35a   : > { %18437 = vst [vmem:[#allocation165_spill] sm:$0xff] %v15036_v19  ;;  %v2581_v13 = vld [vmem:[#allocation7 + $0x330] sm:$0xff] }
 0x35b   : > { %v2705_v43 = vld [vmem:[#allocation7 + $0x710] sm:$0xff]  ;;  %7308 = vmatprep.subr.bf16.mxu1 %v11050_v3  ;;  %v10914_v57 = vcombine.high %v2577_v42, %v2581_v13  ;;  %v6103_v3 = vpop.f32.mrf.mxu0  ;;  %7116 = vmatpush2.bf16.msra.mxu0 %v10921_v18  ;;  %v6296_v51 = vpop.f32.mrf.mxu1  ;;  %v18450_v18 = vld [vmem:[#allocation170_spill] sm:$0xff] }
 0x35c   : > { %v2709_v54 = vld [vmem:[#allocation7 + $0x730] sm:$0xff]  ;;  %6792 = vmatmul.mubr.bf16.gmra.mxu0 %v18441_v60 }
 0x35d   : > { %v18440_v58 = vld [vmem:[#allocation167_spill] sm:$0xff]  ;;  %v11042_v40 = vcombine.high %v2705_v43, %v2709_v54  ;;  %v18445_v29 = vld [vmem:[#allocation128_spill] sm:$0xff]  ;;  %v11041_v60 = vcombine.low %v2705_v43, %v2709_v54  ;;  %7309 = vmatpush2.bf16.msra.mxu1 %v11049_v10  ;;  %v6105_v37 = vpop.f32.mrf.mxu0  ;;  %7117 = vmatprep.subr.bf16.mxu0 %v10914_v57  ;;  %v6298_v54 = vpop.f32.mrf.mxu1 }
 0x35e   : > { %v6098_v46 = vadd.f32 %v6097_v49, %v18440_v58  ;;  %v2569_v20 = vld [vmem:[#allocation7 + $0x2d0] sm:$0xff]  ;;  %6801 = vmatprep.mubr.bf16.mxu0 %v18445_v29  ;;  %v10913_v58 = vcombine.low %v2577_v42, %v2581_v13  ;;  %v6106_v42 = vadd.f32 %v6105_v37, %v18450_v18 }
 0x35f   : > { %v2573_v32 = vld [vmem:[#allocation7 + $0x2f0] sm:$0xff]  ;;  %7310 = vmatprep.subr.bf16.mxu1 %v11042_v40  ;;  %v6300_v19 = vpop.f32.mrf.mxu1 }
 0x360   : > { %v15045_v47 = vadd.f32 %v6290_v55, %v6098_v46  ;;  %v18444_v49 = vld [vmem:[#allocation127_spill] sm:$0xff]  ;;  %v15053_v55 = vadd.f32 %v6294_v50, %v6102_v59  ;;  %v18448_v46 = vld [vmem:[#allocation169_spill] sm:$0xff]  ;;  %v10906_v17 = vcombine.high %v2569_v20, %v2573_v32  ;;  %v6107_v59 = vpop.f32.mrf.mxu0  ;;  %7118 = vmatpush2.bf16.msra.mxu0 %v10913_v58  ;;  %v10905_v50 = vcombine.low %v2569_v20, %v2573_v32  ;;  %v18455_v20 = vld [vmem:[#allocation172_spill] sm:$0xff] }
 0x361   : > { %6985 = vmatmul.mubr.bf16.gmra.mxu1 %v18444_v49  ;;  %v2697_v6 = vld [vmem:[#allocation7 + $0x6d0] sm:$0xff]  ;;  %v6104_v62 = vadd.f32 %v6103_v3, %v18448_v46  ;;  %v15059_v3 = vadd.f32 %v6298_v54, %v6106_v42  ;;  %v6304_v54 = vpop.f32.mrf.mxu1 }
 0x362   : > { %18442 = vst [vmem:[#allocation167_spill] sm:$0xff] %v15045_v47  ;;  %v2701_v11 = vld [vmem:[#allocation7 + $0x6f0] sm:$0xff]  ;;  %6994 = vmatprep.mubr.bf16.mxu1 %v18446_v39  ;;  %18447 = vst [vmem:[#allocation168_spill] sm:$0xff] %v15053_v55  ;;  %7311 = vmatpush2.bf16.msra.mxu1 %v11041_v60  ;;  %v6111_v40 = vpop.f32.mrf.mxu0 }
 0x363   : > { %v11034_v29 = vcombine.high %v2697_v6, %v2701_v11  ;;  %v2561_v49 = vld [vmem:[#allocation7 + $0x290] sm:$0xff]  ;;  %v15056_v39 = vadd.f32 %v6296_v51, %v6104_v62  ;;  %18451 = vst [vmem:[#allocation170_spill] sm:$0xff] %v15059_v3  ;;  %7119 = vmatprep.subr.bf16.mxu0 %v10906_v17  ;;  %v11033_v57 = vcombine.low %v2697_v6, %v2701_v11  ;;  %v18457_v17 = vld [vmem:[#allocation98_spill] sm:$0xff] }
 0x364   : > { %v2565_v13 = vld [vmem:[#allocation7 + $0x2b0] sm:$0xff]  ;;  %v6112_v42 = vadd.f32 %v6111_v40, %v18455_v20  ;;  %7120 = vmatpush2.bf16.msra.mxu0 %v10905_v50  ;;  %v6306_v40 = vpop.f32.mrf.mxu1 }
 0x365   : > { %18449 = vst [vmem:[#allocation169_spill] sm:$0xff] %v15056_v39  ;;  %v2689_v43 = vld [vmem:[#allocation7 + $0x690] sm:$0xff]  ;;  %7312 = vmatprep.subr.bf16.mxu1 %v11034_v29  ;;  %v10898_v37 = vcombine.high %v2561_v49, %v2565_v13  ;;  %v6113_v29 = vpop.f32.mrf.mxu0 }
 0x366   : > { %v2693_v38 = vld [vmem:[#allocation7 + $0x6b0] sm:$0xff]  ;;  %7313 = vmatpush2.bf16.msra.mxu1 %v11033_v57 }
 0x367   : > { %v18452_v10 = vld [vmem:[#allocation171_spill] sm:$0xff]  ;;  %v11026_v51 = vcombine.high %v2689_v43, %v2693_v38  ;;  %v6115_v55 = vpop.f32.mrf.mxu0  ;;  %7121 = vmatprep.subr.bf16.mxu0 %v10898_v37 }
 0x368   : > { %v6108_v46 = vadd.f32 %v6107_v59, %v18452_v10  ;;  %v18453_v62 = vld [vmem:[#allocation131_spill] sm:$0xff]  ;;  %v18456_v59 = vld [vmem:[#allocation132_spill] sm:$0xff]  ;;  %v10897_v10 = vcombine.low %v2561_v49, %v2565_v13  ;;  %v6116_v49 = vadd.f32 %v6115_v55, %v14738_v7 }
 0x369   : > { %6802 = vmatmul.mubr.bf16.gmra.mxu0 %v18453_v62  ;;  %v2553_v18 = vld [vmem:[#allocation7 + $0x250] sm:$0xff]  ;;  %6995 = vmatmul.mubr.bf16.gmra.mxu1 %v18456_v59  ;;  %v11025_v62 = vcombine.low %v2689_v43, %v2693_v38  ;;  %v6308_v38 = vpop.f32.mrf.mxu1 }
 0x36a   : > { %v2557_v47 = vld [vmem:[#allocation7 + $0x270] sm:$0xff]  ;;  %v15065_v32 = vadd.f32 %v6300_v19, %v6108_v46  ;;  %6811 = vmatprep.mubr.bf16.mxu0 %v18457_v17  ;;  %v15073_v19 = vadd.f32 %v6304_v54, %v6112_v42  ;;  %v6114_v46 = vadd.f32 %v6113_v29, %v14736_v4  ;;  %7314 = vmatprep.subr.bf16.mxu1 %v11026_v51  ;;  %v6117_v42 = vpop.f32.mrf.mxu0 }
 0x36b   : > { %v2681_v60 = vld [vmem:[#allocation7 + $0x650] sm:$0xff]  ;;  %v10890_v20 = vcombine.high %v2553_v18, %v2557_v47  ;;  %7122 = vmatpush2.bf16.msra.mxu0 %v10897_v10  ;;  %v10889_v54 = vcombine.low %v2553_v18, %v2557_v47  ;;  %v15079_v4 = vadd.f32 %v6308_v38, %v6116_v49  ;;  %v6118_v57 = vadd.f32 %v6117_v42, %v14740_v26  ;;  %v6310_v29 = vpop.f32.mrf.mxu1  ;;  %v18465_v26 = vld [vmem:[#allocation105_spill] sm:$0xff] }
 0x36c   : > { %18454 = vst [vmem:[#allocation171_spill] sm:$0xff] %v15065_v32  ;;  %v2685_v6 = vld [vmem:[#allocation7 + $0x670] sm:$0xff]  ;;  %18459 = vst [vmem:[#allocation172_spill] sm:$0xff] %v15073_v19  ;;  %7315 = vmatpush2.bf16.msra.mxu1 %v11025_v62  ;;  %v6121_v51 = vpop.f32.mrf.mxu0  ;;  %v18466_v62 = vld [vmem:[#allocation110_spill] sm:$0xff] }
 0x36d   : > { %v18458_v11 = vld [vmem:[#allocation99_spill] sm:$0xff]  ;;  %v11018_v3 = vcombine.high %v2681_v60, %v2685_v6  ;;  %18461 = vst [vmem:[#allocation192_spill] sm:$0xff] %v15079_v4  ;;  %7123 = vmatprep.subr.bf16.mxu0 %v10890_v20  ;;  %v11017_v37 = vcombine.low %v2681_v60, %v2685_v6  ;;  %v15085_v58 = vadd.f32 %v6310_v29, %v6118_v57  ;;  %v6314_v18 = vpop.f32.mrf.mxu1  ;;  %v18464_v10 = vld [vmem:[#allocation104_spill] sm:$0xff] }
 0x36e   : > { %7004 = vmatprep.mubr.bf16.mxu1 %v18458_v11  ;;  %v2545_v17 = vld [vmem:[#allocation7 + $0x210] sm:$0xff]  ;;  %v15076_v11 = vadd.f32 %v6306_v40, %v6114_v46  ;;  %v18462_v46 = vld [vmem:[#allocation137_spill] sm:$0xff]  ;;  %v6122_v47 = vadd.f32 %v6121_v51, %v14745_v0  ;;  %v6123_v60 = vpop.f32.mrf.mxu0  ;;  %v11130_v0 = vcombine.high %v14930_v16, %v14932_v63  ;;  %v18477_v40 = vld [vmem:[#allocation114_spill] sm:$0xff] }
 0x36f   : > { %v2549_v13 = vld [vmem:[#allocation7 + $0x230] sm:$0xff]  ;;  %7316 = vmatprep.subr.bf16.mxu1 %v11018_v3  ;;  %18463 = vst [vmem:[#allocation193_spill] sm:$0xff] %v15085_v58  ;;  %7124 = vmatpush2.bf16.msra.mxu0 %v10889_v54  ;;  %v6124_v38 = vadd.f32 %v6123_v60, %v14750_v9  ;;  %v6316_v42 = vpop.f32.mrf.mxu1  ;;  %v11258_v54 = vcombine.high %v14947_v24, %v14949_v33  ;;  %v18473_v60 = vld [vmem:[#allocation109_spill] sm:$0xff] }
 0x370   : > { %18460 = vst [vmem:[#allocation191_spill] sm:$0xff] %v15076_v11  ;;  %v2673_v43 = vld [vmem:[#allocation7 + $0x610] sm:$0xff]  ;;  %v10882_v7 = vcombine.high %v2545_v17, %v2549_v13  ;;  %v10881_v6 = vcombine.low %v2545_v17, %v2549_v13  ;;  %v15093_v49 = vadd.f32 %v6314_v18, %v6122_v47  ;;  %7317 = vmatpush2.bf16.msra.mxu1 %v11017_v37  ;;  %v6125_v57 = vpop.f32.mrf.mxu0  ;;  %v18472_v18 = vld [vmem:[#allocation106_spill] sm:$0xff] }
 0x371   : > { %v2677_v50 = vld [vmem:[#allocation7 + $0x630] sm:$0xff]  ;;  %6812 = vmatmul.mubr.bf16.gmra.mxu0 %v18462_v46  ;;  %7005 = vmatmul.mubr.bf16.gmra.mxu1 %v18464_v10  ;;  %v15100_v17 = vadd.f32 %v6316_v42, %v6124_v38  ;;  %v6126_v13 = vadd.f32 %v6125_v57, %v14754_v21 }
 0x372   : > { %v11010_v55 = vcombine.high %v2673_v43, %v2677_v50  ;;  %6821 = vmatprep.mubr.bf16.mxu0 %v18465_v26  ;;  %7014 = vmatprep.mubr.bf16.mxu1 %v18466_v62  ;;  %v11009_v3 = vcombine.low %v2673_v43, %v2677_v50  ;;  %18467 = vst [vmem:[#allocation194_spill] sm:$0xff] %v15093_v49  ;;  %v6318_v43 = vpop.f32.mrf.mxu1  ;;  %v6127_v50 = vpop.f32.mrf.mxu0  ;;  %v18479_v19 = vld [vmem:[#allocation119_spill] sm:$0xff] }
 0x373   : > { %7125 = vmatprep.subr.bf16.mxu0 %v10882_v7  ;;  %18468 = vst [vmem:[#allocation195_spill] sm:$0xff] %v15100_v17  ;;  %v15103_v29 = vadd.f32 %v6318_v43, %v6126_v13  ;;  %v6128_v9 = vadd.f32 %v6127_v50, %v14756_v22  ;;  %v18470_v7 = vld [vmem:[#allocation107_spill] sm:$0xff]  ;;  %v18474_v22 = vld [vmem:[#allocation108_spill] sm:$0xff] }
 0x374   : > { %7318 = vmatprep.subr.bf16.mxu1 %v11010_v55  ;;  %7126 = vmatpush2.bf16.msra.mxu0 %v10881_v6  ;;  %v6320_v37 = vpop.f32.mrf.mxu1  ;;  %v6357_v51 = vpop.f32.mrf.mxu0  ;;  %v18476_v55 = vld [vmem:[#allocation115_spill] sm:$0xff] }
 0x375   : > { %18469 = vst [vmem:[#allocation196_spill] sm:$0xff] %v15103_v29  ;;  %7319 = vmatpush2.bf16.msra.mxu1 %v11009_v3  ;;  %7481 = vmatprep.subr.bf16.mxu0 %v11130_v0  ;;  %v15109_v47 = vadd.f32 %v6320_v37, %v6128_v9 }
 0x376   : > { %7674 = vmatprep.subr.bf16.mxu1 %v11258_v54  ;;  %v6550_v21 = vpop.f32.mrf.mxu1  ;;  %v6359_v3 = vpop.f32.mrf.mxu0 }
 0x377   : > { %18471 = vst [vmem:[#allocation197_spill] sm:$0xff] %v15109_v47  ;;  %v15113_v6 = vadd.f32 %v6550_v21, %v6357_v51  ;;  %v18475_v51 = vld [vmem:[#allocation32_spill] sm:$0xff] }
 0x378   : > { %v6552_v42 = vpop.f32.mrf.mxu1  ;;  %v6361_v57 = vpop.f32.mrf.mxu0 }
 0x379   : > { %6822 = vmatmul.mubr.bf16.gmra.mxu0 %v18470_v7  ;;  %7015 = vmatmul.mubr.bf16.gmra.mxu1 %v18472_v18  ;;  %v15118_v0 = vadd.f32 %v6552_v42, %v6359_v3  ;;  %v18478_v3 = vld [vmem:[#allocation116_spill] sm:$0xff] }
 0x37a   : > { %6831 = vmatprep.mubr.bf16.mxu0 %v18473_v60  ;;  %7024 = vmatprep.mubr.bf16.mxu1 %v18474_v22  ;;  %v6554_v54 = vpop.f32.mrf.mxu1  ;;  %v6363_v43 = vpop.f32.mrf.mxu0 }
 0x37b   : > { %v15120_v13 = vadd.f32 %v6554_v54, %v6361_v57 }
 0x37c   : > { %v6556_v50 = vpop.f32.mrf.mxu1  ;;  %v6367_v37 = vpop.f32.mrf.mxu0 }
 0x37d   : > { %v15122_v9 = vadd.f32 %v6556_v50, %v6363_v43 }
 0x37e   : > { %v6560_v21 = vpop.f32.mrf.mxu1  ;;  %v6369_v42 = vpop.f32.mrf.mxu0 }
 0x37f   : > { %v15127_v38 = vadd.f32 %v6560_v21, %v6367_v37  ;;  %v18480_v37 = vld [vmem:[#allocation120_spill] sm:$0xff]  ;;  %v18481_v21 = vld [vmem:[#allocation66_spill] sm:$0xff] }
 0x380   : > { %v6562_v20 = vpop.f32.mrf.mxu1  ;;  %v6371_v54 = vpop.f32.mrf.mxu0 }
 0x381   : > { %6832 = vmatmul.mubr.bf16.gmra.mxu0 %v18475_v51  ;;  %7025 = vmatmul.mubr.bf16.gmra.mxu1 %v18476_v55  ;;  %v15130_v57 = vadd.f32 %v6562_v20, %v6369_v42  ;;  %v18482_v20 = vld [vmem:[#allocation83_spill] sm:$0xff] }
 0x382   : > { %6841 = vmatprep.mubr.bf16.mxu0 %v18477_v40  ;;  %7034 = vmatprep.mubr.bf16.mxu1 %v18478_v3  ;;  %v6564_v49 = vpop.f32.mrf.mxu1  ;;  %v6373_v50 = vpop.f32.mrf.mxu0 }
 0x383   : > { %v15132_v43 = vadd.f32 %v6564_v49, %v6371_v54 }
 0x384   : > { %v6566_v29 = vpop.f32.mrf.mxu1  ;;  %v6377_v47 = vpop.f32.mrf.mxu0 }
 0x385   : > { %v15134_v17 = vadd.f32 %v6566_v29, %v6373_v50 }
 0x386   : > { %v6570_v4 = vpop.f32.mrf.mxu1  ;;  %v6379_v42 = vpop.f32.mrf.mxu0 }
 0x387   : > { %v15139_v11 = vadd.f32 %v6570_v4, %v6377_v47  ;;  %v18484_v4 = vld [vmem:[#allocation138_spill] sm:$0xff]  ;;  %v18485_v47 = vld [vmem:[#allocation125_spill] sm:$0xff] }
 0x388   : > { %v6572_v58 = vpop.f32.mrf.mxu1  ;;  %v6381_v54 = vpop.f32.mrf.mxu0 }
 0x389   : > { %6842 = vmatmul.mubr.bf16.gmra.mxu0 %v18479_v19  ;;  %7035 = vmatmul.mubr.bf16.gmra.mxu1 %v18480_v37  ;;  %v15142_v49 = vadd.f32 %v6572_v58, %v6379_v42  ;;  %v18483_v37 = vld [vmem:[#allocation121_spill] sm:$0xff]  ;;  %v18486_v58 = vld [vmem:[#allocation139_spill] sm:$0xff] }
 0x38a   : > { %6851 = vmatprep.mubr.bf16.mxu0 %v18481_v21  ;;  %7044 = vmatprep.mubr.bf16.mxu1 %v18482_v20  ;;  %v6574_v39 = vpop.f32.mrf.mxu1  ;;  %v6383_v50 = vpop.f32.mrf.mxu0 }
 0x38b   : > { %v15144_v29 = vadd.f32 %v6574_v39, %v6381_v54 }
 0x38c   : > { %v6576_v32 = vpop.f32.mrf.mxu1  ;;  %v6387_v3 = vpop.f32.mrf.mxu0 }
 0x38d   : > { %v15146_v19 = vadd.f32 %v6576_v32, %v6383_v50 }
 0x38e   : > { %v6580_v21 = vpop.f32.mrf.mxu1  ;;  %v6389_v42 = vpop.f32.mrf.mxu0 }
 0x38f   : > { %v15151_v20 = vadd.f32 %v6580_v21, %v6387_v3  ;;  %v18488_v3 = vld [vmem:[#allocation141_spill] sm:$0xff]  ;;  %v18489_v21 = vld [vmem:[#allocation130_spill] sm:$0xff] }
 0x390   : > { %v6582_v40 = vpop.f32.mrf.mxu1  ;;  %v6391_v54 = vpop.f32.mrf.mxu0 }
 0x391   : > { %6852 = vmatmul.mubr.bf16.gmra.mxu0 %v18483_v37  ;;  %7045 = vmatmul.mubr.bf16.gmra.mxu1 %v18484_v4  ;;  %v15154_v39 = vadd.f32 %v6582_v40, %v6389_v42  ;;  %v18487_v4 = vld [vmem:[#allocation140_spill] sm:$0xff]  ;;  %v18490_v40 = vld [vmem:[#allocation142_spill] sm:$0xff] }
 0x392   : > { %6861 = vmatprep.mubr.bf16.mxu0 %v18485_v47  ;;  %7054 = vmatprep.mubr.bf16.mxu1 %v18486_v58  ;;  %v6584_v55 = vpop.f32.mrf.mxu1  ;;  %v6393_v50 = vpop.f32.mrf.mxu0 }
 0x393   : > { %v15156_v32 = vadd.f32 %v6584_v55, %v6391_v54 }
 0x394   : > { %v6586_v51 = vpop.f32.mrf.mxu1  ;;  %v6397_v22 = vpop.f32.mrf.mxu0 }
 0x395   : > { %v15158_v37 = vadd.f32 %v6586_v51, %v6393_v50 }
 0x396   : > { %v6590_v47 = vpop.f32.mrf.mxu1  ;;  %v6399_v42 = vpop.f32.mrf.mxu0 }
 0x397   : > { %v15163_v58 = vadd.f32 %v6590_v47, %v6397_v22  ;;  %v18495_v22 = vld [vmem:[#allocation133_spill] sm:$0xff]  ;;  %v18496_v47 = vld [vmem:[#allocation136_spill] sm:$0xff] }
 0x398   : > { %v6592_v60 = vpop.f32.mrf.mxu1  ;;  %v6401_v54 = vpop.f32.mrf.mxu0 }
 0x399   : > { %6862 = vmatmul.mubr.bf16.gmra.mxu0 %v18487_v4  ;;  %7055 = vmatmul.mubr.bf16.gmra.mxu1 %v18488_v3  ;;  %v15166_v55 = vadd.f32 %v6592_v60, %v6399_v42  ;;  %v18494_v3 = vld [vmem:[#allocation135_spill] sm:$0xff]  ;;  %v18498_v60 = vld [vmem:[#allocation134_spill] sm:$0xff] }
 0x39a   : > { %6871 = vmatprep.mubr.bf16.mxu0 %v18489_v21  ;;  %7064 = vmatprep.mubr.bf16.mxu1 %v18490_v40  ;;  %v6594_v18 = vpop.f32.mrf.mxu1  ;;  %v6403_v50 = vpop.f32.mrf.mxu0 }
 0x39b   : > { %18491 = vst [vmem:[#allocation198_spill] sm:$0xff] %v15166_v55  ;;  %v15168_v51 = vadd.f32 %v6594_v18, %v6401_v54 }
 0x39c   : > { %v6596_v7 = vpop.f32.mrf.mxu1  ;;  %v6407_v62 = vpop.f32.mrf.mxu0 }
 0x39d   : > { %18492 = vst [vmem:[#allocation199_spill] sm:$0xff] %v15168_v51  ;;  %v15170_v4 = vadd.f32 %v6596_v7, %v6403_v50  ;;  %v18530_v51 = vld [vmem:[#allocation47_spill] sm:$0xff] }
 0x39e   : > { %v6600_v21 = vpop.f32.mrf.mxu1  ;;  %v6409_v42 = vpop.f32.mrf.mxu0 }
 0x39f   : > { %18493 = vst [vmem:[#allocation200_spill] sm:$0xff] %v15170_v4  ;;  %v15175_v40 = vadd.f32 %v6600_v21, %v6407_v62  ;;  %v18503_v62 = vld [vmem:[#allocation144_spill] sm:$0xff]  ;;  %v18504_v21 = vld [vmem:[#allocation145_spill] sm:$0xff] }
 0x3a0   : > { %v6602_v26 = vpop.f32.mrf.mxu1  ;;  %v6411_v54 = vpop.f32.mrf.mxu0 }
 0x3a1   : > { %6872 = vmatmul.mubr.bf16.gmra.mxu0 %v18494_v3  ;;  %7065 = vmatmul.mubr.bf16.gmra.mxu1 %v18495_v22  ;;  %18497 = vst [vmem:[#allocation201_spill] sm:$0xff] %v15175_v40  ;;  %v15178_v18 = vadd.f32 %v6602_v26, %v6409_v42  ;;  %v18502_v22 = vld [vmem:[#allocation143_spill] sm:$0xff]  ;;  %v18506_v26 = vld [vmem:[#allocation146_spill] sm:$0xff] }
 0x3a2   : > { %6881 = vmatprep.mubr.bf16.mxu0 %v18496_v47  ;;  %7074 = vmatprep.mubr.bf16.mxu1 %v18498_v60  ;;  %v6604_v10 = vpop.f32.mrf.mxu1  ;;  %v6413_v50 = vpop.f32.mrf.mxu0  ;;  %v2909_v40 = vld [vmem:[#allocation7 + $0xd70] sm:$0xff] }
 0x3a3   : > { %18499 = vst [vmem:[#allocation202_spill] sm:$0xff] %v15178_v18  ;;  %v15180_v7 = vadd.f32 %v6604_v10, %v6411_v54 }
 0x3a4   : > { %v6606_v46 = vpop.f32.mrf.mxu1  ;;  %v6417_v59 = vpop.f32.mrf.mxu0 }
 0x3a5   : > { %18500 = vst [vmem:[#allocation203_spill] sm:$0xff] %v15180_v7  ;;  %v15182_v3 = vadd.f32 %v6606_v46, %v6413_v50 }
 0x3a6   : > { %v6610_v47 = vpop.f32.mrf.mxu1  ;;  %v6419_v42 = vpop.f32.mrf.mxu0 }
 0x3a7   : > { %18501 = vst [vmem:[#allocation204_spill] sm:$0xff] %v15182_v3  ;;  %v15187_v60 = vadd.f32 %v6610_v47, %v6417_v59  ;;  %v18511_v59 = vld [vmem:[#allocation148_spill] sm:$0xff] }
 0x3a8   : > { %v6612_v27 = vpop.f32.mrf.mxu1  ;;  %v6421_v54 = vpop.f32.mrf.mxu0  ;;  %v18512_v47 = vld [vmem:[#allocation28_spill] sm:$0xff] }
 0x3a9   : > { %6882 = vmatmul.mubr.bf16.gmra.mxu0 %v18502_v22  ;;  %7075 = vmatmul.mubr.bf16.gmra.mxu1 %v18503_v62  ;;  %18505 = vst [vmem:[#allocation205_spill] sm:$0xff] %v15187_v60  ;;  %v15190_v10 = vadd.f32 %v6612_v27, %v6419_v42  ;;  %v18510_v62 = vld [vmem:[#allocation147_spill] sm:$0xff]  ;;  %v18514_v27 = vld [vmem:[#allocation29_spill] sm:$0xff] }
 0x3aa   : > { %6891 = vmatprep.mubr.bf16.mxu0 %v18504_v21  ;;  %7084 = vmatprep.mubr.bf16.mxu1 %v18506_v26  ;;  %v6614_v8 = vpop.f32.mrf.mxu1  ;;  %v6423_v50 = vpop.f32.mrf.mxu0  ;;  %v2917_v60 = vld [vmem:[#allocation7 + $0xdb0] sm:$0xff] }
 0x3ab   : > { %18507 = vst [vmem:[#allocation206_spill] sm:$0xff] %v15190_v10  ;;  %v15192_v46 = vadd.f32 %v6614_v8, %v6421_v54 }
 0x3ac   : > { %v6616_v3 = vpop.f32.mrf.mxu1  ;;  %v6427_v7 = vpop.f32.mrf.mxu0 }
 0x3ad   : > { %18508 = vst [vmem:[#allocation207_spill] sm:$0xff] %v15192_v46  ;;  %v15194_v22 = vadd.f32 %v6616_v3, %v6423_v50  ;;  %v2785_v46 = vld [vmem:[#allocation7 + $0x990] sm:$0xff] }
 0x3ae   : > { %v6620_v21 = vpop.f32.mrf.mxu1  ;;  %v6429_v42 = vpop.f32.mrf.mxu0  ;;  %v2789_v3 = vld [vmem:[#allocation7 + $0x9b0] sm:$0xff] }
 0x3af   : > { %18509 = vst [vmem:[#allocation208_spill] sm:$0xff] %v15194_v22  ;;  %v15199_v26 = vadd.f32 %v6620_v21, %v6427_v7  ;;  %v2913_v22 = vld [vmem:[#allocation7 + $0xd90] sm:$0xff]  ;;  %v11122_v15 = vcombine.high %v2785_v46, %v2789_v3 }
 0x3b0   : > { %v6622_v10 = vpop.f32.mrf.mxu1  ;;  %v6431_v54 = vpop.f32.mrf.mxu0  ;;  %v18518_v21 = vld [vmem:[#allocation35_spill] sm:$0xff] }
 0x3b1   : > { %6892 = vmatmul.mubr.bf16.gmra.mxu0 %v18510_v62  ;;  %7085 = vmatmul.mubr.bf16.gmra.mxu1 %v18511_v59  ;;  %18513 = vst [vmem:[#allocation209_spill] sm:$0xff] %v15199_v26  ;;  %v15202_v8 = vadd.f32 %v6622_v10, %v6429_v42  ;;  %v2777_v26 = vld [vmem:[#allocation7 + $0x950] sm:$0xff] }
 0x3b2   : > { %7127 = vmatprep.mubr.bf16.mxu0 %v18512_v47  ;;  %7320 = vmatprep.mubr.bf16.mxu1 %v18514_v27  ;;  %v6624_v50 = vpop.f32.mrf.mxu1  ;;  %v6433_v18 = vpop.f32.mrf.mxu0  ;;  %v11250_v27 = vcombine.high %v2913_v22, %v2917_v60  ;;  %v2781_v10 = vld [vmem:[#allocation7 + $0x970] sm:$0xff] }
 0x3b3   : > { %18515 = vst [vmem:[#allocation210_spill] sm:$0xff] %v15202_v8  ;;  %v15204_v62 = vadd.f32 %v6624_v50, %v6431_v54  ;;  %v18519_v8 = vld [vmem:[#allocation37_spill] sm:$0xff]  ;;  %v18522_v50 = vld [vmem:[#allocation40_spill] sm:$0xff] }
 0x3b4   : > { %v6626_v59 = vpop.f32.mrf.mxu1  ;;  %v6437_v7 = vpop.f32.mrf.mxu0 }
 0x3b5   : > { %18516 = vst [vmem:[#allocation211_spill] sm:$0xff] %v15204_v62  ;;  %v15206_v47 = vadd.f32 %v6626_v59, %v6433_v18  ;;  %v18523_v18 = vcombine.low %v14930_v16, %v14932_v63  ;;  %v18524_v62 = vcombine.low %v14947_v24, %v14949_v33  ;;  %v2901_v16 = vld [vmem:[#allocation7 + $0xd30] sm:$0xff]  ;;  %v11113_v33 = vcombine.low %v2777_v26, %v2781_v10 }
 0x3b6   : > { %v6630_v42 = vpop.f32.mrf.mxu1  ;;  %v6439_v59 = vpop.f32.mrf.mxu0 }
 0x3b7   : > { %18517 = vst [vmem:[#allocation212_spill] sm:$0xff] %v15206_v47  ;;  %v15211_v54 = vadd.f32 %v6630_v42, %v6437_v7  ;;  %v11242_v42 = vcombine.high %v2905_v48, %v2909_v40 }
 0x3b8   : > { %v6632_v47 = vpop.f32.mrf.mxu1  ;;  %v6441_v7 = vpop.f32.mrf.mxu0 }
 0x3b9   : > { %7128 = vmatmul.mubr.bf16.vlgmr.msra.gmra.mxu0 %v18518_v21  ;;  %7321 = vmatmul.mubr.bf16.vlgmr.msra.gmra.mxu1 %v18519_v8  ;;  %18521 = vst [vmem:[#allocation213_spill] sm:$0xff] %v15211_v54  ;;  %v11121_v21 = vcombine.low %v2785_v46, %v2789_v3  ;;  %v11249_v8 = vcombine.low %v2913_v22, %v2917_v60  ;;  %v2897_v54 = vld [vmem:[#allocation7 + $0xd10] sm:$0xff]  ;;  %v15224_v46 = vld [vmem:[#allocation7 + $0x1f8] sm:$0xff] }
 0x3ba   : > { %7137 = vmatprep.mubr.bf16.mxu0 %v18520_v14  ;;  %7330 = vmatprep.mubr.bf16.mxu1 %v18522_v50  ;;  %v11114_v14 = vcombine.high %v2777_v26, %v2781_v10  ;;  %v15220_v4 = vadd.f32 %v6632_v47, %v6439_v59  ;;  %v2773_v50 = vld [vmem:[#allocation7 + $0x930] sm:$0xff]  ;;  %v6634_v63 = vpop.f32.mrf.mxu1  ;;  %v15226_v3 = vld [vmem:[#allocation7 + $0x5d8] sm:$0xff]  ;;  %v11241_v47 = vcombine.low %v2905_v48, %v2909_v40 }
 0x3bb   : > { %7482 = vmatpush1.bf16.msra.mxu0 %v18523_v18  ;;  %7675 = vmatpush1.bf16.msra.mxu1 %v18524_v62  ;;  %v15222_v18 = vld [vmem:[#allocation7 + $0x1d8] sm:$0xff]  ;;  %v15228_v24 = vadd.f32 %v6634_v63, %v6441_v7  ;;  %v11234_v26 = vcombine.high %v2897_v54, %v2901_v16  ;;  %v2765_v10 = vld [vmem:[#allocation7 + $0x8f0] sm:$0xff] }
 0x3bc   : > { %7483 = vmatprep.subr.bf16.mxu0 %v11122_v15  ;;  %18525 = vst [vmem:[#allocation214_spill] sm:$0xff] %v15220_v4  ;;  %7676 = vmatprep.subr.bf16.mxu1 %v11250_v27  ;;  %v6443_v15 = vpop.f32.mrf.mxu0  ;;  %v15232_v60 = vld [vmem:[#allocation7 + $0x5f8] sm:$0xff]  ;;  %v6636_v62 = vpop.f32.mrf.mxu1  ;;  %v11106_v27 = vcombine.high %v2769_v5, %v2773_v50  ;;  %v2893_v48 = vld [vmem:[#allocation7 + $0xcf0] sm:$0xff] }
 0x3bd   : > { %18526 = vst [vmem:[#allocation215_spill] sm:$0xff] %v15228_v24  ;;  %v15236_v4 = vadd.f32 %v6636_v62, %v6443_v15  ;;  %v18528_v63 = vld [vmem:[#allocation45_spill] sm:$0xff]  ;;  %v18529_v24 = vld [vmem:[#allocation46_spill] sm:$0xff]  ;;  %v11105_v62 = vcombine.low %v2769_v5, %v2773_v50 }
 0x3be   : > { %v6447_v7 = vpop.f32.mrf.mxu0  ;;  %v6640_v22 = vpop.f32.mrf.mxu1 }
 0x3bf   : > { %7484 = vmatpush1.bf16.msra.mxu0 %v11121_v21  ;;  %7677 = vmatpush1.bf16.msra.mxu1 %v11249_v8  ;;  %18527 = vst [vmem:[#allocation216_spill] sm:$0xff] %v15236_v4  ;;  %v2761_v21 = vld [vmem:[#allocation7 + $0x8d0] sm:$0xff]  ;;  %v15241_v40 = vadd.f32 %v6640_v22, %v6447_v7 }
 0x3c0   : > { %7485 = vmatprep.subr.bf16.mxu0 %v11114_v14  ;;  %7678 = vmatprep.subr.bf16.mxu1 %v11242_v42  ;;  %v2889_v14 = vld [vmem:[#allocation7 + $0xcd0] sm:$0xff]  ;;  %v6449_v15 = vpop.f32.mrf.mxu0  ;;  %v6642_v59 = vpop.f32.mrf.mxu1  ;;  %v11233_v42 = vcombine.low %v2897_v54, %v2901_v16  ;;  %v11097_v5 = vcombine.low %v2761_v21, %v2765_v10 }
 0x3c1   : > { %7138 = vmatmul.mubr.bf16.gmra.mxu0 %v18528_v63  ;;  %7331 = vmatmul.mubr.bf16.gmra.mxu1 %v18529_v24  ;;  %18531 = vst [vmem:[#allocation217_spill] sm:$0xff] %v15241_v40  ;;  %v18532_v8 = vld [vmem:[#allocation48_spill] sm:$0xff]  ;;  %v11098_v63 = vcombine.high %v2761_v21, %v2765_v10  ;;  %v15244_v4 = vadd.f32 %v6642_v59, %v6449_v15 }
 0x3c2   : > { %7147 = vmatprep.mubr.bf16.mxu0 %v18530_v51  ;;  %7340 = vmatprep.mubr.bf16.mxu1 %v18532_v8  ;;  %v6451_v55 = vpop.f32.mrf.mxu0  ;;  %v11226_v24 = vcombine.high %v2889_v14, %v2893_v48  ;;  %v2753_v51 = vld [vmem:[#allocation7 + $0x890] sm:$0xff]  ;;  %v6644_v34 = vpop.f32.mrf.mxu1  ;;  %v11225_v54 = vcombine.low %v2889_v14, %v2893_v48 }
 0x3c3   : > { %7486 = vmatpush1.bf16.msra.mxu0 %v11113_v33  ;;  %7679 = vmatpush1.bf16.msra.mxu1 %v11241_v47  ;;  %18533 = vst [vmem:[#allocation218_spill] sm:$0xff] %v15244_v4  ;;  %v2881_v22 = vld [vmem:[#allocation7 + $0xc90] sm:$0xff]  ;;  %v15246_v40 = vadd.f32 %v6644_v34, %v6451_v55  ;;  %v11090_v16 = vcombine.high %v2753_v51, %v2757_v56 }
 0x3c4   : > { %7487 = vmatprep.subr.bf16.mxu0 %v11106_v27  ;;  %7680 = vmatprep.subr.bf16.mxu1 %v11234_v26  ;;  %v2885_v7 = vld [vmem:[#allocation7 + $0xcb0] sm:$0xff]  ;;  %v6453_v8 = vpop.f32.mrf.mxu0  ;;  %v6646_v50 = vpop.f32.mrf.mxu1  ;;  %v18536_v27 = vld [vmem:[#allocation50_spill] sm:$0xff]  ;;  %v11089_v48 = vcombine.low %v2753_v51, %v2757_v56 }
 0x3c5   : > { %18534 = vst [vmem:[#allocation219_spill] sm:$0xff] %v15246_v40  ;;  %v15248_v33 = vadd.f32 %v6646_v50, %v6453_v8  ;;  %v11218_v59 = vcombine.high %v2881_v22, %v2885_v7  ;;  %v2745_v26 = vld [vmem:[#allocation7 + $0x850] sm:$0xff] }
 0x3c6   : > { %v6457_v47 = vpop.f32.mrf.mxu0  ;;  %v2749_v15 = vld [vmem:[#allocation7 + $0x870] sm:$0xff]  ;;  %v6650_v4 = vpop.f32.mrf.mxu1 }
 0x3c7   : > { %7488 = vmatpush1.bf16.msra.mxu0 %v11105_v62  ;;  %7681 = vmatpush1.bf16.msra.mxu1 %v11233_v42  ;;  %18535 = vst [vmem:[#allocation220_spill] sm:$0xff] %v15248_v33  ;;  %v18537_v34 = vld [vmem:[#allocation51_spill] sm:$0xff]  ;;  %v18538_v55 = vld [vmem:[#allocation52_spill] sm:$0xff]  ;;  %v15253_v62 = vadd.f32 %v6650_v4, %v6457_v47  ;;  %v11082_v42 = vcombine.high %v2745_v26, %v2749_v15 }
 0x3c8   : > { %7489 = vmatprep.subr.bf16.mxu0 %v11098_v63  ;;  %7682 = vmatprep.subr.bf16.mxu1 %v11226_v24  ;;  %v2873_v21 = vld [vmem:[#allocation7 + $0xc50] sm:$0xff]  ;;  %v18540_v63 = vld [vmem:[#allocation53_spill] sm:$0xff]  ;;  %v6459_v14 = vpop.f32.mrf.mxu0  ;;  %v6652_v8 = vpop.f32.mrf.mxu1  ;;  %v11217_v24 = vcombine.low %v2881_v22, %v2885_v7  ;;  %v11081_v56 = vcombine.low %v2745_v26, %v2749_v15 }
 0x3c9   : > { %7148 = vmatmul.mubr.bf16.gmra.mxu0 %v18536_v27  ;;  %7341 = vmatmul.mubr.bf16.gmra.mxu1 %v18537_v34  ;;  %v2877_v10 = vld [vmem:[#allocation7 + $0xc70] sm:$0xff]  ;;  %18539 = vst [vmem:[#allocation221_spill] sm:$0xff] %v15253_v62  ;;  %v15256_v50 = vadd.f32 %v6652_v8, %v6459_v14 }
 0x3ca   : > { %7157 = vmatprep.mubr.bf16.mxu0 %v18538_v55  ;;  %7350 = vmatprep.mubr.bf16.mxu1 %v18540_v63  ;;  %v6461_v27 = vpop.f32.mrf.mxu0  ;;  %v11210_v34 = vcombine.high %v2873_v21, %v2877_v10  ;;  %v2737_v55 = vld [vmem:[#allocation7 + $0x810] sm:$0xff]  ;;  %v6654_v40 = vpop.f32.mrf.mxu1  ;;  %v11209_v22 = vcombine.low %v2873_v21, %v2877_v10  ;;  %v18548_v21 = vld [vmem:[#allocation57_spill] sm:$0xff] }
 0x3cb   : > { %7490 = vmatpush1.bf16.msra.mxu0 %v11097_v5  ;;  %7683 = vmatpush1.bf16.msra.mxu1 %v11225_v54  ;;  %18541 = vst [vmem:[#allocation222_spill] sm:$0xff] %v15256_v50  ;;  %v2741_v33 = vld [vmem:[#allocation7 + $0x830] sm:$0xff]  ;;  %v15258_v62 = vadd.f32 %v6654_v40, %v6461_v27 }
 0x3cc   : > { %7491 = vmatprep.subr.bf16.mxu0 %v11090_v16  ;;  %7684 = vmatprep.subr.bf16.mxu1 %v11218_v59  ;;  %v2865_v4 = vld [vmem:[#allocation7 + $0xc10] sm:$0xff]  ;;  %v6463_v63 = vpop.f32.mrf.mxu0  ;;  %v6656_v51 = vpop.f32.mrf.mxu1  ;;  %v11074_v7 = vcombine.high %v2737_v55, %v2741_v33  ;;  %v18544_v16 = vld [vmem:[#allocation54_spill] sm:$0xff] }
 0x3cd   : > { %v2869_v47 = vld [vmem:[#allocation7 + $0xc30] sm:$0xff]  ;;  %18542 = vst [vmem:[#allocation223_spill] sm:$0xff] %v15258_v62  ;;  %v15260_v5 = vadd.f32 %v6656_v51, %v6463_v63  ;;  %v11073_v63 = vcombine.low %v2737_v55, %v2741_v33 }
 0x3ce   : > { %v6467_v54 = vpop.f32.mrf.mxu0  ;;  %v11202_v59 = vcombine.high %v2865_v4, %v2869_v47  ;;  %v2857_v14 = vld [vmem:[#allocation7 + $0xbd0] sm:$0xff]  ;;  %v6660_v50 = vpop.f32.mrf.mxu1 }
 0x3cf   : > { %7492 = vmatpush1.bf16.msra.mxu0 %v11089_v48  ;;  %7685 = vmatpush1.bf16.msra.mxu1 %v11217_v24  ;;  %18543 = vst [vmem:[#allocation224_spill] sm:$0xff] %v15260_v5  ;;  %v2861_v8 = vld [vmem:[#allocation7 + $0xbf0] sm:$0xff]  ;;  %v15265_v48 = vadd.f32 %v6660_v50, %v6467_v54 }
 0x3d0   : > { %7493 = vmatprep.subr.bf16.mxu0 %v11082_v42  ;;  %7686 = vmatprep.subr.bf16.mxu1 %v11210_v34  ;;  %v18545_v40 = vld [vmem:[#allocation55_spill] sm:$0xff]  ;;  %v18546_v27 = vld [vmem:[#allocation56_spill] sm:$0xff]  ;;  %v6469_v10 = vpop.f32.mrf.mxu0  ;;  %v6662_v24 = vpop.f32.mrf.mxu1  ;;  %v11201_v34 = vcombine.low %v2865_v4, %v2869_v47  ;;  %v11194_v42 = vcombine.high %v2857_v14, %v2861_v8  ;;  %v11193_v33 = vcombine.low %v2857_v14, %v2861_v8 }
 0x3d1   : > { %7158 = vmatmul.mubr.bf16.gmra.mxu0 %v18544_v16  ;;  %7351 = vmatmul.mubr.bf16.gmra.mxu1 %v18545_v40  ;;  %v2985_v26 = vld [vmem:[#allocation7 + $0xfd0] sm:$0xff]  ;;  %18547 = vst [vmem:[#allocation225_spill] sm:$0xff] %v15265_v48  ;;  %v15268_v51 = vadd.f32 %v6662_v24, %v6469_v10 }
 0x3d2   : > { %7167 = vmatprep.mubr.bf16.mxu0 %v18546_v27  ;;  %v2989_v15 = vld [vmem:[#allocation7 + $0xff0] sm:$0xff]  ;;  %7360 = vmatprep.mubr.bf16.mxu1 %v18548_v21  ;;  %v6471_v16 = vpop.f32.mrf.mxu0  ;;  %v6664_v62 = vpop.f32.mrf.mxu1 }
 0x3d3   : > { %7494 = vmatpush1.bf16.msra.mxu0 %v11081_v56  ;;  %7687 = vmatpush1.bf16.msra.mxu1 %v11209_v22  ;;  %18549 = vst [vmem:[#allocation226_spill] sm:$0xff] %v15268_v51  ;;  %v11322_v40 = vcombine.high %v2985_v26, %v2989_v15  ;;  %v2849_v27 = vld [vmem:[#allocation7 + $0xb90] sm:$0xff]  ;;  %v15270_v48 = vadd.f32 %v6664_v62, %v6471_v16  ;;  %v18553_v62 = vld [vmem:[#allocation61_spill] sm:$0xff] }
 0x3d4   : > { %7495 = vmatprep.subr.bf16.mxu0 %v11074_v7  ;;  %7688 = vmatprep.subr.bf16.mxu1 %v11202_v59  ;;  %v2853_v5 = vld [vmem:[#allocation7 + $0xbb0] sm:$0xff]  ;;  %v6473_v21 = vpop.f32.mrf.mxu0  ;;  %v6666_v55 = vpop.f32.mrf.mxu1  ;;  %v11321_v4 = vcombine.low %v2985_v26, %v2989_v15  ;;  %v18556_v26 = vld [vmem:[#allocation21_spill] sm:$0xff] }
 0x3d5   : > { %v2977_v50 = vld [vmem:[#allocation7 + $0xf90] sm:$0xff]  ;;  %18550 = vst [vmem:[#allocation227_spill] sm:$0xff] %v15270_v48  ;;  %v11186_v47 = vcombine.high %v2849_v27, %v2853_v5  ;;  %v15272_v56 = vadd.f32 %v6666_v55, %v6473_v21  ;;  %v11185_v21 = vcombine.low %v2849_v27, %v2853_v5 }
 0x3d6   : > { %v2981_v54 = vld [vmem:[#allocation7 + $0xfb0] sm:$0xff]  ;;  %v6477_v22 = vpop.f32.mrf.mxu0  ;;  %v6670_v51 = vpop.f32.mrf.mxu1 }
 0x3d7   : > { %7496 = vmatpush1.bf16.msra.mxu0 %v11073_v63  ;;  %7689 = vmatpush1.bf16.msra.mxu1 %v11201_v34  ;;  %18551 = vst [vmem:[#allocation228_spill] sm:$0xff] %v15272_v56  ;;  %v18552_v7 = vld [vmem:[#allocation60_spill] sm:$0xff]  ;;  %v11314_v59 = vcombine.high %v2977_v50, %v2981_v54  ;;  %v15277_v63 = vadd.f32 %v6670_v51, %v6477_v22 }
 0x3d8   : > { %7497 = vmatprep.subr.bf16.mxu0 %v11194_v42  ;;  %7690 = vmatprep.subr.bf16.mxu1 %v11322_v40  ;;  %v2841_v10 = vld [vmem:[#allocation7 + $0xb50] sm:$0xff]  ;;  %v6479_v15 = vpop.f32.mrf.mxu0  ;;  %v6672_v34 = vpop.f32.mrf.mxu1  ;;  %v11313_v40 = vcombine.low %v2977_v50, %v2981_v54 }
 0x3d9   : > { %7168 = vmatmul.mubr.bf16.gmra.mxu0 %v18552_v7  ;;  %v2845_v24 = vld [vmem:[#allocation7 + $0xb70] sm:$0xff]  ;;  %7361 = vmatmul.mubr.bf16.gmra.mxu1 %v18553_v62  ;;  %18555 = vst [vmem:[#allocation229_spill] sm:$0xff] %v15277_v63  ;;  %v15280_v55 = vadd.f32 %v6672_v34, %v6479_v15 }
 0x3da   : > { %v18554_v16 = vld [vmem:[#allocation20_spill] sm:$0xff]  ;;  %7370 = vmatprep.mubr.bf16.mxu1 %v18556_v26  ;;  %v11178_v42 = vcombine.high %v2841_v10, %v2845_v24  ;;  %v6481_v7 = vpop.f32.mrf.mxu0  ;;  %v6674_v48 = vpop.f32.mrf.mxu1  ;;  %v11177_v5 = vcombine.low %v2841_v10, %v2845_v24 }
 0x3db   : > { %7177 = vmatprep.mubr.bf16.mxu0 %v18554_v16  ;;  %v2969_v14 = vld [vmem:[#allocation7 + $0xf50] sm:$0xff]  ;;  %7498 = vmatpush2.bf16.msra.mxu0 %v11193_v33  ;;  %18557 = vst [vmem:[#allocation230_spill] sm:$0xff] %v15280_v55  ;;  %v15282_v63 = vadd.f32 %v6674_v48, %v6481_v7  ;;  %v18562_v7 = vld [vmem:[#allocation26_spill] sm:$0xff] }
 0x3dc   : > { %v2973_v8 = vld [vmem:[#allocation7 + $0xf70] sm:$0xff]  ;;  %7691 = vmatpush2.bf16.msra.mxu1 %v11321_v4  ;;  %7499 = vmatprep.subr.bf16.mxu0 %v11186_v47  ;;  %v6483_v26 = vpop.f32.mrf.mxu0  ;;  %v6676_v27 = vpop.f32.mrf.mxu1 }
 0x3dd   : > { %7692 = vmatprep.subr.bf16.mxu1 %v11314_v59  ;;  %v11306_v62 = vcombine.high %v2969_v14, %v2973_v8  ;;  %v2833_v16 = vld [vmem:[#allocation7 + $0xb10] sm:$0xff]  ;;  %18558 = vst [vmem:[#allocation231_spill] sm:$0xff] %v15282_v63  ;;  %v11305_v50 = vcombine.low %v2969_v14, %v2973_v8  ;;  %v15284_v33 = vadd.f32 %v6676_v27, %v6483_v26 }
 0x3de   : > { %v2837_v56 = vld [vmem:[#allocation7 + $0xb30] sm:$0xff]  ;;  %v6487_v4 = vpop.f32.mrf.mxu0  ;;  %v6680_v55 = vpop.f32.mrf.mxu1 }
 0x3df   : > { %v2961_v51 = vld [vmem:[#allocation7 + $0xf10] sm:$0xff]  ;;  %7500 = vmatpush2.bf16.msra.mxu0 %v11185_v21  ;;  %v11170_v54 = vcombine.high %v2833_v16, %v2837_v56  ;;  %18559 = vst [vmem:[#allocation232_spill] sm:$0xff] %v15284_v33  ;;  %v15289_v21 = vadd.f32 %v6680_v55, %v6487_v4  ;;  %v11169_v26 = vcombine.low %v2833_v16, %v2837_v56 }
 0x3e0   : > { %v2965_v22 = vld [vmem:[#allocation7 + $0xf30] sm:$0xff]  ;;  %7693 = vmatpush2.bf16.msra.mxu1 %v11313_v40  ;;  %7501 = vmatprep.subr.bf16.mxu0 %v11178_v42  ;;  %v6489_v8 = vpop.f32.mrf.mxu0  ;;  %v6682_v40 = vpop.f32.mrf.mxu1 }
 0x3e1   : > { %v18560_v47 = vld [vmem:[#allocation67_spill] sm:$0xff]  ;;  %7694 = vmatprep.subr.bf16.mxu1 %v11306_v62  ;;  %v11298_v59 = vcombine.high %v2961_v51, %v2965_v22  ;;  %18563 = vst [vmem:[#allocation233_spill] sm:$0xff] %v15289_v21  ;;  %v18564_v14 = vld [vmem:[#allocation24_spill] sm:$0xff]  ;;  %v11297_v62 = vcombine.low %v2961_v51, %v2965_v22  ;;  %v15292_v27 = vadd.f32 %v6682_v40, %v6489_v8 }
 0x3e2   : > { %7178 = vmatmul.mubr.bf16.gmra.mxu0 %v18560_v47  ;;  %v2825_v15 = vld [vmem:[#allocation7 + $0xad0] sm:$0xff]  ;;  %v6491_v47 = vpop.f32.mrf.mxu0  ;;  %v6684_v63 = vpop.f32.mrf.mxu1 }
 0x3e3   : > { %v2829_v34 = vld [vmem:[#allocation7 + $0xaf0] sm:$0xff]  ;;  %7187 = vmatprep.mubr.bf16.mxu0 %v18562_v7  ;;  %7502 = vmatpush2.bf16.msra.mxu0 %v11177_v5  ;;  %18565 = vst [vmem:[#allocation234_spill] sm:$0xff] %v15292_v27  ;;  %v15294_v21 = vadd.f32 %v6684_v63, %v6491_v47  ;;  %v18569_v63 = vld [vmem:[#allocation70_spill] sm:$0xff] }
 0x3e4   : > { %v18561_v48 = vld [vmem:[#allocation23_spill] sm:$0xff]  ;;  %7695 = vmatpush2.bf16.msra.mxu1 %v11305_v50  ;;  %7503 = vmatprep.subr.bf16.mxu0 %v11170_v54  ;;  %v11162_v42 = vcombine.high %v2825_v15, %v2829_v34  ;;  %v11161_v56 = vcombine.low %v2825_v15, %v2829_v34  ;;  %v6686_v16 = vpop.f32.mrf.mxu1  ;;  %v18568_v54 = vld [vmem:[#allocation69_spill] sm:$0xff]  ;;  %v18570_v47 = vld [vmem:[#allocation30_spill] sm:$0xff] }
 0x3e5   : > { %7371 = vmatmul.mubr.bf16.gmra.mxu1 %v18561_v48  ;;  %v2953_v10 = vld [vmem:[#allocation7 + $0xed0] sm:$0xff]  ;;  %7696 = vmatprep.subr.bf16.mxu1 %v11298_v59  ;;  %18566 = vst [vmem:[#allocation235_spill] sm:$0xff] %v15294_v21 }
 0x3e6   : > { %v2957_v24 = vld [vmem:[#allocation7 + $0xef0] sm:$0xff]  ;;  %7380 = vmatprep.mubr.bf16.mxu1 %v18564_v14  ;;  %v6493_v14 = vpop.f32.mrf.mxu0  ;;  %v6690_v27 = vpop.f32.mrf.mxu1 }
 0x3e7   : > { %v11290_v48 = vcombine.high %v2953_v10, %v2957_v24  ;;  %v2817_v7 = vld [vmem:[#allocation7 + $0xa90] sm:$0xff]  ;;  %7504 = vmatpush2.bf16.msra.mxu0 %v11169_v26  ;;  %v11289_v51 = vcombine.low %v2953_v10, %v2957_v24  ;;  %v15296_v5 = vadd.f32 %v6686_v16, %v6493_v14  ;;  %v18572_v10 = vld [vmem:[#allocation33_spill] sm:$0xff] }
 0x3e8   : > { %v2821_v33 = vld [vmem:[#allocation7 + $0xab0] sm:$0xff]  ;;  %7697 = vmatpush2.bf16.msra.mxu1 %v11297_v62  ;;  %7505 = vmatprep.subr.bf16.mxu0 %v11162_v42  ;;  %v6497_v50 = vpop.f32.mrf.mxu0  ;;  %v6692_v62 = vpop.f32.mrf.mxu1 }
 0x3e9   : > { %v2945_v55 = vld [vmem:[#allocation7 + $0xe90] sm:$0xff]  ;;  %v11154_v22 = vcombine.high %v2817_v7, %v2821_v33  ;;  %18567 = vst [vmem:[#allocation236_spill] sm:$0xff] %v15296_v5  ;;  %7698 = vmatprep.subr.bf16.mxu1 %v11290_v48  ;;  %v15301_v26 = vadd.f32 %v6690_v27, %v6497_v50  ;;  %v11153_v14 = vcombine.low %v2817_v7, %v2821_v33 }
 0x3ea   : > { %v2949_v4 = vld [vmem:[#allocation7 + $0xeb0] sm:$0xff]  ;;  %7188 = vmatmul.mubr.bf16.gmra.mxu0 %v18568_v54  ;;  %v6499_v24 = vpop.f32.mrf.mxu0  ;;  %v6694_v21 = vpop.f32.mrf.mxu1 }
 0x3eb   : > { %v11282_v59 = vcombine.high %v2945_v55, %v2949_v4  ;;  %v2809_v8 = vld [vmem:[#allocation7 + $0xa50] sm:$0xff]  ;;  %7197 = vmatprep.mubr.bf16.mxu0 %v18570_v47  ;;  %18571 = vst [vmem:[#allocation237_spill] sm:$0xff] %v15301_v26  ;;  %7506 = vmatpush2.bf16.msra.mxu0 %v11161_v56  ;;  %v11281_v48 = vcombine.low %v2945_v55, %v2949_v4 }
 0x3ec   : > { %v2813_v40 = vld [vmem:[#allocation7 + $0xa70] sm:$0xff]  ;;  %7699 = vmatpush2.bf16.msra.mxu1 %v11289_v51  ;;  %7507 = vmatprep.subr.bf16.mxu0 %v11154_v22  ;;  %v15304_v16 = vadd.f32 %v6692_v62, %v6499_v24  ;;  %v6501_v54 = vpop.f32.mrf.mxu0  ;;  %v6696_v7 = vpop.f32.mrf.mxu1  ;;  %v11004_v24 = vcombine.high %v15226_v3, %v15232_v60 }
 0x3ed   : > { %7381 = vmatmul.mubr.bf16.gmra.mxu1 %v18569_v63  ;;  %v2937_v15 = vld [vmem:[#allocation7 + $0xe50] sm:$0xff]  ;;  %v11146_v42 = vcombine.high %v2809_v8, %v2813_v40  ;;  %7700 = vmatprep.subr.bf16.mxu1 %v11282_v59  ;;  %v15306_v26 = vadd.f32 %v6694_v21, %v6501_v54  ;;  %v11145_v33 = vcombine.low %v2809_v8, %v2813_v40 }
 0x3ee   : > { %v2941_v34 = vld [vmem:[#allocation7 + $0xe70] sm:$0xff]  ;;  %7390 = vmatprep.mubr.bf16.mxu1 %v18572_v10  ;;  %v6503_v10 = vpop.f32.mrf.mxu0  ;;  %v6700_v59 = vpop.f32.mrf.mxu1 }
 0x3ef   : > { %v11274_v63 = vcombine.high %v2937_v15, %v2941_v34  ;;  %v2801_v47 = vld [vmem:[#allocation7 + $0xa10] sm:$0xff]  ;;  %7508 = vmatpush2.bf16.msra.mxu0 %v11153_v14  ;;  %v11273_v55 = vcombine.low %v2937_v15, %v2941_v34  ;;  %v15308_v56 = vadd.f32 %v6696_v7, %v6503_v10  ;;  %v18574_v7 = vld [vmem:[#allocation49_spill] sm:$0xff] }
 0x3f0   : > { %v2805_v5 = vld [vmem:[#allocation7 + $0xa30] sm:$0xff]  ;;  %7701 = vmatpush2.bf16.msra.mxu1 %v11281_v48  ;;  %7509 = vmatprep.subr.bf16.mxu0 %v11146_v42  ;;  %v6507_v51 = vpop.f32.mrf.mxu0  ;;  %v6702_v40 = vpop.f32.mrf.mxu1 }
 0x3f1   : > { %v2929_v27 = vld [vmem:[#allocation7 + $0xe10] sm:$0xff]  ;;  %v11138_v4 = vcombine.high %v2801_v47, %v2805_v5  ;;  %7702 = vmatprep.subr.bf16.mxu1 %v11274_v63  ;;  %v15313_v21 = vadd.f32 %v6700_v59, %v6507_v51  ;;  %v11137_v8 = vcombine.low %v2801_v47, %v2805_v5  ;;  %v10876_v63 = vcombine.high %v15222_v18, %v15224_v46 }
 0x3f2   : > { %v2933_v50 = vld [vmem:[#allocation7 + $0xe30] sm:$0xff]  ;;  %7198 = vmatmul.mubr.bf16.gmra.mxu0 %v18313_v25  ;;  %v6509_v54 = vpop.f32.mrf.mxu0  ;;  %v6704_v14 = vpop.f32.mrf.mxu1 }
 0x3f3   : > { %v11266_v22 = vcombine.high %v2929_v27, %v2933_v50  ;;  %7207 = vmatprep.mubr.bf16.mxu0 %v18315_v36  ;;  %7510 = vmatpush2.bf16.msra.mxu0 %v11145_v33  ;;  %v11265_v15 = vcombine.low %v2929_v27, %v2933_v50  ;;  %v15318_v34 = vadd.f32 %v6702_v40, %v6509_v54  ;;  %v18573_v33 = vld [vmem:[#allocation74_spill] sm:$0xff] }
 0x3f4   : > { %7703 = vmatpush2.bf16.msra.mxu1 %v11273_v55  ;;  %7511 = vmatprep.subr.bf16.mxu0 %v11138_v4  ;;  %v6511_v10 = vpop.f32.mrf.mxu0  ;;  %v6706_v5 = vpop.f32.mrf.mxu1  ;;  %v18575_v55 = vld [vmem:[#allocation75_spill] sm:$0xff] }
 0x3f5   : > { %7391 = vmatmul.mubr.bf16.gmra.mxu1 %v18314_v53  ;;  %7704 = vmatprep.subr.bf16.mxu1 %v11266_v22  ;;  %v15322_v62 = vadd.f32 %v6704_v14, %v6511_v10 }
 0x3f6   : > { %7400 = vmatprep.mubr.bf16.mxu1 %v18316_v35  ;;  %v6513_v48 = vpop.f32.mrf.mxu0  ;;  %v6936_v50 = vpop.f32.mrf.mxu1 }
 0x3f7   : > { %7512 = vmatpush2.bf16.msra.mxu0 %v11137_v8  ;;  %v15324_v47 = vadd.f32 %v6706_v5, %v6513_v48 }
 0x3f8   : > { %7705 = vmatpush2.bf16.msra.mxu1 %v11265_v15  ;;  %7867 = vmatprep.subr.bf16.mxu0 %v10876_v63  ;;  %v6743_v42 = vpop.f32.mrf.mxu0  ;;  %v6938_v59 = vpop.f32.mrf.mxu1 }
 0x3f9   : > { %8060 = vmatprep.subr.bf16.mxu1 %v11004_v24  ;;  %v6744_v27 = vadd.f32 %v6743_v42, %v15113_v6 }
 0x3fa   : > { %7208 = vmatmul.mubr.bf16.gmra.mxu0 %v18317_v45  ;;  %v6745_v4 = vpop.f32.mrf.mxu0  ;;  %v6940_v15 = vpop.f32.mrf.mxu1 }
 0x3fb   : > { %7217 = vmatprep.mubr.bf16.mxu0 %v18574_v7  ;;  %v15331_v51 = vadd.f32 %v6936_v50, %v6744_v27  ;;  %v6746_v22 = vadd.f32 %v6745_v4, %v15118_v0  ;;  %v18580_v27 = vld [vmem:[#allocation77_spill] sm:$0xff]  ;;  %v18582_v50 = vld [vmem:[#allocation79_spill] sm:$0xff] }
 0x3fc   : > { %v6747_v54 = vpop.f32.mrf.mxu0  ;;  %v6942_v24 = vpop.f32.mrf.mxu1 }
 0x3fd   : > { %7401 = vmatmul.mubr.bf16.gmra.mxu1 %v18573_v33  ;;  %18576 = vst [vmem:[#allocation74_spill] sm:$0xff] %v15331_v51  ;;  %v15334_v8 = vadd.f32 %v6938_v59, %v6746_v22  ;;  %v6748_v40 = vadd.f32 %v6747_v54, %v15120_v13  ;;  %v18581_v13 = vld [vmem:[#allocation78_spill] sm:$0xff] }
 0x3fe   : > { %7410 = vmatprep.mubr.bf16.mxu1 %v18575_v55  ;;  %v6749_v6 = vpop.f32.mrf.mxu0  ;;  %v6946_v42 = vpop.f32.mrf.mxu1 }
 0x3ff   : > { %18577 = vst [vmem:[#allocation49_spill] sm:$0xff] %v15334_v8  ;;  %v15337_v63 = vadd.f32 %v6940_v15, %v6748_v40  ;;  %v6750_v10 = vadd.f32 %v6749_v6, %v15122_v9 }
 0x400   : > { %v6753_v14 = vpop.f32.mrf.mxu0  ;;  %v6948_v54 = vpop.f32.mrf.mxu1 }
 0x401   : > { %18578 = vst [vmem:[#allocation75_spill] sm:$0xff] %v15337_v63  ;;  %v15343_v0 = vadd.f32 %v6942_v24, %v6750_v10  ;;  %v6754_v5 = vadd.f32 %v6753_v14, %v15127_v38 }
 0x402   : > { %7218 = vmatmul.mubr.bf16.gmra.mxu0 %v18324_v28  ;;  %v6755_v4 = vpop.f32.mrf.mxu0  ;;  %v6950_v6 = vpop.f32.mrf.mxu1 }
 0x403   : > { %18579 = vst [vmem:[#allocation238_spill] sm:$0xff] %v15343_v0  ;;  %7227 = vmatprep.mubr.bf16.mxu0 %v18581_v13  ;;  %v15351_v22 = vadd.f32 %v6946_v42, %v6754_v5  ;;  %v6756_v59 = vadd.f32 %v6755_v4, %v15130_v57 }
 0x404   : > { %v6757_v40 = vpop.f32.mrf.mxu0  ;;  %v6952_v48 = vpop.f32.mrf.mxu1 }
 0x405   : > { %7411 = vmatmul.mubr.bf16.gmra.mxu1 %v18580_v27  ;;  %18583 = vst [vmem:[#allocation77_spill] sm:$0xff] %v15351_v22  ;;  %v15354_v15 = vadd.f32 %v6948_v54, %v6756_v59  ;;  %v6758_v38 = vadd.f32 %v6757_v40, %v15132_v43 }
 0x406   : > { %7420 = vmatprep.mubr.bf16.mxu1 %v18582_v50  ;;  %v6759_v10 = vpop.f32.mrf.mxu0  ;;  %v6956_v4 = vpop.f32.mrf.mxu1 }
 0x407   : > { %18584 = vst [vmem:[#allocation78_spill] sm:$0xff] %v15354_v15  ;;  %v15357_v24 = vadd.f32 %v6950_v6, %v6758_v38  ;;  %v6760_v14 = vadd.f32 %v6759_v10, %v15134_v17 }
 0x408   : > { %v6763_v51 = vpop.f32.mrf.mxu0  ;;  %v6958_v40 = vpop.f32.mrf.mxu1 }
 0x409   : > { %18585 = vst [vmem:[#allocation79_spill] sm:$0xff] %v15357_v24  ;;  %v15363_v57 = vadd.f32 %v6952_v48, %v6760_v14  ;;  %v6764_v42 = vadd.f32 %v6763_v51, %v15139_v11 }
 0x40a   : > { %7228 = vmatmul.mubr.bf16.gmra.mxu0 %v18332_v12  ;;  %v6765_v43 = vpop.f32.mrf.mxu0  ;;  %v6960_v51 = vpop.f32.mrf.mxu1 }
 0x40b   : > { %18586 = vst [vmem:[#allocation239_spill] sm:$0xff] %v15363_v57  ;;  %7237 = vmatprep.mubr.bf16.mxu0 %v18335_v61  ;;  %v15371_v59 = vadd.f32 %v6956_v4, %v6764_v42  ;;  %v6766_v54 = vadd.f32 %v6765_v43, %v15142_v49  ;;  %v18615_v57 = vld [vmem:[#allocation90_spill] sm:$0xff] }
 0x40c   : > { %v6767_v48 = vpop.f32.mrf.mxu0  ;;  %v6962_v5 = vpop.f32.mrf.mxu1 }
 0x40d   : > { %7421 = vmatmul.mubr.bf16.gmra.mxu1 %v18334_v52  ;;  %18587 = vst [vmem:[#allocation240_spill] sm:$0xff] %v15371_v59  ;;  %v15374_v38 = vadd.f32 %v6958_v40, %v6766_v54  ;;  %v6768_v11 = vadd.f32 %v6767_v48, %v15144_v29 }
 0x40e   : > { %7430 = vmatprep.mubr.bf16.mxu1 %v18336_v1  ;;  %v6769_v6 = vpop.f32.mrf.mxu0  ;;  %v6966_v43 = vpop.f32.mrf.mxu1 }
 0x40f   : > { %18588 = vst [vmem:[#allocation241_spill] sm:$0xff] %v15374_v38  ;;  %v15377_v10 = vadd.f32 %v6960_v51, %v6768_v11  ;;  %v6770_v14 = vadd.f32 %v6769_v6, %v15146_v19 }
 0x410   : > { %v6773_v9 = vpop.f32.mrf.mxu0  ;;  %v6968_v48 = vpop.f32.mrf.mxu1 }
 0x411   : > { %18589 = vst [vmem:[#allocation242_spill] sm:$0xff] %v15377_v10  ;;  %v15383_v49 = vadd.f32 %v6962_v5, %v6770_v14  ;;  %v6774_v4 = vadd.f32 %v6773_v9, %v15151_v20 }
 0x412   : > { %7238 = vmatmul.mubr.bf16.gmra.mxu0 %v18340_v31  ;;  %v6775_v29 = vpop.f32.mrf.mxu0  ;;  %v6970_v9 = vpop.f32.mrf.mxu1 }
 0x413   : > { %18590 = vst [vmem:[#allocation243_spill] sm:$0xff] %v15383_v49  ;;  %7247 = vmatprep.mubr.bf16.mxu0 %v18343_v23  ;;  %v15391_v54 = vadd.f32 %v6966_v43, %v6774_v4  ;;  %v6776_v40 = vadd.f32 %v6775_v29, %v15154_v39  ;;  %v18603_v49 = vld [vmem:[#allocation88_spill] sm:$0xff] }
 0x414   : > { %v6777_v5 = vpop.f32.mrf.mxu0  ;;  %v6972_v42 = vpop.f32.mrf.mxu1 }
 0x415   : > { %7431 = vmatmul.mubr.bf16.gmra.mxu1 %v18342_v44  ;;  %18591 = vst [vmem:[#allocation244_spill] sm:$0xff] %v15391_v54  ;;  %v15394_v11 = vadd.f32 %v6968_v48, %v6776_v40  ;;  %v6778_v20 = vadd.f32 %v6777_v5, %v15156_v32  ;;  %v18595_v32 = vld [vmem:[#allocation36_spill] sm:$0xff] }
 0x416   : > { %7440 = vmatprep.mubr.bf16.mxu1 %v18344_v30  ;;  %v6779_v51 = vpop.f32.mrf.mxu0  ;;  %v18596_v40 = vld [vmem:[#allocation68_spill] sm:$0xff] }
 0x417   : > { %18592 = vst [vmem:[#allocation245_spill] sm:$0xff] %v15394_v11  ;;  %v15397_v6 = vadd.f32 %v6970_v9, %v6778_v20  ;;  %v6780_v14 = vadd.f32 %v6779_v51, %v15158_v37  ;;  %v6976_v29 = vpop.f32.mrf.mxu1  ;;  %v18598_v20 = vld [vmem:[#allocation198_spill] sm:$0xff] }
 0x418   : > { %v6783_v17 = vpop.f32.mrf.mxu0 }
 0x419   : > { %18593 = vst [vmem:[#allocation246_spill] sm:$0xff] %v15397_v6  ;;  %v15403_v39 = vadd.f32 %v6972_v42, %v6780_v14  ;;  %v6784_v43 = vadd.f32 %v6783_v17, %v15163_v58  ;;  %v6978_v51 = vpop.f32.mrf.mxu1  ;;  %v18600_v58 = vld [vmem:[#allocation199_spill] sm:$0xff]  ;;  %v18602_v6 = vld [vmem:[#allocation200_spill] sm:$0xff] }
 0x41a   : > { %7248 = vmatmul.mubr.bf16.gmra.mxu0 %v18348_v41  ;;  %v6785_v48 = vpop.f32.mrf.mxu0 }
 0x41b   : > { %18594 = vst [vmem:[#allocation247_spill] sm:$0xff] %v15403_v39  ;;  %7257 = vmatprep.mubr.bf16.mxu0 %v18595_v32  ;;  %v15411_v5 = vadd.f32 %v6976_v29, %v6784_v43  ;;  %v6786_v9 = vadd.f32 %v6785_v48, %v18598_v20  ;;  %v6980_v4 = vpop.f32.mrf.mxu1  ;;  %v18605_v48 = vld [vmem:[#allocation201_spill] sm:$0xff]  ;;  %v18614_v39 = vld [vmem:[#allocation204_spill] sm:$0xff] }
 0x41c   : > { %v6787_v42 = vpop.f32.mrf.mxu0  ;;  %v2910_v32 = vld [vmem:[#allocation7 + $0xd78] sm:$0xff] }
 0x41d   : > { %7441 = vmatmul.mubr.bf16.gmra.mxu1 %v18350_v2  ;;  %18597 = vst [vmem:[#allocation248_spill] sm:$0xff] %v15411_v5  ;;  %v15414_v14 = vadd.f32 %v6978_v51, %v6786_v9  ;;  %v6788_v17 = vadd.f32 %v6787_v42, %v18600_v58  ;;  %v6982_v10 = vpop.f32.mrf.mxu1  ;;  %v18606_v51 = vld [vmem:[#allocation31_spill] sm:$0xff]  ;;  %v18607_v42 = vld [vmem:[#allocation72_spill] sm:$0xff] }
 0x41e   : > { %7450 = vmatprep.mubr.bf16.mxu1 %v18596_v40  ;;  %v6789_v19 = vpop.f32.mrf.mxu0  ;;  %v2906_v40 = vld [vmem:[#allocation7 + $0xd58] sm:$0xff] }
 0x41f   : > { %18599 = vst [vmem:[#allocation198_spill] sm:$0xff] %v15414_v14  ;;  %v15417_v54 = vadd.f32 %v6980_v4, %v6788_v17  ;;  %v6790_v59 = vadd.f32 %v6789_v19, %v18602_v6  ;;  %v18608_v4 = vld [vmem:[#allocation34_spill] sm:$0xff] }
 0x420   : > { %v6793_v38 = vpop.f32.mrf.mxu0  ;;  %v18610_v17 = vld [vmem:[#allocation202_spill] sm:$0xff] }
 0x421   : > { %18601 = vst [vmem:[#allocation199_spill] sm:$0xff] %v15417_v54  ;;  %v15423_v29 = vadd.f32 %v6982_v10, %v6790_v59  ;;  %v6794_v20 = vadd.f32 %v6793_v38, %v18605_v48  ;;  %v6986_v9 = vpop.f32.mrf.mxu1  ;;  %v18612_v38 = vld [vmem:[#allocation203_spill] sm:$0xff] }
 0x422   : > { %7258 = vmatmul.mubr.bf16.gmra.mxu0 %v18603_v49  ;;  %v6795_v58 = vpop.f32.mrf.mxu0 }
 0x423   : > { %18604 = vst [vmem:[#allocation200_spill] sm:$0xff] %v15423_v29  ;;  %7267 = vmatprep.mubr.bf16.mxu0 %v18607_v42  ;;  %v15431_v6 = vadd.f32 %v6986_v9, %v6794_v20  ;;  %v6796_v37 = vadd.f32 %v6795_v58, %v18610_v17  ;;  %v6988_v43 = vpop.f32.mrf.mxu1  ;;  %v18617_v58 = vld [vmem:[#allocation205_spill] sm:$0xff]  ;;  %v18618_v17 = vld [vmem:[#allocation91_spill] sm:$0xff]  ;;  %v18626_v29 = vld [vmem:[#allocation208_spill] sm:$0xff] }
 0x424   : > { %v6797_v59 = vpop.f32.mrf.mxu0 }
 0x425   : > { %7451 = vmatmul.mubr.bf16.gmra.mxu1 %v18606_v51  ;;  %18609 = vst [vmem:[#allocation201_spill] sm:$0xff] %v15431_v6  ;;  %v15434_v10 = vadd.f32 %v6988_v43, %v6796_v37  ;;  %v6798_v48 = vadd.f32 %v6797_v59, %v18612_v38  ;;  %v6990_v5 = vpop.f32.mrf.mxu1  ;;  %v18619_v59 = vld [vmem:[#allocation92_spill] sm:$0xff] }
 0x426   : > { %7460 = vmatprep.mubr.bf16.mxu1 %v18608_v4  ;;  %v6799_v54 = vpop.f32.mrf.mxu0  ;;  %v2506_v51 = vld [vmem:[#allocation7 + $0xd8] sm:$0xff] }
 0x427   : > { %18611 = vst [vmem:[#allocation202_spill] sm:$0xff] %v15434_v10  ;;  %v15437_v11 = vadd.f32 %v6990_v5, %v6798_v48  ;;  %v6800_v22 = vadd.f32 %v6799_v54, %v18614_v39  ;;  %v6992_v24 = vpop.f32.mrf.mxu1  ;;  %v18620_v5 = vld [vmem:[#allocation93_spill] sm:$0xff]  ;;  %v18622_v48 = vld [vmem:[#allocation206_spill] sm:$0xff] }
 0x428   : > { %v2534_v10 = vld [vmem:[#allocation7 + $0x1b8] sm:$0xff] }
 0x429   : > { %18613 = vst [vmem:[#allocation203_spill] sm:$0xff] %v15437_v11  ;;  %v6803_v15 = vpop.f32.mrf.mxu0  ;;  %v15443_v9 = vadd.f32 %v6992_v24, %v6800_v22  ;;  %v6996_v43 = vpop.f32.mrf.mxu1 }
 0x42a   : > { %7268 = vmatmul.mubr.bf16.gmra.mxu0 %v18615_v57  ;;  %v6804_v37 = vadd.f32 %v6803_v15, %v18617_v58  ;;  %v18624_v15 = vld [vmem:[#allocation207_spill] sm:$0xff]  ;;  %v18645_v57 = vcombine.low %v15222_v18, %v15224_v46 }
 0x42b   : > { %18616 = vst [vmem:[#allocation204_spill] sm:$0xff] %v15443_v9  ;;  %7277 = vmatprep.mubr.bf16.mxu0 %v18619_v59  ;;  %v6805_v38 = vpop.f32.mrf.mxu0  ;;  %v6998_v20 = vpop.f32.mrf.mxu1  ;;  %v2658_v9 = vld [vmem:[#allocation7 + $0x598] sm:$0xff] }
 0x42c   : > { %v15451_v39 = vadd.f32 %v6996_v43, %v6804_v37  ;;  %v6806_v19 = vadd.f32 %v6805_v38, %v18622_v48  ;;  %v18629_v38 = vld [vmem:[#allocation209_spill] sm:$0xff]  ;;  %v18630_v48 = vld [vmem:[#allocation95_spill] sm:$0xff] }
 0x42d   : > { %7461 = vmatmul.mubr.bf16.gmra.mxu1 %v18618_v17  ;;  %v6807_v22 = vpop.f32.mrf.mxu0  ;;  %v7000_v6 = vpop.f32.mrf.mxu1  ;;  %v18642_v59 = vld [vmem:[#allocation101_spill] sm:$0xff]  ;;  %v18644_v17 = vld [vmem:[#allocation103_spill] sm:$0xff] }
 0x42e   : > { %7470 = vmatprep.mubr.bf16.mxu1 %v18620_v5  ;;  %18621 = vst [vmem:[#allocation205_spill] sm:$0xff] %v15451_v39  ;;  %v15454_v24 = vadd.f32 %v6998_v20, %v6806_v19  ;;  %v6808_v58 = vadd.f32 %v6807_v22, %v18624_v15  ;;  %v18627_v5 = vld [vmem:[#allocation94_spill] sm:$0xff]  ;;  %v18631_v22 = vld [vmem:[#allocation96_spill] sm:$0xff] }
 0x42f   : > { %v6809_v11 = vpop.f32.mrf.mxu0  ;;  %v7002_v8 = vpop.f32.mrf.mxu1 }
 0x430   : > { %18623 = vst [vmem:[#allocation206_spill] sm:$0xff] %v15454_v24  ;;  %v15457_v14 = vadd.f32 %v7000_v6, %v6808_v58  ;;  %v6810_v63 = vadd.f32 %v6809_v11, %v18626_v29  ;;  %v18632_v6 = vld [vmem:[#allocation97_spill] sm:$0xff]  ;;  %v18634_v58 = vld [vmem:[#allocation210_spill] sm:$0xff]  ;;  %v18639_v24 = vld [vmem:[#allocation100_spill] sm:$0xff] }
 0x431   : > { %v6813_v0 = vpop.f32.mrf.mxu0  ;;  %v7006_v20 = vpop.f32.mrf.mxu1 }
 0x432   : > { %18625 = vst [vmem:[#allocation207_spill] sm:$0xff] %v15457_v14  ;;  %7278 = vmatmul.mubr.bf16.gmra.mxu0 %v18627_v5  ;;  %v15463_v43 = vadd.f32 %v7002_v8, %v6810_v63  ;;  %v6814_v19 = vadd.f32 %v6813_v0, %v18629_v38  ;;  %v2530_v63 = vld [vmem:[#allocation7 + $0x198] sm:$0xff]  ;;  %v18636_v0 = vld [vmem:[#allocation211_spill] sm:$0xff] }
 0x433   : > { %7513 = vmatprep.mubr.bf16.mxu0 %v18631_v22  ;;  %v6815_v15 = vpop.f32.mrf.mxu0  ;;  %v7008_v37 = vpop.f32.mrf.mxu1  ;;  %v2662_v22 = vld [vmem:[#allocation7 + $0x5b8] sm:$0xff] }
 0x434   : > { %18628 = vst [vmem:[#allocation208_spill] sm:$0xff] %v15463_v43  ;;  %v15471_v29 = vadd.f32 %v7006_v20, %v6814_v19  ;;  %v6816_v54 = vadd.f32 %v6815_v15, %v18634_v58  ;;  %v18638_v5 = vld [vmem:[#allocation212_spill] sm:$0xff]  ;;  %v10868_v15 = vcombine.high %v2530_v63, %v2534_v10  ;;  %v10996_v58 = vcombine.high %v2658_v9, %v2662_v22 }
 0x435   : > { %7471 = vmatmul.mubr.bf16.gmra.mxu1 %v18630_v48  ;;  %v6817_v8 = vpop.f32.mrf.mxu0  ;;  %v7010_v14 = vpop.f32.mrf.mxu1  ;;  %v15481_v43 = vld [vmem:[#allocation7 + $0x158] sm:$0xff] }
 0x436   : > { %7706 = vmatprep.mubr.bf16.mxu1 %v18632_v6  ;;  %18633 = vst [vmem:[#allocation209_spill] sm:$0xff] %v15471_v29  ;;  %v15474_v39 = vadd.f32 %v7008_v37, %v6816_v54  ;;  %v6818_v38 = vadd.f32 %v6817_v8, %v18636_v0  ;;  %v15483_v54 = vld [vmem:[#allocation7 + $0x178] sm:$0xff]  ;;  %v10867_v37 = vcombine.low %v2530_v63, %v2534_v10 }
 0x437   : > { %v6819_v6 = vpop.f32.mrf.mxu0  ;;  %v7012_v19 = vpop.f32.mrf.mxu1  ;;  %v18641_v0 = vld [vmem:[#allocation213_spill] sm:$0xff]  ;;  %v10860_v18 = vcombine.high %v15481_v43, %v15483_v54 }
 0x438   : > { %18635 = vst [vmem:[#allocation210_spill] sm:$0xff] %v15474_v39  ;;  %v15477_v48 = vadd.f32 %v7010_v14, %v6818_v38  ;;  %v6820_v11 = vadd.f32 %v6819_v6, %v18638_v5  ;;  %v18643_v5 = vld [vmem:[#allocation102_spill] sm:$0xff]  ;;  %v15492_v6 = vld [vmem:[#allocation7 + $0x558] sm:$0xff] }
 0x439   : > { %v6823_v20 = vpop.f32.mrf.mxu0  ;;  %v7016_v38 = vpop.f32.mrf.mxu1  ;;  %v2514_v10 = vld [vmem:[#allocation7 + $0x118] sm:$0xff] }
 0x43a   : > { %18637 = vst [vmem:[#allocation211_spill] sm:$0xff] %v15477_v48  ;;  %7514 = vmatmul.mubr.bf16.vlgmr.msra.gmra.mxu0 %v18639_v24  ;;  %v15487_v8 = vadd.f32 %v7012_v19, %v6820_v11  ;;  %v6824_v14 = vadd.f32 %v6823_v20, %v18641_v0  ;;  %v2654_v24 = vld [vmem:[#allocation7 + $0x578] sm:$0xff]  ;;  %v10995_v11 = vcombine.low %v2658_v9, %v2662_v22  ;;  %v18647_v48 = vld [vmem:[#allocation214_spill] sm:$0xff]  ;;  %v18658_v0 = vld [vmem:[#allocation27_spill] sm:$0xff] }
 0x43b   : > { %7523 = vmatprep.mubr.bf16.mxu0 %v18643_v5  ;;  %7868 = vmatpush1.bf16.msra.mxu0 %v18645_v57  ;;  %v6825_v4 = vpop.f32.mrf.mxu0  ;;  %v15498_v19 = vld [vmem:[#allocation7 + $0x9d8] sm:$0xff]  ;;  %v10988_v57 = vcombine.high %v15492_v6, %v2654_v24 }
 0x43c   : > { %18640 = vst [vmem:[#allocation212_spill] sm:$0xff] %v15487_v8  ;;  %v15500_v20 = vld [vmem:[#allocation7 + $0x9f8] sm:$0xff]  ;;  %v15504_v29 = vadd.f32 %v7016_v38, %v6824_v14  ;;  %v6826_v5 = vadd.f32 %v6825_v4, %v18647_v48  ;;  %7869 = vmatprep.subr.bf16.mxu0 %v10868_v15 }
 0x43d   : > { %7707 = vmatmul.mubr.bf16.vlgmr.msra.gmra.mxu1 %v18642_v59  ;;  %v7018_v59 = vpop.f32.mrf.mxu1  ;;  %v6827_v46 = vpop.f32.mrf.mxu0  ;;  %v15515_v22 = vld [vmem:[#allocation7 + $0xdd8] sm:$0xff] }
 0x43e   : > { %7716 = vmatprep.mubr.bf16.mxu1 %v18644_v17  ;;  %18646 = vst [vmem:[#allocation213_spill] sm:$0xff] %v15504_v29  ;;  %v18648_v17 = vcombine.low %v15226_v3, %v15232_v60  ;;  %v15517_v4 = vld [vmem:[#allocation7 + $0xdf8] sm:$0xff]  ;;  %v15519_v48 = vadd.f32 %v7018_v59, %v6826_v5  ;;  %v18650_v3 = vld [vmem:[#allocation215_spill] sm:$0xff]  ;;  %v10987_v5 = vcombine.low %v15492_v6, %v2654_v24 }
 0x43f   : > { %v6828_v60 = vadd.f32 %v6827_v46, %v18650_v3  ;;  %v2518_v63 = vld [vmem:[#allocation7 + $0x138] sm:$0xff]  ;;  %v6829_v15 = vpop.f32.mrf.mxu0  ;;  %7870 = vmatpush1.bf16.msra.mxu0 %v10867_v37  ;;  %v18653_v3 = vld [vmem:[#allocation111_spill] sm:$0xff] }
 0x440   : > { %8061 = vmatpush1.bf16.msra.mxu1 %v18648_v17  ;;  %18649 = vst [vmem:[#allocation214_spill] sm:$0xff] %v15519_v48  ;;  %v7020_v17 = vpop.f32.mrf.mxu1  ;;  %v2642_v14 = vld [vmem:[#allocation7 + $0x518] sm:$0xff]  ;;  %7871 = vmatprep.subr.bf16.mxu0 %v10860_v18  ;;  %v10852_v37 = vcombine.high %v2514_v10, %v2518_v63 }
 0x441   : > { %8062 = vmatprep.subr.bf16.mxu1 %v10996_v58  ;;  %v2646_v38 = vld [vmem:[#allocation7 + $0x538] sm:$0xff]  ;;  %v10859_v58 = vcombine.low %v15481_v43, %v15483_v54  ;;  %v15526_v9 = vadd.f32 %v7020_v17, %v6828_v60  ;;  %v6833_v46 = vpop.f32.mrf.mxu0 }
 0x442   : > { %v18652_v39 = vld [vmem:[#allocation216_spill] sm:$0xff]  ;;  %v7022_v59 = vpop.f32.mrf.mxu1  ;;  %7524 = vmatmul.mubr.bf16.gmra.mxu0 %v18653_v3  ;;  %v10980_v42 = vcombine.high %v2642_v14, %v2646_v38  ;;  %v18655_v17 = vld [vmem:[#allocation217_spill] sm:$0xff]  ;;  %v10851_v3 = vcombine.low %v2514_v10, %v2518_v63  ;;  %v10979_v49 = vcombine.low %v2642_v14, %v2646_v38 }
 0x443   : > { %18651 = vst [vmem:[#allocation215_spill] sm:$0xff] %v15526_v9  ;;  %v6830_v8 = vadd.f32 %v6829_v15, %v18652_v39  ;;  %v2510_v43 = vld [vmem:[#allocation7 + $0xf8] sm:$0xff]  ;;  %v6834_v39 = vadd.f32 %v6833_v46, %v18655_v17  ;;  %7872 = vmatpush1.bf16.msra.mxu0 %v10859_v58  ;;  %v18662_v58 = vld [vmem:[#allocation219_spill] sm:$0xff] }
 0x444   : > { %8063 = vmatpush1.bf16.msra.mxu1 %v10995_v11  ;;  %v7026_v15 = vpop.f32.mrf.mxu1  ;;  %v18656_v11 = vld [vmem:[#allocation112_spill] sm:$0xff]  ;;  %v18657_v18 = vld [vmem:[#allocation113_spill] sm:$0xff]  ;;  %v10844_v29 = vcombine.high %v2506_v51, %v2510_v43  ;;  %7873 = vmatprep.subr.bf16.mxu0 %v10852_v37 }
 0x445   : > { %8064 = vmatprep.subr.bf16.mxu1 %v10988_v57  ;;  %v15533_v60 = vadd.f32 %v7022_v59, %v6830_v8  ;;  %7717 = vmatmul.mubr.bf16.gmra.mxu1 %v18656_v11  ;;  %v2634_v24 = vld [vmem:[#allocation7 + $0x4d8] sm:$0xff]  ;;  %v6835_v57 = vpop.f32.mrf.mxu0  ;;  %v15541_v8 = vadd.f32 %v7026_v15, %v6834_v39  ;;  %v18660_v59 = vld [vmem:[#allocation218_spill] sm:$0xff]  ;;  %v10843_v15 = vcombine.low %v2506_v51, %v2510_v43 }
 0x446   : > { %7533 = vmatprep.mubr.bf16.mxu0 %v18657_v18  ;;  %v2638_v6 = vld [vmem:[#allocation7 + $0x4f8] sm:$0xff]  ;;  %7726 = vmatprep.mubr.bf16.mxu1 %v18658_v0  ;;  %v6836_v46 = vadd.f32 %v6835_v57, %v18660_v59  ;;  %v7028_v17 = vpop.f32.mrf.mxu1 }
 0x447   : > { %18654 = vst [vmem:[#allocation216_spill] sm:$0xff] %v15533_v60  ;;  %18659 = vst [vmem:[#allocation217_spill] sm:$0xff] %v15541_v8  ;;  %v6837_v9 = vpop.f32.mrf.mxu0  ;;  %v10972_v18 = vcombine.high %v2634_v24, %v2638_v6  ;;  %v2498_v11 = vld [vmem:[#allocation7 + $0x98] sm:$0xff]  ;;  %7874 = vmatpush1.bf16.msra.mxu0 %v10851_v3 }
 0x448   : > { %8065 = vmatpush1.bf16.msra.mxu1 %v10987_v5  ;;  %v15544_v0 = vadd.f32 %v7028_v17, %v6836_v46  ;;  %v6838_v10 = vadd.f32 %v6837_v9, %v18662_v58  ;;  %v7030_v63 = vpop.f32.mrf.mxu1  ;;  %v2502_v14 = vld [vmem:[#allocation7 + $0xb8] sm:$0xff]  ;;  %7875 = vmatprep.subr.bf16.mxu0 %v10844_v29 }
 0x449   : > { %8066 = vmatprep.subr.bf16.mxu1 %v10980_v42  ;;  %v2626_v38 = vld [vmem:[#allocation7 + $0x498] sm:$0xff]  ;;  %v6839_v39 = vpop.f32.mrf.mxu0  ;;  %v10971_v42 = vcombine.low %v2634_v24, %v2638_v6  ;;  %v10836_v9 = vcombine.high %v2498_v11, %v2502_v14  ;;  %v18670_v6 = vld [vmem:[#allocation82_spill] sm:$0xff] }
 0x44a   : > { %18661 = vst [vmem:[#allocation218_spill] sm:$0xff] %v15544_v0  ;;  %v2630_v54 = vld [vmem:[#allocation7 + $0x4b8] sm:$0xff]  ;;  %v15547_v57 = vadd.f32 %v7030_v63, %v6838_v10  ;;  %v7032_v48 = vpop.f32.mrf.mxu1 }
 0x44b   : > { %v18664_v5 = vld [vmem:[#allocation220_spill] sm:$0xff]  ;;  %v6843_v37 = vpop.f32.mrf.mxu0  ;;  %v18665_v46 = vld [vmem:[#allocation117_spill] sm:$0xff]  ;;  %v10964_v17 = vcombine.high %v2626_v38, %v2630_v54  ;;  %7876 = vmatpush1.bf16.msra.mxu0 %v10843_v15  ;;  %v18674_v15 = vld [vmem:[#allocation223_spill] sm:$0xff] }
 0x44c   : > { %18663 = vst [vmem:[#allocation219_spill] sm:$0xff] %v15547_v57  ;;  %v6840_v59 = vadd.f32 %v6839_v39, %v18664_v5  ;;  %8067 = vmatpush1.bf16.msra.mxu1 %v10979_v49  ;;  %7534 = vmatmul.mubr.bf16.gmra.mxu0 %v18665_v46  ;;  %v2490_v58 = vld [vmem:[#allocation7 + $0x58] sm:$0xff]  ;;  %v7036_v63 = vpop.f32.mrf.mxu1  ;;  %v18668_v39 = vld [vmem:[#allocation118_spill] sm:$0xff]  ;;  %v10835_v5 = vcombine.low %v2498_v11, %v2502_v14 }
 0x44d   : > { %8068 = vmatprep.subr.bf16.mxu1 %v10972_v18  ;;  %v2494_v60 = vld [vmem:[#allocation7 + $0x78] sm:$0xff]  ;;  %7727 = vmatmul.mubr.bf16.gmra.mxu1 %v18668_v39  ;;  %v18669_v49 = vld [vmem:[#allocation62_spill] sm:$0xff]  ;;  %v6845_v18 = vpop.f32.mrf.mxu0  ;;  %v10963_v46 = vcombine.low %v2626_v38, %v2630_v54 }
 0x44e   : > { %v15553_v51 = vadd.f32 %v7032_v48, %v6840_v59  ;;  %v18667_v43 = vld [vmem:[#allocation221_spill] sm:$0xff]  ;;  %7543 = vmatprep.mubr.bf16.mxu0 %v18669_v49  ;;  %7736 = vmatprep.mubr.bf16.mxu1 %v18670_v6  ;;  %v18672_v59 = vld [vmem:[#allocation222_spill] sm:$0xff]  ;;  %v10828_v8 = vcombine.high %v2490_v58, %v2494_v60 }
 0x44f   : > { %v6844_v10 = vadd.f32 %v6843_v37, %v18667_v43  ;;  %v2618_v29 = vld [vmem:[#allocation7 + $0x458] sm:$0xff]  ;;  %v6846_v37 = vadd.f32 %v6845_v18, %v18672_v59  ;;  %v7038_v43 = vpop.f32.mrf.mxu1  ;;  %v6847_v57 = vpop.f32.mrf.mxu0  ;;  %7877 = vmatprep.subr.bf16.mxu0 %v10836_v9 }
 0x450   : > { %18666 = vst [vmem:[#allocation220_spill] sm:$0xff] %v15553_v51  ;;  %v2622_v24 = vld [vmem:[#allocation7 + $0x478] sm:$0xff]  ;;  %8069 = vmatpush1.bf16.msra.mxu1 %v10971_v42  ;;  %v6848_v11 = vadd.f32 %v6847_v57, %v18674_v15  ;;  %7878 = vmatpush1.bf16.msra.mxu0 %v10835_v5 }
 0x451   : > { %v15561_v48 = vadd.f32 %v7036_v63, %v6844_v10  ;;  %8070 = vmatprep.subr.bf16.mxu1 %v10964_v17  ;;  %v10956_v49 = vcombine.high %v2618_v29, %v2622_v24  ;;  %v2482_v39 = vld [vmem:[#allocation7 + $0x18] sm:$0xff]  ;;  %v15564_v6 = vadd.f32 %v7038_v43, %v6846_v37  ;;  %v7040_v54 = vpop.f32.mrf.mxu1  ;;  %v6849_v10 = vpop.f32.mrf.mxu0  ;;  %v10827_v63 = vcombine.low %v2490_v58, %v2494_v60  ;;  %v18677_v37 = vld [vmem:[#allocation122_spill] sm:$0xff] }
 0x452   : > { %v2486_v14 = vld [vmem:[#allocation7 + $0x38] sm:$0xff]  ;;  %v15567_v18 = vadd.f32 %v7040_v54, %v6848_v11  ;;  %7879 = vmatprep.subr.bf16.mxu0 %v10828_v8  ;;  %v10955_v9 = vcombine.low %v2618_v29, %v2622_v24  ;;  %v18681_v8 = vld [vmem:[#allocation86_spill] sm:$0xff] }
 0x453   : > { %18671 = vst [vmem:[#allocation221_spill] sm:$0xff] %v15561_v48  ;;  %18673 = vst [vmem:[#allocation222_spill] sm:$0xff] %v15564_v6  ;;  %v2610_v38 = vld [vmem:[#allocation7 + $0x418] sm:$0xff]  ;;  %v7042_v0 = vpop.f32.mrf.mxu1  ;;  %v6853_v17 = vpop.f32.mrf.mxu0  ;;  %v10820_v57 = vcombine.high %v2482_v39, %v2486_v14 }
 0x454   : > { %v2614_v3 = vld [vmem:[#allocation7 + $0x438] sm:$0xff]  ;;  %18675 = vst [vmem:[#allocation223_spill] sm:$0xff] %v15567_v18  ;;  %8071 = vmatpush1.bf16.msra.mxu1 %v10963_v46  ;;  %7544 = vmatmul.mubr.bf16.gmra.mxu0 %v18677_v37 }
 0x455   : > { %v18676_v42 = vld [vmem:[#allocation224_spill] sm:$0xff]  ;;  %8072 = vmatprep.subr.bf16.mxu1 %v10956_v49  ;;  %v10948_v43 = vcombine.high %v2610_v38, %v2614_v3  ;;  %v18679_v58 = vld [vmem:[#allocation225_spill] sm:$0xff]  ;;  %v7046_v54 = vpop.f32.mrf.mxu1  ;;  %7553 = vmatprep.mubr.bf16.mxu0 %v18681_v8  ;;  %v6855_v49 = vpop.f32.mrf.mxu0  ;;  %v10947_v37 = vcombine.low %v2610_v38, %v2614_v3 }
 0x456   : > { %v6850_v59 = vadd.f32 %v6849_v10, %v18676_v42  ;;  %v2602_v15 = vld [vmem:[#allocation7 + $0x3d8] sm:$0xff]  ;;  %v6854_v11 = vadd.f32 %v6853_v17, %v18679_v58  ;;  %v18680_v10 = vld [vmem:[#allocation71_spill] sm:$0xff]  ;;  %7880 = vmatpush1.bf16.msra.mxu0 %v10827_v63  ;;  %v10819_v42 = vcombine.low %v2482_v39, %v2486_v14 }
 0x457   : > { %v2606_v51 = vld [vmem:[#allocation7 + $0x3f8] sm:$0xff]  ;;  %7737 = vmatmul.mubr.bf16.gmra.mxu1 %v18680_v10  ;;  %v7048_v58 = vpop.f32.mrf.mxu1  ;;  %v6857_v18 = vpop.f32.mrf.mxu0  ;;  %7881 = vmatprep.subr.bf16.mxu0 %v10820_v57  ;;  %v18686_v63 = vld [vmem:[#allocation227_spill] sm:$0xff] }
 0x458   : > { %v15573_v60 = vadd.f32 %v7042_v0, %v6850_v59  ;;  %v2730_v46 = vld [vmem:[#allocation7 + $0x7d8] sm:$0xff]  ;;  %v15581_v0 = vadd.f32 %v7046_v54, %v6854_v11  ;;  %v18684_v59 = vld [vmem:[#allocation226_spill] sm:$0xff]  ;;  %8073 = vmatpush1.bf16.msra.mxu1 %v10955_v9  ;;  %v10940_v48 = vcombine.high %v2602_v15, %v2606_v51  ;;  %v6858_v39 = vadd.f32 %v6857_v18, %v18686_v63 }
 0x459   : > { %v2734_v29 = vld [vmem:[#allocation7 + $0x7f8] sm:$0xff]  ;;  %v6856_v17 = vadd.f32 %v6855_v49, %v18684_v59  ;;  %8074 = vmatprep.subr.bf16.mxu1 %v10948_v43  ;;  %v7050_v3 = vpop.f32.mrf.mxu1  ;;  %v6859_v11 = vpop.f32.mrf.mxu0  ;;  %v10939_v54 = vcombine.low %v2602_v15, %v2606_v51 }
 0x45a   : > { %18678 = vst [vmem:[#allocation224_spill] sm:$0xff] %v15573_v60  ;;  %v18682_v24 = vld [vmem:[#allocation85_spill] sm:$0xff]  ;;  %18683 = vst [vmem:[#allocation225_spill] sm:$0xff] %v15581_v0  ;;  %v11068_v8 = vcombine.high %v2730_v46, %v2734_v29  ;;  %7882 = vmatpush1.bf16.msra.mxu0 %v10819_v42  ;;  %v15587_v49 = vadd.f32 %v7050_v3, %v6858_v39  ;;  %v18688_v9 = vld [vmem:[#allocation228_spill] sm:$0xff]  ;;  %v11067_v57 = vcombine.low %v2730_v46, %v2734_v29 }
 0x45b   : > { %7746 = vmatprep.mubr.bf16.mxu1 %v18682_v24  ;;  %v2594_v10 = vld [vmem:[#allocation7 + $0x398] sm:$0xff]  ;;  %v15584_v24 = vadd.f32 %v7048_v58, %v6856_v17  ;;  %v6860_v59 = vadd.f32 %v6859_v11, %v18688_v9  ;;  %v7052_v6 = vpop.f32.mrf.mxu1  ;;  %7883 = vmatprep.subr.bf16.mxu0 %v10940_v48  ;;  %v6863_v43 = vpop.f32.mrf.mxu0  ;;  %v18689_v17 = vld [vmem:[#allocation87_spill] sm:$0xff] }
 0x45c   : > { %v2598_v14 = vld [vmem:[#allocation7 + $0x3b8] sm:$0xff]  ;;  %18687 = vst [vmem:[#allocation227_spill] sm:$0xff] %v15587_v49  ;;  %8075 = vmatpush1.bf16.msra.mxu1 %v10947_v37  ;;  %7554 = vmatmul.mubr.bf16.gmra.mxu0 %v18689_v17  ;;  %v18692_v11 = vld [vmem:[#allocation123_spill] sm:$0xff] }
 0x45d   : > { %18685 = vst [vmem:[#allocation226_spill] sm:$0xff] %v15584_v24  ;;  %v2722_v38 = vld [vmem:[#allocation7 + $0x798] sm:$0xff]  ;;  %8076 = vmatprep.subr.bf16.mxu1 %v11068_v8  ;;  %v10932_v18 = vcombine.high %v2594_v10, %v2598_v14  ;;  %v15593_v51 = vadd.f32 %v7052_v6, %v6860_v59  ;;  %v7056_v3 = vpop.f32.mrf.mxu1  ;;  %v6865_v8 = vpop.f32.mrf.mxu0  ;;  %v10931_v9 = vcombine.low %v2594_v10, %v2598_v14  ;;  %v18696_v59 = vld [vmem:[#allocation230_spill] sm:$0xff] }
 0x45e   : > { %v2726_v5 = vld [vmem:[#allocation7 + $0x7b8] sm:$0xff]  ;;  %7884 = vmatpush2.bf16.msra.mxu0 %v10939_v54  ;;  %v18698_v54 = vld [vmem:[#allocation231_spill] sm:$0xff] }
 0x45f   : > { %v11060_v58 = vcombine.high %v2722_v38, %v2726_v5  ;;  %v2586_v63 = vld [vmem:[#allocation7 + $0x358] sm:$0xff]  ;;  %18690 = vst [vmem:[#allocation228_spill] sm:$0xff] %v15593_v51  ;;  %7747 = vmatmul.mubr.bf16.gmra.mxu1 %v18692_v11  ;;  %v11059_v17 = vcombine.low %v2722_v38, %v2726_v5  ;;  %v6867_v49 = vpop.f32.mrf.mxu0  ;;  %7885 = vmatprep.subr.bf16.mxu0 %v10932_v18 }
 0x460   : > { %v2590_v60 = vld [vmem:[#allocation7 + $0x378] sm:$0xff]  ;;  %8077 = vmatpush2.bf16.msra.mxu1 %v11067_v57  ;;  %v6868_v10 = vadd.f32 %v6867_v49, %v18698_v54 }
 0x461   : > { %v18691_v15 = vld [vmem:[#allocation229_spill] sm:$0xff]  ;;  %v18694_v29 = vld [vmem:[#allocation124_spill] sm:$0xff]  ;;  %v10924_v0 = vcombine.high %v2586_v63, %v2590_v60  ;;  %8078 = vmatprep.subr.bf16.mxu1 %v11060_v58 }
 0x462   : > { %v6864_v39 = vadd.f32 %v6863_v43, %v18691_v15  ;;  %v18693_v48 = vld [vmem:[#allocation89_spill] sm:$0xff]  ;;  %7756 = vmatprep.mubr.bf16.mxu1 %v18694_v29  ;;  %v6866_v43 = vadd.f32 %v6865_v8, %v18696_v59  ;;  %v7058_v15 = vpop.f32.mrf.mxu1  ;;  %7886 = vmatpush2.bf16.msra.mxu0 %v10931_v9  ;;  %v18700_v57 = vld [vmem:[#allocation232_spill] sm:$0xff] }
 0x463   : > { %7563 = vmatprep.mubr.bf16.mxu0 %v18693_v48  ;;  %v2714_v37 = vld [vmem:[#allocation7 + $0x758] sm:$0xff]  ;;  %7887 = vmatprep.subr.bf16.mxu0 %v10924_v0 }
 0x464   : > { %v2718_v46 = vld [vmem:[#allocation7 + $0x778] sm:$0xff]  ;;  %v15601_v6 = vadd.f32 %v7056_v3, %v6864_v39  ;;  %v15604_v29 = vadd.f32 %v7058_v15, %v6866_v43  ;;  %v7060_v5 = vpop.f32.mrf.mxu1  ;;  %v6869_v39 = vpop.f32.mrf.mxu0  ;;  %v10923_v3 = vcombine.low %v2586_v63, %v2590_v60  ;;  %8079 = vmatpush2.bf16.msra.mxu1 %v11059_v17  ;;  %v18701_v43 = vld [vmem:[#allocation126_spill] sm:$0xff] }
 0x465   : > { %v11052_v48 = vcombine.high %v2714_v37, %v2718_v46  ;;  %v2578_v11 = vld [vmem:[#allocation7 + $0x318] sm:$0xff]  ;;  %v15607_v8 = vadd.f32 %v7060_v5, %v6868_v10  ;;  %v6870_v59 = vadd.f32 %v6869_v39, %v18700_v57  ;;  %v11051_v18 = vcombine.low %v2714_v37, %v2718_v46  ;;  %7564 = vmatmul.mubr.bf16.gmra.mxu0 %v18701_v43  ;;  %v18704_v39 = vld [vmem:[#allocation127_spill] sm:$0xff] }
 0x466   : > { %18695 = vst [vmem:[#allocation229_spill] sm:$0xff] %v15601_v6  ;;  %18697 = vst [vmem:[#allocation230_spill] sm:$0xff] %v15604_v29  ;;  %v2582_v14 = vld [vmem:[#allocation7 + $0x338] sm:$0xff]  ;;  %v7062_v24 = vpop.f32.mrf.mxu1  ;;  %v6873_v58 = vpop.f32.mrf.mxu0  ;;  %7888 = vmatpush2.bf16.msra.mxu0 %v10923_v3  ;;  %v18710_v3 = vld [vmem:[#allocation235_spill] sm:$0xff] }
 0x467   : > { %v2706_v38 = vld [vmem:[#allocation7 + $0x718] sm:$0xff]  ;;  %18699 = vst [vmem:[#allocation231_spill] sm:$0xff] %v15607_v8  ;;  %8080 = vmatprep.subr.bf16.mxu1 %v11052_v48  ;;  %v10916_v49 = vcombine.high %v2578_v11, %v2582_v14  ;;  %v15613_v60 = vadd.f32 %v7062_v24, %v6870_v59  ;;  %7757 = vmatmul.mubr.bf16.gmra.mxu1 %v18704_v39  ;;  %v18708_v59 = vld [vmem:[#allocation234_spill] sm:$0xff] }
 0x468   : > { %v2710_v42 = vld [vmem:[#allocation7 + $0x738] sm:$0xff]  ;;  %v7066_v5 = vpop.f32.mrf.mxu1  ;;  %v6875_v48 = vpop.f32.mrf.mxu0  ;;  %v10915_v57 = vcombine.low %v2578_v11, %v2582_v14  ;;  %8081 = vmatpush2.bf16.msra.mxu1 %v11051_v18 }
 0x469   : > { %v11044_v15 = vcombine.high %v2706_v38, %v2710_v42  ;;  %v2570_v54 = vld [vmem:[#allocation7 + $0x2d8] sm:$0xff]  ;;  %18702 = vst [vmem:[#allocation232_spill] sm:$0xff] %v15613_v60  ;;  %v11043_v43 = vcombine.low %v2706_v38, %v2710_v42  ;;  %7889 = vmatprep.subr.bf16.mxu0 %v10916_v49 }
 0x46a   : > { %v2574_v51 = vld [vmem:[#allocation7 + $0x2f8] sm:$0xff]  ;;  %v6877_v8 = vpop.f32.mrf.mxu0  ;;  %7890 = vmatpush2.bf16.msra.mxu0 %v10915_v57 }
 0x46b   : > { %v18703_v63 = vld [vmem:[#allocation233_spill] sm:$0xff]  ;;  %v18705_v0 = vld [vmem:[#allocation128_spill] sm:$0xff]  ;;  %v10908_v6 = vcombine.high %v2570_v54, %v2574_v51  ;;  %8082 = vmatprep.subr.bf16.mxu1 %v11044_v15  ;;  %v6878_v11 = vadd.f32 %v6877_v8, %v18710_v3 }
 0x46c   : > { %v6874_v10 = vadd.f32 %v6873_v58, %v18703_v63  ;;  %7573 = vmatprep.mubr.bf16.mxu0 %v18705_v0  ;;  %v2698_v17 = vld [vmem:[#allocation7 + $0x6d8] sm:$0xff]  ;;  %v6876_v58 = vadd.f32 %v6875_v48, %v18708_v59  ;;  %v7068_v63 = vpop.f32.mrf.mxu1  ;;  %8083 = vmatpush2.bf16.msra.mxu1 %v11043_v43 }
 0x46d   : > { %v2702_v37 = vld [vmem:[#allocation7 + $0x6f8] sm:$0xff]  ;;  %7891 = vmatprep.subr.bf16.mxu0 %v10908_v6  ;;  %v18717_v6 = vld [vmem:[#allocation98_spill] sm:$0xff] }
 0x46e   : > { %v18706_v46 = vld [vmem:[#allocation129_spill] sm:$0xff]  ;;  %v15621_v24 = vadd.f32 %v7066_v5, %v6874_v10  ;;  %v11036_v0 = vcombine.high %v2698_v17, %v2702_v37  ;;  %v7070_v42 = vpop.f32.mrf.mxu1  ;;  %v6879_v10 = vpop.f32.mrf.mxu0  ;;  %v10907_v5 = vcombine.low %v2570_v54, %v2574_v51  ;;  %v18712_v18 = vld [vmem:[#allocation236_spill] sm:$0xff]  ;;  %v11035_v49 = vcombine.low %v2698_v17, %v2702_v37  ;;  %v18718_v37 = vld [vmem:[#allocation99_spill] sm:$0xff] }
 0x46f   : > { %7766 = vmatprep.mubr.bf16.mxu1 %v18706_v46  ;;  %v2562_v39 = vld [vmem:[#allocation7 + $0x298] sm:$0xff]  ;;  %v15624_v46 = vadd.f32 %v7068_v63, %v6876_v58  ;;  %v15627_v48 = vadd.f32 %v7070_v42, %v6878_v11  ;;  %v6880_v59 = vadd.f32 %v6879_v10, %v18712_v18  ;;  %v18713_v58 = vld [vmem:[#allocation131_spill] sm:$0xff] }
 0x470   : > { %18707 = vst [vmem:[#allocation233_spill] sm:$0xff] %v15621_v24  ;;  %v2566_v14 = vld [vmem:[#allocation7 + $0x2b8] sm:$0xff]  ;;  %v7072_v29 = vpop.f32.mrf.mxu1  ;;  %v6883_v15 = vpop.f32.mrf.mxu0  ;;  %7574 = vmatmul.mubr.bf16.gmra.mxu0 %v18713_v58  ;;  %8084 = vmatprep.subr.bf16.mxu1 %v11036_v0 }
 0x471   : > { %18709 = vst [vmem:[#allocation234_spill] sm:$0xff] %v15624_v46  ;;  %v2690_v38 = vld [vmem:[#allocation7 + $0x698] sm:$0xff]  ;;  %18711 = vst [vmem:[#allocation235_spill] sm:$0xff] %v15627_v48  ;;  %v10900_v8 = vcombine.high %v2562_v39, %v2566_v14  ;;  %v15633_v51 = vadd.f32 %v7072_v29, %v6880_v59  ;;  %7583 = vmatprep.mubr.bf16.mxu0 %v18717_v6  ;;  %7892 = vmatpush2.bf16.msra.mxu0 %v10907_v5 }
 0x472   : > { %v2694_v9 = vld [vmem:[#allocation7 + $0x6b8] sm:$0xff]  ;;  %v7076_v42 = vpop.f32.mrf.mxu1  ;;  %v6885_v0 = vpop.f32.mrf.mxu0  ;;  %v10899_v18 = vcombine.low %v2562_v39, %v2566_v14  ;;  %8085 = vmatpush2.bf16.msra.mxu1 %v11035_v49 }
 0x473   : > { %v11028_v63 = vcombine.high %v2690_v38, %v2694_v9  ;;  %v2554_v3 = vld [vmem:[#allocation7 + $0x258] sm:$0xff]  ;;  %18714 = vst [vmem:[#allocation236_spill] sm:$0xff] %v15633_v51  ;;  %v11027_v58 = vcombine.low %v2690_v38, %v2694_v9  ;;  %v6886_v59 = vadd.f32 %v6885_v0, %v15304_v16  ;;  %7893 = vmatprep.subr.bf16.mxu0 %v10900_v8 }
 0x474   : > { %v2558_v60 = vld [vmem:[#allocation7 + $0x278] sm:$0xff]  ;;  %v6887_v24 = vpop.f32.mrf.mxu0 }
 0x475   : > { %v18715_v54 = vld [vmem:[#allocation237_spill] sm:$0xff]  ;;  %v18716_v10 = vld [vmem:[#allocation132_spill] sm:$0xff]  ;;  %8086 = vmatprep.subr.bf16.mxu1 %v11028_v63  ;;  %v6888_v39 = vadd.f32 %v6887_v24, %v15306_v26  ;;  %7894 = vmatpush2.bf16.msra.mxu0 %v10899_v18 }
 0x476   : > { %v6884_v11 = vadd.f32 %v6883_v15, %v18715_v54  ;;  %7767 = vmatmul.mubr.bf16.gmra.mxu1 %v18716_v10  ;;  %v2682_v43 = vld [vmem:[#allocation7 + $0x658] sm:$0xff]  ;;  %v7078_v15 = vpop.f32.mrf.mxu1  ;;  %v10892_v54 = vcombine.high %v2554_v3, %v2558_v60 }
 0x477   : > { %v2686_v17 = vld [vmem:[#allocation7 + $0x678] sm:$0xff]  ;;  %7776 = vmatprep.mubr.bf16.mxu1 %v18718_v37  ;;  %v15644_v37 = vadd.f32 %v7078_v15, %v6886_v59  ;;  %8087 = vmatpush2.bf16.msra.mxu1 %v11027_v58  ;;  %v18726_v58 = vld [vmem:[#allocation110_spill] sm:$0xff] }
 0x478   : > { %v15641_v29 = vadd.f32 %v7076_v42, %v6884_v11  ;;  %v11020_v48 = vcombine.high %v2682_v43, %v2686_v17  ;;  %v2546_v6 = vld [vmem:[#allocation7 + $0x218] sm:$0xff]  ;;  %v7080_v9 = vpop.f32.mrf.mxu1  ;;  %v6889_v11 = vpop.f32.mrf.mxu0  ;;  %v10891_v42 = vcombine.low %v2554_v3, %v2558_v60  ;;  %7895 = vmatprep.subr.bf16.mxu0 %v10892_v54  ;;  %v11019_v8 = vcombine.low %v2682_v43, %v2686_v17  ;;  %v18737_v15 = vld [vmem:[#allocation114_spill] sm:$0xff] }
 0x479   : > { %18720 = vst [vmem:[#allocation249_spill] sm:$0xff] %v15644_v37  ;;  %v2550_v14 = vld [vmem:[#allocation7 + $0x238] sm:$0xff]  ;;  %v15647_v16 = vadd.f32 %v7080_v9, %v6888_v39  ;;  %v6890_v49 = vadd.f32 %v6889_v11, %v15308_v56 }
 0x47a   : > { %18719 = vst [vmem:[#allocation237_spill] sm:$0xff] %v15641_v29  ;;  %v2674_v38 = vld [vmem:[#allocation7 + $0x618] sm:$0xff]  ;;  %v7082_v0 = vpop.f32.mrf.mxu1  ;;  %v6893_v63 = vpop.f32.mrf.mxu0  ;;  %8088 = vmatprep.subr.bf16.mxu1 %v11020_v48  ;;  %v10884_v26 = vcombine.high %v2546_v6, %v2550_v14  ;;  %7896 = vmatpush2.bf16.msra.mxu0 %v10891_v42  ;;  %v10883_v17 = vcombine.low %v2546_v6, %v2550_v14  ;;  %v18739_v29 = vld [vmem:[#allocation119_spill] sm:$0xff] }
 0x47b   : > { %v2678_v5 = vld [vmem:[#allocation7 + $0x638] sm:$0xff]  ;;  %18721 = vst [vmem:[#allocation250_spill] sm:$0xff] %v15647_v16  ;;  %v15653_v57 = vadd.f32 %v7082_v0, %v6890_v49  ;;  %v6894_v60 = vadd.f32 %v6893_v63, %v15313_v21  ;;  %8089 = vmatpush2.bf16.msra.mxu1 %v11019_v8  ;;  %v11132_v21 = vcombine.high %v15498_v19, %v15500_v20 }
 0x47c   : > { %v18722_v59 = vld [vmem:[#allocation137_spill] sm:$0xff]  ;;  %v11012_v24 = vcombine.high %v2674_v38, %v2678_v5  ;;  %v7086_v3 = vpop.f32.mrf.mxu1  ;;  %v18724_v18 = vld [vmem:[#allocation104_spill] sm:$0xff]  ;;  %v6895_v43 = vpop.f32.mrf.mxu0  ;;  %v11011_v48 = vcombine.low %v2674_v38, %v2678_v5  ;;  %7897 = vmatprep.subr.bf16.mxu0 %v10884_v26  ;;  %v11260_v42 = vcombine.high %v15515_v22, %v15517_v4  ;;  %v18730_v26 = vld [vmem:[#allocation107_spill] sm:$0xff] }
 0x47d   : > { %7584 = vmatmul.mubr.bf16.gmra.mxu0 %v18722_v59  ;;  %18723 = vst [vmem:[#allocation251_spill] sm:$0xff] %v15653_v57  ;;  %v18725_v56 = vld [vmem:[#allocation105_spill] sm:$0xff]  ;;  %v15661_v39 = vadd.f32 %v7086_v3, %v6894_v60  ;;  %v6896_v9 = vadd.f32 %v6895_v43, %v15318_v34  ;;  %v18732_v3 = vld [vmem:[#allocation106_spill] sm:$0xff] }
 0x47e   : > { %7777 = vmatmul.mubr.bf16.gmra.mxu1 %v18724_v18  ;;  %7593 = vmatprep.mubr.bf16.mxu0 %v18725_v56  ;;  %v7088_v11 = vpop.f32.mrf.mxu1  ;;  %v6897_v49 = vpop.f32.mrf.mxu0  ;;  %v18733_v43 = vld [vmem:[#allocation109_spill] sm:$0xff] }
 0x47f   : > { %7786 = vmatprep.mubr.bf16.mxu1 %v18726_v58  ;;  %18727 = vst [vmem:[#allocation252_spill] sm:$0xff] %v15661_v39  ;;  %8090 = vmatprep.subr.bf16.mxu1 %v11012_v24  ;;  %v15668_v6 = vadd.f32 %v7088_v11, %v6896_v9  ;;  %v6898_v14 = vadd.f32 %v6897_v49, %v15322_v62  ;;  %v18736_v24 = vld [vmem:[#allocation115_spill] sm:$0xff] }
 0x480   : > { %v7090_v38 = vpop.f32.mrf.mxu1  ;;  %v6899_v5 = vpop.f32.mrf.mxu0  ;;  %7898 = vmatpush2.bf16.msra.mxu0 %v10883_v17  ;;  %8091 = vmatpush2.bf16.msra.mxu1 %v11011_v48 }
 0x481   : > { %18728 = vst [vmem:[#allocation253_spill] sm:$0xff] %v15668_v6  ;;  %v15671_v0 = vadd.f32 %v7090_v38, %v6898_v14  ;;  %v6900_v34 = vadd.f32 %v6899_v5, %v15324_v47  ;;  %8253 = vmatprep.subr.bf16.mxu0 %v11132_v21  ;;  %8446 = vmatprep.subr.bf16.mxu1 %v11260_v42  ;;  %v18734_v47 = vld [vmem:[#allocation108_spill] sm:$0xff] }
 0x482   : > { %v7092_v8 = vpop.f32.mrf.mxu1  ;;  %v7129_v63 = vpop.f32.mrf.mxu0 }
 0x483   : > { %18729 = vst [vmem:[#allocation254_spill] sm:$0xff] %v15671_v0  ;;  %v15677_v60 = vadd.f32 %v7092_v8, %v6900_v34 }
 0x484   : > { %v7322_v62 = vpop.f32.mrf.mxu1  ;;  %v7131_v48 = vpop.f32.mrf.mxu0 }
 0x485   : > { %7594 = vmatmul.mubr.bf16.gmra.mxu0 %v18730_v26  ;;  %18731 = vst [vmem:[#allocation255_spill] sm:$0xff] %v15677_v60  ;;  %v15681_v17 = vadd.f32 %v7322_v62, %v7129_v63  ;;  %v18735_v63 = vld [vmem:[#allocation32_spill] sm:$0xff] }
 0x486   : > { %7787 = vmatmul.mubr.bf16.gmra.mxu1 %v18732_v3  ;;  %7603 = vmatprep.mubr.bf16.mxu0 %v18733_v43  ;;  %v7324_v11 = vpop.f32.mrf.mxu1  ;;  %v7133_v49 = vpop.f32.mrf.mxu0 }
 0x487   : > { %7796 = vmatprep.mubr.bf16.mxu1 %v18734_v47  ;;  %v15686_v21 = vadd.f32 %v7324_v11, %v7131_v48  ;;  %v18738_v48 = vld [vmem:[#allocation116_spill] sm:$0xff] }
 0x488   : > { %v7326_v42 = vpop.f32.mrf.mxu1  ;;  %v7135_v38 = vpop.f32.mrf.mxu0 }
 0x489   : > { %v15688_v14 = vadd.f32 %v7326_v42, %v7133_v49 }
 0x48a   : > { %v7328_v5 = vpop.f32.mrf.mxu1  ;;  %v7139_v8 = vpop.f32.mrf.mxu0 }
 0x48b   : > { %v15690_v34 = vadd.f32 %v7328_v5, %v7135_v38 }
 0x48c   : > { %v7332_v62 = vpop.f32.mrf.mxu1  ;;  %v7141_v11 = vpop.f32.mrf.mxu0 }
 0x48d   : > { %7604 = vmatmul.mubr.bf16.gmra.mxu0 %v18735_v63  ;;  %v15695_v9 = vadd.f32 %v7332_v62, %v7139_v8  ;;  %v18740_v8 = vld [vmem:[#allocation120_spill] sm:$0xff]  ;;  %v18741_v62 = vld [vmem:[#allocation66_spill] sm:$0xff] }
 0x48e   : > { %7797 = vmatmul.mubr.bf16.gmra.mxu1 %v18736_v24  ;;  %7613 = vmatprep.mubr.bf16.mxu0 %v18737_v15  ;;  %v7334_v54 = vpop.f32.mrf.mxu1  ;;  %v7143_v42 = vpop.f32.mrf.mxu0 }
 0x48f   : > { %7806 = vmatprep.mubr.bf16.mxu1 %v18738_v48  ;;  %v15698_v49 = vadd.f32 %v7334_v54, %v7141_v11  ;;  %v18742_v54 = vld [vmem:[#allocation83_spill] sm:$0xff] }
 0x490   : > { %v7336_v39 = vpop.f32.mrf.mxu1  ;;  %v7145_v5 = vpop.f32.mrf.mxu0 }
 0x491   : > { %v15700_v38 = vadd.f32 %v7336_v39, %v7143_v42 }
 0x492   : > { %v7338_v0 = vpop.f32.mrf.mxu1  ;;  %v7149_v60 = vpop.f32.mrf.mxu0 }
 0x493   : > { %v15702_v6 = vadd.f32 %v7338_v0, %v7145_v5 }
 0x494   : > { %v7342_v16 = vpop.f32.mrf.mxu1  ;;  %v7151_v11 = vpop.f32.mrf.mxu0 }
 0x495   : > { %7614 = vmatmul.mubr.bf16.gmra.mxu0 %v18739_v29  ;;  %v15707_v37 = vadd.f32 %v7342_v16, %v7149_v60  ;;  %v18744_v16 = vld [vmem:[#allocation138_spill] sm:$0xff]  ;;  %v18745_v60 = vld [vmem:[#allocation125_spill] sm:$0xff] }
 0x496   : > { %7807 = vmatmul.mubr.bf16.gmra.mxu1 %v18740_v8  ;;  %7623 = vmatprep.mubr.bf16.mxu0 %v18741_v62  ;;  %v7344_v57 = vpop.f32.mrf.mxu1  ;;  %v7153_v42 = vpop.f32.mrf.mxu0  ;;  %v18743_v8 = vld [vmem:[#allocation121_spill] sm:$0xff] }
 0x497   : > { %7816 = vmatprep.mubr.bf16.mxu1 %v18742_v54  ;;  %v15710_v39 = vadd.f32 %v7344_v57, %v7151_v11  ;;  %v18746_v57 = vld [vmem:[#allocation139_spill] sm:$0xff] }
 0x498   : > { %v7346_v46 = vpop.f32.mrf.mxu1  ;;  %v7155_v5 = vpop.f32.mrf.mxu0 }
 0x499   : > { %v15712_v0 = vadd.f32 %v7346_v46, %v7153_v42 }
 0x49a   : > { %v7348_v51 = vpop.f32.mrf.mxu1  ;;  %v7159_v48 = vpop.f32.mrf.mxu0 }
 0x49b   : > { %v15714_v29 = vadd.f32 %v7348_v51, %v7155_v5 }
 0x49c   : > { %v7352_v62 = vpop.f32.mrf.mxu1  ;;  %v7161_v11 = vpop.f32.mrf.mxu0 }
 0x49d   : > { %7624 = vmatmul.mubr.bf16.gmra.mxu0 %v18743_v8  ;;  %v15719_v54 = vadd.f32 %v7352_v62, %v7159_v48  ;;  %v18748_v48 = vld [vmem:[#allocation141_spill] sm:$0xff]  ;;  %v18749_v62 = vld [vmem:[#allocation130_spill] sm:$0xff] }
 0x49e   : > { %7817 = vmatmul.mubr.bf16.gmra.mxu1 %v18744_v16  ;;  %7633 = vmatprep.mubr.bf16.mxu0 %v18745_v60  ;;  %v7354_v15 = vpop.f32.mrf.mxu1  ;;  %v7163_v42 = vpop.f32.mrf.mxu0  ;;  %v18747_v16 = vld [vmem:[#allocation140_spill] sm:$0xff] }
 0x49f   : > { %7826 = vmatprep.mubr.bf16.mxu1 %v18746_v57  ;;  %v15722_v46 = vadd.f32 %v7354_v15, %v7161_v11  ;;  %v18751_v15 = vld [vmem:[#allocation142_spill] sm:$0xff] }
 0x4a0   : > { %v7356_v24 = vpop.f32.mrf.mxu1  ;;  %v7165_v5 = vpop.f32.mrf.mxu0 }
 0x4a1   : > { %v15724_v51 = vadd.f32 %v7356_v24, %v7163_v42 }
 0x4a2   : > { %v7358_v63 = vpop.f32.mrf.mxu1  ;;  %v7169_v47 = vpop.f32.mrf.mxu0 }
 0x4a3   : > { %v15726_v8 = vadd.f32 %v7358_v63, %v7165_v5 }
 0x4a4   : > { %v7362_v60 = vpop.f32.mrf.mxu1  ;;  %v7171_v11 = vpop.f32.mrf.mxu0 }
 0x4a5   : > { %7634 = vmatmul.mubr.bf16.gmra.mxu0 %v18747_v16  ;;  %v15731_v57 = vadd.f32 %v7362_v60, %v7169_v47  ;;  %v18756_v47 = vld [vmem:[#allocation133_spill] sm:$0xff]  ;;  %v18757_v60 = vld [vmem:[#allocation136_spill] sm:$0xff] }
 0x4a6   : > { %7827 = vmatmul.mubr.bf16.gmra.mxu1 %v18748_v48  ;;  %7643 = vmatprep.mubr.bf16.mxu0 %v18749_v62  ;;  %v7364_v43 = vpop.f32.mrf.mxu1  ;;  %v7173_v42 = vpop.f32.mrf.mxu0  ;;  %v18755_v48 = vld [vmem:[#allocation135_spill] sm:$0xff] }
 0x4a7   : > { %18750 = vst [vmem:[#allocation256_spill] sm:$0xff] %v15731_v57  ;;  %7836 = vmatprep.mubr.bf16.mxu1 %v18751_v15  ;;  %v15734_v24 = vadd.f32 %v7364_v43, %v7171_v11  ;;  %v18759_v43 = vld [vmem:[#allocation134_spill] sm:$0xff] }
 0x4a8   : > { %v7366_v3 = vpop.f32.mrf.mxu1  ;;  %v7175_v5 = vpop.f32.mrf.mxu0 }
 0x4a9   : > { %18752 = vst [vmem:[#allocation257_spill] sm:$0xff] %v15734_v24  ;;  %v15736_v63 = vadd.f32 %v7366_v3, %v7173_v42  ;;  %v18781_v24 = vld [vmem:[#allocation38_spill] sm:$0xff] }
 0x4aa   : > { %v7368_v26 = vpop.f32.mrf.mxu1  ;;  %v7179_v58 = vpop.f32.mrf.mxu0 }
 0x4ab   : > { %18753 = vst [vmem:[#allocation258_spill] sm:$0xff] %v15736_v63  ;;  %v15738_v16 = vadd.f32 %v7368_v26, %v7175_v5 }
 0x4ac   : > { %v7372_v62 = vpop.f32.mrf.mxu1  ;;  %v7181_v11 = vpop.f32.mrf.mxu0 }
 0x4ad   : > { %18754 = vst [vmem:[#allocation259_spill] sm:$0xff] %v15738_v16  ;;  %7644 = vmatmul.mubr.bf16.gmra.mxu0 %v18755_v48  ;;  %v15743_v15 = vadd.f32 %v7372_v62, %v7179_v58  ;;  %v18764_v58 = vld [vmem:[#allocation144_spill] sm:$0xff]  ;;  %v18765_v62 = vld [vmem:[#allocation145_spill] sm:$0xff] }
 0x4ae   : > { %7837 = vmatmul.mubr.bf16.gmra.mxu1 %v18756_v47  ;;  %7653 = vmatprep.mubr.bf16.mxu0 %v18757_v60  ;;  %v7374_v56 = vpop.f32.mrf.mxu1  ;;  %v7183_v42 = vpop.f32.mrf.mxu0  ;;  %v18763_v47 = vld [vmem:[#allocation143_spill] sm:$0xff] }
 0x4af   : > { %18758 = vst [vmem:[#allocation260_spill] sm:$0xff] %v15743_v15  ;;  %7846 = vmatprep.mubr.bf16.mxu1 %v18759_v43  ;;  %v15746_v3 = vadd.f32 %v7374_v56, %v7181_v11  ;;  %v18767_v56 = vld [vmem:[#allocation146_spill] sm:$0xff] }
 0x4b0   : > { %v7376_v18 = vpop.f32.mrf.mxu1  ;;  %v7185_v5 = vpop.f32.mrf.mxu0 }
 0x4b1   : > { %18760 = vst [vmem:[#allocation261_spill] sm:$0xff] %v15746_v3  ;;  %v15748_v26 = vadd.f32 %v7376_v18, %v7183_v42 }
 0x4b2   : > { %v7378_v59 = vpop.f32.mrf.mxu1  ;;  %v7189_v10 = vpop.f32.mrf.mxu0 }
 0x4b3   : > { %18761 = vst [vmem:[#allocation262_spill] sm:$0xff] %v15748_v26  ;;  %v15750_v48 = vadd.f32 %v7378_v59, %v7185_v5 }
 0x4b4   : > { %v7382_v60 = vpop.f32.mrf.mxu1  ;;  %v7191_v11 = vpop.f32.mrf.mxu0 }
 0x4b5   : > { %18762 = vst [vmem:[#allocation263_spill] sm:$0xff] %v15750_v48  ;;  %7654 = vmatmul.mubr.bf16.gmra.mxu0 %v18763_v47  ;;  %v15755_v43 = vadd.f32 %v7382_v60, %v7189_v10  ;;  %v18772_v10 = vld [vmem:[#allocation148_spill] sm:$0xff] }
 0x4b6   : > { %7847 = vmatmul.mubr.bf16.gmra.mxu1 %v18764_v58  ;;  %7663 = vmatprep.mubr.bf16.mxu0 %v18765_v62  ;;  %v7384_v3 = vpop.f32.mrf.mxu1  ;;  %v7193_v42 = vpop.f32.mrf.mxu0  ;;  %v18771_v58 = vld [vmem:[#allocation147_spill] sm:$0xff]  ;;  %v18773_v60 = vld [vmem:[#allocation28_spill] sm:$0xff] }
 0x4b7   : > { %18766 = vst [vmem:[#allocation264_spill] sm:$0xff] %v15755_v43  ;;  %7856 = vmatprep.mubr.bf16.mxu1 %v18767_v56  ;;  %v15758_v18 = vadd.f32 %v7384_v3, %v7191_v11  ;;  %v18775_v3 = vld [vmem:[#allocation29_spill] sm:$0xff] }
 0x4b8   : > { %v7386_v26 = vpop.f32.mrf.mxu1  ;;  %v7195_v5 = vpop.f32.mrf.mxu0  ;;  %v2918_v43 = vld [vmem:[#allocation7 + $0xdb8] sm:$0xff] }
 0x4b9   : > { %18768 = vst [vmem:[#allocation265_spill] sm:$0xff] %v15758_v18  ;;  %v15760_v59 = vadd.f32 %v7386_v26, %v7193_v42 }
 0x4ba   : > { %v7388_v48 = vpop.f32.mrf.mxu1  ;;  %v7199_v15 = vpop.f32.mrf.mxu0 }
 0x4bb   : > { %18769 = vst [vmem:[#allocation266_spill] sm:$0xff] %v15760_v59  ;;  %v15762_v47 = vadd.f32 %v7388_v48, %v7195_v5  ;;  %v2786_v59 = vld [vmem:[#allocation7 + $0x998] sm:$0xff] }
 0x4bc   : > { %v7392_v62 = vpop.f32.mrf.mxu1  ;;  %v7201_v11 = vpop.f32.mrf.mxu0  ;;  %v2790_v48 = vld [vmem:[#allocation7 + $0x9b8] sm:$0xff] }
 0x4bd   : > { %18770 = vst [vmem:[#allocation267_spill] sm:$0xff] %v15762_v47  ;;  %7664 = vmatmul.mubr.bf16.gmra.mxu0 %v18771_v58  ;;  %v15767_v56 = vadd.f32 %v7392_v62, %v7199_v15  ;;  %v2914_v47 = vld [vmem:[#allocation7 + $0xd98] sm:$0xff]  ;;  %v11124_v63 = vcombine.high %v2786_v59, %v2790_v48  ;;  %v18779_v62 = vld [vmem:[#allocation35_spill] sm:$0xff] }
 0x4be   : > { %7857 = vmatmul.mubr.bf16.gmra.mxu1 %v18772_v10  ;;  %7899 = vmatprep.mubr.bf16.mxu0 %v18773_v60  ;;  %v7394_v18 = vpop.f32.mrf.mxu1  ;;  %v7203_v42 = vpop.f32.mrf.mxu0 }
 0x4bf   : > { %18774 = vst [vmem:[#allocation28_spill] sm:$0xff] %v15767_v56  ;;  %8092 = vmatprep.mubr.bf16.mxu1 %v18775_v3  ;;  %v15770_v26 = vadd.f32 %v7394_v18, %v7201_v11  ;;  %v11252_v3 = vcombine.high %v2914_v47, %v2918_v43  ;;  %v2778_v56 = vld [vmem:[#allocation7 + $0x958] sm:$0xff] }
 0x4c0   : > { %v7396_v5 = vpop.f32.mrf.mxu1  ;;  %v7205_v16 = vpop.f32.mrf.mxu0  ;;  %v2782_v18 = vld [vmem:[#allocation7 + $0x978] sm:$0xff] }
 0x4c1   : > { %18776 = vst [vmem:[#allocation29_spill] sm:$0xff] %v15770_v26  ;;  %v15772_v58 = vadd.f32 %v7396_v5, %v7203_v42  ;;  %v18780_v26 = vld [vmem:[#allocation37_spill] sm:$0xff]  ;;  %v18783_v5 = vld [vmem:[#allocation40_spill] sm:$0xff] }
 0x4c2   : > { %v7398_v10 = vpop.f32.mrf.mxu1  ;;  %v7209_v15 = vpop.f32.mrf.mxu0 }
 0x4c3   : > { %18777 = vst [vmem:[#allocation268_spill] sm:$0xff] %v15772_v58  ;;  %v15774_v60 = vadd.f32 %v7398_v10, %v7205_v16  ;;  %v18784_v16 = vcombine.low %v15498_v19, %v15500_v20  ;;  %v18785_v58 = vcombine.low %v15515_v22, %v15517_v4  ;;  %v2898_v19 = vld [vmem:[#allocation7 + $0xd18] sm:$0xff]  ;;  %v11243_v4 = vcombine.low %v2906_v40, %v2910_v32 }
 0x4c4   : > { %v7402_v11 = vpop.f32.mrf.mxu1  ;;  %v7211_v10 = vpop.f32.mrf.mxu0  ;;  %v2902_v20 = vld [vmem:[#allocation7 + $0xd38] sm:$0xff] }
 0x4c5   : > { %18778 = vst [vmem:[#allocation269_spill] sm:$0xff] %v15774_v60  ;;  %7900 = vmatmul.mubr.bf16.vlgmr.msra.gmra.mxu0 %v18779_v62  ;;  %v15779_v42 = vadd.f32 %v7402_v11, %v7209_v15  ;;  %v11123_v62 = vcombine.low %v2786_v59, %v2790_v48  ;;  %v11244_v11 = vcombine.high %v2906_v40, %v2910_v32  ;;  %v18793_v32 = vld [vmem:[#allocation48_spill] sm:$0xff] }
 0x4c6   : > { %8093 = vmatmul.mubr.bf16.vlgmr.msra.gmra.mxu1 %v18780_v26  ;;  %7909 = vmatprep.mubr.bf16.mxu0 %v18781_v24  ;;  %v7404_v60 = vpop.f32.mrf.mxu1  ;;  %v11251_v26 = vcombine.low %v2914_v47, %v2918_v43  ;;  %v11116_v24 = vcombine.high %v2778_v56, %v2782_v18  ;;  %v7213_v15 = vpop.f32.mrf.mxu0  ;;  %v11115_v48 = vcombine.low %v2778_v56, %v2782_v18  ;;  %v2890_v56 = vld [vmem:[#allocation7 + $0xcd8] sm:$0xff] }
 0x4c7   : > { %18782 = vst [vmem:[#allocation35_spill] sm:$0xff] %v15779_v42  ;;  %8102 = vmatprep.mubr.bf16.mxu1 %v18783_v5  ;;  %8254 = vmatpush1.bf16.msra.mxu0 %v18784_v16  ;;  %v15788_v2 = vadd.f32 %v7404_v60, %v7211_v10  ;;  %v2770_v5 = vld [vmem:[#allocation7 + $0x918] sm:$0xff]  ;;  %v11236_v60 = vcombine.high %v2898_v19, %v2902_v20 }
 0x4c8   : > { %8447 = vmatpush1.bf16.msra.mxu1 %v18785_v58  ;;  %8255 = vmatprep.subr.bf16.mxu0 %v11124_v63  ;;  %v2774_v42 = vld [vmem:[#allocation7 + $0x938] sm:$0xff]  ;;  %v7406_v57 = vpop.f32.mrf.mxu1  ;;  %v7215_v59 = vpop.f32.mrf.mxu0 }
 0x4c9   : > { %18786 = vst [vmem:[#allocation37_spill] sm:$0xff] %v15788_v2  ;;  %8448 = vmatprep.subr.bf16.mxu1 %v11252_v3  ;;  %v15790_v16 = vadd.f32 %v7406_v57, %v7213_v15  ;;  %v11108_v63 = vcombine.high %v2770_v5, %v2774_v42  ;;  %v18789_v58 = vld [vmem:[#allocation45_spill] sm:$0xff]  ;;  %v18790_v57 = vld [vmem:[#allocation46_spill] sm:$0xff]  ;;  %v18791_v15 = vld [vmem:[#allocation47_spill] sm:$0xff] }
 0x4ca   : > { %v7408_v22 = vpop.f32.mrf.mxu1  ;;  %v7219_v43 = vpop.f32.mrf.mxu0  ;;  %v2762_v3 = vld [vmem:[#allocation7 + $0x8d8] sm:$0xff] }
 0x4cb   : > { %18787 = vst [vmem:[#allocation38_spill] sm:$0xff] %v15790_v16  ;;  %8256 = vmatpush1.bf16.msra.mxu0 %v11123_v62  ;;  %v15792_v47 = vadd.f32 %v7408_v22, %v7215_v59  ;;  %v2766_v10 = vld [vmem:[#allocation7 + $0x8f8] sm:$0xff] }
 0x4cc   : > { %8449 = vmatpush1.bf16.msra.mxu1 %v11251_v26  ;;  %8257 = vmatprep.subr.bf16.mxu0 %v11116_v24  ;;  %v7412_v2 = vpop.f32.mrf.mxu1  ;;  %v2894_v18 = vld [vmem:[#allocation7 + $0xcf8] sm:$0xff]  ;;  %v7221_v40 = vpop.f32.mrf.mxu0  ;;  %v11107_v26 = vcombine.low %v2770_v5, %v2774_v42  ;;  %v11100_v59 = vcombine.high %v2762_v3, %v2766_v10  ;;  %v11099_v42 = vcombine.low %v2762_v3, %v2766_v10 }
 0x4cd   : > { %18788 = vst [vmem:[#allocation40_spill] sm:$0xff] %v15792_v47  ;;  %7910 = vmatmul.mubr.bf16.gmra.mxu0 %v18789_v58  ;;  %8450 = vmatprep.subr.bf16.mxu1 %v11244_v11  ;;  %v15797_v62 = vadd.f32 %v7412_v2, %v7219_v43  ;;  %v11235_v11 = vcombine.low %v2898_v19, %v2902_v20  ;;  %v2758_v47 = vld [vmem:[#allocation7 + $0x8b8] sm:$0xff] }
 0x4ce   : > { %8103 = vmatmul.mubr.bf16.gmra.mxu1 %v18790_v57  ;;  %7919 = vmatprep.mubr.bf16.mxu0 %v18791_v15  ;;  %v7414_v24 = vpop.f32.mrf.mxu1  ;;  %v7223_v58 = vpop.f32.mrf.mxu0  ;;  %v11228_v57 = vcombine.high %v2890_v56, %v2894_v18  ;;  %v2754_v15 = vld [vmem:[#allocation7 + $0x898] sm:$0xff]  ;;  %v11227_v19 = vcombine.low %v2890_v56, %v2894_v18 }
 0x4cf   : > { %18792 = vst [vmem:[#allocation45_spill] sm:$0xff] %v15797_v62  ;;  %8112 = vmatprep.mubr.bf16.mxu1 %v18793_v32  ;;  %8258 = vmatpush1.bf16.msra.mxu0 %v11115_v48  ;;  %v15800_v22 = vadd.f32 %v7414_v24, %v7221_v40  ;;  %v2882_v2 = vld [vmem:[#allocation7 + $0xc98] sm:$0xff]  ;;  %v11092_v20 = vcombine.high %v2754_v15, %v2758_v47 }
 0x4d0   : > { %8451 = vmatpush1.bf16.msra.mxu1 %v11243_v4  ;;  %8259 = vmatprep.subr.bf16.mxu0 %v11108_v63  ;;  %v7416_v16 = vpop.f32.mrf.mxu1  ;;  %v2886_v43 = vld [vmem:[#allocation7 + $0xcb8] sm:$0xff]  ;;  %v7225_v32 = vpop.f32.mrf.mxu0  ;;  %v18797_v63 = vld [vmem:[#allocation50_spill] sm:$0xff] }
 0x4d1   : > { %18794 = vst [vmem:[#allocation46_spill] sm:$0xff] %v15800_v22  ;;  %8452 = vmatprep.subr.bf16.mxu1 %v11236_v60  ;;  %v15802_v62 = vadd.f32 %v7416_v16, %v7223_v58  ;;  %v11220_v60 = vcombine.high %v2882_v2, %v2886_v43  ;;  %v2746_v40 = vld [vmem:[#allocation7 + $0x858] sm:$0xff]  ;;  %v18798_v16 = vld [vmem:[#allocation51_spill] sm:$0xff] }
 0x4d2   : > { %v7418_v5 = vpop.f32.mrf.mxu1  ;;  %v7229_v4 = vpop.f32.mrf.mxu0  ;;  %v2750_v24 = vld [vmem:[#allocation7 + $0x878] sm:$0xff] }
 0x4d3   : > { %18795 = vst [vmem:[#allocation47_spill] sm:$0xff] %v15802_v62  ;;  %8260 = vmatpush1.bf16.msra.mxu0 %v11107_v26  ;;  %v15804_v48 = vadd.f32 %v7418_v5, %v7225_v32  ;;  %v18799_v58 = vld [vmem:[#allocation52_spill] sm:$0xff]  ;;  %v18801_v56 = vld [vmem:[#allocation53_spill] sm:$0xff]  ;;  %v11084_v32 = vcombine.high %v2746_v40, %v2750_v24 }
 0x4d4   : > { %8453 = vmatpush1.bf16.msra.mxu1 %v11235_v11  ;;  %8261 = vmatprep.subr.bf16.mxu0 %v11100_v59  ;;  %v7422_v22 = vpop.f32.mrf.mxu1  ;;  %v2874_v3 = vld [vmem:[#allocation7 + $0xc58] sm:$0xff]  ;;  %v7231_v18 = vpop.f32.mrf.mxu0  ;;  %v11091_v11 = vcombine.low %v2754_v15, %v2758_v47  ;;  %v11083_v47 = vcombine.low %v2746_v40, %v2750_v24 }
 0x4d5   : > { %18796 = vst [vmem:[#allocation48_spill] sm:$0xff] %v15804_v48  ;;  %7920 = vmatmul.mubr.bf16.gmra.mxu0 %v18797_v63  ;;  %8454 = vmatprep.subr.bf16.mxu1 %v11228_v57  ;;  %v2878_v10 = vld [vmem:[#allocation7 + $0xc78] sm:$0xff]  ;;  %v15809_v26 = vadd.f32 %v7422_v22, %v7229_v4  ;;  %v11219_v57 = vcombine.low %v2882_v2, %v2886_v43 }
 0x4d6   : > { %8113 = vmatmul.mubr.bf16.gmra.mxu1 %v18798_v16  ;;  %7929 = vmatprep.mubr.bf16.mxu0 %v18799_v58  ;;  %v7424_v59 = vpop.f32.mrf.mxu1  ;;  %v7233_v63 = vpop.f32.mrf.mxu0  ;;  %v11212_v16 = vcombine.high %v2874_v3, %v2878_v10  ;;  %v2738_v58 = vld [vmem:[#allocation7 + $0x818] sm:$0xff]  ;;  %v11211_v2 = vcombine.low %v2874_v3, %v2878_v10 }
 0x4d7   : > { %18800 = vst [vmem:[#allocation50_spill] sm:$0xff] %v15809_v26  ;;  %8122 = vmatprep.mubr.bf16.mxu1 %v18801_v56  ;;  %8262 = vmatpush1.bf16.msra.mxu0 %v11099_v42  ;;  %v15812_v5 = vadd.f32 %v7424_v59, %v7231_v18  ;;  %v2742_v48 = vld [vmem:[#allocation7 + $0x838] sm:$0xff] }
 0x4d8   : > { %8455 = vmatpush1.bf16.msra.mxu1 %v11227_v19  ;;  %8263 = vmatprep.subr.bf16.mxu0 %v11092_v20  ;;  %v7426_v62 = vpop.f32.mrf.mxu1  ;;  %v2866_v22 = vld [vmem:[#allocation7 + $0xc18] sm:$0xff]  ;;  %v7235_v56 = vpop.f32.mrf.mxu0  ;;  %v11076_v43 = vcombine.high %v2738_v58, %v2742_v48  ;;  %v18805_v20 = vld [vmem:[#allocation54_spill] sm:$0xff] }
 0x4d9   : > { %18802 = vst [vmem:[#allocation51_spill] sm:$0xff] %v15812_v5  ;;  %8456 = vmatprep.subr.bf16.mxu1 %v11220_v60  ;;  %v2870_v4 = vld [vmem:[#allocation7 + $0xc38] sm:$0xff]  ;;  %v15814_v26 = vadd.f32 %v7426_v62, %v7233_v63  ;;  %v18806_v62 = vld [vmem:[#allocation55_spill] sm:$0xff] }
 0x4da   : > { %v7428_v15 = vpop.f32.mrf.mxu1  ;;  %v7239_v19 = vpop.f32.mrf.mxu0  ;;  %v11204_v60 = vcombine.high %v2866_v22, %v2870_v4  ;;  %v2858_v18 = vld [vmem:[#allocation7 + $0xbd8] sm:$0xff] }
 0x4db   : > { %18803 = vst [vmem:[#allocation52_spill] sm:$0xff] %v15814_v26  ;;  %8264 = vmatpush1.bf16.msra.mxu0 %v11091_v11  ;;  %v15816_v42 = vadd.f32 %v7428_v15, %v7235_v56  ;;  %v2862_v59 = vld [vmem:[#allocation7 + $0xbf8] sm:$0xff] }
 0x4dc   : > { %8457 = vmatpush1.bf16.msra.mxu1 %v11219_v57  ;;  %8265 = vmatprep.subr.bf16.mxu0 %v11084_v32  ;;  %v7432_v5 = vpop.f32.mrf.mxu1  ;;  %v18807_v63 = vld [vmem:[#allocation56_spill] sm:$0xff]  ;;  %v18809_v3 = vld [vmem:[#allocation57_spill] sm:$0xff]  ;;  %v7241_v10 = vpop.f32.mrf.mxu0  ;;  %v11075_v57 = vcombine.low %v2738_v58, %v2742_v48  ;;  %v11196_v56 = vcombine.high %v2858_v18, %v2862_v59  ;;  %v11195_v48 = vcombine.low %v2858_v18, %v2862_v59 }
 0x4dd   : > { %18804 = vst [vmem:[#allocation53_spill] sm:$0xff] %v15816_v42  ;;  %7930 = vmatmul.mubr.bf16.gmra.mxu0 %v18805_v20  ;;  %8458 = vmatprep.subr.bf16.mxu1 %v11212_v16  ;;  %v2986_v40 = vld [vmem:[#allocation7 + $0xfd8] sm:$0xff]  ;;  %v15821_v11 = vadd.f32 %v7432_v5, %v7239_v19  ;;  %v11203_v16 = vcombine.low %v2866_v22, %v2870_v4 }
 0x4de   : > { %8123 = vmatmul.mubr.bf16.gmra.mxu1 %v18806_v62  ;;  %7939 = vmatprep.mubr.bf16.mxu0 %v18807_v63  ;;  %v2990_v24 = vld [vmem:[#allocation7 + $0xff8] sm:$0xff]  ;;  %v7434_v32 = vpop.f32.mrf.mxu1  ;;  %v7243_v20 = vpop.f32.mrf.mxu0 }
 0x4df   : > { %18808 = vst [vmem:[#allocation54_spill] sm:$0xff] %v15821_v11  ;;  %8132 = vmatprep.mubr.bf16.mxu1 %v18809_v3  ;;  %8266 = vmatpush1.bf16.msra.mxu0 %v11083_v47  ;;  %v15824_v15 = vadd.f32 %v7434_v32, %v7241_v10  ;;  %v11324_v62 = vcombine.high %v2986_v40, %v2990_v24  ;;  %v2850_v63 = vld [vmem:[#allocation7 + $0xb98] sm:$0xff] }
 0x4e0   : > { %8459 = vmatpush1.bf16.msra.mxu1 %v11211_v2  ;;  %8267 = vmatprep.subr.bf16.mxu0 %v11076_v43  ;;  %v2854_v42 = vld [vmem:[#allocation7 + $0xbb8] sm:$0xff]  ;;  %v7436_v26 = vpop.f32.mrf.mxu1  ;;  %v7245_v3 = vpop.f32.mrf.mxu0  ;;  %v11323_v22 = vcombine.low %v2986_v40, %v2990_v24 }
 0x4e1   : > { %18810 = vst [vmem:[#allocation55_spill] sm:$0xff] %v15824_v15  ;;  %8460 = vmatprep.subr.bf16.mxu1 %v11204_v60  ;;  %v2978_v5 = vld [vmem:[#allocation7 + $0xf98] sm:$0xff]  ;;  %v15826_v11 = vadd.f32 %v7436_v26, %v7243_v20  ;;  %v11188_v4 = vcombine.high %v2850_v63, %v2854_v42 }
 0x4e2   : > { %v2982_v19 = vld [vmem:[#allocation7 + $0xfb8] sm:$0xff]  ;;  %v7438_v58 = vpop.f32.mrf.mxu1  ;;  %v7249_v2 = vpop.f32.mrf.mxu0 }
 0x4e3   : > { %18811 = vst [vmem:[#allocation56_spill] sm:$0xff] %v15826_v11  ;;  %8268 = vmatpush1.bf16.msra.mxu0 %v11075_v57  ;;  %v15828_v47 = vadd.f32 %v7438_v58, %v7245_v3  ;;  %v18813_v43 = vld [vmem:[#allocation60_spill] sm:$0xff]  ;;  %v11316_v60 = vcombine.high %v2978_v5, %v2982_v19  ;;  %v18814_v26 = vld [vmem:[#allocation61_spill] sm:$0xff] }
 0x4e4   : > { %8461 = vmatpush1.bf16.msra.mxu1 %v11203_v16  ;;  %8269 = vmatprep.subr.bf16.mxu0 %v11196_v56  ;;  %v2842_v10 = vld [vmem:[#allocation7 + $0xb58] sm:$0xff]  ;;  %v7442_v15 = vpop.f32.mrf.mxu1  ;;  %v7251_v24 = vpop.f32.mrf.mxu0  ;;  %v11187_v16 = vcombine.low %v2850_v63, %v2854_v42 }
 0x4e5   : > { %18812 = vst [vmem:[#allocation57_spill] sm:$0xff] %v15828_v47  ;;  %7940 = vmatmul.mubr.bf16.gmra.mxu0 %v18813_v43  ;;  %8462 = vmatprep.subr.bf16.mxu1 %v11324_v62  ;;  %v2846_v32 = vld [vmem:[#allocation7 + $0xb78] sm:$0xff]  ;;  %v15833_v57 = vadd.f32 %v7442_v15, %v7249_v2  ;;  %v11315_v62 = vcombine.low %v2978_v5, %v2982_v19 }
 0x4e6   : > { %8133 = vmatmul.mubr.bf16.gmra.mxu1 %v18814_v26  ;;  %v18815_v20 = vld [vmem:[#allocation20_spill] sm:$0xff]  ;;  %v18817_v40 = vld [vmem:[#allocation21_spill] sm:$0xff]  ;;  %v7444_v56 = vpop.f32.mrf.mxu1  ;;  %v11180_v3 = vcombine.high %v2842_v10, %v2846_v32  ;;  %v7253_v43 = vpop.f32.mrf.mxu0  ;;  %v11179_v42 = vcombine.low %v2842_v10, %v2846_v32 }
 0x4e7   : > { %7949 = vmatprep.mubr.bf16.mxu0 %v18815_v20  ;;  %v2970_v18 = vld [vmem:[#allocation7 + $0xf58] sm:$0xff]  ;;  %18816 = vst [vmem:[#allocation60_spill] sm:$0xff] %v15833_v57  ;;  %8142 = vmatprep.mubr.bf16.mxu1 %v18817_v40  ;;  %v15836_v58 = vadd.f32 %v7444_v56, %v7251_v24 }
 0x4e8   : > { %v2974_v59 = vld [vmem:[#allocation7 + $0xf78] sm:$0xff]  ;;  %8270 = vmatpush2.bf16.msra.mxu0 %v11195_v48  ;;  %8463 = vmatpush2.bf16.msra.mxu1 %v11323_v22  ;;  %v7446_v11 = vpop.f32.mrf.mxu1  ;;  %v7255_v40 = vpop.f32.mrf.mxu0 }
 0x4e9   : > { %8271 = vmatprep.subr.bf16.mxu0 %v11188_v4  ;;  %18818 = vst [vmem:[#allocation61_spill] sm:$0xff] %v15836_v58  ;;  %8464 = vmatprep.subr.bf16.mxu1 %v11316_v60  ;;  %v11308_v26 = vcombine.high %v2970_v18, %v2974_v59  ;;  %v2834_v20 = vld [vmem:[#allocation7 + $0xb18] sm:$0xff]  ;;  %v15838_v57 = vadd.f32 %v7446_v11, %v7253_v43  ;;  %v18821_v4 = vld [vmem:[#allocation67_spill] sm:$0xff]  ;;  %v18823_v43 = vld [vmem:[#allocation26_spill] sm:$0xff] }
 0x4ea   : > { %v2838_v47 = vld [vmem:[#allocation7 + $0xb38] sm:$0xff]  ;;  %v7448_v63 = vpop.f32.mrf.mxu1  ;;  %v11307_v5 = vcombine.low %v2970_v18, %v2974_v59  ;;  %v7259_v22 = vpop.f32.mrf.mxu0  ;;  %v18822_v11 = vld [vmem:[#allocation23_spill] sm:$0xff] }
 0x4eb   : > { %v2962_v15 = vld [vmem:[#allocation7 + $0xf18] sm:$0xff]  ;;  %18819 = vst [vmem:[#allocation20_spill] sm:$0xff] %v15838_v57  ;;  %v11172_v19 = vcombine.high %v2834_v20, %v2838_v47  ;;  %v15840_v48 = vadd.f32 %v7448_v63, %v7255_v40 }
 0x4ec   : > { %v2966_v2 = vld [vmem:[#allocation7 + $0xf38] sm:$0xff]  ;;  %8272 = vmatpush2.bf16.msra.mxu0 %v11187_v16  ;;  %8465 = vmatpush2.bf16.msra.mxu1 %v11315_v62  ;;  %v7452_v58 = vpop.f32.mrf.mxu1  ;;  %v7261_v59 = vpop.f32.mrf.mxu0  ;;  %v11171_v62 = vcombine.low %v2834_v20, %v2838_v47 }
 0x4ed   : > { %8273 = vmatprep.subr.bf16.mxu0 %v11180_v3  ;;  %18820 = vst [vmem:[#allocation21_spill] sm:$0xff] %v15840_v48  ;;  %7950 = vmatmul.mubr.bf16.gmra.mxu0 %v18821_v4  ;;  %v11300_v60 = vcombine.high %v2962_v15, %v2966_v2  ;;  %v2826_v24 = vld [vmem:[#allocation7 + $0xad8] sm:$0xff]  ;;  %v15845_v16 = vadd.f32 %v7452_v58, %v7259_v22 }
 0x4ee   : > { %8466 = vmatprep.subr.bf16.mxu1 %v11308_v26  ;;  %v2830_v56 = vld [vmem:[#allocation7 + $0xaf8] sm:$0xff]  ;;  %8143 = vmatmul.mubr.bf16.gmra.mxu1 %v18822_v11  ;;  %v7454_v3 = vpop.f32.mrf.mxu1  ;;  %v11299_v26 = vcombine.low %v2962_v15, %v2966_v2  ;;  %v7263_v4 = vpop.f32.mrf.mxu0 }
 0x4ef   : > { %7959 = vmatprep.mubr.bf16.mxu0 %v18823_v43  ;;  %v2954_v10 = vld [vmem:[#allocation7 + $0xed8] sm:$0xff]  ;;  %18824 = vst [vmem:[#allocation67_spill] sm:$0xff] %v15845_v16  ;;  %v11164_v40 = vcombine.high %v2826_v24, %v2830_v56  ;;  %v15848_v63 = vadd.f32 %v7454_v3, %v7261_v59  ;;  %v11163_v47 = vcombine.low %v2826_v24, %v2830_v56 }
 0x4f0   : > { %v2958_v32 = vld [vmem:[#allocation7 + $0xef8] sm:$0xff]  ;;  %8274 = vmatpush2.bf16.msra.mxu0 %v11179_v42  ;;  %8467 = vmatpush2.bf16.msra.mxu1 %v11307_v5  ;;  %v7456_v57 = vpop.f32.mrf.mxu1 }
 0x4f1   : > { %v18825_v18 = vld [vmem:[#allocation24_spill] sm:$0xff]  ;;  %8275 = vmatprep.subr.bf16.mxu0 %v11172_v19  ;;  %18826 = vst [vmem:[#allocation23_spill] sm:$0xff] %v15848_v63  ;;  %8468 = vmatprep.subr.bf16.mxu1 %v11300_v60  ;;  %v11292_v11 = vcombine.high %v2954_v10, %v2958_v32  ;;  %v15850_v16 = vadd.f32 %v7456_v57, %v7263_v4  ;;  %v18829_v19 = vld [vmem:[#allocation69_spill] sm:$0xff]  ;;  %v18830_v57 = vld [vmem:[#allocation70_spill] sm:$0xff] }
 0x4f2   : > { %8152 = vmatprep.mubr.bf16.mxu1 %v18825_v18  ;;  %v2818_v43 = vld [vmem:[#allocation7 + $0xa98] sm:$0xff]  ;;  %v7265_v18 = vpop.f32.mrf.mxu0  ;;  %v7458_v20 = vpop.f32.mrf.mxu1  ;;  %v11291_v15 = vcombine.low %v2954_v10, %v2958_v32  ;;  %v18831_v4 = vld [vmem:[#allocation30_spill] sm:$0xff] }
 0x4f3   : > { %v2822_v48 = vld [vmem:[#allocation7 + $0xab8] sm:$0xff]  ;;  %18827 = vst [vmem:[#allocation26_spill] sm:$0xff] %v15850_v16  ;;  %v15852_v42 = vadd.f32 %v7458_v20, %v7265_v18 }
 0x4f4   : > { %v2946_v58 = vld [vmem:[#allocation7 + $0xe98] sm:$0xff]  ;;  %8276 = vmatpush2.bf16.msra.mxu0 %v11171_v62  ;;  %8469 = vmatpush2.bf16.msra.mxu1 %v11299_v26  ;;  %v11156_v2 = vcombine.high %v2818_v43, %v2822_v48  ;;  %v7269_v5 = vpop.f32.mrf.mxu0  ;;  %v7462_v63 = vpop.f32.mrf.mxu1  ;;  %v11155_v26 = vcombine.low %v2818_v43, %v2822_v48 }
 0x4f5   : > { %v2950_v22 = vld [vmem:[#allocation7 + $0xeb8] sm:$0xff]  ;;  %8277 = vmatprep.subr.bf16.mxu0 %v11164_v40  ;;  %18828 = vst [vmem:[#allocation24_spill] sm:$0xff] %v15852_v42  ;;  %7960 = vmatmul.mubr.bf16.gmra.mxu0 %v18829_v19  ;;  %v15857_v62 = vadd.f32 %v7462_v63, %v7269_v5 }
 0x4f6   : > { %8470 = vmatprep.subr.bf16.mxu1 %v11292_v11  ;;  %v11284_v60 = vcombine.high %v2946_v58, %v2950_v22  ;;  %v2810_v59 = vld [vmem:[#allocation7 + $0xa58] sm:$0xff]  ;;  %8153 = vmatmul.mubr.bf16.gmra.mxu1 %v18830_v57  ;;  %v7271_v32 = vpop.f32.mrf.mxu0  ;;  %v7464_v40 = vpop.f32.mrf.mxu1  ;;  %v11283_v11 = vcombine.low %v2946_v58, %v2950_v22 }
 0x4f7   : > { %v2814_v3 = vld [vmem:[#allocation7 + $0xa78] sm:$0xff]  ;;  %7969 = vmatprep.mubr.bf16.mxu0 %v18831_v4  ;;  %18832 = vst [vmem:[#allocation69_spill] sm:$0xff] %v15857_v62  ;;  %v15860_v20 = vadd.f32 %v7464_v40, %v7271_v32  ;;  %v12170_v32 = vld [vmem:[#allocation10 + $0x78] sm:$0xff]  }
 0x4f8   : > { %v2938_v24 = vld [vmem:[#allocation7 + $0xe58] sm:$0xff]  ;;  %8278 = vmatpush2.bf16.msra.mxu0 %v11163_v47  ;;  %8471 = vmatpush2.bf16.msra.mxu1 %v11291_v15  ;;  %v11148_v18 = vcombine.high %v2810_v59, %v2814_v3  ;;  %v7273_v19 = vpop.f32.mrf.mxu0  ;;  %v7466_v16 = vpop.f32.mrf.mxu1  ;;  %v11147_v48 = vcombine.low %v2810_v59, %v2814_v3  ;;  %v12172_v40 = vld [vmem:[#allocation10 + $0xf8] sm:$0xff]  }
 0x4f9   : > { %v2942_v56 = vld [vmem:[#allocation7 + $0xe78] sm:$0xff]  ;;  %8279 = vmatprep.subr.bf16.mxu0 %v11156_v2  ;;  %8472 = vmatprep.subr.bf16.mxu1 %v11284_v60  ;;  %v15862_v62 = vadd.f32 %v7466_v16, %v7273_v19 }
 0x4fa   : > { %v18833_v10 = vld [vmem:[#allocation33_spill] sm:$0xff]  ;;  %v11276_v57 = vcombine.high %v2938_v24, %v2942_v56  ;;  %v7468_v43 = vpop.f32.mrf.mxu1  ;;  %v11275_v58 = vcombine.low %v2938_v24, %v2942_v56 }
 0x4fb   : > { %8162 = vmatprep.mubr.bf16.mxu1 %v18833_v10  ;;  %v2802_v4 = vld [vmem:[#allocation7 + $0xa18] sm:$0xff]  ;;  %v7275_v10 = vpop.f32.mrf.mxu0 }
 0x4fc   : > { %v2806_v42 = vld [vmem:[#allocation7 + $0xa38] sm:$0xff]  ;;  %8280 = vmatpush2.bf16.msra.mxu0 %v11155_v26  ;;  %8473 = vmatpush2.bf16.msra.mxu1 %v11283_v11  ;;  %v15864_v47 = vadd.f32 %v7468_v43, %v7275_v10  ;;  %v7472_v60 = vpop.f32.mrf.mxu1 }
 0x4fd   : > { %v2930_v63 = vld [vmem:[#allocation7 + $0xe18] sm:$0xff]  ;;  %8281 = vmatprep.subr.bf16.mxu0 %v11148_v18  ;;  %v11140_v22 = vcombine.high %v2802_v4, %v2806_v42  ;;  %v7279_v15 = vpop.f32.mrf.mxu0  ;;  %7970 = vmatmul.mubr.bf16.gmra.mxu0 %v18313_v25  ;;  %v11139_v3 = vcombine.low %v2802_v4, %v2806_v42 }
 0x4fe   : > { %v2934_v5 = vld [vmem:[#allocation7 + $0xe38] sm:$0xff]  ;;  %8474 = vmatprep.subr.bf16.mxu1 %v11276_v57  ;;  %8163 = vmatmul.mubr.bf16.gmra.mxu1 %v18314_v53  ;;  %v15869_v16 = vadd.f32 %v7472_v60, %v7279_v15  ;;  %v7474_v24 = vpop.f32.mrf.mxu1 }
 0x4ff   : > { %v11268_v2 = vcombine.high %v2930_v63, %v2934_v5  ;;  %7979 = vmatprep.mubr.bf16.mxu0 %v18315_v36  ;;  %8172 = vmatprep.mubr.bf16.mxu1 %v18316_v35  ;;  %v7281_v59 = vpop.f32.mrf.mxu0  ;;  %v11267_v56 = vcombine.low %v2930_v63, %v2934_v5 }
 0x500   : > { %8282 = vmatpush2.bf16.msra.mxu0 %v11147_v48  ;;  %8475 = vmatpush2.bf16.msra.mxu1 %v11275_v58  ;;  %v15872_v25 = vadd.f32 %v7474_v24, %v7281_v59  ;;  %v7476_v53 = vpop.f32.mrf.mxu1 }
 0x501   : > { %8283 = vmatprep.subr.bf16.mxu0 %v11140_v22  ;;  %v7283_v26 = vpop.f32.mrf.mxu0  ;;  %8476 = vmatprep.subr.bf16.mxu1 %v11268_v2 }
 0x502   : > { %v15874_v11 = vadd.f32 %v7476_v53, %v7283_v26  ;;  %v7478_v18 = vpop.f32.mrf.mxu1 }
 0x503   : > { %v7285_v36 = vpop.f32.mrf.mxu0 }
 0x504   : > { %8284 = vmatpush2.bf16.msra.mxu0 %v11139_v3  ;;  %8477 = vmatpush2.bf16.msra.mxu1 %v11267_v56  ;;  %v15876_v35 = vadd.f32 %v7478_v18, %v7285_v36  ;;  %v7708_v57 = vpop.f32.mrf.mxu1 }
 0x505   : > { %11556 = vmatprep.subr.bf16.mxu0 %v12170_v32  ;;  %v7515_v42 = vpop.f32.mrf.mxu0  ;;  %7980 = vmatmul.mubr.bf16.gmra.mxu0 %v18317_v45 }
 0x506   : > { %11668 = vmatprep.subr.bf16.mxu1 %v12172_v40  ;;  %v7516_v19 = vadd.f32 %v7515_v42, %v15681_v17  ;;  %8173 = vmatmul.mubr.bf16.gmra.mxu1 %v18573_v33  ;;  %v7710_v10 = vpop.f32.mrf.mxu1 }
 0x507   : > { %7989 = vmatprep.mubr.bf16.mxu0 %v18574_v7  ;;  %8182 = vmatprep.mubr.bf16.mxu1 %v18575_v55  ;;  %v7517_v4 = vpop.f32.mrf.mxu0 }
 0x508   : > { %v15883_v63 = vadd.f32 %v7708_v57, %v7516_v19  ;;  %v7518_v5 = vadd.f32 %v7517_v4, %v15686_v21  ;;  %v7712_v58 = vpop.f32.mrf.mxu1 }
 0x509   : > { %v7519_v48 = vpop.f32.mrf.mxu0 }
 0x50a   : > { %v15886_v43 = vadd.f32 %v7710_v10, %v7518_v5  ;;  %v7520_v45 = vadd.f32 %v7519_v48, %v15688_v14  ;;  %v7714_v7 = vpop.f32.mrf.mxu1 }
 0x50b   : > { %v7521_v17 = vpop.f32.mrf.mxu0 }
 0x50c   : > { %v15889_v22 = vadd.f32 %v7712_v58, %v7520_v45  ;;  %v7522_v33 = vadd.f32 %v7521_v17, %v15690_v34  ;;  %v7718_v60 = vpop.f32.mrf.mxu1 }
 0x50d   : > { %v7525_v15 = vpop.f32.mrf.mxu0  ;;  %7990 = vmatmul.mubr.bf16.gmra.mxu0 %v18324_v28 }
 0x50e   : > { %v15895_v21 = vadd.f32 %v7714_v7, %v7522_v33  ;;  %v7526_v2 = vadd.f32 %v7525_v15, %v15695_v9  ;;  %8183 = vmatmul.mubr.bf16.gmra.mxu1 %v18580_v27  ;;  %7999 = vmatprep.mubr.bf16.mxu0 %v18581_v13  ;;  %v7720_v3 = vpop.f32.mrf.mxu1 }
 0x50f   : > { %8192 = vmatprep.mubr.bf16.mxu1 %v18582_v50  ;;  %v7527_v14 = vpop.f32.mrf.mxu0 }
 0x510   : > { %v15903_v59 = vadd.f32 %v7718_v60, %v7526_v2  ;;  %v7528_v28 = vadd.f32 %v7527_v14, %v15698_v49  ;;  %v7722_v32 = vpop.f32.mrf.mxu1 }
 0x511   : > { %v7529_v24 = vpop.f32.mrf.mxu0 }
 0x512   : > { %18834 = vst [vmem:[#allocation70_spill] sm:$0xff] %v15903_v59  ;;  %v15906_v56 = vadd.f32 %v7720_v3, %v7528_v28  ;;  %v7530_v9 = vadd.f32 %v7529_v24, %v15700_v38  ;;  %v7724_v50 = vpop.f32.mrf.mxu1  ;;  %v18845_v24 = vld [vmem:[#allocation256_spill] sm:$0xff]  ;;  %v12205_v59 = vld [vmem:[#allocation10 + $0x1b8] sm:$0xff]  }
 0x513   : > { %v7531_v27 = vpop.f32.mrf.mxu0 }
 0x514   : > { %18835 = vst [vmem:[#allocation30_spill] sm:$0xff] %v15906_v56  ;;  %v15909_v26 = vadd.f32 %v7722_v32, %v7530_v9  ;;  %v7532_v13 = vadd.f32 %v7531_v27, %v15702_v6  ;;  %v7728_v18 = vpop.f32.mrf.mxu1  ;;  %v18846_v27 = vld [vmem:[#allocation39_spill] sm:$0xff] }
 0x515   : > { %v7535_v40 = vpop.f32.mrf.mxu0  ;;  %8000 = vmatmul.mubr.bf16.gmra.mxu0 %v18332_v12 }
 0x516   : > { %18836 = vst [vmem:[#allocation33_spill] sm:$0xff] %v15909_v26  ;;  %v15915_v49 = vadd.f32 %v7724_v50, %v7532_v13  ;;  %v7536_v36 = vadd.f32 %v7535_v40, %v15707_v37  ;;  %8193 = vmatmul.mubr.bf16.gmra.mxu1 %v18334_v52  ;;  %8009 = vmatprep.mubr.bf16.mxu0 %v18335_v61  ;;  %v7730_v19 = vpop.f32.mrf.mxu1  ;;  %v18848_v13 = vld [vmem:[#allocation68_spill] sm:$0xff] }
 0x517   : > { %8202 = vmatprep.mubr.bf16.mxu1 %v18336_v1  ;;  %v7537_v38 = vpop.f32.mrf.mxu0  ;;  %v12206_v26 = vld [vmem:[#allocation10 + $0x170] sm:$0xff]  }
 0x518   : > { %v15923_v42 = vadd.f32 %v7728_v18, %v7536_v36  ;;  %v7538_v12 = vadd.f32 %v7537_v38, %v15710_v39  ;;  %v7732_v5 = vpop.f32.mrf.mxu1 }
 0x519   : > { %v7539_v57 = vpop.f32.mrf.mxu0 }
 0x51a   : > { %18837 = vst [vmem:[#allocation270_spill] sm:$0xff] %v15923_v42  ;;  %v15926_v4 = vadd.f32 %v7730_v19, %v7538_v12  ;;  %v7540_v37 = vadd.f32 %v7539_v57, %v15712_v0  ;;  %v7734_v1 = vpop.f32.mrf.mxu1  ;;  %v18852_v19 = vld [vmem:[#allocation258_spill] sm:$0xff]  ;;  %v19027_v42 = vld [vmem:[#allocation75_spill] sm:$0xff] }
 0x51b   : > { %v7541_v52 = vpop.f32.mrf.mxu0 }
 0x51c   : > { %18838 = vst [vmem:[#allocation271_spill] sm:$0xff] %v15926_v4  ;;  %v15929_v10 = vadd.f32 %v7732_v5, %v7540_v37  ;;  %v7542_v61 = vadd.f32 %v7541_v52, %v15714_v29  ;;  %v7738_v17 = vpop.f32.mrf.mxu1  ;;  %v19030_v4 = vld [vmem:[#allocation239_spill] sm:$0xff] }
 0x51d   : > { %v7545_v48 = vpop.f32.mrf.mxu0  ;;  %8010 = vmatmul.mubr.bf16.gmra.mxu0 %v18340_v31 }
 0x51e   : > { %18839 = vst [vmem:[#allocation272_spill] sm:$0xff] %v15929_v10  ;;  %v15935_v39 = vadd.f32 %v7734_v1, %v7542_v61  ;;  %v7546_v58 = vadd.f32 %v7545_v48, %v15719_v54  ;;  %8203 = vmatmul.mubr.bf16.gmra.mxu1 %v18342_v44  ;;  %8019 = vmatprep.mubr.bf16.mxu0 %v18343_v23  ;;  %v7740_v7 = vpop.f32.mrf.mxu1  ;;  %v18854_v61 = vld [vmem:[#allocation259_spill] sm:$0xff] }
 0x51f   : > { %8212 = vmatprep.mubr.bf16.mxu1 %v18344_v30  ;;  %v7547_v0 = vpop.f32.mrf.mxu0 }
 0x520   : > { %18840 = vst [vmem:[#allocation273_spill] sm:$0xff] %v15935_v39  ;;  %v15943_v33 = vadd.f32 %v7738_v17, %v7546_v58  ;;  %v7548_v31 = vadd.f32 %v7547_v0, %v15722_v46  ;;  %v7742_v60 = vpop.f32.mrf.mxu1  ;;  %v18855_v17 = vld [vmem:[#allocation88_spill] sm:$0xff]  ;;  %v12173_v0 = vld [vmem:[#allocation10 + $0xb8] sm:$0xff]  }
 0x521   : > { %v7549_v15 = vpop.f32.mrf.mxu0  ;;  %v19031_v39 = vld [vmem:[#allocation78_spill] sm:$0xff] }
 0x522   : > { %18841 = vst [vmem:[#allocation274_spill] sm:$0xff] %v15943_v33  ;;  %v15946_v2 = vadd.f32 %v7740_v7, %v7548_v31  ;;  %v7550_v54 = vadd.f32 %v7549_v15, %v15724_v51  ;;  %v7744_v30 = vpop.f32.mrf.mxu1  ;;  %v18847_v51 = vld [vmem:[#allocation36_spill] sm:$0xff] }
 0x523   : > { %v7551_v44 = vpop.f32.mrf.mxu0  ;;  %v18857_v7 = vld [vmem:[#allocation260_spill] sm:$0xff] }
 0x524   : > { %18842 = vst [vmem:[#allocation275_spill] sm:$0xff] %v15946_v2  ;;  %v15949_v14 = vadd.f32 %v7742_v60, %v7550_v54  ;;  %v7552_v23 = vadd.f32 %v7551_v44, %v15726_v8  ;;  %v7748_v32 = vpop.f32.mrf.mxu1  ;;  %v18858_v60 = vld [vmem:[#allocation31_spill] sm:$0xff]  ;;  %v18859_v44 = vld [vmem:[#allocation72_spill] sm:$0xff] }
 0x525   : > { %v7555_v28 = vpop.f32.mrf.mxu0  ;;  %8020 = vmatmul.mubr.bf16.gmra.mxu0 %v18348_v41  ;;  %v18850_v41 = vld [vmem:[#allocation257_spill] sm:$0xff] }
 0x526   : > { %18843 = vst [vmem:[#allocation276_spill] sm:$0xff] %v15949_v14  ;;  %v15955_v46 = vadd.f32 %v7744_v30, %v7552_v23  ;;  %v7556_v9 = vadd.f32 %v7555_v28, %v18845_v24  ;;  %8213 = vmatmul.mubr.bf16.gmra.mxu1 %v18846_v27  ;;  %8029 = vmatprep.mubr.bf16.mxu0 %v18847_v51  ;;  %v7750_v18 = vpop.f32.mrf.mxu1  ;;  %v18860_v23 = vld [vmem:[#allocation34_spill] sm:$0xff]  ;;  %v18894_v28 = vld [vmem:[#allocation101_spill] sm:$0xff] }
 0x527   : > { %8222 = vmatprep.mubr.bf16.mxu1 %v18848_v13  ;;  %v7557_v50 = vpop.f32.mrf.mxu0 }
 0x528   : > { %18844 = vst [vmem:[#allocation277_spill] sm:$0xff] %v15955_v46  ;;  %v15963_v40 = vadd.f32 %v7748_v32, %v7556_v9  ;;  %v7558_v36 = vadd.f32 %v7557_v50, %v18850_v41  ;;  %v7752_v37 = vpop.f32.mrf.mxu1  ;;  %v18862_v9 = vld [vmem:[#allocation261_spill] sm:$0xff]  ;;  %v18864_v50 = vld [vmem:[#allocation262_spill] sm:$0xff] }
 0x529   : > { %v7559_v38 = vpop.f32.mrf.mxu0 }
 0x52a   : > { %18849 = vst [vmem:[#allocation256_spill] sm:$0xff] %v15963_v40  ;;  %v15966_v12 = vadd.f32 %v7750_v18, %v7558_v36  ;;  %v7560_v57 = vadd.f32 %v7559_v38, %v18852_v19  ;;  %v7754_v48 = vpop.f32.mrf.mxu1  ;;  %v18866_v19 = vld [vmem:[#allocation263_spill] sm:$0xff]  ;;  %v19012_v40 = vld [vmem:[#allocation41_spill] sm:$0xff] }
 0x52b   : > { %v7561_v5 = vpop.f32.mrf.mxu0 }
 0x52c   : > { %18851 = vst [vmem:[#allocation39_spill] sm:$0xff] %v15966_v12  ;;  %v15969_v52 = vadd.f32 %v7752_v37, %v7560_v57  ;;  %v7562_v1 = vadd.f32 %v7561_v5, %v18854_v61  ;;  %v7758_v54 = vpop.f32.mrf.mxu1  ;;  %v18867_v61 = vld [vmem:[#allocation90_spill] sm:$0xff] }
 0x52d   : > { %v7565_v58 = vpop.f32.mrf.mxu0  ;;  %8030 = vmatmul.mubr.bf16.gmra.mxu0 %v18855_v17  ;;  %v19014_v12 = vld [vmem:[#allocation238_spill] sm:$0xff] }
 0x52e   : > { %18853 = vst [vmem:[#allocation36_spill] sm:$0xff] %v15969_v52  ;;  %v15975_v31 = vadd.f32 %v7754_v48, %v7562_v1  ;;  %v7566_v15 = vadd.f32 %v7565_v58, %v18857_v7  ;;  %8223 = vmatmul.mubr.bf16.gmra.mxu1 %v18858_v60  ;;  %8039 = vmatprep.mubr.bf16.mxu0 %v18859_v44  ;;  %v7760_v27 = vpop.f32.mrf.mxu1  ;;  %v18869_v58 = vld [vmem:[#allocation264_spill] sm:$0xff]  ;;  %v18872_v60 = vld [vmem:[#allocation93_spill] sm:$0xff] }
 0x52f   : > { %8232 = vmatprep.mubr.bf16.mxu1 %v18860_v23  ;;  %v7567_v30 = vpop.f32.mrf.mxu0 }
 0x530   : > { %18856 = vst [vmem:[#allocation68_spill] sm:$0xff] %v15975_v31  ;;  %v15983_v24 = vadd.f32 %v7758_v54, %v7566_v15  ;;  %v7568_v32 = vadd.f32 %v7567_v30, %v18862_v9  ;;  %v7762_v36 = vpop.f32.mrf.mxu1  ;;  %v18870_v15 = vld [vmem:[#allocation91_spill] sm:$0xff]  ;;  %v18871_v54 = vld [vmem:[#allocation92_spill] sm:$0xff]  ;;  %v18874_v9 = vld [vmem:[#allocation265_spill] sm:$0xff] }
 0x531   : > { %v7569_v51 = vpop.f32.mrf.mxu0 }
 0x532   : > { %18861 = vst [vmem:[#allocation257_spill] sm:$0xff] %v15983_v24  ;;  %v15986_v13 = vadd.f32 %v7760_v27, %v7568_v32  ;;  %v7570_v41 = vadd.f32 %v7569_v51, %v18864_v50  ;;  %v7764_v37 = vpop.f32.mrf.mxu1 }
 0x533   : > { %v7571_v18 = vpop.f32.mrf.mxu0 }
 0x534   : > { %18863 = vst [vmem:[#allocation258_spill] sm:$0xff] %v15986_v13  ;;  %v15989_v38 = vadd.f32 %v7762_v36, %v7570_v41  ;;  %v7572_v57 = vadd.f32 %v7571_v18, %v18866_v19  ;;  %v18876_v41 = vld [vmem:[#allocation266_spill] sm:$0xff] }
 0x535   : > { %v7575_v5 = vpop.f32.mrf.mxu0  ;;  %8040 = vmatmul.mubr.bf16.gmra.mxu0 %v18867_v61 }
 0x536   : > { %18865 = vst [vmem:[#allocation259_spill] sm:$0xff] %v15989_v38  ;;  %v15995_v48 = vadd.f32 %v7764_v37, %v7572_v57  ;;  %v7576_v17 = vadd.f32 %v7575_v5, %v18869_v58  ;;  %v7768_v7 = vpop.f32.mrf.mxu1  ;;  %8233 = vmatmul.mubr.bf16.gmra.mxu1 %v18870_v15  ;;  %8049 = vmatprep.mubr.bf16.mxu0 %v18871_v54  ;;  %v18878_v37 = vld [vmem:[#allocation267_spill] sm:$0xff]  ;;  %v18879_v15 = vld [vmem:[#allocation94_spill] sm:$0xff]  ;;  %v18881_v54 = vld [vmem:[#allocation28_spill] sm:$0xff] }
 0x537   : > { %8242 = vmatprep.mubr.bf16.mxu1 %v18872_v60  ;;  %v7577_v44 = vpop.f32.mrf.mxu0 }
 0x538   : > { %18868 = vst [vmem:[#allocation88_spill] sm:$0xff] %v15995_v48  ;;  %v16003_v30 = vadd.f32 %v7768_v7, %v7576_v17  ;;  %v7578_v32 = vadd.f32 %v7577_v44, %v18874_v9  ;;  %v7770_v27 = vpop.f32.mrf.mxu1  ;;  %v18882_v9 = vld [vmem:[#allocation95_spill] sm:$0xff]  ;;  %v12171_v17 = vld [vmem:[#allocation10 + $0x38] sm:$0xff]   ;;  %v19011_v48 = vld [vmem:[#allocation44_spill] sm:$0xff] }
 0x539   : > { %v7579_v51 = vpop.f32.mrf.mxu0 }
 0x53a   : > { %18873 = vst [vmem:[#allocation260_spill] sm:$0xff] %v16003_v30  ;;  %v16006_v50 = vadd.f32 %v7770_v27, %v7578_v32  ;;  %v7580_v36 = vadd.f32 %v7579_v51, %v18876_v41  ;;  %v7772_v18 = vpop.f32.mrf.mxu1  ;;  %v18883_v32 = vld [vmem:[#allocation96_spill] sm:$0xff]  ;;  %v18884_v27 = vld [vmem:[#allocation97_spill] sm:$0xff] }
 0x53b   : > { %v7581_v19 = vpop.f32.mrf.mxu0  ;;  %v19004_v30 = vld [vmem:[#allocation136_spill] sm:$0xff] }
 0x53c   : > { %18875 = vst [vmem:[#allocation31_spill] sm:$0xff] %v16006_v50  ;;  %v16009_v57 = vadd.f32 %v7772_v18, %v7580_v36  ;;  %v7582_v5 = vadd.f32 %v7581_v19, %v18878_v37  ;;  %v7774_v61 = vpop.f32.mrf.mxu1  ;;  %v18886_v18 = vld [vmem:[#allocation29_spill] sm:$0xff] }
 0x53d   : > { %v7585_v58 = vpop.f32.mrf.mxu0  ;;  %8050 = vmatmul.mubr.bf16.gmra.mxu0 %v18879_v15 }
 0x53e   : > { %18877 = vst [vmem:[#allocation72_spill] sm:$0xff] %v16009_v57  ;;  %v16015_v7 = vadd.f32 %v7774_v61, %v7582_v5  ;;  %v7586_v60 = vadd.f32 %v7585_v58, %v18881_v54  ;;  %v7778_v44 = vpop.f32.mrf.mxu1  ;;  %8243 = vmatmul.mubr.bf16.gmra.mxu1 %v18882_v9  ;;  %8285 = vmatprep.mubr.bf16.mxu0 %v18883_v32  ;;  %v18888_v58 = vld [vmem:[#allocation268_spill] sm:$0xff] }
 0x53f   : > { %8478 = vmatprep.mubr.bf16.mxu1 %v18884_v27  ;;  %v7587_v51 = vpop.f32.mrf.mxu0  ;;  %v18890_v27 = vld [vmem:[#allocation269_spill] sm:$0xff] }
 0x540   : > { %18880 = vst [vmem:[#allocation34_spill] sm:$0xff] %v16015_v7  ;;  %v16023_v36 = vadd.f32 %v7778_v44, %v7586_v60  ;;  %v7588_v19 = vadd.f32 %v7587_v51, %v18886_v18  ;;  %v7780_v37 = vpop.f32.mrf.mxu1  ;;  %v18891_v60 = vld [vmem:[#allocation100_spill] sm:$0xff]  ;;  %v18898_v18 = vld [vmem:[#allocation37_spill] sm:$0xff] }
 0x541   : > { %v7589_v5 = vpop.f32.mrf.mxu0  ;;  %v12174_v44 = vld [vmem:[#allocation10 + $0x70] sm:$0xff]  }
 0x542   : > { %18885 = vst [vmem:[#allocation261_spill] sm:$0xff] %v16023_v36  ;;  %v16026_v61 = vadd.f32 %v7780_v37, %v7588_v19  ;;  %v7590_v15 = vadd.f32 %v7589_v5, %v18888_v58  ;;  %v7782_v54 = vpop.f32.mrf.mxu1  ;;  %v12176_v51 = vld [vmem:[#allocation10 + $0xf0] sm:$0xff]   ;;  %v18893_v37 = vld [vmem:[#allocation35_spill] sm:$0xff] }
 0x543   : > { %v7591_v9 = vpop.f32.mrf.mxu0 }
 0x544   : > { %18887 = vst [vmem:[#allocation262_spill] sm:$0xff] %v16026_v61  ;;  %v16029_v32 = vadd.f32 %v7782_v54, %v7590_v15  ;;  %v7592_v1 = vadd.f32 %v7591_v9, %v18890_v27  ;;  %v7784_v23 = vpop.f32.mrf.mxu1  ;;  %v18895_v15 = vld [vmem:[#allocation102_spill] sm:$0xff]  ;;  %v18896_v54 = vld [vmem:[#allocation103_spill] sm:$0xff]  ;;  %v12175_v27 = vld [vmem:[#allocation10 + $0x30] sm:$0xff]  }
 0x545   : > { %v7595_v41 = vpop.f32.mrf.mxu0  ;;  %8286 = vmatmul.mubr.bf16.vlgmr.msra.gmra.mxu0 %v18891_v60  ;;  %v12179_v60 = vld [vmem:[#allocation10 + $0x28] sm:$0xff]  }
 0x546   : > { %18889 = vst [vmem:[#allocation263_spill] sm:$0xff] %v16029_v32  ;;  %v16035_v19 = vadd.f32 %v7784_v23, %v7592_v1  ;;  %v7596_v5 = vadd.f32 %v7595_v41, %v18893_v37  ;;  %v7788_v58 = vpop.f32.mrf.mxu1  ;;  %8479 = vmatmul.mubr.bf16.vlgmr.msra.gmra.mxu1 %v18894_v28  ;;  %8295 = vmatprep.mubr.bf16.mxu0 %v18895_v15  ;;  %v12177_v41 = vld [vmem:[#allocation10 + $0xb0] sm:$0xff]   ;;  %v12178_v37 = vld [vmem:[#allocation10 + $0x68] sm:$0xff]  }
 0x547   : > { %8488 = vmatprep.mubr.bf16.mxu1 %v18896_v54  ;;  %11557 = vmatpush3.bf16.msra.mxu0 %v12171_v17  ;;  %v7597_v9 = vpop.f32.mrf.mxu0  ;;  %v12180_v28 = vld [vmem:[#allocation10 + $0xe8] sm:$0xff]   ;;  %v18900_v17 = vld [vmem:[#allocation38_spill] sm:$0xff] }
 0x548   : > { %18892 = vst [vmem:[#allocation90_spill] sm:$0xff] %v16035_v19  ;;  %v16043_v3 = vadd.f32 %v7788_v58, %v7596_v5  ;;  %v7598_v1 = vadd.f32 %v7597_v9, %v18898_v18  ;;  %v7790_v23 = vpop.f32.mrf.mxu1  ;;  %11669 = vmatpush3.bf16.msra.mxu1 %v12173_v0  ;;  %11558 = vmatprep.subr.bf16.mxu0 %v12174_v44  ;;  %v18902_v58 = vld [vmem:[#allocation40_spill] sm:$0xff]  ;;  %v18903_v44 = vld [vmem:[#allocation111_spill] sm:$0xff] }
 0x549   : > { %v7599_v8 = vpop.f32.mrf.mxu0  ;;  %11670 = vmatprep.subr.bf16.mxu1 %v12176_v51  ;;  %v12181_v0 = vld [vmem:[#allocation10 + $0xa8] sm:$0xff]   ;;  %v12182_v51 = vld [vmem:[#allocation10 + $0x60] sm:$0xff]  }
 0x54a   : > { %18897 = vst [vmem:[#allocation264_spill] sm:$0xff] %v16043_v3  ;;  %v16046_v15 = vadd.f32 %v7790_v23, %v7598_v1  ;;  %v7600_v54 = vadd.f32 %v7599_v8, %v18900_v17  ;;  %v7792_v45 = vpop.f32.mrf.mxu1  ;;  %v12184_v1 = vld [vmem:[#allocation10 + $0xe0] sm:$0xff]  }
 0x54b   : > { %v7601_v29 = vpop.f32.mrf.mxu0  ;;  %11559 = vmatpush3.bf16.msra.mxu0 %v12175_v27  ;;  %v18905_v27 = vld [vmem:[#allocation45_spill] sm:$0xff]  ;;  %v18910_v8 = vld [vmem:[#allocation46_spill] sm:$0xff] }
 0x54c   : > { %18899 = vst [vmem:[#allocation91_spill] sm:$0xff] %v16046_v15  ;;  %v16049_v5 = vadd.f32 %v7792_v45, %v7600_v54  ;;  %v7602_v18 = vadd.f32 %v7601_v29, %v18902_v58  ;;  %v7794_v9 = vpop.f32.mrf.mxu1  ;;  %11671 = vmatpush3.bf16.msra.mxu1 %v12177_v41  ;;  %11560 = vmatprep.subr.bf16.mxu0 %v12178_v37  ;;  %v18906_v54 = vld [vmem:[#allocation112_spill] sm:$0xff]  ;;  %v18907_v29 = vld [vmem:[#allocation113_spill] sm:$0xff]  ;;  %v18908_v41 = vld [vmem:[#allocation27_spill] sm:$0xff] }
 0x54d   : > { %v7605_v53 = vpop.f32.mrf.mxu0  ;;  %8296 = vmatmul.mubr.bf16.gmra.mxu0 %v18903_v44  ;;  %11672 = vmatprep.subr.bf16.mxu1 %v12180_v28  ;;  %v12183_v58 = vld [vmem:[#allocation10 + $0x20] sm:$0xff]   ;;  %v12187_v28 = vld [vmem:[#allocation10 + $0x18] sm:$0xff]  }
 0x54e   : > { %18901 = vst [vmem:[#allocation92_spill] sm:$0xff] %v16049_v5  ;;  %v16055_v23 = vadd.f32 %v7794_v9, %v7602_v18  ;;  %v7606_v45 = vadd.f32 %v7605_v53, %v18905_v27  ;;  %v7798_v17 = vpop.f32.mrf.mxu1  ;;  %8489 = vmatmul.mubr.bf16.gmra.mxu1 %v18906_v54  ;;  %8305 = vmatprep.mubr.bf16.mxu0 %v18907_v29  ;;  %v12185_v53 = vld [vmem:[#allocation10 + $0xa0] sm:$0xff]   ;;  %v12186_v27 = vld [vmem:[#allocation10 + $0x58] sm:$0xff]  }
 0x54f   : > { %8498 = vmatprep.mubr.bf16.mxu1 %v18908_v41  ;;  %v7607_v37 = vpop.f32.mrf.mxu0  ;;  %11561 = vmatpush3.bf16.msra.mxu0 %v12179_v60  ;;  %v12188_v54 = vld [vmem:[#allocation10 + $0xd8] sm:$0xff]   ;;  %v18912_v41 = vld [vmem:[#allocation47_spill] sm:$0xff] }
 0x550   : > { %18904 = vst [vmem:[#allocation93_spill] sm:$0xff] %v16055_v23  ;;  %v16063_v44 = vadd.f32 %v7798_v17, %v7606_v45  ;;  %v7608_v18 = vadd.f32 %v7607_v37, %v18910_v8  ;;  %v7800_v9 = vpop.f32.mrf.mxu1  ;;  %11673 = vmatpush3.bf16.msra.mxu1 %v12181_v0  ;;  %11562 = vmatprep.subr.bf16.mxu0 %v12182_v51  ;;  %v18914_v17 = vld [vmem:[#allocation48_spill] sm:$0xff]  ;;  %v12189_v0 = vld [vmem:[#allocation10 + $0x98] sm:$0xff]  }
 0x551   : > { %v7609_v6 = vpop.f32.mrf.mxu0  ;;  %11674 = vmatprep.subr.bf16.mxu1 %v12184_v1  ;;  %v18915_v51 = vld [vmem:[#allocation117_spill] sm:$0xff]  ;;  %v19001_v15 = vld [vmem:[#allocation142_spill] sm:$0xff] }
 0x552   : > { %18909 = vst [vmem:[#allocation265_spill] sm:$0xff] %v16063_v44  ;;  %v16066_v29 = vadd.f32 %v7800_v9, %v7608_v18  ;;  %v7610_v60 = vadd.f32 %v7609_v6, %v18912_v41  ;;  %v7802_v55 = vpop.f32.mrf.mxu1  ;;  %v12190_v1 = vld [vmem:[#allocation10 + $0x50] sm:$0xff]   ;;  %v18922_v6 = vld [vmem:[#allocation51_spill] sm:$0xff] }
 0x553   : > { %v7611_v34 = vpop.f32.mrf.mxu0  ;;  %11563 = vmatpush3.bf16.msra.mxu0 %v12183_v58  ;;  %v12192_v18 = vld [vmem:[#allocation10 + $0xd0] sm:$0xff]   ;;  %v18917_v58 = vld [vmem:[#allocation50_spill] sm:$0xff] }
 0x554   : > { %18911 = vst [vmem:[#allocation266_spill] sm:$0xff] %v16066_v29  ;;  %v16069_v45 = vadd.f32 %v7802_v55, %v7610_v60  ;;  %v7612_v8 = vadd.f32 %v7611_v34, %v18914_v17  ;;  %v7804_v37 = vpop.f32.mrf.mxu1  ;;  %11675 = vmatpush3.bf16.msra.mxu1 %v12185_v53  ;;  %11564 = vmatprep.subr.bf16.mxu0 %v12186_v27  ;;  %v18918_v60 = vld [vmem:[#allocation118_spill] sm:$0xff]  ;;  %v12191_v17 = vld [vmem:[#allocation10 + $0x10] sm:$0xff]  }
 0x555   : > { %v7615_v3 = vpop.f32.mrf.mxu0  ;;  %8306 = vmatmul.mubr.bf16.gmra.mxu0 %v18915_v51  ;;  %11676 = vmatprep.subr.bf16.mxu1 %v12188_v54  ;;  %v18919_v34 = vld [vmem:[#allocation62_spill] sm:$0xff]  ;;  %v12195_v54 = vld [vmem:[#allocation10 + $0x8] sm:$0xff]  }
 0x556   : > { %18913 = vst [vmem:[#allocation267_spill] sm:$0xff] %v16069_v45  ;;  %v16075_v9 = vadd.f32 %v7804_v37, %v7612_v8  ;;  %v7616_v55 = vadd.f32 %v7615_v3, %v18917_v58  ;;  %v7808_v41 = vpop.f32.mrf.mxu1  ;;  %8499 = vmatmul.mubr.bf16.gmra.mxu1 %v18918_v60  ;;  %8315 = vmatprep.mubr.bf16.mxu0 %v18919_v34  ;;  %v18920_v53 = vld [vmem:[#allocation82_spill] sm:$0xff]  ;;  %v12193_v3 = vld [vmem:[#allocation10 + $0x90] sm:$0xff]   ;;  %v12194_v58 = vld [vmem:[#allocation10 + $0x48] sm:$0xff]  }
 0x557   : > { %8508 = vmatprep.mubr.bf16.mxu1 %v18920_v53  ;;  %v7617_v27 = vpop.f32.mrf.mxu0  ;;  %11565 = vmatpush3.bf16.msra.mxu0 %v12187_v28  ;;  %v12196_v60 = vld [vmem:[#allocation10 + $0xc8] sm:$0xff]  }
 0x558   : > { %18916 = vst [vmem:[#allocation94_spill] sm:$0xff] %v16075_v9  ;;  %v16083_v51 = vadd.f32 %v7808_v41, %v7616_v55  ;;  %v7618_v8 = vadd.f32 %v7617_v27, %v18922_v6  ;;  %v7810_v37 = vpop.f32.mrf.mxu1  ;;  %11677 = vmatpush3.bf16.msra.mxu1 %v12189_v0  ;;  %11566 = vmatprep.subr.bf16.mxu0 %v12190_v1  ;;  %v18924_v53 = vld [vmem:[#allocation52_spill] sm:$0xff]  ;;  %v18926_v41 = vld [vmem:[#allocation53_spill] sm:$0xff]  ;;  %v18927_v1 = vld [vmem:[#allocation122_spill] sm:$0xff] }
 0x559   : > { %v7619_v44 = vpop.f32.mrf.mxu0  ;;  %11678 = vmatprep.subr.bf16.mxu1 %v12192_v18  ;;  %v12197_v0 = vld [vmem:[#allocation10 + $0x88] sm:$0xff]   ;;  %v12198_v18 = vld [vmem:[#allocation10 + $0x40] sm:$0xff]  }
 0x55a   : > { %18921 = vst [vmem:[#allocation28_spill] sm:$0xff] %v16083_v51  ;;  %v16086_v34 = vadd.f32 %v7810_v37, %v7618_v8  ;;  %v7620_v28 = vadd.f32 %v7619_v44, %v18924_v53  ;;  %v7812_v45 = vpop.f32.mrf.mxu1  ;;  %v12200_v8 = vld [vmem:[#allocation10 + $0xc0] sm:$0xff]  }
 0x55b   : > { %v7621_v5 = vpop.f32.mrf.mxu0  ;;  %11567 = vmatpush3.bf16.msra.mxu0 %v12191_v17  ;;  %v18929_v17 = vld [vmem:[#allocation54_spill] sm:$0xff]  ;;  %v18934_v44 = vld [vmem:[#allocation55_spill] sm:$0xff] }
 0x55c   : > { %18923 = vst [vmem:[#allocation95_spill] sm:$0xff] %v16086_v34  ;;  %v16089_v55 = vadd.f32 %v7812_v45, %v7620_v28  ;;  %v7622_v6 = vadd.f32 %v7621_v5, %v18926_v41  ;;  %v7814_v27 = vpop.f32.mrf.mxu1  ;;  %11679 = vmatpush3.bf16.msra.mxu1 %v12193_v3  ;;  %11568 = vmatprep.subr.bf16.mxu0 %v12194_v58  ;;  %v18930_v28 = vld [vmem:[#allocation71_spill] sm:$0xff]  ;;  %v18931_v5 = vld [vmem:[#allocation86_spill] sm:$0xff]  ;;  %v18932_v3 = vld [vmem:[#allocation85_spill] sm:$0xff] }
 0x55d   : > { %v7625_v29 = vpop.f32.mrf.mxu0  ;;  %8316 = vmatmul.mubr.bf16.gmra.mxu0 %v18927_v1  ;;  %11680 = vmatprep.subr.bf16.mxu1 %v12196_v60  ;;  %v12199_v41 = vld [vmem:[#allocation10] sm:$0xff]  }
 0x55e   : > { %18925 = vst [vmem:[#allocation96_spill] sm:$0xff] %v16089_v55  ;;  %v16095_v37 = vadd.f32 %v7814_v27, %v7622_v6  ;;  %v7626_v45 = vadd.f32 %v7625_v29, %v18929_v17  ;;  %v7818_v53 = vpop.f32.mrf.mxu1  ;;  %8509 = vmatmul.mubr.bf16.gmra.mxu1 %v18930_v28  ;;  %8325 = vmatprep.mubr.bf16.mxu0 %v18931_v5  ;;  %v12201_v29 = vld [vmem:[#allocation10 + $0x80] sm:$0xff]   ;;  %v12202_v17 = vld [vmem:[#allocation10 + $0x178] sm:$0xff]  }
 0x55f   : > { %8518 = vmatprep.mubr.bf16.mxu1 %v18932_v3  ;;  %v7627_v58 = vpop.f32.mrf.mxu0  ;;  %11569 = vmatpush3.bf16.msra.mxu0 %v12195_v54  ;;  %v12204_v28 = vld [vmem:[#allocation10 + $0x1f8] sm:$0xff]   ;;  %v18936_v3 = vld [vmem:[#allocation56_spill] sm:$0xff] }
 0x560   : > { %18928 = vst [vmem:[#allocation97_spill] sm:$0xff] %v16095_v37  ;;  %v16103_v1 = vadd.f32 %v7818_v53, %v7626_v45  ;;  %v7628_v6 = vadd.f32 %v7627_v58, %v18934_v44  ;;  %v7820_v27 = vpop.f32.mrf.mxu1  ;;  %11681 = vmatpush3.bf16.msra.mxu1 %v12197_v0  ;;  %11570 = vmatprep.subr.bf16.mxu0 %v12198_v18  ;;  %v18938_v45 = vld [vmem:[#allocation57_spill] sm:$0xff]  ;;  %v18939_v58 = vld [vmem:[#allocation87_spill] sm:$0xff]  ;;  %v18951_v34 = vld [vmem:[#allocation126_spill] sm:$0xff] }
 0x561   : > { %v7629_v51 = vpop.f32.mrf.mxu0  ;;  %11682 = vmatprep.subr.bf16.mxu1 %v12200_v8  ;;  %v19000_v37 = vld [vmem:[#allocation130_spill] sm:$0xff] }
 0x562   : > { %18933 = vst [vmem:[#allocation29_spill] sm:$0xff] %v16103_v1  ;;  %v16106_v5 = vadd.f32 %v7820_v27, %v7628_v6  ;;  %v7630_v54 = vadd.f32 %v7629_v51, %v18936_v3  ;;  %v7822_v55 = vpop.f32.mrf.mxu1  ;;  %v18941_v51 = vld [vmem:[#allocation60_spill] sm:$0xff] }
 0x563   : > { %v7631_v9 = vpop.f32.mrf.mxu0  ;;  %11571 = vmatpush3.bf16.msra.mxu0 %v12199_v41  ;;  %v18942_v41 = vld [vmem:[#allocation123_spill] sm:$0xff] }
 0x564   : > { %18935 = vst [vmem:[#allocation268_spill] sm:$0xff] %v16106_v5  ;;  %v16109_v60 = vadd.f32 %v7822_v55, %v7630_v54  ;;  %v7632_v53 = vadd.f32 %v7631_v9, %v18938_v45  ;;  %v7824_v44 = vpop.f32.mrf.mxu1  ;;  %11683 = vmatpush3.bf16.msra.mxu1 %v12201_v29  ;;  %11780 = vmatprep.subr.bf16.mxu0 %v12202_v17  ;;  %v18943_v55 = vld [vmem:[#allocation89_spill] sm:$0xff]  ;;  %v18944_v9 = vld [vmem:[#allocation124_spill] sm:$0xff] }
 0x565   : > { %v7635_v0 = vpop.f32.mrf.mxu0  ;;  %8326 = vmatmul.mubr.bf16.gmra.mxu0 %v18939_v58  ;;  %11892 = vmatprep.subr.bf16.mxu1 %v12204_v28  ;;  %v18946_v28 = vld [vmem:[#allocation61_spill] sm:$0xff] }
 0x566   : > { %18937 = vst [vmem:[#allocation269_spill] sm:$0xff] %v16109_v60  ;;  %v16115_v8 = vadd.f32 %v7824_v44, %v7632_v53  ;;  %v7636_v6 = vadd.f32 %v7635_v0, %v18941_v51  ;;  %v7828_v27 = vpop.f32.mrf.mxu1  ;;  %8519 = vmatmul.mubr.bf16.gmra.mxu1 %v18942_v41  ;;  %8335 = vmatprep.mubr.bf16.mxu0 %v18943_v55  ;;  %v18948_v0 = vld [vmem:[#allocation20_spill] sm:$0xff]  ;;  %v18950_v55 = vld [vmem:[#allocation21_spill] sm:$0xff] }
 0x567   : > { %8528 = vmatprep.mubr.bf16.mxu1 %v18944_v9  ;;  %v7637_v29 = vpop.f32.mrf.mxu0 }
 0x568   : > { %18940 = vst [vmem:[#allocation100_spill] sm:$0xff] %v16115_v8  ;;  %v16123_v3 = vadd.f32 %v7828_v27, %v7636_v6  ;;  %v7638_v54 = vadd.f32 %v7637_v29, %v18946_v28  ;;  %v7830_v45 = vpop.f32.mrf.mxu1  ;;  %v18953_v29 = vld [vmem:[#allocation67_spill] sm:$0xff] }
 0x569   : > { %v7639_v53 = vpop.f32.mrf.mxu0  ;;  %v18963_v8 = vld [vmem:[#allocation131_spill] sm:$0xff] }
 0x56a   : > { %18945 = vst [vmem:[#allocation35_spill] sm:$0xff] %v16123_v3  ;;  %v16126_v44 = vadd.f32 %v7830_v45, %v7638_v54  ;;  %v7640_v58 = vadd.f32 %v7639_v53, %v18948_v0  ;;  %v7832_v51 = vpop.f32.mrf.mxu1  ;;  %v18954_v45 = vld [vmem:[#allocation127_spill] sm:$0xff]  ;;  %v18955_v53 = vld [vmem:[#allocation128_spill] sm:$0xff]  ;;  %v18956_v0 = vld [vmem:[#allocation129_spill] sm:$0xff] }
 0x56b   : > { %v7641_v41 = vpop.f32.mrf.mxu0 }
 0x56c   : > { %18947 = vst [vmem:[#allocation101_spill] sm:$0xff] %v16126_v44  ;;  %v16129_v18 = vadd.f32 %v7832_v51, %v7640_v58  ;;  %v7642_v9 = vadd.f32 %v7641_v41, %v18950_v55  ;;  %v7834_v1 = vpop.f32.mrf.mxu1 }
 0x56d   : > { %v7645_v60 = vpop.f32.mrf.mxu0  ;;  %8336 = vmatmul.mubr.bf16.gmra.mxu0 %v18951_v34  ;;  %v18958_v34 = vld [vmem:[#allocation23_spill] sm:$0xff] }
 0x56e   : > { %18949 = vst [vmem:[#allocation102_spill] sm:$0xff] %v16129_v18  ;;  %v16135_v27 = vadd.f32 %v7834_v1, %v7642_v9  ;;  %v7646_v28 = vadd.f32 %v7645_v60, %v18953_v29  ;;  %v7838_v54 = vpop.f32.mrf.mxu1  ;;  %8529 = vmatmul.mubr.bf16.gmra.mxu1 %v18954_v45  ;;  %8345 = vmatprep.mubr.bf16.mxu0 %v18955_v53  ;;  %v18960_v60 = vld [vmem:[#allocation26_spill] sm:$0xff]  ;;  %v18962_v53 = vld [vmem:[#allocation24_spill] sm:$0xff] }
 0x56f   : > { %8538 = vmatprep.mubr.bf16.mxu1 %v18956_v0  ;;  %v7647_v58 = vpop.f32.mrf.mxu0 }
 0x570   : > { %18952 = vst [vmem:[#allocation103_spill] sm:$0xff] %v16135_v27  ;;  %v16143_v41 = vadd.f32 %v7838_v54, %v7646_v28  ;;  %v7648_v55 = vadd.f32 %v7647_v58, %v18958_v34  ;;  %v7840_v6 = vpop.f32.mrf.mxu1  ;;  %v18965_v58 = vld [vmem:[#allocation69_spill] sm:$0xff] }
 0x571   : > { %v7649_v1 = vpop.f32.mrf.mxu0  ;;  %v18999_v27 = vld [vmem:[#allocation141_spill] sm:$0xff] }
 0x572   : > { %18957 = vst [vmem:[#allocation37_spill] sm:$0xff] %v16143_v41  ;;  %v16146_v9 = vadd.f32 %v7840_v6, %v7648_v55  ;;  %v7650_v29 = vadd.f32 %v7649_v1, %v18960_v60  ;;  %v7842_v17 = vpop.f32.mrf.mxu1  ;;  %v18966_v55 = vld [vmem:[#allocation132_spill] sm:$0xff]  ;;  %v18967_v1 = vld [vmem:[#allocation98_spill] sm:$0xff]  ;;  %v18972_v41 = vld [vmem:[#allocation137_spill] sm:$0xff] }
 0x573   : > { %v7651_v45 = vpop.f32.mrf.mxu0 }
 0x574   : > { %18959 = vst [vmem:[#allocation38_spill] sm:$0xff] %v16146_v9  ;;  %v16149_v3 = vadd.f32 %v7842_v17, %v7650_v29  ;;  %v7652_v0 = vadd.f32 %v7651_v45, %v18962_v53  ;;  %v7844_v18 = vpop.f32.mrf.mxu1  ;;  %v18968_v17 = vld [vmem:[#allocation99_spill] sm:$0xff] }
 0x575   : > { %v7655_v5 = vpop.f32.mrf.mxu0  ;;  %8346 = vmatmul.mubr.bf16.gmra.mxu0 %v18963_v8  ;;  %v18980_v29 = vld [vmem:[#allocation107_spill] sm:$0xff] }
 0x576   : > { %18961 = vst [vmem:[#allocation40_spill] sm:$0xff] %v16149_v3  ;;  %v16155_v54 = vadd.f32 %v7844_v18, %v7652_v0  ;;  %v7656_v6 = vadd.f32 %v7655_v5, %v18965_v58  ;;  %v7848_v34 = vpop.f32.mrf.mxu1  ;;  %8539 = vmatmul.mubr.bf16.gmra.mxu1 %v18966_v55  ;;  %8355 = vmatprep.mubr.bf16.mxu0 %v18967_v1  ;;  %v16240_v3 = vld [vmem:[#allocation8] sm:$0xff]  ;;  %v18997_v9 = vld [vmem:[#allocation19_spill] sm:$0xff] }
 0x577   : > { %8548 = vmatprep.mubr.bf16.mxu1 %v18968_v17  ;;  %v7657_v60 = vpop.f32.mrf.mxu0 }
 0x578   : > { %18964 = vst [vmem:[#allocation111_spill] sm:$0xff] %v16155_v54  ;;  %v16163_v45 = vadd.f32 %v7848_v34, %v7656_v6  ;;  %v7658_v8 = vadd.f32 %v7657_v60, %v15860_v20  ;;  %v7850_v53 = vpop.f32.mrf.mxu1 }
 0x579   : > { %v7659_v18 = vpop.f32.mrf.mxu0 }
 0x57a   : > { %18969 = vst [vmem:[#allocation45_spill] sm:$0xff] %v16163_v45  ;;  %v16166_v0 = vadd.f32 %v7850_v53, %v7658_v8  ;;  %v7660_v5 = vadd.f32 %v7659_v18, %v15862_v62  ;;  %v7852_v58 = vpop.f32.mrf.mxu1  ;;  %v18974_v8 = vld [vmem:[#allocation104_spill] sm:$0xff]  ;;  %v18975_v62 = vld [vmem:[#allocation105_spill] sm:$0xff]  ;;  %v18976_v53 = vld [vmem:[#allocation110_spill] sm:$0xff] }
 0x57b   : > { %v7661_v55 = vpop.f32.mrf.mxu0 }
 0x57c   : > { %18970 = vst [vmem:[#allocation112_spill] sm:$0xff] %v16166_v0  ;;  %v16169_v28 = vadd.f32 %v7852_v58, %v7660_v5  ;;  %v7662_v1 = vadd.f32 %v7661_v55, %v15864_v47  ;;  %v7854_v17 = vpop.f32.mrf.mxu1  ;;  %v18987_v47 = vld [vmem:[#allocation114_spill] sm:$0xff] }
 0x57d   : > { %v7665_v51 = vpop.f32.mrf.mxu0  ;;  %8356 = vmatmul.mubr.bf16.gmra.mxu0 %v18972_v41 }
 0x57e   : > { %18971 = vst [vmem:[#allocation113_spill] sm:$0xff] %v16169_v28  ;;  %v16175_v20 = vadd.f32 %v7854_v17, %v7662_v1  ;;  %v7666_v34 = vadd.f32 %v7665_v51, %v15869_v16  ;;  %v7858_v60 = vpop.f32.mrf.mxu1  ;;  %8549 = vmatmul.mubr.bf16.gmra.mxu1 %v18974_v8  ;;  %8365 = vmatprep.mubr.bf16.mxu0 %v18975_v62 }
 0x57f   : > { %8558 = vmatprep.mubr.bf16.mxu1 %v18976_v53  ;;  %v7667_v18 = vpop.f32.mrf.mxu0 }
 0x580   : > { %18973 = vst [vmem:[#allocation27_spill] sm:$0xff] %v16175_v20  ;;  %v16183_v5 = vadd.f32 %v7858_v60, %v7666_v34  ;;  %v7668_v41 = vadd.f32 %v7667_v18, %v15872_v25  ;;  %v7860_v58 = vpop.f32.mrf.mxu1  ;;  %v18982_v18 = vld [vmem:[#allocation106_spill] sm:$0xff] }
 0x581   : > { %v7669_v55 = vpop.f32.mrf.mxu0 }
 0x582   : > { %18977 = vst [vmem:[#allocation46_spill] sm:$0xff] %v16183_v5  ;;  %v16186_v1 = vadd.f32 %v7860_v58, %v7668_v41  ;;  %v7670_v16 = vadd.f32 %v7669_v55, %v15874_v11  ;;  %v7862_v51 = vpop.f32.mrf.mxu1  ;;  %v18983_v41 = vld [vmem:[#allocation109_spill] sm:$0xff]  ;;  %v18984_v58 = vld [vmem:[#allocation108_spill] sm:$0xff] }
 0x583   : > { %v7671_v17 = vpop.f32.mrf.mxu0 }
 0x584   : > { %18978 = vst [vmem:[#allocation47_spill] sm:$0xff] %v16186_v1  ;;  %v16189_v8 = vadd.f32 %v7862_v51, %v7670_v16  ;;  %v7672_v62 = vadd.f32 %v7671_v17, %v15876_v35  ;;  %v7864_v53 = vpop.f32.mrf.mxu1 }
 0x585   : > { %v7901_v6 = vpop.f32.mrf.mxu0  ;;  %8366 = vmatmul.mubr.bf16.gmra.mxu0 %v18980_v29 }
 0x586   : > { %18979 = vst [vmem:[#allocation48_spill] sm:$0xff] %v16189_v8  ;;  %v16195_v25 = vadd.f32 %v7864_v53, %v7672_v62  ;;  %v8094_v60 = vpop.f32.mrf.mxu1  ;;  %8559 = vmatmul.mubr.bf16.gmra.mxu1 %v18982_v18  ;;  %8375 = vmatprep.mubr.bf16.mxu0 %v18983_v41 }
 0x587   : > { %v16199_v11 = vadd.f32 %v8094_v60, %v7901_v6  ;;  %8568 = vmatprep.mubr.bf16.mxu1 %v18984_v58  ;;  %v7903_v55 = vpop.f32.mrf.mxu0  ;;  %v18985_v6 = vld [vmem:[#allocation32_spill] sm:$0xff]  ;;  %v18986_v58 = vld [vmem:[#allocation115_spill] sm:$0xff] }
 0x588   : > { %18981 = vst [vmem:[#allocation117_spill] sm:$0xff] %v16195_v25  ;;  %v8096_v16 = vpop.f32.mrf.mxu1 }
 0x589   : > { %v16204_v29 = vadd.f32 %v8096_v16, %v7903_v55  ;;  %v7905_v51 = vpop.f32.mrf.mxu0  ;;  %v18988_v55 = vld [vmem:[#allocation116_spill] sm:$0xff] }
 0x58a   : > { %v8098_v17 = vpop.f32.mrf.mxu1 }
 0x58b   : > { %v16206_v62 = vadd.f32 %v8098_v17, %v7905_v51  ;;  %v7907_v53 = vpop.f32.mrf.mxu0 }
 0x58c   : > { %v8100_v34 = vpop.f32.mrf.mxu1 }
 0x58d   : > { %v16208_v18 = vadd.f32 %v8100_v34, %v7907_v53  ;;  %v7911_v41 = vpop.f32.mrf.mxu0  ;;  %8376 = vmatmul.mubr.bf16.gmra.mxu0 %v18985_v6 }
 0x58e   : > { %v8104_v60 = vpop.f32.mrf.mxu1  ;;  %8569 = vmatmul.mubr.bf16.gmra.mxu1 %v18986_v58  ;;  %8385 = vmatprep.mubr.bf16.mxu0 %v18987_v47  ;;  %v18989_v58 = vld [vmem:[#allocation119_spill] sm:$0xff] }
 0x58f   : > { %v16213_v35 = vadd.f32 %v8104_v60, %v7911_v41  ;;  %8578 = vmatprep.mubr.bf16.mxu1 %v18988_v55  ;;  %v7913_v16 = vpop.f32.mrf.mxu0  ;;  %v18990_v41 = vld [vmem:[#allocation120_spill] sm:$0xff]  ;;  %v18991_v60 = vld [vmem:[#allocation66_spill] sm:$0xff] }
 0x590   : > { %v8106_v5 = vpop.f32.mrf.mxu1 }
 0x591   : > { %v16216_v51 = vadd.f32 %v8106_v5, %v7913_v16  ;;  %v7915_v17 = vpop.f32.mrf.mxu0  ;;  %v18992_v5 = vld [vmem:[#allocation83_spill] sm:$0xff] }
 0x592   : > { %v8108_v8 = vpop.f32.mrf.mxu1 }
 0x593   : > { %v16218_v34 = vadd.f32 %v8108_v8, %v7915_v17  ;;  %v7917_v53 = vpop.f32.mrf.mxu0 }
 0x594   : > { %v8110_v1 = vpop.f32.mrf.mxu1 }
 0x595   : > { %v16220_v6 = vadd.f32 %v8110_v1, %v7917_v53  ;;  %v7921_v25 = vpop.f32.mrf.mxu0  ;;  %8386 = vmatmul.mubr.bf16.gmra.mxu0 %v18989_v58 }
 0x596   : > { %v8114_v47 = vpop.f32.mrf.mxu1  ;;  %8579 = vmatmul.mubr.bf16.gmra.mxu1 %v18990_v41  ;;  %8395 = vmatprep.mubr.bf16.mxu0 %v18991_v60  ;;  %v18993_v41 = vld [vmem:[#allocation121_spill] sm:$0xff] }
 0x597   : > { %v16225_v55 = vadd.f32 %v8114_v47, %v7921_v25  ;;  %8588 = vmatprep.mubr.bf16.mxu1 %v18992_v5  ;;  %v7923_v16 = vpop.f32.mrf.mxu0  ;;  %v18994_v25 = vld [vmem:[#allocation138_spill] sm:$0xff]  ;;  %v18995_v47 = vld [vmem:[#allocation125_spill] sm:$0xff] }
 0x598   : > { %v8116_v45 = vpop.f32.mrf.mxu1 }
 0x599   : > { %v16228_v8 = vadd.f32 %v8116_v45, %v7923_v16  ;;  %v7925_v17 = vpop.f32.mrf.mxu0  ;;  %v18996_v45 = vld [vmem:[#allocation139_spill] sm:$0xff] }
 0x59a   : > { %v8118_v28 = vpop.f32.mrf.mxu1 }
 0x59b   : > { %v16230_v1 = vadd.f32 %v8118_v28, %v7925_v17  ;;  %v7927_v53 = vpop.f32.mrf.mxu0 }
 0x59c   : > { %v8120_v0 = vpop.f32.mrf.mxu1 }
 0x59d   : > { %v16232_v58 = vadd.f32 %v8120_v0, %v7927_v53  ;;  %v7931_v20 = vpop.f32.mrf.mxu0  ;;  %8396 = vmatmul.mubr.bf16.gmra.mxu0 %v18993_v41  ;;  %v8776_v41 = vrot.slane %v16240_v3, %v18997_v9 }
 0x59e   : > { %v8124_v60 = vpop.f32.mrf.mxu1  ;;  %8589 = vmatmul.mubr.bf16.gmra.mxu1 %v18994_v25  ;;  %8405 = vmatprep.mubr.bf16.mxu0 %v18995_v47 }
 0x59f   : > { %v16237_v5 = vadd.f32 %v8124_v60, %v7931_v20  ;;  %8598 = vmatprep.mubr.bf16.mxu1 %v18996_v45  ;;  %v7933_v16 = vpop.f32.mrf.mxu0  ;;  %v18998_v60 = vld [vmem:[#allocation140_spill] sm:$0xff] }
 0x5a0   : > { %v8126_v28 = vpop.f32.mrf.mxu1 }
 0x5a1   : > { %v16242_v17 = vadd.f32 %v8126_v28, %v7933_v16  ;;  %v7935_v0 = vpop.f32.mrf.mxu0  ;;  %v8784_v16 = vcombine.high %v8776_v41, %v8776_v41 }
 0x5a2   : > { %v8128_v53 = vpop.f32.mrf.mxu1 }
 0x5a3   : > { %v16246_v54 = vadd.f32 %v8128_v53, %v7935_v0  ;;  %v7937_v25 = vpop.f32.mrf.mxu0 }
 0x5a4   : > { %v8130_v44 = vpop.f32.mrf.mxu1 }
 0x5a5   : > { %v16248_v47 = vadd.f32 %v8130_v44, %v7937_v25  ;;  %v7941_v20 = vpop.f32.mrf.mxu0  ;;  %8406 = vmatmul.mubr.bf16.gmra.mxu0 %v18998_v60  ;;  %v8806_v25 = vrot.slane %v8784_v16, %v18997_v9 }
 0x5a6   : > { %v8134_v45 = vpop.f32.mrf.mxu1  ;;  %8599 = vmatmul.mubr.bf16.gmra.mxu1 %v18999_v27  ;;  %8415 = vmatprep.mubr.bf16.mxu0 %v19000_v37 }
 0x5a7   : > { %v16253_v28 = vadd.f32 %v8134_v45, %v7941_v20  ;;  %8608 = vmatprep.mubr.bf16.mxu1 %v19001_v15  ;;  %v7943_v23 = vpop.f32.mrf.mxu0  ;;  %v8816_v27 = vcombine.high %v8806_v25, %v8806_v25  ;;  %v19002_v20 = vld [vmem:[#allocation135_spill] sm:$0xff]  ;;  %v19003_v15 = vld [vmem:[#allocation133_spill] sm:$0xff] }
 0x5a8   : > { %v8136_v0 = vpop.f32.mrf.mxu1 }
 0x5a9   : > { %v16256_v53 = vadd.f32 %v8136_v0, %v7943_v23  ;;  %v7945_v36 = vpop.f32.mrf.mxu0  ;;  %v19005_v0 = vld [vmem:[#allocation134_spill] sm:$0xff]  ;;  %v8840_v57 = vpack.i.b16 %v8816_v27, %v8816_v27 }
 0x5aa   : > { %v8138_v44 = vpop.f32.mrf.mxu1 }
 0x5ab   : > { %v16259_v32 = vadd.f32 %v8138_v44, %v7945_v36  ;;  %v7947_v60 = vpop.f32.mrf.mxu0  ;;  %v8826_v36 = vpack.i.b16 %v8806_v25, %v8806_v25 }
 0x5ac   : > { %v8140_v61 = vpop.f32.mrf.mxu1 }
 0x5ad   : > { %v16261_v19 = vadd.f32 %v8140_v61, %v7947_v60  ;;  %v7951_v37 = vpop.f32.mrf.mxu0  ;;  %8416 = vmatmul.mubr.bf16.gmra.mxu0 %v19002_v20  ;;  %v8792_v60 = vrot.slane %v8776_v41, %v18997_v9  ;;  %v19009_v41 = vld [vmem:[#allocation145_spill] sm:$0xff] }
 0x5ae   : > { %v8144_v45 = vpop.f32.mrf.mxu1  ;;  %8609 = vmatmul.mubr.bf16.gmra.mxu1 %v19003_v15  ;;  %8425 = vmatprep.mubr.bf16.mxu0 %v19004_v30  ;;  %v19006_v15 = vld [vmem:[#allocation22_spill] sm:$0xff] }
 0x5af   : > { %v16266_v23 = vadd.f32 %v8144_v45, %v7951_v37  ;;  %8618 = vmatprep.mubr.bf16.mxu1 %v19005_v0  ;;  %v7953_v16 = vpop.f32.mrf.mxu0  ;;  %v16275_v38 = vrot.slane %v8826_v36, %v19006_v15  ;;  %v8814_v30 = vcombine.high %v8792_v60, %v8792_v60  ;;  %v16278_v45 = vrot.slane %v8840_v57, %v19006_v15  ;;  %v19007_v0 = vld [vmem:[#allocation143_spill] sm:$0xff]  ;;  %v19010_v36 = vld [vmem:[#allocation146_spill] sm:$0xff] }
 0x5b0   : > { %v8146_v44 = vpop.f32.mrf.mxu1  ;;  %v19013_v57 = vpack.c.bf16 %v19011_v48, %v19012_v40 }
 0x5b1   : > { %v16269_v50 = vadd.f32 %v8146_v44, %v7953_v16  ;;  %v7955_v61 = vpop.f32.mrf.mxu0  ;;  %v19008_v44 = vld [vmem:[#allocation144_spill] sm:$0xff] }
 0x5b2   : > { %v8148_v7 = vpop.f32.mrf.mxu1 }
 0x5b3   : > { %v16272_v20 = vadd.f32 %v8148_v7, %v7955_v61  ;;  %v7957_v24 = vpop.f32.mrf.mxu0  ;;  %v8819_v7 = vpack.i.b16 %v8792_v60, %v8792_v60 }
 0x5b4   : > { %v8150_v37 = vpop.f32.mrf.mxu1 }
 0x5b5   : > { %v16280_v25 = vadd.f32 %v8150_v37, %v7957_v24  ;;  %v7961_v27 = vpop.f32.mrf.mxu0  ;;  %8426 = vmatmul.mubr.bf16.gmra.mxu0 %v19007_v0  ;;  %v8875_v24 = vadd.bf16 %v16275_v38, %v19013_v57  ;;  %v8833_v37 = vpack.i.b16 %v8814_v30, %v8814_v30  ;;  %v19015_v0 = vld [vmem:[#allocation49_spill] sm:$0xff]  ;;  %v19017_v30 = vmov 0  }
 0x5b6   : > { %v8154_v16 = vpop.f32.mrf.mxu1  ;;  %8619 = vmatmul.mubr.bf16.gmra.mxu1 %v19008_v44  ;;  %8435 = vmatprep.mubr.bf16.mxu0 %v19009_v41  ;;  %v19016_v31 = vpack.c.bf16 %v19014_v12, %v19015_v0  ;;  %v19019_v0 = vld [vmem:[#allocation148_spill] sm:$0xff] }
 0x5b7   : > { %v16285_v61 = vadd.f32 %v8154_v16, %v7961_v27  ;;  %8628 = vmatprep.mubr.bf16.mxu1 %v19010_v36  ;;  %v7963_v13 = vpop.f32.mrf.mxu0  ;;  %v16299_v16 = vrot.slane %v8819_v7, %v19006_v15  ;;  %v16304_v40 = vrot.slane %v8833_v37, %v19006_v15  ;;  %v9003_v57 = vmax.bf16 %v19017_v30, %v8875_v24  ;;  %v19020_v7 = vld [vmem:[#allocation42_spill] sm:$0xff] }
 0x5b8   : > { %v8156_v52 = vpop.f32.mrf.mxu1  ;;  %v8877_v44 = vadd.bf16 %v16278_v45, %v19016_v31  ;;  %v19018_v31 = vld [vmem:[#allocation147_spill] sm:$0xff] }
 0x5b9   : > { %v16296_v33 = vadd.f32 %v8156_v52, %v7963_v13  ;;  %v7965_v60 = vpop.f32.mrf.mxu0 }
 0x5ba   : > { %v8158_v27 = vpop.f32.mrf.mxu1  ;;  %v9005_v52 = vmax.bf16 %v19017_v30, %v8877_v44  ;;  %v19028_v44 = vld [vmem:[#allocation74_spill] sm:$0xff] }
 0x5bb   : > { %v16301_v41 = vadd.f32 %v8158_v27, %v7965_v60  ;;  %v7967_v36 = vpop.f32.mrf.mxu0  ;;  %v19021_v60 = vld [vmem:[#allocation73_spill] sm:$0xff]  ;;  %v19029_v10 = vpack.c.bf16 %v19027_v42, %v19028_v44 }
 0x5bc   : > { %v8160_v48 = vpop.f32.mrf.mxu1  ;;  %v19022_v27 = vpack.c.bf16 %v19020_v7, %v19021_v60  ;;  %v19032_v7 = vpack.c.bf16 %v19030_v4, %v19031_v39 }
 0x5bd   : > { %v16307_v14 = vadd.f32 %v8160_v48, %v7967_v36  ;;  %v7971_v12 = vpop.f32.mrf.mxu0  ;;  %8436 = vmatmul.mubr.bf16.gmra.mxu0 %v19018_v31  ;;  %v19024_v36 = vld [vmem:[#allocation80_spill] sm:$0xff] }
 0x5be   : > { %v8164_v13 = vpop.f32.mrf.mxu1  ;;  %8629 = vmatmul.mubr.bf16.gmra.mxu1 %v19019_v0  ;;  %9681 = vmatprep.mubr.bf16.mxu0 %v9003_v57  ;;  %v8874_v37 = vadd.bf16 %v16299_v16, %v19022_v27  ;;  %v19025_v48 = vld [vmem:[#allocation76_spill] sm:$0xff]  ;;  %v8876_v0 = vadd.bf16 %v16304_v40, %v19029_v10  ;;  %v8885_v60 = vadd.bf16 %v16278_v45, %v19032_v7 }
 0x5bf   : > { %v16316_v2 = vadd.f32 %v8164_v13, %v7971_v12  ;;  %9842 = vmatprep.mubr.bf16.mxu1 %v9005_v52  ;;  %v7973_v24 = vpop.f32.mrf.mxu0  ;;  %v19026_v46 = vpack.c.bf16 %v19024_v36, %v19025_v48  ;;  %v12203_v48 = vld [vmem:[#allocation10 + $0x138] sm:$0xff]  }
 0x5c0   : > { %v8166_v57 = vpop.f32.mrf.mxu1  ;;  %v9002_v27 = vmax.bf16 %v19017_v30, %v8874_v37  ;;  %v9004_v42 = vmax.bf16 %v19017_v30, %v8876_v0  ;;  %v19036_v37 = vld [vmem:[#allocation173_spill] sm:$0xff] }
 0x5c1   : > { %19023 = vst [vmem:[#allocation50_spill] sm:$0xff] %v16316_v2  ;;  %v8883_v31 = vadd.bf16 %v16275_v38, %v19026_v46  ;;  %v16330_v12 = vadd.f32 %v8166_v57, %v7973_v24  ;;  %v7975_v52 = vpop.f32.mrf.mxu0  ;;  %v9013_v24 = vmax.bf16 %v19017_v30, %v8885_v60  ;;  %v12208_v57 = vld [vmem:[#allocation10 + $0x1f0] sm:$0xff]  }
 0x5c2   : > { %v8168_v13 = vpop.f32.mrf.mxu1  ;;  %v19044_v2 = vld [vmem:[#allocation77_spill] sm:$0xff] }
 0x5c3   : > { %19033 = vst [vmem:[#allocation118_spill] sm:$0xff] %v16330_v12  ;;  %v16333_v36 = vadd.f32 %v8168_v13, %v7975_v52  ;;  %v7977_v46 = vpop.f32.mrf.mxu0  ;;  %v9011_v10 = vmax.bf16 %v19017_v30, %v8883_v31  ;;  %v19037_v52 = vld [vmem:[#allocation43_spill] sm:$0xff] }
 0x5c4   : > { %v8170_v44 = vpop.f32.mrf.mxu1  ;;  %v19038_v13 = vpack.c.bf16 %v19036_v37, %v19037_v52  ;;  %v19043_v12 = vld [vmem:[#allocation79_spill] sm:$0xff]  ;;  %v12209_v37 = vld [vmem:[#allocation10 + $0x1b0] sm:$0xff]  }
 0x5c5   : > { %19034 = vst [vmem:[#allocation62_spill] sm:$0xff] %v16333_v36  ;;  %v16337_v4 = vadd.f32 %v8170_v44, %v7977_v46  ;;  %v7981_v39 = vpop.f32.mrf.mxu0  ;;  %9682 = vmatmul.mubr.bf16.vlgmr.msra.gmra.mxu0 %v9002_v27  ;;  %v12207_v46 = vld [vmem:[#allocation10 + $0x130] sm:$0xff]   ;;  %v19040_v44 = vld [vmem:[#allocation63_spill] sm:$0xff] }
 0x5c6   : > { %v8174_v7 = vpop.f32.mrf.mxu1  ;;  %9843 = vmatmul.mubr.bf16.vlgmr.msra.gmra.mxu1 %v9004_v42  ;;  %9689 = vmatprep.mubr.bf16.mxu0 %v9011_v10  ;;  %v8882_v0 = vadd.bf16 %v16299_v16, %v19038_v13  ;;  %v19045_v42 = vpack.c.bf16 %v19043_v12, %v19044_v2 }
 0x5c7   : > { %19035 = vst [vmem:[#allocation82_spill] sm:$0xff] %v16337_v4  ;;  %v16344_v36 = vadd.f32 %v8174_v7, %v7981_v39  ;;  %9850 = vmatprep.mubr.bf16.mxu1 %v9013_v24  ;;  %11781 = vmatpush3.bf16.msra.mxu0 %v12203_v48  ;;  %v7983_v31 = vpop.f32.mrf.mxu0  ;;  %v19041_v4 = vld [vmem:[#allocation58_spill] sm:$0xff]  ;;  %v12210_v39 = vld [vmem:[#allocation10 + $0x168] sm:$0xff]   ;;  %v19047_v24 = vld [vmem:[#allocation241_spill] sm:$0xff] }
 0x5c8   : > { %v19042_v27 = vpack.c.bf16 %v19040_v44, %v19041_v4  ;;  %v8884_v10 = vadd.bf16 %v16304_v40, %v19045_v42  ;;  %v8176_v56 = vpop.f32.mrf.mxu1  ;;  %11893 = vmatpush3.bf16.msra.mxu1 %v12205_v59  ;;  %11782 = vmatprep.subr.bf16.mxu0 %v12206_v26  ;;  %v19046_v7 = vld [vmem:[#allocation243_spill] sm:$0xff]  ;;  %v9010_v2 = vmax.bf16 %v19017_v30, %v8882_v0 }
 0x5c9   : > { %19039 = vst [vmem:[#allocation51_spill] sm:$0xff] %v16344_v36  ;;  %v19048_v48 = vpack.c.bf16 %v19046_v7, %v19047_v24  ;;  %v16358_v13 = vadd.f32 %v8176_v56, %v7983_v31  ;;  %v7985_v4 = vpop.f32.mrf.mxu0  ;;  %11894 = vmatprep.subr.bf16.mxu1 %v12208_v57  ;;  %v12212_v44 = vld [vmem:[#allocation10 + $0x1e8] sm:$0xff]   ;;  %v12214_v31 = vld [vmem:[#allocation10 + $0x160] sm:$0xff]  }
 0x5ca   : > { %v8891_v60 = vadd.bf16 %v16275_v38, %v19042_v27  ;;  %v8178_v27 = vpop.f32.mrf.mxu1  ;;  %v12211_v59 = vld [vmem:[#allocation10 + $0x128] sm:$0xff]   ;;  %v9012_v26 = vmax.bf16 %v19017_v30, %v8884_v10  ;;  %v19053_v10 = vld [vmem:[#allocation81_spill] sm:$0xff] }
 0x5cb   : > { %v8893_v52 = vadd.bf16 %v16278_v45, %v19048_v48  ;;  %19049 = vst [vmem:[#allocation52_spill] sm:$0xff] %v16358_v13  ;;  %v16361_v12 = vadd.f32 %v8178_v27, %v7985_v4  ;;  %v7987_v42 = vpop.f32.mrf.mxu0  ;;  %11783 = vmatpush3.bf16.msra.mxu0 %v12207_v46  ;;  %v12213_v56 = vld [vmem:[#allocation10 + $0x1a8] sm:$0xff]   ;;  %v12216_v48 = vld [vmem:[#allocation10 + $0x1e0] sm:$0xff]  }
 0x5cc   : > { %v8180_v36 = vpop.f32.mrf.mxu1  ;;  %v9019_v7 = vmax.bf16 %v19017_v30, %v8891_v60  ;;  %11895 = vmatpush3.bf16.msra.mxu1 %v12209_v37  ;;  %11784 = vmatprep.subr.bf16.mxu0 %v12210_v39  ;;  %v19052_v46 = vld [vmem:[#allocation59_spill] sm:$0xff] }
 0x5cd   : > { %19050 = vst [vmem:[#allocation53_spill] sm:$0xff] %v16361_v12  ;;  %v16365_v24 = vadd.f32 %v8180_v36, %v7987_v42  ;;  %v7991_v57 = vpop.f32.mrf.mxu0  ;;  %9690 = vmatmul.mubr.bf16.gmra.mxu0 %v9010_v2  ;;  %v9021_v0 = vmax.bf16 %v19017_v30, %v8893_v52  ;;  %11896 = vmatprep.subr.bf16.mxu1 %v12212_v44  ;;  %v12215_v36 = vld [vmem:[#allocation10 + $0x120] sm:$0xff]   ;;  %v19056_v42 = vld [vmem:[#allocation84_spill] sm:$0xff]  ;;  %v19057_v2 = vld [vmem:[#allocation25_spill] sm:$0xff] }
 0x5ce   : > { %v8184_v4 = vpop.f32.mrf.mxu1  ;;  %9851 = vmatmul.mubr.bf16.gmra.mxu1 %v9012_v26  ;;  %9697 = vmatprep.mubr.bf16.mxu0 %v9019_v7  ;;  %v19054_v27 = vpack.c.bf16 %v19052_v46, %v19053_v10  ;;  %v19059_v44 = vld [vmem:[#allocation242_spill] sm:$0xff]  ;;  %v19060_v12 = vld [vmem:[#allocation240_spill] sm:$0xff] }
 0x5cf   : > { %19051 = vst [vmem:[#allocation122_spill] sm:$0xff] %v16365_v24  ;;  %v16372_v37 = vadd.f32 %v8184_v4, %v7991_v57  ;;  %9858 = vmatprep.mubr.bf16.mxu1 %v9021_v0  ;;  %v7993_v39 = vpop.f32.mrf.mxu0  ;;  %11785 = vmatpush3.bf16.msra.mxu0 %v12211_v59  ;;  %v19058_v24 = vpack.c.bf16 %v19056_v42, %v19057_v2  ;;  %v12217_v46 = vld [vmem:[#allocation10 + $0x1a0] sm:$0xff]   ;;  %v12218_v57 = vld [vmem:[#allocation10 + $0x158] sm:$0xff]  }
 0x5d0   : > { %v8890_v60 = vadd.bf16 %v16299_v16, %v19054_v27  ;;  %v19061_v26 = vpack.c.bf16 %v19059_v44, %v19060_v12  ;;  %v8186_v13 = vpop.f32.mrf.mxu1  ;;  %11897 = vmatpush3.bf16.msra.mxu1 %v12213_v56  ;;  %11786 = vmatprep.subr.bf16.mxu0 %v12214_v31  ;;  %v19062_v4 = vld [vmem:[#allocation247_spill] sm:$0xff]  ;;  %v19063_v0 = vld [vmem:[#allocation245_spill] sm:$0xff] }
 0x5d1   : > { %19055 = vst [vmem:[#allocation54_spill] sm:$0xff] %v16372_v37  ;;  %v8899_v52 = vadd.bf16 %v16275_v38, %v19058_v24  ;;  %v19064_v10 = vpack.c.bf16 %v19062_v4, %v19063_v0  ;;  %v16386_v27 = vadd.f32 %v8186_v13, %v7993_v39  ;;  %v7995_v42 = vpop.f32.mrf.mxu0  ;;  %11898 = vmatprep.subr.bf16.mxu1 %v12216_v48  ;;  %v12220_v24 = vld [vmem:[#allocation10 + $0x1d8] sm:$0xff]   ;;  %v12222_v39 = vld [vmem:[#allocation10 + $0x150] sm:$0xff]  }
 0x5d2   : > { %v8892_v7 = vadd.bf16 %v16304_v40, %v19061_v26  ;;  %v8188_v2 = vpop.f32.mrf.mxu1  ;;  %v9018_v12 = vmax.bf16 %v19017_v30, %v8890_v60  ;;  %v12219_v56 = vld [vmem:[#allocation10 + $0x118] sm:$0xff]  }
 0x5d3   : > { %v8901_v59 = vadd.bf16 %v16278_v45, %v19064_v10  ;;  %19065 = vst [vmem:[#allocation71_spill] sm:$0xff] %v16386_v27  ;;  %v16389_v44 = vadd.f32 %v8188_v2, %v7995_v42  ;;  %v7997_v26 = vpop.f32.mrf.mxu0  ;;  %11787 = vmatpush3.bf16.msra.mxu0 %v12215_v36  ;;  %v9027_v4 = vmax.bf16 %v19017_v30, %v8899_v52  ;;  %v12221_v13 = vld [vmem:[#allocation10 + $0x198] sm:$0xff]   ;;  %v12224_v10 = vld [vmem:[#allocation10 + $0x1d0] sm:$0xff]  }
 0x5d4   : > { %v9020_v31 = vmax.bf16 %v19017_v30, %v8892_v7  ;;  %v8190_v37 = vpop.f32.mrf.mxu1  ;;  %11899 = vmatpush3.bf16.msra.mxu1 %v12217_v46  ;;  %11788 = vmatprep.subr.bf16.mxu0 %v12218_v57  ;;  %v19068_v36 = vld [vmem:[#allocation65_spill] sm:$0xff]  ;;  %v19069_v7 = vld [vmem:[#allocation64_spill] sm:$0xff] }
 0x5d5   : > { %19066 = vst [vmem:[#allocation86_spill] sm:$0xff] %v16389_v44  ;;  %v16393_v0 = vadd.f32 %v8190_v37, %v7997_v26  ;;  %v8001_v48 = vpop.f32.mrf.mxu0  ;;  %9698 = vmatmul.mubr.bf16.gmra.mxu0 %v9018_v12  ;;  %v9029_v60 = vmax.bf16 %v19017_v30, %v8901_v59  ;;  %11900 = vmatprep.subr.bf16.mxu1 %v12220_v24  ;;  %v12223_v37 = vld [vmem:[#allocation10 + $0x110] sm:$0xff]   ;;  %v19073_v12 = vld [vmem:[#allocation175_spill] sm:$0xff]  ;;  %v19075_v24 = vld [vmem:[#allocation246_spill] sm:$0xff] }
 0x5d6   : > { %v8194_v42 = vpop.f32.mrf.mxu1  ;;  %9859 = vmatmul.mubr.bf16.gmra.mxu1 %v9020_v31  ;;  %9705 = vmatprep.mubr.bf16.mxu0 %v9027_v4  ;;  %v19070_v2 = vpack.c.bf16 %v19068_v36, %v19069_v7  ;;  %v19072_v26 = vld [vmem:[#allocation177_spill] sm:$0xff]  ;;  %v19076_v44 = vld [vmem:[#allocation244_spill] sm:$0xff] }
 0x5d7   : > { %19067 = vst [vmem:[#allocation85_spill] sm:$0xff] %v16393_v0  ;;  %v16400_v46 = vadd.f32 %v8194_v42, %v8001_v48  ;;  %9866 = vmatprep.mubr.bf16.mxu1 %v9029_v60  ;;  %v8003_v57 = vpop.f32.mrf.mxu0  ;;  %11789 = vmatpush3.bf16.msra.mxu0 %v12219_v56  ;;  %v19074_v0 = vpack.c.bf16 %v19072_v26, %v19073_v12  ;;  %v12225_v36 = vld [vmem:[#allocation10 + $0x190] sm:$0xff]   ;;  %v12226_v48 = vld [vmem:[#allocation10 + $0x148] sm:$0xff]   ;;  %v19079_v60 = vld [vmem:[#allocation198_spill] sm:$0xff] }
 0x5d8   : > { %v8898_v52 = vadd.bf16 %v16299_v16, %v19070_v2  ;;  %v19077_v31 = vpack.c.bf16 %v19075_v24, %v19076_v44  ;;  %v8196_v27 = vpop.f32.mrf.mxu1  ;;  %11901 = vmatpush3.bf16.msra.mxu1 %v12221_v13  ;;  %11790 = vmatprep.subr.bf16.mxu0 %v12222_v39  ;;  %v19078_v42 = vld [vmem:[#allocation200_spill] sm:$0xff] }
 0x5d9   : > { %19071 = vst [vmem:[#allocation55_spill] sm:$0xff] %v16400_v46  ;;  %v8907_v59 = vadd.bf16 %v16275_v38, %v19074_v0  ;;  %v19080_v7 = vpack.c.bf16 %v19078_v42, %v19079_v60  ;;  %v16414_v2 = vadd.f32 %v8196_v27, %v8003_v57  ;;  %v8005_v26 = vpop.f32.mrf.mxu0  ;;  %11902 = vmatprep.subr.bf16.mxu1 %v12224_v10  ;;  %v12228_v0 = vld [vmem:[#allocation10 + $0x1c8] sm:$0xff]   ;;  %v12230_v57 = vld [vmem:[#allocation10 + $0x140] sm:$0xff]  }
 0x5da   : > { %v8900_v4 = vadd.bf16 %v16304_v40, %v19077_v31  ;;  %v8198_v12 = vpop.f32.mrf.mxu1  ;;  %v9026_v44 = vmax.bf16 %v19017_v30, %v8898_v52  ;;  %v12227_v13 = vld [vmem:[#allocation10 + $0x108] sm:$0xff]  }
 0x5db   : > { %v8909_v56 = vadd.bf16 %v16278_v45, %v19080_v7  ;;  %19081 = vst [vmem:[#allocation56_spill] sm:$0xff] %v16414_v2  ;;  %v16417_v24 = vadd.f32 %v8198_v12, %v8005_v26  ;;  %v8007_v31 = vpop.f32.mrf.mxu0  ;;  %11791 = vmatpush3.bf16.msra.mxu0 %v12223_v37  ;;  %v9035_v42 = vmax.bf16 %v19017_v30, %v8907_v59  ;;  %v12229_v27 = vld [vmem:[#allocation10 + $0x188] sm:$0xff]   ;;  %v12232_v7 = vld [vmem:[#allocation10 + $0x1c0] sm:$0xff]  }
 0x5dc   : > { %v9028_v39 = vmax.bf16 %v19017_v30, %v8900_v4  ;;  %v8200_v46 = vpop.f32.mrf.mxu1  ;;  %11903 = vmatpush3.bf16.msra.mxu1 %v12225_v36  ;;  %11792 = vmatprep.subr.bf16.mxu0 %v12226_v48  ;;  %v19084_v37 = vld [vmem:[#allocation176_spill] sm:$0xff]  ;;  %v19085_v4 = vld [vmem:[#allocation174_spill] sm:$0xff] }
 0x5dd   : > { %19082 = vst [vmem:[#allocation57_spill] sm:$0xff] %v16417_v24  ;;  %v16421_v60 = vadd.f32 %v8200_v46, %v8007_v31  ;;  %v8011_v10 = vpop.f32.mrf.mxu0  ;;  %9706 = vmatmul.mubr.bf16.gmra.mxu0 %v9026_v44  ;;  %v9037_v52 = vmax.bf16 %v19017_v30, %v8909_v56  ;;  %11904 = vmatprep.subr.bf16.mxu1 %v12228_v0  ;;  %v12231_v46 = vld [vmem:[#allocation10 + $0x100] sm:$0xff]   ;;  %v19087_v31 = vld [vmem:[#allocation181_spill] sm:$0xff]  ;;  %v19091_v24 = vld [vmem:[#allocation248_spill] sm:$0xff] }
 0x5de   : > { %v8204_v26 = vpop.f32.mrf.mxu1  ;;  %9867 = vmatmul.mubr.bf16.gmra.mxu1 %v9028_v39  ;;  %9713 = vmatprep.mubr.bf16.mxu0 %v9035_v42  ;;  %v19086_v12 = vpack.c.bf16 %v19084_v37, %v19085_v4  ;;  %v19088_v44 = vld [vmem:[#allocation179_spill] sm:$0xff] }
 0x5df   : > { %19083 = vst [vmem:[#allocation87_spill] sm:$0xff] %v16421_v60  ;;  %v16428_v36 = vadd.f32 %v8204_v26, %v8011_v10  ;;  %9874 = vmatprep.mubr.bf16.mxu1 %v9037_v52  ;;  %v8013_v48 = vpop.f32.mrf.mxu0  ;;  %11793 = vmatpush3.bf16.msra.mxu0 %v12227_v13  ;;  %v19089_v60 = vpack.c.bf16 %v19087_v31, %v19088_v44  ;;  %v19090_v0 = vld [vmem:[#allocation199_spill] sm:$0xff]  ;;  %v19093_v10 = vld [vmem:[#allocation204_spill] sm:$0xff]  ;;  %v19094_v26 = vld [vmem:[#allocation202_spill] sm:$0xff] }
 0x5e0   : > { %v8906_v59 = vadd.bf16 %v16299_v16, %v19086_v12  ;;  %v19092_v39 = vpack.c.bf16 %v19090_v0, %v19091_v24  ;;  %v8206_v2 = vpop.f32.mrf.mxu1  ;;  %11905 = vmatpush3.bf16.msra.mxu1 %v12229_v27  ;;  %11794 = vmatprep.subr.bf16.mxu0 %v12230_v57  ;;  %v12233_v37 = vld [vmem:[#allocation10 + $0x180] sm:$0xff]   ;;  %v19095_v52 = vpack.c.bf16 %v19093_v10, %v19094_v26 }
 0x5e1   : > { %v8915_v56 = vadd.bf16 %v16275_v38, %v19089_v60  ;;  %v16442_v4 = vadd.f32 %v8206_v2, %v8013_v48  ;;  %v8015_v12 = vpop.f32.mrf.mxu0  ;;  %11906 = vmatprep.subr.bf16.mxu1 %v12232_v7  ;;  %v19100_v48 = vld [vmem:[#allocation178_spill] sm:$0xff] }
 0x5e2   : > { %v8908_v42 = vadd.bf16 %v16304_v40, %v19092_v39  ;;  %v8917_v13 = vadd.bf16 %v16278_v45, %v19095_v52  ;;  %v8208_v31 = vpop.f32.mrf.mxu1  ;;  %v9034_v60 = vmax.bf16 %v19017_v30, %v8906_v59  ;;  %v19099_v59 = vld [vmem:[#allocation180_spill] sm:$0xff] }
 0x5e3   : > { %19096 = vst [vmem:[#allocation60_spill] sm:$0xff] %v16442_v4  ;;  %v16445_v44 = vadd.f32 %v8208_v31, %v8015_v12  ;;  %v8017_v24 = vpop.f32.mrf.mxu0  ;;  %11795 = vmatpush3.bf16.msra.mxu0 %v12231_v46  ;;  %v9043_v0 = vmax.bf16 %v19017_v30, %v8915_v56  ;;  %v19101_v26 = vpack.c.bf16 %v19099_v59, %v19100_v48  ;;  %v19103_v56 = vld [vmem:[#allocation185_spill] sm:$0xff] }
 0x5e4   : > { %v9036_v27 = vmax.bf16 %v19017_v30, %v8908_v42  ;;  %v8210_v57 = vpop.f32.mrf.mxu1  ;;  %11907 = vmatpush3.bf16.msra.mxu1 %v12233_v37  ;;  %v9045_v2 = vmax.bf16 %v19017_v30, %v8917_v13  ;;  %v19104_v37 = vld [vmem:[#allocation183_spill] sm:$0xff] }
 0x5e5   : > { %19097 = vst [vmem:[#allocation123_spill] sm:$0xff] %v16445_v44  ;;  %v16449_v39 = vadd.f32 %v8210_v57, %v8017_v24  ;;  %v8021_v10 = vpop.f32.mrf.mxu0  ;;  %9714 = vmatmul.mubr.bf16.gmra.mxu0 %v9034_v60  ;;  %v8914_v46 = vadd.bf16 %v16299_v16, %v19101_v26  ;;  %v19105_v12 = vpack.c.bf16 %v19103_v56, %v19104_v37  ;;  %v19106_v60 = vld [vmem:[#allocation203_spill] sm:$0xff]  ;;  %v19107_v24 = vld [vmem:[#allocation201_spill] sm:$0xff] }
 0x5e6   : > { %v8214_v7 = vpop.f32.mrf.mxu1  ;;  %9875 = vmatmul.mubr.bf16.gmra.mxu1 %v9036_v27  ;;  %9721 = vmatprep.mubr.bf16.mxu0 %v9043_v0  ;;  %v19108_v13 = vpack.c.bf16 %v19106_v60, %v19107_v24  ;;  %v19109_v0 = vld [vmem:[#allocation208_spill] sm:$0xff] }
 0x5e7   : > { %19098 = vst [vmem:[#allocation89_spill] sm:$0xff] %v16449_v39  ;;  %v16456_v52 = vadd.f32 %v8214_v7, %v8021_v10  ;;  %9882 = vmatprep.mubr.bf16.mxu1 %v9045_v2  ;;  %v8023_v42 = vpop.f32.mrf.mxu0  ;;  %v8923_v31 = vadd.bf16 %v16275_v38, %v19105_v12  ;;  %v19110_v39 = vld [vmem:[#allocation206_spill] sm:$0xff]  ;;  %v9042_v26 = vmax.bf16 %v19017_v30, %v8914_v46 }
 0x5e8   : > { %v8916_v27 = vadd.bf16 %v16304_v40, %v19108_v13  ;;  %v8216_v57 = vpop.f32.mrf.mxu1  ;;  %v19111_v59 = vpack.c.bf16 %v19109_v0, %v19110_v39  ;;  %v19116_v0 = vld [vmem:[#allocation182_spill] sm:$0xff] }
 0x5e9   : > { %19102 = vst [vmem:[#allocation124_spill] sm:$0xff] %v16456_v52  ;;  %v16470_v10 = vadd.f32 %v8216_v57, %v8023_v42  ;;  %v8025_v2 = vpop.f32.mrf.mxu0  ;;  %v9051_v24 = vmax.bf16 %v19017_v30, %v8923_v31  ;;  %v19115_v57 = vld [vmem:[#allocation184_spill] sm:$0xff]  ;;  %v19120_v31 = vld [vmem:[#allocation187_spill] sm:$0xff] }
 0x5ea   : > { %v8925_v48 = vadd.bf16 %v16278_v45, %v19111_v59  ;;  %v8218_v7 = vpop.f32.mrf.mxu1  ;;  %v9044_v12 = vmax.bf16 %v19017_v30, %v8916_v27  ;;  %v19117_v46 = vpack.c.bf16 %v19115_v57, %v19116_v0 }
 0x5eb   : > { %19112 = vst [vmem:[#allocation61_spill] sm:$0xff] %v16470_v10  ;;  %v16473_v56 = vadd.f32 %v8218_v7, %v8025_v2  ;;  %v8027_v37 = vpop.f32.mrf.mxu0  ;;  %v19119_v7 = vld [vmem:[#allocation189_spill] sm:$0xff]  ;;  %v19126_v10 = vld [vmem:[#allocation210_spill] sm:$0xff] }
 0x5ec   : > { %v8220_v60 = vpop.f32.mrf.mxu1  ;;  %v9053_v39 = vmax.bf16 %v19017_v30, %v8925_v48  ;;  %v8922_v59 = vadd.bf16 %v16299_v16, %v19117_v46 }
 0x5ed   : > { %19113 = vst [vmem:[#allocation20_spill] sm:$0xff] %v16473_v56  ;;  %v16477_v13 = vadd.f32 %v8220_v60, %v8027_v37  ;;  %v8031_v52 = vpop.f32.mrf.mxu0  ;;  %9722 = vmatmul.mubr.bf16.gmra.mxu0 %v9042_v26  ;;  %v19121_v37 = vpack.c.bf16 %v19119_v7, %v19120_v31  ;;  %v19122_v26 = vld [vmem:[#allocation207_spill] sm:$0xff]  ;;  %v19125_v56 = vld [vmem:[#allocation212_spill] sm:$0xff] }
 0x5ee   : > { %v8224_v42 = vpop.f32.mrf.mxu1  ;;  %9883 = vmatmul.mubr.bf16.gmra.mxu1 %v9044_v12  ;;  %9729 = vmatprep.mubr.bf16.mxu0 %v9051_v24  ;;  %v19127_v57 = vpack.c.bf16 %v19125_v56, %v19126_v10  ;;  %v9050_v46 = vmax.bf16 %v19017_v30, %v8922_v59 }
 0x5ef   : > { %19114 = vst [vmem:[#allocation21_spill] sm:$0xff] %v16477_v13  ;;  %v16484_v2 = vadd.f32 %v8224_v42, %v8031_v52  ;;  %9890 = vmatprep.mubr.bf16.mxu1 %v9053_v39  ;;  %v8033_v27 = vpop.f32.mrf.mxu0  ;;  %v8931_v60 = vadd.bf16 %v16275_v38, %v19121_v37  ;;  %v19123_v13 = vld [vmem:[#allocation205_spill] sm:$0xff] }
 0x5f0   : > { %v19124_v48 = vpack.c.bf16 %v19122_v26, %v19123_v13  ;;  %v8226_v24 = vpop.f32.mrf.mxu1  ;;  %v8933_v0 = vadd.bf16 %v16278_v45, %v19127_v57 }
 0x5f1   : > { %19118 = vst [vmem:[#allocation126_spill] sm:$0xff] %v16484_v2  ;;  %v16498_v52 = vadd.f32 %v8226_v24, %v8033_v27  ;;  %v8035_v39 = vpop.f32.mrf.mxu0  ;;  %v9059_v26 = vmax.bf16 %v19017_v30, %v8931_v60  ;;  %v19131_v27 = vld [vmem:[#allocation188_spill] sm:$0xff]  ;;  %v19132_v24 = vld [vmem:[#allocation186_spill] sm:$0xff]  ;;  %v19136_v60 = vld [vmem:[#allocation149_spill] sm:$0xff] }
 0x5f2   : > { %v8924_v12 = vadd.bf16 %v16304_v40, %v19124_v48  ;;  %v8228_v42 = vpop.f32.mrf.mxu1  ;;  %v9061_v10 = vmax.bf16 %v19017_v30, %v8933_v0  ;;  %v19133_v59 = vpack.c.bf16 %v19131_v27, %v19132_v24 }
 0x5f3   : > { %19128 = vst [vmem:[#allocation67_spill] sm:$0xff] %v16498_v52  ;;  %v16501_v7 = vadd.f32 %v8228_v42, %v8035_v39  ;;  %v8037_v31 = vpop.f32.mrf.mxu0  ;;  %v19135_v42 = vld [vmem:[#allocation151_spill] sm:$0xff]  ;;  %v19142_v52 = vld [vmem:[#allocation214_spill] sm:$0xff] }
 0x5f4   : > { %v9052_v37 = vmax.bf16 %v19017_v30, %v8924_v12  ;;  %v8230_v13 = vpop.f32.mrf.mxu1  ;;  %v8930_v57 = vadd.bf16 %v16299_v16, %v19133_v59 }
 0x5f5   : > { %19129 = vst [vmem:[#allocation127_spill] sm:$0xff] %v16501_v7  ;;  %v16505_v48 = vadd.f32 %v8230_v13, %v8037_v31  ;;  %v8041_v2 = vpop.f32.mrf.mxu0  ;;  %9730 = vmatmul.mubr.bf16.gmra.mxu0 %v9050_v46  ;;  %v19137_v31 = vpack.c.bf16 %v19135_v42, %v19136_v60  ;;  %v19138_v46 = vld [vmem:[#allocation211_spill] sm:$0xff]  ;;  %v19141_v7 = vld [vmem:[#allocation216_spill] sm:$0xff] }
 0x5f6   : > { %v8234_v56 = vpop.f32.mrf.mxu1  ;;  %9891 = vmatmul.mubr.bf16.gmra.mxu1 %v9052_v37  ;;  %9737 = vmatprep.mubr.bf16.mxu0 %v9059_v26  ;;  %v19143_v27 = vpack.c.bf16 %v19141_v7, %v19142_v52  ;;  %v9058_v59 = vmax.bf16 %v19017_v30, %v8930_v57 }
 0x5f7   : > { %19130 = vst [vmem:[#allocation128_spill] sm:$0xff] %v16505_v48  ;;  %v16512_v39 = vadd.f32 %v8234_v56, %v8041_v2  ;;  %9898 = vmatprep.mubr.bf16.mxu1 %v9061_v10  ;;  %v8043_v12 = vpop.f32.mrf.mxu0  ;;  %v8939_v13 = vadd.bf16 %v16275_v38, %v19137_v31  ;;  %v19139_v48 = vld [vmem:[#allocation209_spill] sm:$0xff] }
 0x5f8   : > { %v19140_v0 = vpack.c.bf16 %v19138_v46, %v19139_v48  ;;  %v8236_v26 = vpop.f32.mrf.mxu1  ;;  %v8941_v24 = vadd.bf16 %v16278_v45, %v19143_v27 }
 0x5f9   : > { %19134 = vst [vmem:[#allocation129_spill] sm:$0xff] %v16512_v39  ;;  %v16526_v2 = vadd.f32 %v8236_v26, %v8043_v12  ;;  %v8045_v10 = vpop.f32.mrf.mxu0  ;;  %v9067_v46 = vmax.bf16 %v19017_v30, %v8939_v13  ;;  %v19147_v12 = vld [vmem:[#allocation150_spill] sm:$0xff]  ;;  %v19152_v13 = vld [vmem:[#allocation153_spill] sm:$0xff] }
 0x5fa   : > { %v8932_v37 = vadd.bf16 %v16304_v40, %v19140_v0  ;;  %v8238_v56 = vpop.f32.mrf.mxu1  ;;  %v9069_v52 = vmax.bf16 %v19017_v30, %v8941_v24  ;;  %v19148_v26 = vld [vmem:[#allocation190_spill] sm:$0xff] }
 0x5fb   : > { %19144 = vst [vmem:[#allocation23_spill] sm:$0xff] %v16526_v2  ;;  %v16529_v42 = vadd.f32 %v8238_v56, %v8045_v10  ;;  %v8047_v60 = vpop.f32.mrf.mxu0  ;;  %v19149_v57 = vpack.c.bf16 %v19147_v12, %v19148_v26  ;;  %v19151_v56 = vld [vmem:[#allocation155_spill] sm:$0xff]  ;;  %v19158_v2 = vld [vmem:[#allocation218_spill] sm:$0xff] }
 0x5fc   : > { %v9060_v31 = vmax.bf16 %v19017_v30, %v8932_v37  ;;  %v8240_v48 = vpop.f32.mrf.mxu1 }
 0x5fd   : > { %19145 = vst [vmem:[#allocation26_spill] sm:$0xff] %v16529_v42  ;;  %v16533_v0 = vadd.f32 %v8240_v48, %v8047_v60  ;;  %v8051_v39 = vpop.f32.mrf.mxu0  ;;  %9738 = vmatmul.mubr.bf16.gmra.mxu0 %v9058_v59  ;;  %v8938_v27 = vadd.bf16 %v16299_v16, %v19149_v57  ;;  %v19153_v60 = vpack.c.bf16 %v19151_v56, %v19152_v13  ;;  %v19154_v59 = vld [vmem:[#allocation215_spill] sm:$0xff]  ;;  %v19157_v42 = vld [vmem:[#allocation220_spill] sm:$0xff] }
 0x5fe   : > { %v8244_v7 = vpop.f32.mrf.mxu1  ;;  %9899 = vmatmul.mubr.bf16.gmra.mxu1 %v9060_v31  ;;  %9745 = vmatprep.mubr.bf16.mxu0 %v9067_v46  ;;  %v19159_v12 = vpack.c.bf16 %v19157_v42, %v19158_v2 }
 0x5ff   : > { %19146 = vst [vmem:[#allocation24_spill] sm:$0xff] %v16533_v0  ;;  %v16540_v10 = vadd.f32 %v8244_v7, %v8051_v39  ;;  %9906 = vmatprep.mubr.bf16.mxu1 %v9069_v52  ;;  %v8053_v37 = vpop.f32.mrf.mxu0  ;;  %v8947_v48 = vadd.bf16 %v16275_v38, %v19153_v60  ;;  %v19155_v0 = vld [vmem:[#allocation213_spill] sm:$0xff]  ;;  %v9066_v57 = vmax.bf16 %v19017_v30, %v8938_v27 }
 0x600   : > { %v19156_v24 = vpack.c.bf16 %v19154_v59, %v19155_v0  ;;  %v8246_v46 = vpop.f32.mrf.mxu1  ;;  %v8949_v26 = vadd.bf16 %v16278_v45, %v19159_v12 }
 0x601   : > { %19150 = vst [vmem:[#allocation131_spill] sm:$0xff] %v16540_v10  ;;  %v16554_v39 = vadd.f32 %v8246_v46, %v8053_v37  ;;  %v8055_v52 = vpop.f32.mrf.mxu0  ;;  %v9075_v59 = vmax.bf16 %v19017_v30, %v8947_v48  ;;  %v19163_v37 = vld [vmem:[#allocation154_spill] sm:$0xff]  ;;  %v19164_v46 = vld [vmem:[#allocation152_spill] sm:$0xff] }
 0x602   : > { %v8940_v31 = vadd.bf16 %v16304_v40, %v19156_v24  ;;  %v8248_v7 = vpop.f32.mrf.mxu1  ;;  %v9077_v2 = vmax.bf16 %v19017_v30, %v8949_v26  ;;  %v19165_v27 = vpack.c.bf16 %v19163_v37, %v19164_v46 }
 0x603   : > { %19160 = vst [vmem:[#allocation69_spill] sm:$0xff] %v16554_v39  ;;  %v16557_v56 = vadd.f32 %v8248_v7, %v8055_v52  ;;  %v8057_v13 = vpop.f32.mrf.mxu0  ;;  %v19166_v52 = vld [vmem:[#allocation159_spill] sm:$0xff]  ;;  %v19167_v7 = vld [vmem:[#allocation157_spill] sm:$0xff]  ;;  %v19173_v39 = vld [vmem:[#allocation222_spill] sm:$0xff] }
 0x604   : > { %v9068_v60 = vmax.bf16 %v19017_v30, %v8940_v31  ;;  %v8250_v0 = vpop.f32.mrf.mxu1  ;;  %v8946_v12 = vadd.bf16 %v16299_v16, %v19165_v27  ;;  %v19168_v31 = vpack.c.bf16 %v19166_v52, %v19167_v7 }
 0x605   : > { %19161 = vst [vmem:[#allocation132_spill] sm:$0xff] %v16557_v56  ;;  %v16561_v24 = vadd.f32 %v8250_v0, %v8057_v13  ;;  %v8287_v10 = vpop.f32.mrf.mxu0  ;;  %9746 = vmatmul.mubr.bf16.gmra.mxu0 %v9066_v57  ;;  %v19169_v13 = vld [vmem:[#allocation219_spill] sm:$0xff]  ;;  %v19170_v0 = vld [vmem:[#allocation217_spill] sm:$0xff] }
 0x606   : > { %v8480_v42 = vpop.f32.mrf.mxu1  ;;  %9907 = vmatmul.mubr.bf16.gmra.mxu1 %v9068_v60  ;;  %9753 = vmatprep.mubr.bf16.mxu0 %v9075_v59  ;;  %v8955_v56 = vadd.bf16 %v16275_v38, %v19168_v31  ;;  %v19171_v57 = vpack.c.bf16 %v19169_v13, %v19170_v0  ;;  %v8288_v60 = vadd.f32 %v8287_v10, %v16199_v11 }
 0x607   : > { %19162 = vst [vmem:[#allocation98_spill] sm:$0xff] %v16561_v24  ;;  %9914 = vmatprep.mubr.bf16.mxu1 %v9077_v2  ;;  %v8289_v48 = vpop.f32.mrf.mxu0  ;;  %v19172_v24 = vld [vmem:[#allocation224_spill] sm:$0xff]  ;;  %v9074_v31 = vmax.bf16 %v19017_v30, %v8946_v12 }
 0x608   : > { %v8948_v26 = vadd.bf16 %v16304_v40, %v19171_v57  ;;  %v8482_v59 = vpop.f32.mrf.mxu1  ;;  %v19174_v37 = vpack.c.bf16 %v19172_v24, %v19173_v39  ;;  %v8290_v52 = vadd.f32 %v8289_v48, %v16204_v29  ;;  %v9083_v13 = vmax.bf16 %v19017_v30, %v8955_v56 }
 0x609   : > { %v8291_v27 = vpop.f32.mrf.mxu0  ;;  %v16586_v11 = vadd.f32 %v8480_v42, %v8288_v60  ;;  %v19175_v42 = vld [vmem:[#allocation158_spill] sm:$0xff] }
 0x60a   : > { %v8957_v46 = vadd.bf16 %v16278_v45, %v19174_v37  ;;  %v8292_v7 = vadd.f32 %v8291_v27, %v16206_v62  ;;  %v8484_v2 = vpop.f32.mrf.mxu1  ;;  %v9076_v0 = vmax.bf16 %v19017_v30, %v8948_v26  ;;  %v16592_v62 = vadd.f32 %v8482_v59, %v8290_v52  ;;  %v19176_v26 = vld [vmem:[#allocation156_spill] sm:$0xff]  ;;  %v19179_v37 = vld [vmem:[#allocation161_spill] sm:$0xff]  ;;  %v19181_v52 = vld [vmem:[#allocation223_spill] sm:$0xff] }
 0x60b   : > { %v8293_v44 = vpop.f32.mrf.mxu0  ;;  %v19177_v60 = vpack.c.bf16 %v19175_v42, %v19176_v26  ;;  %v19185_v42 = vld [vmem:[#allocation226_spill] sm:$0xff] }
 0x60c   : > { %v16588_v10 = vadd.f32 %v8484_v2, %v8292_v7  ;;  %v8294_v39 = vadd.f32 %v8293_v44, %v16208_v18  ;;  %v8486_v24 = vpop.f32.mrf.mxu1  ;;  %v9085_v29 = vmax.bf16 %v19017_v30, %v8957_v46  ;;  %v19178_v44 = vld [vmem:[#allocation163_spill] sm:$0xff]  ;;  %v19182_v7 = vld [vmem:[#allocation221_spill] sm:$0xff] }
 0x60d   : > { %v8297_v57 = vpop.f32.mrf.mxu0  ;;  %9754 = vmatmul.mubr.bf16.gmra.mxu0 %v9074_v31  ;;  %v8954_v18 = vadd.bf16 %v16299_v16, %v19177_v60  ;;  %v19180_v27 = vpack.c.bf16 %v19178_v44, %v19179_v37  ;;  %v19183_v2 = vpack.c.bf16 %v19181_v52, %v19182_v7 }
 0x60e   : > { %v16596_v48 = vadd.f32 %v8486_v24, %v8294_v39  ;;  %v8490_v56 = vpop.f32.mrf.mxu1  ;;  %9915 = vmatmul.mubr.bf16.gmra.mxu1 %v9076_v0  ;;  %9761 = vmatprep.mubr.bf16.mxu0 %v9083_v13  ;;  %v8298_v0 = vadd.f32 %v8297_v57, %v16213_v35  ;;  %v19184_v24 = vld [vmem:[#allocation228_spill] sm:$0xff] }
 0x60f   : > { %v8963_v46 = vadd.bf16 %v16275_v38, %v19180_v27  ;;  %9922 = vmatprep.mubr.bf16.mxu1 %v9085_v29  ;;  %v8299_v59 = vpop.f32.mrf.mxu0  ;;  %v8956_v31 = vadd.bf16 %v16304_v40, %v19183_v2  ;;  %v19186_v26 = vpack.c.bf16 %v19184_v24, %v19185_v42  ;;  %v9082_v52 = vmax.bf16 %v19017_v30, %v8954_v18 }
 0x610   : > { %v8492_v39 = vpop.f32.mrf.mxu1  ;;  %v8300_v29 = vadd.f32 %v8299_v59, %v16216_v51  ;;  %v16622_v35 = vadd.f32 %v8490_v56, %v8298_v0  ;;  %v19187_v56 = vld [vmem:[#allocation162_spill] sm:$0xff] }
 0x611   : > { %v8965_v60 = vadd.bf16 %v16278_v45, %v19186_v26  ;;  %v8301_v44 = vpop.f32.mrf.mxu0  ;;  %v9091_v2 = vmax.bf16 %v19017_v30, %v8963_v46  ;;  %v9084_v12 = vmax.bf16 %v19017_v30, %v8956_v31  ;;  %v19188_v31 = vld [vmem:[#allocation160_spill] sm:$0xff] }
 0x612   : > { %v8302_v37 = vadd.f32 %v8301_v44, %v16218_v34  ;;  %v8494_v27 = vpop.f32.mrf.mxu1  ;;  %v16628_v34 = vadd.f32 %v8492_v39, %v8300_v29  ;;  %v19189_v0 = vpack.c.bf16 %v19187_v56, %v19188_v31  ;;  %v19190_v44 = vld [vmem:[#allocation167_spill] sm:$0xff]  ;;  %v19196_v56 = vld [vmem:[#allocation232_spill] sm:$0xff]  ;;  %v19197_v31 = vld [vmem:[#allocation230_spill] sm:$0xff] }
 0x613   : > { %v8303_v7 = vpop.f32.mrf.mxu0  ;;  %v9093_v51 = vmax.bf16 %v19017_v30, %v8965_v60  ;;  %v19193_v29 = vld [vmem:[#allocation227_spill] sm:$0xff] }
 0x614   : > { %v16624_v57 = vadd.f32 %v8494_v27, %v8302_v37  ;;  %v8304_v24 = vadd.f32 %v8303_v7, %v16220_v6  ;;  %v8496_v42 = vpop.f32.mrf.mxu1  ;;  %v8962_v6 = vadd.bf16 %v16299_v16, %v19189_v0  ;;  %v19191_v37 = vld [vmem:[#allocation165_spill] sm:$0xff]  ;;  %v19198_v0 = vpack.c.bf16 %v19196_v56, %v19197_v31 }
 0x615   : > { %v8307_v26 = vpop.f32.mrf.mxu0  ;;  %9762 = vmatmul.mubr.bf16.gmra.mxu0 %v9082_v52  ;;  %v19192_v27 = vpack.c.bf16 %v19190_v44, %v19191_v37  ;;  %v19194_v52 = vld [vmem:[#allocation225_spill] sm:$0xff] }
 0x616   : > { %v16632_v59 = vadd.f32 %v8496_v42, %v8304_v24  ;;  %v8500_v46 = vpop.f32.mrf.mxu1  ;;  %9923 = vmatmul.mubr.bf16.gmra.mxu1 %v9084_v12  ;;  %9769 = vmatprep.mubr.bf16.mxu0 %v9091_v2  ;;  %v19195_v7 = vpack.c.bf16 %v19193_v29, %v19194_v52  ;;  %v8308_v2 = vadd.f32 %v8307_v26, %v16225_v55 }
 0x617   : > { %v8971_v60 = vadd.bf16 %v16275_v38, %v19192_v27  ;;  %9930 = vmatprep.mubr.bf16.mxu1 %v9093_v51  ;;  %v8309_v39 = vpop.f32.mrf.mxu0  ;;  %v8973_v44 = vadd.bf16 %v16278_v45, %v19198_v0  ;;  %v9090_v29 = vmax.bf16 %v19017_v30, %v8962_v6 }
 0x618   : > { %v8964_v24 = vadd.bf16 %v16304_v40, %v19195_v7  ;;  %v8502_v42 = vpop.f32.mrf.mxu1  ;;  %v8310_v51 = vadd.f32 %v8309_v39, %v16228_v8  ;;  %v16658_v55 = vadd.f32 %v8500_v46, %v8308_v2  ;;  %v19199_v46 = vld [vmem:[#allocation166_spill] sm:$0xff]  ;;  %v19202_v2 = vld [vmem:[#allocation171_spill] sm:$0xff] }
 0x619   : > { %v8311_v37 = vpop.f32.mrf.mxu0  ;;  %v9099_v7 = vmax.bf16 %v19017_v30, %v8971_v60  ;;  %v9101_v8 = vmax.bf16 %v19017_v30, %v8973_v44 }
 0x61a   : > { %v8312_v27 = vadd.f32 %v8311_v37, %v16230_v1  ;;  %v8504_v18 = vpop.f32.mrf.mxu1  ;;  %v9092_v12 = vmax.bf16 %v19017_v30, %v8964_v24  ;;  %v16664_v1 = vadd.f32 %v8502_v42, %v8310_v51  ;;  %v19203_v37 = vld [vmem:[#allocation169_spill] sm:$0xff]  ;;  %v8769_v42 = vcombine.high %v16240_v3, %v16240_v3 }
 0x61b   : > { %v8313_v52 = vpop.f32.mrf.mxu0 }
 0x61c   : > { %v16660_v26 = vadd.f32 %v8504_v18, %v8312_v27  ;;  %v8314_v56 = vadd.f32 %v8313_v52, %v16232_v58  ;;  %v8506_v31 = vpop.f32.mrf.mxu1  ;;  %v19200_v18 = vld [vmem:[#allocation164_spill] sm:$0xff]  ;;  %v19204_v27 = vpack.c.bf16 %v19202_v2, %v19203_v37  ;;  %v19206_v52 = vld [vmem:[#allocation229_spill] sm:$0xff] }
 0x61d   : > { %v8317_v0 = vpop.f32.mrf.mxu0  ;;  %9770 = vmatmul.mubr.bf16.gmra.mxu0 %v9090_v29  ;;  %v19201_v24 = vpack.c.bf16 %v19199_v46, %v19200_v18  ;;  %v19205_v29 = vld [vmem:[#allocation231_spill] sm:$0xff]  ;;  %v19208_v18 = vld [vmem:[#allocation236_spill] sm:$0xff] }
 0x61e   : > { %v16668_v39 = vadd.f32 %v8506_v31, %v8314_v56  ;;  %v8510_v60 = vpop.f32.mrf.mxu1  ;;  %9931 = vmatmul.mubr.bf16.gmra.mxu1 %v9092_v12  ;;  %9777 = vmatprep.mubr.bf16.mxu0 %v9099_v7  ;;  %v8979_v44 = vadd.bf16 %v16275_v38, %v19204_v27  ;;  %v19207_v56 = vpack.c.bf16 %v19205_v29, %v19206_v52 }
 0x61f   : > { %v8970_v58 = vadd.bf16 %v16299_v16, %v19201_v24  ;;  %9938 = vmatprep.mubr.bf16.mxu1 %v9101_v8  ;;  %v8319_v51 = vpop.f32.mrf.mxu0  ;;  %v8318_v31 = vadd.f32 %v8317_v0, %v16237_v5  ;;  %v19209_v24 = vld [vmem:[#allocation234_spill] sm:$0xff]  ;;  %v8783_v52 = vrot.slane %v8769_v42, %v18997_v9 }
 0x620   : > { %v8972_v12 = vadd.bf16 %v16304_v40, %v19207_v56  ;;  %v8512_v46 = vpop.f32.mrf.mxu1  ;;  %v19210_v2 = vpack.c.bf16 %v19208_v18, %v19209_v24  ;;  %v8320_v3 = vadd.f32 %v8319_v51, %v16242_v17  ;;  %v9107_v7 = vmax.bf16 %v19017_v30, %v8979_v44 }
 0x621   : > { %v8321_v27 = vpop.f32.mrf.mxu0  ;;  %v9098_v29 = vmax.bf16 %v19017_v30, %v8970_v58  ;;  %v16697_v0 = vadd.f32 %v8510_v60, %v8318_v31  ;;  %v19211_v60 = vld [vmem:[#allocation170_spill] sm:$0xff]  ;;  %v19214_v31 = vld [vmem:[#allocation193_spill] sm:$0xff] }
 0x622   : > { %v8981_v37 = vadd.bf16 %v16278_v45, %v19210_v2  ;;  %v8322_v8 = vadd.f32 %v8321_v27, %v16246_v54  ;;  %v8514_v6 = vpop.f32.mrf.mxu1  ;;  %v9100_v5 = vmax.bf16 %v19017_v30, %v8972_v12  ;;  %v16703_v51 = vadd.f32 %v8512_v46, %v8320_v3  ;;  %v19215_v27 = vld [vmem:[#allocation191_spill] sm:$0xff] }
 0x623   : > { %v8323_v56 = vpop.f32.mrf.mxu0  ;;  %v8785_v46 = vcombine.high %v8783_v52, %v8783_v52 }
 0x624   : > { %v16699_v18 = vadd.f32 %v8514_v6, %v8322_v8  ;;  %v8324_v24 = vadd.f32 %v8323_v56, %v16248_v47  ;;  %v8516_v2 = vpop.f32.mrf.mxu1  ;;  %v9109_v54 = vmax.bf16 %v19017_v30, %v8981_v37  ;;  %v19212_v6 = vld [vmem:[#allocation168_spill] sm:$0xff]  ;;  %v19216_v8 = vpack.c.bf16 %v19214_v31, %v19215_v27  ;;  %v19218_v56 = vld [vmem:[#allocation233_spill] sm:$0xff] }
 0x625   : > { %v8327_v17 = vpop.f32.mrf.mxu0  ;;  %9778 = vmatmul.mubr.bf16.gmra.mxu0 %v9098_v29  ;;  %v19213_v12 = vpack.c.bf16 %v19211_v60, %v19212_v6  ;;  %v19217_v29 = vld [vmem:[#allocation235_spill] sm:$0xff] }
 0x626   : > { %v16707_v42 = vadd.f32 %v8516_v2, %v8324_v24  ;;  %v8520_v44 = vpop.f32.mrf.mxu1  ;;  %9939 = vmatmul.mubr.bf16.gmra.mxu1 %v9100_v5  ;;  %9785 = vmatprep.mubr.bf16.mxu0 %v9107_v7  ;;  %v8987_v37 = vadd.bf16 %v16275_v38, %v19216_v8  ;;  %v19219_v24 = vpack.c.bf16 %v19217_v29, %v19218_v56  ;;  %v19220_v6 = vld [vmem:[#allocation251_spill] sm:$0xff] }
 0x627   : > { %v8978_v47 = vadd.bf16 %v16299_v16, %v19213_v12  ;;  %9946 = vmatprep.mubr.bf16.mxu1 %v9109_v54  ;;  %v8329_v3 = vpop.f32.mrf.mxu0  ;;  %v8328_v5 = vadd.f32 %v8327_v17, %v16253_v28  ;;  %v19221_v12 = vld [vmem:[#allocation249_spill] sm:$0xff]  ;;  %v8813_v56 = vrot.slane %v8785_v46, %v18997_v9 }
 0x628   : > { %v8980_v2 = vadd.bf16 %v16304_v40, %v19219_v24  ;;  %v8522_v60 = vpop.f32.mrf.mxu1  ;;  %v19222_v58 = vpack.c.bf16 %v19220_v6, %v19221_v12  ;;  %v8330_v54 = vadd.f32 %v8329_v3, %v16256_v53  ;;  %v9115_v7 = vmax.bf16 %v19017_v30, %v8987_v37 }
 0x629   : > { %v8331_v27 = vpop.f32.mrf.mxu0  ;;  %v9106_v29 = vmax.bf16 %v19017_v30, %v8978_v47  ;;  %v16734_v17 = vadd.f32 %v8520_v44, %v8328_v5  ;;  %v8817_v53 = vcombine.high %v8813_v56, %v8813_v56  ;;  %v19224_v44 = vld [vmem:[#allocation172_spill] sm:$0xff] }
 0x62a   : > { %v8989_v31 = vadd.bf16 %v16278_v45, %v19222_v58  ;;  %v8332_v8 = vadd.f32 %v8331_v27, %v16259_v32  ;;  %v8524_v13 = vpop.f32.mrf.mxu1  ;;  %v9108_v28 = vmax.bf16 %v19017_v30, %v8980_v2  ;;  %v16740_v47 = vadd.f32 %v8522_v60, %v8330_v54  ;;  %v19226_v27 = vld [vmem:[#allocation197_spill] sm:$0xff]  ;;  %v19229_v60 = vld [vmem:[#allocation250_spill] sm:$0xff] }
 0x62b   : > { %v8333_v24 = vpop.f32.mrf.mxu0  ;;  %v19230_v54 = vld [vmem:[#allocation237_spill] sm:$0xff] }
 0x62c   : > { %v16736_v6 = vadd.f32 %v8524_v13, %v8332_v8  ;;  %v8334_v58 = vadd.f32 %v8333_v24, %v16261_v19  ;;  %v8526_v12 = vpop.f32.mrf.mxu1  ;;  %v9117_v32 = vmax.bf16 %v19017_v30, %v8989_v31  ;;  %v19223_v13 = vld [vmem:[#allocation192_spill] sm:$0xff]  ;;  %v19227_v8 = vld [vmem:[#allocation195_spill] sm:$0xff]  ;;  %v19231_v24 = vpack.c.bf16 %v19229_v60, %v19230_v54 }
 0x62d   : > { %v8337_v3 = vpop.f32.mrf.mxu0  ;;  %9786 = vmatmul.mubr.bf16.gmra.mxu0 %v9106_v29  ;;  %v19225_v5 = vpack.c.bf16 %v19223_v13, %v19224_v44  ;;  %v19228_v29 = vpack.c.bf16 %v19226_v27, %v19227_v8  ;;  %v19232_v44 = vld [vmem:[#allocation255_spill] sm:$0xff] }
 0x62e   : > { %v16744_v37 = vadd.f32 %v8526_v12, %v8334_v58  ;;  %v8530_v2 = vpop.f32.mrf.mxu1  ;;  %9947 = vmatmul.mubr.bf16.gmra.mxu1 %v9108_v28  ;;  %9793 = vmatprep.mubr.bf16.mxu0 %v9115_v7  ;;  %v8988_v46 = vadd.bf16 %v16304_v40, %v19231_v24  ;;  %v8854_v58 = vpack.i.b16 %v8813_v56, %v8813_v56 }
 0x62f   : > { %v8986_v19 = vadd.bf16 %v16299_v16, %v19225_v5  ;;  %v8995_v31 = vadd.bf16 %v16275_v38, %v19228_v29  ;;  %9954 = vmatprep.mubr.bf16.mxu1 %v9117_v32  ;;  %v8339_v12 = vpop.f32.mrf.mxu0  ;;  %v8338_v28 = vadd.f32 %v8337_v3, %v16266_v23  ;;  %v19233_v5 = vld [vmem:[#allocation253_spill] sm:$0xff]  ;;  %v8868_v38 = vpack.i.b16 %v8817_v53, %v8817_v53 }
 0x630   : > { %v8678_v7 = vpack.c.bf16 %v16744_v37, %v16740_v47  ;;  %v8532_v13 = vpop.f32.mrf.mxu1  ;;  %v19234_v4 = vpack.c.bf16 %v19232_v44, %v19233_v5  ;;  %v8799_v29 = vrot.slane %v8783_v52, %v18997_v9  ;;  %v8340_v60 = vadd.f32 %v8339_v12, %v16269_v50  ;;  %v19235_v12 = vld [vmem:[#allocation196_spill] sm:$0xff]  ;;  %v19286_v47 = vld [vmem:[#allocation87_spill] sm:$0xff] }
 0x631   : > { %v8341_v8 = vpop.f32.mrf.mxu0  ;;  %v9114_v54 = vmax.bf16 %v19017_v30, %v8986_v19  ;;  %v9116_v24 = vmax.bf16 %v19017_v30, %v8988_v46  ;;  %v16771_v23 = vrot.slane %v8854_v58, %v19006_v15  ;;  %v9123_v44 = vmax.bf16 %v19017_v30, %v8995_v31 }
 0x632   : > { %v8997_v27 = vadd.bf16 %v16278_v45, %v19234_v4  ;;  %v8342_v56 = vadd.f32 %v8341_v8, %v16272_v20  ;;  %v8534_v32 = vpop.f32.mrf.mxu1  ;;  %v8815_v45 = vcombine.high %v8799_v29, %v8799_v29  ;;  %v16774_v4 = vadd.f32 %v8530_v2, %v8338_v28  ;;  %v19239_v8 = vld [vmem:[#allocation252_spill] sm:$0xff] }
 0x633   : > { %v8343_v3 = vpop.f32.mrf.mxu0  ;;  %v16780_v20 = vrot.slane %v8868_v38, %v19006_v15  ;;  %v16783_v19 = vadd.f32 %v8532_v13, %v8340_v60  ;;  %v19238_v38 = vld [vmem:[#allocation254_spill] sm:$0xff]  ;;  %v8847_v13 = vpack.i.b16 %v8799_v29, %v8799_v29  ;;  %v19241_v60 = vpack.c.bf16 %v15895_v21, %v15886_v43 }
 0x634   : > { %v16776_v53 = vadd.f32 %v8534_v32, %v8342_v56  ;;  %v8344_v50 = vadd.f32 %v8343_v3, %v16280_v25  ;;  %v8536_v9 = vpop.f32.mrf.mxu1  ;;  %v9125_v46 = vmax.bf16 %v19017_v30, %v8997_v27  ;;  %v19236_v25 = vld [vmem:[#allocation194_spill] sm:$0xff]  ;;  %v19240_v56 = vpack.c.bf16 %v19238_v38, %v19239_v8 }
 0x635   : > { %v8347_v52 = vpop.f32.mrf.mxu0  ;;  %9794 = vmatmul.mubr.bf16.gmra.mxu0 %v9114_v54  ;;  %v19237_v28 = vpack.c.bf16 %v19235_v12, %v19236_v25  ;;  %v8879_v32 = vadd.bf16 %v16771_v23, %v19241_v60  ;;  %v16813_v12 = vrot.slane %v8847_v13, %v19006_v15 }
 0x636   : > { %v8685_v31 = vpack.c.bf16 %v16776_v53, %v16774_v4  ;;  %v16787_v58 = vadd.f32 %v8536_v9, %v8344_v50  ;;  %v8540_v2 = vpop.f32.mrf.mxu1  ;;  %9955 = vmatmul.mubr.bf16.gmra.mxu1 %v9116_v24  ;;  %9801 = vmatprep.mubr.bf16.mxu0 %v9123_v44  ;;  %v8996_v27 = vadd.bf16 %v16304_v40, %v19240_v56 }
 0x637   : > { %v8994_v5 = vadd.bf16 %v16299_v16, %v19237_v28  ;;  %9962 = vmatprep.mubr.bf16.mxu1 %v9125_v46  ;;  %v8349_v54 = vpop.f32.mrf.mxu0  ;;  %v8861_v24 = vpack.i.b16 %v8815_v45, %v8815_v45  ;;  %v8348_v44 = vadd.f32 %v8347_v52, %v16285_v61  ;;  %v19242_v50 = vpack.c.bf16 %v16596_v48, %v16592_v62 }
 0x638   : > { %v8686_v3 = vpack.c.bf16 %v16787_v58, %v16783_v19  ;;  %v8542_v16 = vpop.f32.mrf.mxu1  ;;  %v8350_v9 = vadd.f32 %v8349_v54, %v16296_v33  ;;  %v9124_v45 = vmax.bf16 %v19017_v30, %v8996_v27  ;;  %v9007_v52 = vmax.bf16 %v19017_v30, %v8879_v32  ;;  %v19244_v27 = vld [vmem:[#allocation30_spill] sm:$0xff]  ;;  %v19296_v19 = vld [vmem:[#allocation89_spill] sm:$0xff] }
 0x639   : > { %v8881_v40 = vadd.bf16 %v16780_v20, %v19242_v50  ;;  %v8351_v29 = vpop.f32.mrf.mxu0  ;;  %v9122_v46 = vmax.bf16 %v19017_v30, %v8994_v5  ;;  %v16817_v62 = vrot.slane %v8861_v24, %v19006_v15  ;;  %v16819_v48 = vadd.f32 %v8540_v2, %v8348_v44 }
 0x63a   : > { %v8352_v43 = vadd.f32 %v8351_v29, %v16301_v41  ;;  %v8544_v21 = vpop.f32.mrf.mxu1  ;;  %v16825_v38 = vadd.f32 %v8542_v16, %v8350_v9  ;;  %v19243_v2 = vpack.c.bf16 %v15889_v22, %v15883_v63  ;;  %v19245_v13 = vpack.c.bf16 %v15915_v49, %v19244_v27  ;;  %v19247_v16 = vld [vmem:[#allocation50_spill] sm:$0xff] }
 0x63b   : > { %v8353_v61 = vpop.f32.mrf.mxu0  ;;  %v9009_v5 = vmax.bf16 %v19017_v30, %v8881_v40  ;;  %v19246_v54 = vpack.c.bf16 %v16588_v10, %v16586_v11  ;;  %v19248_v22 = vpack.c.bf16 %v16632_v59, %v16628_v34  ;;  %v19249_v29 = vld [vmem:[#allocation118_spill] sm:$0xff] }
 0x63c   : > { %v16821_v25 = vadd.f32 %v8544_v21, %v8352_v43  ;;  %v8354_v33 = vadd.f32 %v8353_v61, %v16307_v14  ;;  %v8546_v41 = vpop.f32.mrf.mxu1  ;;  %v8878_v14 = vadd.bf16 %v16813_v12, %v19243_v2  ;;  %v8887_v60 = vadd.bf16 %v16771_v23, %v19245_v13  ;;  %v19250_v43 = vld [vmem:[#allocation62_spill] sm:$0xff] }
 0x63d   : > { %v8357_v28 = vpop.f32.mrf.mxu0  ;;  %9802 = vmatmul.mubr.bf16.gmra.mxu0 %v9122_v46  ;;  %v8880_v24 = vadd.bf16 %v16817_v62, %v19246_v54  ;;  %v8889_v49 = vadd.bf16 %v16780_v20, %v19248_v22  ;;  %v19251_v34 = vld [vmem:[#allocation82_spill] sm:$0xff] }
 0x63e   : > { %v8693_v8 = vpack.c.bf16 %v16821_v25, %v16819_v48  ;;  %v16829_v56 = vadd.f32 %v8546_v41, %v8354_v33  ;;  %v8550_v15 = vpop.f32.mrf.mxu1  ;;  %9963 = vmatmul.mubr.bf16.gmra.mxu1 %v9124_v45  ;;  %10003 = vmatprep.mubr.bf16.mxu0 %v9007_v52  ;;  %v8358_v50 = vadd.f32 %v8357_v28, %v19247_v16  ;;  %v19256_v16 = vld [vmem:[#allocation271_spill] sm:$0xff] }
 0x63f   : > { %10164 = vmatprep.mubr.bf16.mxu1 %v9009_v5  ;;  %v8359_v32 = vpop.f32.mrf.mxu0  ;;  %v9006_v11 = vmax.bf16 %v19017_v30, %v8878_v14  ;;  %v9015_v45 = vmax.bf16 %v19017_v30, %v8887_v60  ;;  %v9008_v61 = vmax.bf16 %v19017_v30, %v8880_v24  ;;  %v9017_v5 = vmax.bf16 %v19017_v30, %v8889_v49  ;;  %v19253_v60 = vld [vmem:[#allocation70_spill] sm:$0xff]  ;;  %v19255_v24 = vld [vmem:[#allocation273_spill] sm:$0xff] }
 0x640   : > { %v8694_v44 = vpack.c.bf16 %v16829_v56, %v16825_v38  ;;  %v8552_v63 = vpop.f32.mrf.mxu1  ;;  %v8360_v9 = vadd.f32 %v8359_v32, %v19249_v29  ;;  %v16855_v52 = vadd.f32 %v8550_v15, %v8358_v50  ;;  %v19252_v15 = vld [vmem:[#allocation33_spill] sm:$0xff]  ;;  %v19257_v50 = vpack.c.bf16 %v19255_v24, %v19256_v16 }
 0x641   : > { %v8361_v40 = vpop.f32.mrf.mxu0  ;;  %v19254_v32 = vpack.c.bf16 %v19252_v15, %v19253_v60  ;;  %v19258_v49 = vpack.c.bf16 %v16624_v57, %v16622_v35  ;;  %v19306_v38 = vld [vmem:[#allocation21_spill] sm:$0xff] }
 0x642   : > { %v8362_v21 = vadd.f32 %v8361_v40, %v19250_v43  ;;  %v8554_v46 = vpop.f32.mrf.mxu1  ;;  %v16861_v2 = vadd.f32 %v8552_v63, %v8360_v9  ;;  %v8895_v22 = vadd.bf16 %v16771_v23, %v19257_v50  ;;  %v19259_v9 = vld [vmem:[#allocation51_spill] sm:$0xff] }
 0x643   : > { %v8363_v10 = vpop.f32.mrf.mxu0  ;;  %v8886_v54 = vadd.bf16 %v16813_v12, %v19254_v32  ;;  %v8888_v40 = vadd.bf16 %v16817_v62, %v19258_v49  ;;  %v19265_v49 = vld [vmem:[#allocation270_spill] sm:$0xff] }
 0x644   : > { %v16857_v33 = vadd.f32 %v8554_v46, %v8362_v21  ;;  %v8364_v59 = vadd.f32 %v8363_v10, %v19251_v34  ;;  %v8556_v41 = vpop.f32.mrf.mxu1  ;;  %v19260_v46 = vpack.c.bf16 %v16668_v39, %v16664_v1  ;;  %v19262_v34 = vld [vmem:[#allocation53_spill] sm:$0xff]  ;;  %v19263_v1 = vld [vmem:[#allocation122_spill] sm:$0xff] }
 0x645   : > { %v8367_v28 = vpop.f32.mrf.mxu0  ;;  %10004 = vmatmul.mubr.bf16.vlgmr.msra.gmra.mxu0 %v9006_v11  ;;  %v9014_v35 = vmax.bf16 %v19017_v30, %v8886_v54  ;;  %v9016_v15 = vmax.bf16 %v19017_v30, %v8888_v40 }
 0x646   : > { %v8701_v14 = vpack.c.bf16 %v16857_v33, %v16855_v52  ;;  %v16865_v27 = vadd.f32 %v8556_v41, %v8364_v59  ;;  %v8560_v13 = vpop.f32.mrf.mxu1  ;;  %10165 = vmatmul.mubr.bf16.vlgmr.msra.gmra.mxu1 %v9008_v61  ;;  %10011 = vmatprep.mubr.bf16.mxu0 %v9015_v45  ;;  %v8368_v43 = vadd.f32 %v8367_v28, %v19259_v9  ;;  %v19261_v45 = vld [vmem:[#allocation52_spill] sm:$0xff] }
 0x647   : > { %10172 = vmatprep.mubr.bf16.mxu1 %v9017_v5  ;;  %v8369_v63 = vpop.f32.mrf.mxu0  ;;  %v8897_v11 = vadd.bf16 %v16780_v20, %v19260_v46  ;;  %v9023_v5 = vmax.bf16 %v19017_v30, %v8895_v22  ;;  %v19268_v46 = vld [vmem:[#allocation275_spill] sm:$0xff] }
 0x648   : > { %v8702_v29 = vpack.c.bf16 %v16865_v27, %v16861_v2  ;;  %v8562_v21 = vpop.f32.mrf.mxu1  ;;  %v8370_v61 = vadd.f32 %v8369_v63, %v19261_v45  ;;  %v16891_v28 = vadd.f32 %v8560_v13, %v8368_v43  ;;  %v19264_v13 = vld [vmem:[#allocation272_spill] sm:$0xff]  ;;  %v19267_v43 = vld [vmem:[#allocation277_spill] sm:$0xff]  ;;  %v19270_v45 = vpack.c.bf16 %v16660_v26, %v16658_v55 }
 0x649   : > { %v8371_v10 = vpop.f32.mrf.mxu0  ;;  %v9025_v16 = vmax.bf16 %v19017_v30, %v8897_v11  ;;  %v19266_v40 = vpack.c.bf16 %v19264_v13, %v19265_v49  ;;  %v19316_v2 = vld [vmem:[#allocation128_spill] sm:$0xff] }
 0x64a   : > { %v8372_v59 = vadd.f32 %v8371_v10, %v19262_v34  ;;  %v8564_v41 = vpop.f32.mrf.mxu1  ;;  %v16897_v50 = vadd.f32 %v8562_v21, %v8370_v61  ;;  %v19269_v10 = vpack.c.bf16 %v19267_v43, %v19268_v46  ;;  %v8896_v61 = vadd.bf16 %v16817_v62, %v19270_v45 }
 0x64b   : > { %v8373_v57 = vpop.f32.mrf.mxu0  ;;  %v8894_v9 = vadd.bf16 %v16813_v12, %v19266_v40 }
 0x64c   : > { %v16893_v60 = vadd.f32 %v8564_v41, %v8372_v59  ;;  %v8374_v39 = vadd.f32 %v8373_v57, %v19263_v1  ;;  %v8566_v32 = vpop.f32.mrf.mxu1  ;;  %v8903_v11 = vadd.bf16 %v16771_v23, %v19269_v10  ;;  %v19271_v59 = vld [vmem:[#allocation54_spill] sm:$0xff]  ;;  %v19272_v57 = vpack.c.bf16 %v16707_v42, %v16703_v51  ;;  %v19273_v1 = vld [vmem:[#allocation71_spill] sm:$0xff]  ;;  %v19275_v51 = vld [vmem:[#allocation85_spill] sm:$0xff] }
 0x64d   : > { %v8377_v24 = vpop.f32.mrf.mxu0  ;;  %10012 = vmatmul.mubr.bf16.gmra.mxu0 %v9014_v35  ;;  %v9022_v55 = vmax.bf16 %v19017_v30, %v8894_v9  ;;  %v9024_v40 = vmax.bf16 %v19017_v30, %v8896_v61  ;;  %v19277_v61 = vld [vmem:[#allocation274_spill] sm:$0xff] }
 0x64e   : > { %v8709_v54 = vpack.c.bf16 %v16893_v60, %v16891_v28  ;;  %v16901_v63 = vadd.f32 %v8566_v32, %v8374_v39  ;;  %v8570_v22 = vpop.f32.mrf.mxu1  ;;  %10173 = vmatmul.mubr.bf16.gmra.mxu1 %v9016_v15  ;;  %10019 = vmatprep.mubr.bf16.mxu0 %v9023_v5  ;;  %v8378_v41 = vadd.f32 %v8377_v24, %v19271_v59  ;;  %v19274_v32 = vld [vmem:[#allocation86_spill] sm:$0xff] }
 0x64f   : > { %10180 = vmatprep.mubr.bf16.mxu1 %v9025_v16  ;;  %v8379_v21 = vpop.f32.mrf.mxu0  ;;  %v8905_v5 = vadd.bf16 %v16780_v20, %v19272_v57  ;;  %v9031_v49 = vmax.bf16 %v19017_v30, %v8903_v11 }
 0x650   : > { %v8710_v34 = vpack.c.bf16 %v16901_v63, %v16897_v50  ;;  %v8572_v35 = vpop.f32.mrf.mxu1  ;;  %v8380_v39 = vadd.f32 %v8379_v21, %v19273_v1  ;;  %v16927_v24 = vadd.f32 %v8570_v22, %v8378_v41  ;;  %v19276_v22 = vld [vmem:[#allocation276_spill] sm:$0xff]  ;;  %v19280_v1 = vld [vmem:[#allocation39_spill] sm:$0xff] }
 0x651   : > { %v8381_v15 = vpop.f32.mrf.mxu0  ;;  %v9033_v21 = vmax.bf16 %v19017_v30, %v8905_v5  ;;  %v19278_v41 = vpack.c.bf16 %v19276_v22, %v19277_v61  ;;  %v19326_v50 = vld [vmem:[#allocation24_spill] sm:$0xff] }
 0x652   : > { %v8382_v16 = vadd.f32 %v8381_v15, %v19274_v32  ;;  %v8574_v13 = vpop.f32.mrf.mxu1  ;;  %v16933_v45 = vadd.f32 %v8572_v35, %v8380_v39  ;;  %v19279_v15 = vld [vmem:[#allocation68_spill] sm:$0xff]  ;;  %v19282_v39 = vpack.c.bf16 %v16699_v18, %v16697_v0 }
 0x653   : > { %v8383_v26 = vpop.f32.mrf.mxu0  ;;  %v8902_v57 = vadd.bf16 %v16813_v12, %v19278_v41  ;;  %v19281_v32 = vpack.c.bf16 %v19279_v15, %v19280_v1 }
 0x654   : > { %v16929_v43 = vadd.f32 %v8574_v13, %v8382_v16  ;;  %v8384_v42 = vadd.f32 %v8383_v26, %v19275_v51  ;;  %v8576_v46 = vpop.f32.mrf.mxu1  ;;  %v8904_v16 = vadd.bf16 %v16817_v62, %v19282_v39 }
 0x655   : > { %v8387_v10 = vpop.f32.mrf.mxu0  ;;  %10020 = vmatmul.mubr.bf16.gmra.mxu0 %v9022_v55  ;;  %v8911_v5 = vadd.bf16 %v16771_v23, %v19281_v32  ;;  %v19283_v55 = vld [vmem:[#allocation55_spill] sm:$0xff]  ;;  %v9030_v0 = vmax.bf16 %v19017_v30, %v8902_v57 }
 0x656   : > { %v8717_v9 = vpack.c.bf16 %v16929_v43, %v16927_v24  ;;  %v16937_v59 = vadd.f32 %v8576_v46, %v8384_v42  ;;  %v8580_v11 = vpop.f32.mrf.mxu1  ;;  %10181 = vmatmul.mubr.bf16.gmra.mxu1 %v9024_v40  ;;  %10027 = vmatprep.mubr.bf16.mxu0 %v9031_v49  ;;  %v8388_v26 = vadd.f32 %v8387_v10, %v19283_v55  ;;  %v19284_v42 = vld [vmem:[#allocation56_spill] sm:$0xff] }
 0x657   : > { %10188 = vmatprep.mubr.bf16.mxu1 %v9033_v21  ;;  %v8389_v35 = vpop.f32.mrf.mxu0  ;;  %v8913_v40 = vadd.bf16 %v16780_v20, %v8678_v7  ;;  %v19285_v21 = vld [vmem:[#allocation57_spill] sm:$0xff]  ;;  %v9039_v41 = vmax.bf16 %v19017_v30, %v8911_v5  ;;  %v9032_v15 = vmax.bf16 %v19017_v30, %v8904_v16  ;;  %v19288_v16 = vld [vmem:[#allocation256_spill] sm:$0xff] }
 0x658   : > { %v8718_v13 = vpack.c.bf16 %v16937_v59, %v16933_v45  ;;  %v8582_v49 = vpop.f32.mrf.mxu1  ;;  %v8390_v46 = vadd.f32 %v8389_v35, %v19284_v42  ;;  %v16963_v10 = vadd.f32 %v8580_v11, %v8388_v26  ;;  %v19287_v11 = vld [vmem:[#allocation36_spill] sm:$0xff]  ;;  %v19336_v45 = vld [vmem:[#allocation98_spill] sm:$0xff] }
 0x659   : > { %v8391_v51 = vpop.f32.mrf.mxu0  ;;  %v9041_v35 = vmax.bf16 %v19017_v30, %v8913_v40  ;;  %v19289_v26 = vpack.c.bf16 %v19287_v11, %v19288_v16  ;;  %v19290_v42 = vld [vmem:[#allocation88_spill] sm:$0xff] }
 0x65a   : > { %v8392_v22 = vadd.f32 %v8391_v51, %v19285_v21  ;;  %v8584_v61 = vpop.f32.mrf.mxu1  ;;  %v16969_v39 = vadd.f32 %v8582_v49, %v8390_v46  ;;  %v19291_v21 = vld [vmem:[#allocation258_spill] sm:$0xff]  ;;  %v19293_v46 = vpack.c.bf16 %v16736_v6, %v16734_v17 }
 0x65b   : > { %v8393_v18 = vpop.f32.mrf.mxu0  ;;  %v8910_v51 = vadd.bf16 %v16813_v12, %v19289_v26 }
 0x65c   : > { %v16965_v1 = vadd.f32 %v8584_v61, %v8392_v22  ;;  %v8394_v37 = vadd.f32 %v8393_v18, %v19286_v47  ;;  %v8586_v7 = vpop.f32.mrf.mxu1  ;;  %v19292_v22 = vpack.c.bf16 %v19290_v42, %v19291_v21  ;;  %v8912_v61 = vadd.bf16 %v16817_v62, %v19293_v46 }
 0x65d   : > { %v8397_v32 = vpop.f32.mrf.mxu0  ;;  %10028 = vmatmul.mubr.bf16.gmra.mxu0 %v9030_v0  ;;  %v9038_v17 = vmax.bf16 %v19017_v30, %v8910_v51 }
 0x65e   : > { %v8725_v57 = vpack.c.bf16 %v16965_v1, %v16963_v10  ;;  %v16973_v55 = vadd.f32 %v8586_v7, %v8394_v37  ;;  %v8590_v5 = vpop.f32.mrf.mxu1  ;;  %10189 = vmatmul.mubr.bf16.gmra.mxu1 %v9032_v15  ;;  %10035 = vmatprep.mubr.bf16.mxu0 %v9039_v41  ;;  %v8919_v40 = vadd.bf16 %v16771_v23, %v19292_v22  ;;  %v19294_v37 = vld [vmem:[#allocation60_spill] sm:$0xff] }
 0x65f   : > { %10196 = vmatprep.mubr.bf16.mxu1 %v9041_v35  ;;  %v8399_v49 = vpop.f32.mrf.mxu0  ;;  %v8398_v18 = vadd.f32 %v8397_v32, %v16428_v36  ;;  %v8921_v15 = vadd.bf16 %v16780_v20, %v8686_v3  ;;  %v19295_v35 = vld [vmem:[#allocation123_spill] sm:$0xff]  ;;  %v9040_v42 = vmax.bf16 %v19017_v30, %v8912_v61  ;;  %v19298_v61 = vld [vmem:[#allocation257_spill] sm:$0xff] }
 0x660   : > { %v8726_v0 = vpack.c.bf16 %v16973_v55, %v16969_v39  ;;  %v8592_v41 = vpop.f32.mrf.mxu1  ;;  %v8400_v7 = vadd.f32 %v8399_v49, %v19294_v37  ;;  %v9047_v26 = vmax.bf16 %v19017_v30, %v8919_v40  ;;  %v19300_v37 = vld [vmem:[#allocation34_spill] sm:$0xff] }
 0x661   : > { %v8401_v47 = vpop.f32.mrf.mxu0  ;;  %v16999_v36 = vadd.f32 %v8590_v5, %v8398_v18  ;;  %v9049_v22 = vmax.bf16 %v19017_v30, %v8921_v15  ;;  %v19297_v5 = vld [vmem:[#allocation259_spill] sm:$0xff] }
 0x662   : > { %v8402_v11 = vadd.f32 %v8401_v47, %v19295_v35  ;;  %v8594_v16 = vpop.f32.mrf.mxu1  ;;  %v17005_v49 = vadd.f32 %v8592_v41, %v8400_v7  ;;  %v19299_v18 = vpack.c.bf16 %v19297_v5, %v19298_v61  ;;  %v19301_v35 = vld [vmem:[#allocation31_spill] sm:$0xff]  ;;  %v8920_v7 = vadd.bf16 %v16817_v62, %v8685_v31 }
 0x663   : > { %v8403_v6 = vpop.f32.mrf.mxu0 }
 0x664   : > { %v17001_v32 = vadd.f32 %v8594_v16, %v8402_v11  ;;  %v8404_v58 = vadd.f32 %v8403_v6, %v19296_v19  ;;  %v8596_v3 = vpop.f32.mrf.mxu1  ;;  %v8918_v47 = vadd.bf16 %v16813_v12, %v19299_v18  ;;  %v19302_v11 = vpack.c.bf16 %v19300_v37, %v19301_v35 }
 0x665   : > { %v8407_v21 = vpop.f32.mrf.mxu0  ;;  %10036 = vmatmul.mubr.bf16.gmra.mxu0 %v9038_v17  ;;  %v19303_v17 = vld [vmem:[#allocation124_spill] sm:$0xff]  ;;  %v9048_v18 = vmax.bf16 %v19017_v30, %v8920_v7 }
 0x666   : > { %v8733_v51 = vpack.c.bf16 %v17001_v32, %v16999_v36  ;;  %v17009_v46 = vadd.f32 %v8596_v3, %v8404_v58  ;;  %v8600_v40 = vpop.f32.mrf.mxu1  ;;  %10197 = vmatmul.mubr.bf16.gmra.mxu1 %v9040_v42  ;;  %10043 = vmatprep.mubr.bf16.mxu0 %v9047_v26  ;;  %v8927_v15 = vadd.bf16 %v16771_v23, %v19302_v11  ;;  %v19304_v58 = vld [vmem:[#allocation61_spill] sm:$0xff]  ;;  %v19308_v7 = vld [vmem:[#allocation260_spill] sm:$0xff] }
 0x667   : > { %10204 = vmatprep.mubr.bf16.mxu1 %v9049_v22  ;;  %v8409_v41 = vpop.f32.mrf.mxu0  ;;  %v8408_v6 = vadd.f32 %v8407_v21, %v19303_v17  ;;  %v8929_v42 = vadd.bf16 %v16780_v20, %v8694_v44  ;;  %v19305_v22 = vld [vmem:[#allocation20_spill] sm:$0xff]  ;;  %v9046_v4 = vmax.bf16 %v19017_v30, %v8918_v47 }
 0x668   : > { %v8734_v16 = vpack.c.bf16 %v17009_v46, %v17005_v49  ;;  %v8602_v26 = vpop.f32.mrf.mxu1  ;;  %v8410_v3 = vadd.f32 %v8409_v41, %v19304_v58  ;;  %v9055_v31 = vmax.bf16 %v19017_v30, %v8927_v15  ;;  %v19310_v58 = vld [vmem:[#allocation90_spill] sm:$0xff] }
 0x669   : > { %v8411_v19 = vpop.f32.mrf.mxu0  ;;  %v17035_v21 = vadd.f32 %v8600_v40, %v8408_v6  ;;  %v9057_v11 = vmax.bf16 %v19017_v30, %v8929_v42  ;;  %v19307_v40 = vld [vmem:[#allocation72_spill] sm:$0xff] }
 0x66a   : > { %v8412_v5 = vadd.f32 %v8411_v19, %v19305_v22  ;;  %v8604_v61 = vpop.f32.mrf.mxu1  ;;  %v17041_v41 = vadd.f32 %v8602_v26, %v8410_v3  ;;  %v19309_v6 = vpack.c.bf16 %v19307_v40, %v19308_v7  ;;  %v19311_v22 = vld [vmem:[#allocation262_spill] sm:$0xff]  ;;  %v8928_v3 = vadd.bf16 %v16817_v62, %v8693_v8 }
 0x66b   : > { %v8413_v53 = vpop.f32.mrf.mxu0 }
 0x66c   : > { %v17037_v37 = vadd.f32 %v8604_v61, %v8412_v5  ;;  %v8414_v56 = vadd.f32 %v8413_v53, %v19306_v38  ;;  %v8606_v44 = vpop.f32.mrf.mxu1  ;;  %v8926_v19 = vadd.bf16 %v16813_v12, %v19309_v6  ;;  %v19312_v5 = vpack.c.bf16 %v19310_v58, %v19311_v22 }
 0x66d   : > { %v8417_v35 = vpop.f32.mrf.mxu0  ;;  %10044 = vmatmul.mubr.bf16.gmra.mxu0 %v9046_v4  ;;  %v19313_v4 = vld [vmem:[#allocation126_spill] sm:$0xff]  ;;  %v9056_v6 = vmax.bf16 %v19017_v30, %v8928_v3  ;;  %v19318_v3 = vld [vmem:[#allocation261_spill] sm:$0xff] }
 0x66e   : > { %v8741_v47 = vpack.c.bf16 %v17037_v37, %v17035_v21  ;;  %v17045_v17 = vadd.f32 %v8606_v44, %v8414_v56  ;;  %v8610_v15 = vpop.f32.mrf.mxu1  ;;  %10205 = vmatmul.mubr.bf16.gmra.mxu1 %v9048_v18  ;;  %10051 = vmatprep.mubr.bf16.mxu0 %v9055_v31  ;;  %v8935_v42 = vadd.bf16 %v16771_v23, %v19312_v5  ;;  %v19314_v56 = vld [vmem:[#allocation67_spill] sm:$0xff] }
 0x66f   : > { %10212 = vmatprep.mubr.bf16.mxu1 %v9057_v11  ;;  %v8419_v26 = vpop.f32.mrf.mxu0  ;;  %v8418_v53 = vadd.f32 %v8417_v35, %v19313_v4  ;;  %v8937_v18 = vadd.bf16 %v16780_v20, %v8702_v29  ;;  %v19315_v11 = vld [vmem:[#allocation127_spill] sm:$0xff]  ;;  %v9054_v48 = vmax.bf16 %v19017_v30, %v8926_v19 }
 0x670   : > { %v8742_v61 = vpack.c.bf16 %v17045_v17, %v17041_v41  ;;  %v8612_v31 = vpop.f32.mrf.mxu1  ;;  %v8420_v44 = vadd.f32 %v8419_v26, %v19314_v56  ;;  %v9063_v8 = vmax.bf16 %v19017_v30, %v8935_v42  ;;  %v19320_v56 = vld [vmem:[#allocation93_spill] sm:$0xff] }
 0x671   : > { %v8421_v38 = vpop.f32.mrf.mxu0  ;;  %v17071_v35 = vadd.f32 %v8610_v15, %v8418_v53  ;;  %v9065_v5 = vmax.bf16 %v19017_v30, %v8937_v18  ;;  %v19317_v15 = vld [vmem:[#allocation263_spill] sm:$0xff] }
 0x672   : > { %v8422_v40 = vadd.f32 %v8421_v38, %v19315_v11  ;;  %v8614_v7 = vpop.f32.mrf.mxu1  ;;  %v17077_v26 = vadd.f32 %v8612_v31, %v8420_v44  ;;  %v19319_v53 = vpack.c.bf16 %v19317_v15, %v19318_v3  ;;  %v19321_v11 = vld [vmem:[#allocation91_spill] sm:$0xff]  ;;  %v8936_v44 = vadd.bf16 %v16817_v62, %v8701_v14 }
 0x673   : > { %v8423_v25 = vpop.f32.mrf.mxu0 }
 0x674   : > { %v17073_v58 = vadd.f32 %v8614_v7, %v8422_v40  ;;  %v8424_v27 = vadd.f32 %v8423_v25, %v19316_v2  ;;  %v8616_v29 = vpop.f32.mrf.mxu1  ;;  %v8934_v38 = vadd.bf16 %v16813_v12, %v19319_v53  ;;  %v19322_v40 = vpack.c.bf16 %v19320_v56, %v19321_v11 }
 0x675   : > { %v8427_v22 = vpop.f32.mrf.mxu0  ;;  %10052 = vmatmul.mubr.bf16.gmra.mxu0 %v9054_v48  ;;  %v19323_v48 = vld [vmem:[#allocation129_spill] sm:$0xff]  ;;  %v9064_v53 = vmax.bf16 %v19017_v30, %v8936_v44  ;;  %v19328_v44 = vld [vmem:[#allocation264_spill] sm:$0xff] }
 0x676   : > { %v8749_v19 = vpack.c.bf16 %v17073_v58, %v17071_v35  ;;  %v17081_v4 = vadd.f32 %v8616_v29, %v8424_v27  ;;  %v8620_v42 = vpop.f32.mrf.mxu1  ;;  %10213 = vmatmul.mubr.bf16.gmra.mxu1 %v9056_v6  ;;  %10059 = vmatprep.mubr.bf16.mxu0 %v9063_v8  ;;  %v8943_v18 = vadd.bf16 %v16771_v23, %v19322_v40  ;;  %v19324_v27 = vld [vmem:[#allocation23_spill] sm:$0xff] }
 0x677   : > { %10220 = vmatprep.mubr.bf16.mxu1 %v9065_v5  ;;  %v8429_v31 = vpop.f32.mrf.mxu0  ;;  %v8428_v25 = vadd.f32 %v8427_v22, %v19323_v48  ;;  %v8945_v6 = vadd.bf16 %v16780_v20, %v8710_v34  ;;  %v19325_v5 = vld [vmem:[#allocation26_spill] sm:$0xff]  ;;  %v9062_v52 = vmax.bf16 %v19017_v30, %v8934_v38 }
 0x678   : > { %v8750_v7 = vpack.c.bf16 %v17081_v4, %v17077_v26  ;;  %v8622_v8 = vpop.f32.mrf.mxu1  ;;  %v8430_v29 = vadd.f32 %v8429_v31, %v19324_v27  ;;  %v9071_v14 = vmax.bf16 %v19017_v30, %v8943_v18  ;;  %v19330_v27 = vld [vmem:[#allocation94_spill] sm:$0xff] }
 0x679   : > { %v8431_v2 = vpop.f32.mrf.mxu0  ;;  %v17107_v22 = vadd.f32 %v8620_v42, %v8428_v25  ;;  %v9073_v40 = vmax.bf16 %v19017_v30, %v8945_v6  ;;  %v19327_v42 = vld [vmem:[#allocation92_spill] sm:$0xff] }
 0x67a   : > { %v8432_v15 = vadd.f32 %v8431_v2, %v19325_v5  ;;  %v8624_v3 = vpop.f32.mrf.mxu1  ;;  %v17113_v31 = vadd.f32 %v8622_v8, %v8430_v29  ;;  %v19329_v25 = vpack.c.bf16 %v19327_v42, %v19328_v44  ;;  %v19331_v5 = vld [vmem:[#allocation266_spill] sm:$0xff]  ;;  %v8944_v29 = vadd.bf16 %v16817_v62, %v8709_v54 }
 0x67b   : > { %v8433_v33 = vpop.f32.mrf.mxu0 }
 0x67c   : > { %v17109_v56 = vadd.f32 %v8624_v3, %v8432_v15  ;;  %v8434_v63 = vadd.f32 %v8433_v33, %v19326_v50  ;;  %v8626_v34 = vpop.f32.mrf.mxu1  ;;  %v8942_v2 = vadd.bf16 %v16813_v12, %v19329_v25  ;;  %v19332_v15 = vpack.c.bf16 %v19330_v27, %v19331_v5 }
 0x67d   : > { %v8437_v11 = vpop.f32.mrf.mxu0  ;;  %10060 = vmatmul.mubr.bf16.gmra.mxu0 %v9062_v52  ;;  %v19333_v52 = vld [vmem:[#allocation131_spill] sm:$0xff]  ;;  %v9072_v25 = vmax.bf16 %v19017_v30, %v8944_v29  ;;  %v19338_v29 = vld [vmem:[#allocation265_spill] sm:$0xff] }
 0x67e   : > { %v8757_v38 = vpack.c.bf16 %v17109_v56, %v17107_v22  ;;  %v17117_v48 = vadd.f32 %v8626_v34, %v8434_v63  ;;  %v8630_v18 = vpop.f32.mrf.mxu1  ;;  %10221 = vmatmul.mubr.bf16.gmra.mxu1 %v9064_v53  ;;  %10067 = vmatprep.mubr.bf16.mxu0 %v9071_v14  ;;  %v8951_v6 = vadd.bf16 %v16771_v23, %v19332_v15  ;;  %v19334_v63 = vld [vmem:[#allocation69_spill] sm:$0xff] }
 0x67f   : > { %10228 = vmatprep.mubr.bf16.mxu1 %v9073_v40  ;;  %v8439_v8 = vpop.f32.mrf.mxu0  ;;  %v8438_v33 = vadd.f32 %v8437_v11, %v19333_v52  ;;  %v8953_v53 = vadd.bf16 %v16780_v20, %v8718_v13  ;;  %v19335_v40 = vld [vmem:[#allocation132_spill] sm:$0xff]  ;;  %v9070_v28 = vmax.bf16 %v19017_v30, %v8942_v2 }
 0x680   : > { %v8758_v3 = vpack.c.bf16 %v17117_v48, %v17113_v31  ;;  %v8632_v14 = vpop.f32.mrf.mxu1  ;;  %v8440_v34 = vadd.f32 %v8439_v8, %v19334_v63  ;;  %v9079_v54 = vmax.bf16 %v19017_v30, %v8951_v6  ;;  %v17159_v63 = vld [vmem:[#allocation11] ss:$0 sm:$0xff] }
 0x681   : > { %v8441_v50 = vpop.f32.mrf.mxu0  ;;  %v17143_v11 = vadd.f32 %v8630_v18, %v8438_v33  ;;  %v9081_v15 = vmax.bf16 %v19017_v30, %v8953_v53  ;;  %v19337_v18 = vld [vmem:[#allocation267_spill] sm:$0xff]  ;;  %v19340_v53 = vld [vmem:[#allocation97_spill] sm:$0xff] }
 0x682   : > { %v8442_v42 = vadd.f32 %v8441_v50, %v19335_v40  ;;  %v8634_v44 = vpop.f32.mrf.mxu1  ;;  %v17149_v8 = vadd.f32 %v8632_v14, %v8440_v34  ;;  %v19339_v33 = vpack.c.bf16 %v19337_v18, %v19338_v29  ;;  %v19341_v14 = vld [vmem:[#allocation95_spill] sm:$0xff] }
 0x683   : > { %v8443_v60 = vpop.f32.mrf.mxu0  ;;  %v19342_v34 = vpack.c.bf16 %v19340_v53, %v19341_v14  ;;  %v19344_v53 = vld [vmem:[#allocation28_spill] sm:$0xff] }
 0x684   : > { %v17145_v27 = vadd.f32 %v8634_v44, %v8442_v42  ;;  %v8444_v59 = vadd.f32 %v8443_v60, %v19336_v45  ;;  %v8636_v13 = vpop.f32.mrf.mxu1  ;;  %v8950_v50 = vadd.bf16 %v16813_v12, %v19339_v33  ;;  %v8952_v44 = vadd.bf16 %v16817_v62, %v8717_v9 }
 0x685   : > { %v11572_v5 = vpop.f32.mrf.mxu0  ;;  %10068 = vmatmul.mubr.bf16.gmra.mxu0 %v9070_v28  ;;  %v8959_v42 = vadd.bf16 %v16771_v23, %v19342_v34 }
 0x686   : > { %v8765_v2 = vpack.c.bf16 %v17145_v27, %v17143_v11  ;;  %v17153_v52 = vadd.f32 %v8636_v13, %v8444_v59  ;;  %v11684_v6 = vpop.f32.mrf.mxu1  ;;  %10229 = vmatmul.mubr.bf16.gmra.mxu1 %v9072_v25  ;;  %10075 = vmatprep.mubr.bf16.mxu0 %v9079_v54  ;;  %v8961_v25 = vadd.bf16 %v16780_v20, %v8726_v0 }
 0x687   : > { %10236 = vmatprep.mubr.bf16.mxu1 %v9081_v15  ;;  %v11573_v40 = vpop.f32.mrf.mxu0  ;;  %v9078_v18 = vmax.bf16 %v19017_v30, %v8950_v50  ;;  %v9080_v43 = vmax.bf16 %v19017_v30, %v8952_v44  ;;  %v9087_v33 = vmax.bf16 %v19017_v30, %v8959_v42  ;;  %v19343_v50 = vld [vmem:[#allocation96_spill] sm:$0xff] }
 0x688   : > { %v8766_v28 = vpack.c.bf16 %v17153_v52, %v17149_v8  ;;  %v11574_v60 = vadd.f32 %v11573_v40, %v11572_v5  ;;  %v11685_v54 = vpop.f32.mrf.mxu1  ;;  %v9089_v55 = vmax.bf16 %v19017_v30, %v8961_v25  ;;  %v19345_v14 = vpack.c.bf16 %v19343_v50, %v19344_v53  ;;  %v19349_v50 = vld [vmem:[#allocation269_spill] sm:$0xff] }
 0x689   : > { %v11686_v45 = vadd.f32 %v11685_v54, %v11684_v6  ;;  %v11575_v59 = vpop.f32.mrf.mxu0  ;;  %v19347_v54 = vld [vmem:[#allocation268_spill] sm:$0xff]  ;;  %v8960_v25 = vadd.bf16 %v16817_v62, %v8725_v57  ;;  %v19350_v53 = vld [vmem:[#allocation29_spill] sm:$0xff] }
 0x68a   : > { %v9684_v13 = vadd.f32 %v11574_v60, %v17159_v63  ;;  %v11687_v15 = vpop.f32.mrf.mxu1  ;;  %v8958_v34 = vadd.bf16 %v16813_v12, %v19345_v14  ;;  %v19346_v60 = vld [vmem:[#allocation100_spill] sm:$0xff]  ;;  %v19351_v14 = vpack.c.bf16 %v19349_v50, %v19350_v53  ;;  %v19358_v53 = vld [vmem:[#allocation111_spill] sm:$0xff] }
 0x68b   : > { %v11576_v24 = vpop.f32.mrf.mxu0  ;;  %v19348_v42 = vpack.c.bf16 %v19346_v60, %v19347_v54  ;;  %v9088_v10 = vmax.bf16 %v19017_v30, %v8960_v25  ;;  %v19352_v60 = vld [vmem:[#allocation103_spill] sm:$0xff]  ;;  %v19353_v54 = vld [vmem:[#allocation101_spill] sm:$0xff]  ;;  %v8968_v25 = vadd.bf16 %v16817_v62, %v8733_v51 }
 0x68c   : > { %v17178_v9 = vadd.f32 %v11686_v45, %v9684_v13  ;;  %v11577_v29 = vadd.f32 %v11576_v24, %v11575_v59  ;;  %v11688_v5 = vpop.f32.mrf.mxu1 }
 0x68d   : > { %v11689_v40 = vadd.f32 %v11688_v5, %v11687_v15  ;;  %v11578_v39 = vpop.f32.mrf.mxu0  ;;  %10076 = vmatmul.mubr.bf16.gmra.mxu0 %v9078_v18  ;;  %v8967_v45 = vadd.bf16 %v16771_v23, %v19348_v42  ;;  %v8969_v18 = vadd.bf16 %v16780_v20, %v8734_v16  ;;  %v19354_v42 = vpack.c.bf16 %v19352_v60, %v19353_v54 }
 0x68e   : > { %v9687_v0 = vadd.f32 %v11577_v29, %v17159_v63  ;;  %v11690_v6 = vpop.f32.mrf.mxu1  ;;  %10237 = vmatmul.mubr.bf16.gmra.mxu1 %v9080_v43  ;;  %10083 = vmatprep.mubr.bf16.mxu0 %v9087_v33  ;;  %v9086_v33 = vmax.bf16 %v19017_v30, %v8958_v34  ;;  %v8966_v34 = vadd.bf16 %v16813_v12, %v19351_v14  ;;  %v19359_v14 = vld [vmem:[#allocation38_spill] sm:$0xff] }
 0x68f   : > { %10244 = vmatprep.mubr.bf16.mxu1 %v9089_v55  ;;  %v11579_v44 = vpop.f32.mrf.mxu0  ;;  %v9097_v46 = vmax.bf16 %v19017_v30, %v8969_v18  ;;  %v9096_v36 = vmax.bf16 %v19017_v30, %v8968_v25  ;;  %v8976_v60 = vadd.bf16 %v16817_v62, %v8741_v47  ;;  %v8985_v25 = vadd.bf16 %v16780_v20, %v8750_v7 }
 0x690   : > { %v17195_v59 = vadd.f32 %v11689_v40, %v9687_v0  ;;  %v11580_v13 = vadd.f32 %v11579_v44, %v11578_v39  ;;  %v11691_v15 = vpop.f32.mrf.mxu1  ;;  %v9095_v39 = vmax.bf16 %v19017_v30, %v8967_v45  ;;  %v8975_v45 = vadd.bf16 %v16771_v23, %v19354_v42 }
 0x691   : > { %v11692_v24 = vadd.f32 %v11691_v15, %v11690_v6  ;;  %v11581_v43 = vpop.f32.mrf.mxu0  ;;  %v9104_v21 = vmax.bf16 %v19017_v30, %v8976_v60  ;;  %v9113_v4 = vmax.bf16 %v19017_v30, %v8985_v25 }
 0x692   : > { %v9692_v29 = vadd.f32 %v11580_v13, %v17159_v63  ;;  %v11693_v5 = vpop.f32.mrf.mxu1 }
 0x693   : > { %v11582_v55 = vpop.f32.mrf.mxu0 }
 0x694   : > { %v17204_v1 = vadd.f32 %v11692_v24, %v9692_v29  ;;  %v11583_v57 = vadd.f32 %v11582_v55, %v11581_v43  ;;  %v11694_v40 = vpop.f32.mrf.mxu1  ;;  %v8977_v24 = vadd.bf16 %v16780_v20, %v8742_v61  ;;  %v9094_v55 = vmax.bf16 %v19017_v30, %v8966_v34 }
 0x695   : > { %v11695_v0 = vadd.f32 %v11694_v40, %v11693_v5  ;;  %v11584_v49 = vpop.f32.mrf.mxu0  ;;  %10084 = vmatmul.mubr.bf16.gmra.mxu0 %v9086_v33  ;;  %v9103_v40 = vmax.bf16 %v19017_v30, %v8975_v45  ;;  %v19360_v34 = vpack.c.bf16 %v19358_v53, %v19359_v14  ;;  %v8993_v53 = vadd.bf16 %v16780_v20, %v8758_v3 }
 0x696   : > { %v9695_v16 = vadd.f32 %v11583_v57, %v17159_v63  ;;  %v11696_v6 = vpop.f32.mrf.mxu1  ;;  %10245 = vmatmul.mubr.bf16.gmra.mxu1 %v9088_v10  ;;  %10091 = vmatprep.mubr.bf16.mxu0 %v9095_v39  ;;  %v9105_v17 = vmax.bf16 %v19017_v30, %v8977_v24 }
 0x697   : > { %10252 = vmatprep.mubr.bf16.mxu1 %v9097_v46  ;;  %v11585_v44 = vpop.f32.mrf.mxu0  ;;  %v19356_v46 = vld [vmem:[#allocation35_spill] sm:$0xff]  ;;  %v9121_v48 = vmax.bf16 %v19017_v30, %v8993_v53 }
 0x698   : > { %v17221_v13 = vadd.f32 %v11695_v0, %v9695_v16  ;;  %v11586_v15 = vadd.f32 %v11585_v44, %v11584_v49  ;;  %v11697_v18 = vpop.f32.mrf.mxu1  ;;  %v19355_v49 = vld [vmem:[#allocation102_spill] sm:$0xff]  ;;  %v8983_v44 = vadd.bf16 %v16771_v23, %v19360_v34 }
 0x699   : > { %v11698_v43 = vadd.f32 %v11697_v18, %v11696_v6  ;;  %v11587_v29 = vpop.f32.mrf.mxu0  ;;  %v19357_v16 = vpack.c.bf16 %v19355_v49, %v19356_v46  ;;  %v8984_v46 = vadd.bf16 %v16817_v62, %v8749_v19 }
 0x69a   : > { %v9700_v5 = vadd.f32 %v11586_v15, %v17159_v63  ;;  %v11699_v33 = vpop.f32.mrf.mxu1 }
 0x69b   : > { %v11588_v10 = vpop.f32.mrf.mxu0  ;;  %v8974_v6 = vadd.bf16 %v16813_v12, %v19357_v16  ;;  %v9112_v35 = vmax.bf16 %v19017_v30, %v8984_v46 }
 0x69c   : > { %v17230_v32 = vadd.f32 %v11698_v43, %v9700_v5  ;;  %v11589_v51 = vadd.f32 %v11588_v10, %v11587_v29  ;;  %v11700_v57 = vpop.f32.mrf.mxu1 }
 0x69d   : > { %v11701_v39 = vadd.f32 %v11700_v57, %v11699_v33  ;;  %v11590_v41 = vpop.f32.mrf.mxu0  ;;  %10092 = vmatmul.mubr.bf16.gmra.mxu0 %v9094_v55  ;;  %v9102_v29 = vmax.bf16 %v19017_v30, %v8974_v6  ;;  %v9111_v55 = vmax.bf16 %v19017_v30, %v8983_v44  ;;  %v19362_v57 = vld [vmem:[#allocation37_spill] sm:$0xff] }
 0x69e   : > { %v9703_v61 = vadd.f32 %v11589_v51, %v17159_v63  ;;  %v11702_v0 = vpop.f32.mrf.mxu1  ;;  %10253 = vmatmul.mubr.bf16.gmra.mxu1 %v9096_v36  ;;  %10099 = vmatprep.mubr.bf16.mxu0 %v9103_v40  ;;  %v19361_v51 = vld [vmem:[#allocation40_spill] sm:$0xff] }
 0x69f   : > { %10260 = vmatprep.mubr.bf16.mxu1 %v9105_v17  ;;  %v11591_v50 = vpop.f32.mrf.mxu0  ;;  %v19363_v40 = vpack.c.bf16 %v19361_v51, %v19362_v57  ;;  %v19364_v17 = vld [vmem:[#allocation27_spill] sm:$0xff]  ;;  %v9001_v57 = vadd.bf16 %v16780_v20, %v8766_v28 }
 0x6a0   : > { %v17247_v54 = vadd.f32 %v11701_v39, %v9703_v61  ;;  %v11592_v42 = vadd.f32 %v11591_v50, %v11590_v41  ;;  %v11703_v45 = vpop.f32.mrf.mxu1  ;;  %v19365_v61 = vld [vmem:[#allocation112_spill] sm:$0xff] }
 0x6a1   : > { %v11704_v15 = vadd.f32 %v11703_v45, %v11702_v0  ;;  %v11593_v18 = vpop.f32.mrf.mxu0  ;;  %v8982_v39 = vadd.bf16 %v16813_v12, %v19363_v40  ;;  %v19366_v0 = vpack.c.bf16 %v19364_v17, %v19365_v61  ;;  %v9129_v20 = vmax.bf16 %v19017_v30, %v9001_v57 }
 0x6a2   : > { %v9708_v24 = vadd.f32 %v11592_v42, %v17159_v63  ;;  %v11705_v43 = vpop.f32.mrf.mxu1 }
 0x6a3   : > { %v11594_v5 = vpop.f32.mrf.mxu0  ;;  %v8991_v49 = vadd.bf16 %v16771_v23, %v19366_v0  ;;  %v9110_v42 = vmax.bf16 %v19017_v30, %v8982_v39 }
 0x6a4   : > { %v17256_v37 = vadd.f32 %v11704_v15, %v9708_v24  ;;  %v11595_v47 = vadd.f32 %v11594_v5, %v11593_v18  ;;  %v11706_v33 = vpop.f32.mrf.mxu1 }
 0x6a5   : > { %v11707_v10 = vadd.f32 %v11706_v33, %v11705_v43  ;;  %v11596_v26 = vpop.f32.mrf.mxu0  ;;  %10100 = vmatmul.mubr.bf16.gmra.mxu0 %v9102_v29  ;;  %v9119_v15 = vmax.bf16 %v19017_v30, %v8991_v49  ;;  %v19367_v43 = vld [vmem:[#allocation113_spill] sm:$0xff] }
 0x6a6   : > { %v9711_v7 = vadd.f32 %v11595_v47, %v17159_v63  ;;  %v11708_v36 = vpop.f32.mrf.mxu1  ;;  %10261 = vmatmul.mubr.bf16.gmra.mxu1 %v9104_v21  ;;  %10107 = vmatprep.mubr.bf16.mxu0 %v9111_v55  ;;  %v19368_v29 = vld [vmem:[#allocation45_spill] sm:$0xff]  ;;  %v19371_v55 = vld [vmem:[#allocation47_spill] sm:$0xff] }
 0x6a7   : > { %10268 = vmatprep.mubr.bf16.mxu1 %v9113_v4  ;;  %v11597_v41 = vpop.f32.mrf.mxu0  ;;  %v19369_v5 = vpack.c.bf16 %v19367_v43, %v19368_v29  ;;  %v19370_v33 = vld [vmem:[#allocation117_spill] sm:$0xff]  ;;  %v8992_v4 = vadd.bf16 %v16817_v62, %v8757_v38 }
 0x6a8   : > { %v17273_v16 = vadd.f32 %v11707_v10, %v9711_v7  ;;  %v11598_v6 = vadd.f32 %v11597_v41, %v11596_v26  ;;  %v11709_v50 = vpop.f32.mrf.mxu1  ;;  %v19372_v10 = vpack.c.bf16 %v19370_v33, %v19371_v55 }
 0x6a9   : > { %v11710_v14 = vadd.f32 %v11709_v50, %v11708_v36  ;;  %v11599_v34 = vpop.f32.mrf.mxu0  ;;  %v8990_v21 = vadd.bf16 %v16813_v12, %v19369_v5  ;;  %v9120_v22 = vmax.bf16 %v19017_v30, %v8992_v4  ;;  %v19374_v50 = vld [vmem:[#allocation46_spill] sm:$0xff] }
 0x6aa   : > { %v9716_v44 = vadd.f32 %v11598_v6, %v17159_v63  ;;  %v11711_v60 = vpop.f32.mrf.mxu1  ;;  %v8999_v26 = vadd.bf16 %v16771_v23, %v19372_v10  ;;  %v19373_v6 = vld [vmem:[#allocation48_spill] sm:$0xff] }
 0x6ab   : > { %v11600_v45 = vpop.f32.mrf.mxu0  ;;  %v9118_v23 = vmax.bf16 %v19017_v30, %v8990_v21  ;;  %v19375_v53 = vpack.c.bf16 %v19373_v6, %v19374_v50 }
 0x6ac   : > { %v17282_v58 = vadd.f32 %v11710_v14, %v9716_v44  ;;  %v11601_v19 = vadd.f32 %v11600_v45, %v11599_v34  ;;  %v11712_v25 = vpop.f32.mrf.mxu1  ;;  %v9127_v49 = vmax.bf16 %v19017_v30, %v8999_v26  ;;  %v9000_v44 = vadd.bf16 %v16817_v62, %v8765_v2 }
 0x6ad   : > { %v11713_v18 = vadd.f32 %v11712_v25, %v11711_v60  ;;  %v11602_v31 = vpop.f32.mrf.mxu0  ;;  %10108 = vmatmul.mubr.bf16.gmra.mxu0 %v9110_v42  ;;  %v8998_v14 = vadd.bf16 %v16813_v12, %v19375_v53 }
 0x6ae   : > { %v9719_v3 = vadd.f32 %v11601_v19, %v17159_v63  ;;  %v11714_v24 = vpop.f32.mrf.mxu1  ;;  %10269 = vmatmul.mubr.bf16.gmra.mxu1 %v9112_v35  ;;  %10115 = vmatprep.mubr.bf16.mxu0 %v9119_v15  ;;  %v9128_v12 = vmax.bf16 %v19017_v30, %v9000_v44 }
 0x6af   : > { %10276 = vmatprep.mubr.bf16.mxu1 %v9121_v48  ;;  %v11603_v47 = vpop.f32.mrf.mxu0 }
 0x6b0   : > { %v17299_v7 = vadd.f32 %v11713_v18, %v9719_v3  ;;  %v11604_v36 = vadd.f32 %v11603_v47, %v11602_v31  ;;  %v11715_v51 = vpop.f32.mrf.mxu1  ;;  %v9126_v18 = vmax.bf16 %v19017_v30, %v8998_v14 }
 0x6b1   : > { %v11716_v40 = vadd.f32 %v11715_v51, %v11714_v24  ;;  %v11605_v39 = vpop.f32.mrf.mxu0 }
 0x6b2   : > { %v9724_v41 = vadd.f32 %v11604_v36, %v17159_v63  ;;  %v11717_v17 = vpop.f32.mrf.mxu1 }
 0x6b3   : > { %v11606_v61 = vpop.f32.mrf.mxu0 }
 0x6b4   : > { %v17308_v56 = vadd.f32 %v11716_v40, %v9724_v41  ;;  %v11607_v38 = vadd.f32 %v11606_v61, %v11605_v39  ;;  %v11718_v0 = vpop.f32.mrf.mxu1 }
 0x6b5   : > { %v11719_v46 = vadd.f32 %v11718_v0, %v11717_v17  ;;  %v11608_v8 = vpop.f32.mrf.mxu0  ;;  %10116 = vmatmul.mubr.bf16.gmra.mxu0 %v9118_v23 }
 0x6b6   : > { %v9727_v52 = vadd.f32 %v11607_v38, %v17159_v63  ;;  %v11720_v28 = vpop.f32.mrf.mxu1  ;;  %10277 = vmatmul.mubr.bf16.gmra.mxu1 %v9120_v22  ;;  %10123 = vmatprep.mubr.bf16.mxu0 %v9127_v49 }
 0x6b7   : > { %10284 = vmatprep.mubr.bf16.mxu1 %v9129_v20  ;;  %v11609_v34 = vpop.f32.mrf.mxu0 }
 0x6b8   : > { %v17321_v60 = vadd.f32 %v11719_v46, %v9727_v52  ;;  %v11610_v42 = vadd.f32 %v11609_v34, %v11608_v8  ;;  %v11721_v45 = vpop.f32.mrf.mxu1 }
 0x6b9   : > { %v11722_v35 = vadd.f32 %v11721_v45, %v11720_v28  ;;  %v11611_v19 = vpop.f32.mrf.mxu0 }
 0x6ba   : > { %v9732_v25 = vadd.f32 %v11610_v42, %v17159_v63  ;;  %v11723_v15 = vpop.f32.mrf.mxu1 }
 0x6bb   : > { %v11612_v31 = vpop.f32.mrf.mxu0 }
 0x6bc   : > { %v17326_v48 = vadd.f32 %v11722_v35, %v9732_v25  ;;  %v11613_v3 = vadd.f32 %v11612_v31, %v11611_v19  ;;  %v11724_v11 = vpop.f32.mrf.mxu1 }
 0x6bd   : > { %v11725_v27 = vadd.f32 %v11724_v11, %v11723_v15  ;;  %v11614_v62 = vpop.f32.mrf.mxu0  ;;  %10124 = vmatmul.mubr.bf16.gmra.mxu0 %v9126_v18 }
 0x6be   : > { %v9735_v2 = vadd.f32 %v11613_v3, %v17159_v63  ;;  %v11726_v24 = vpop.f32.mrf.mxu1  ;;  %10285 = vmatmul.mubr.bf16.gmra.mxu1 %v9128_v12 }
 0x6bf   : > { %v11615_v43 = vpop.f32.mrf.mxu0 }
 0x6c0   : > { %v17329_v29 = vadd.f32 %v11725_v27, %v9735_v2  ;;  %v11616_v5 = vadd.f32 %v11615_v43, %v11614_v62  ;;  %v11727_v21 = vpop.f32.mrf.mxu1 }
 0x6c1   : > { %v11728_v47 = vadd.f32 %v11727_v21, %v11726_v24  ;;  %v11617_v33 = vpop.f32.mrf.mxu0 }
 0x6c2   : > { %v9740_v30 = vadd.f32 %v11616_v5, %v17159_v63  ;;  %v11729_v55 = vpop.f32.mrf.mxu1 }
 0x6c3   : > { %v11618_v10 = vpop.f32.mrf.mxu0 }
 0x6c4   : > { %v17332_v26 = vadd.f32 %v11728_v47, %v9740_v30  ;;  %v11619_v4 = vadd.f32 %v11618_v10, %v11617_v33  ;;  %v11730_v36 = vpop.f32.mrf.mxu1 }
 0x6c5   : > { %v11731_v51 = vadd.f32 %v11730_v36, %v11729_v55  ;;  %v11620_v57 = vpop.f32.mrf.mxu0 }
 0x6c6   : > { %v9743_v40 = vadd.f32 %v11619_v4, %v17159_v63  ;;  %v11732_v39 = vpop.f32.mrf.mxu1 }
 0x6c7   : > { %v11621_v41 = vpop.f32.mrf.mxu0 }
 0x6c8   : > { %v17335_v17 = vadd.f32 %v11731_v51, %v9743_v40  ;;  %v11622_v23 = vadd.f32 %v11621_v41, %v11620_v57  ;;  %v11733_v61 = vpop.f32.mrf.mxu1 }
 0x6c9   : > { %v11734_v22 = vadd.f32 %v11733_v61, %v11732_v39  ;;  %v11623_v38 = vpop.f32.mrf.mxu0 }
 0x6ca   : > { %v9748_v0 = vadd.f32 %v11622_v23, %v17159_v63  ;;  %v11735_v49 = vpop.f32.mrf.mxu1 }
 0x6cb   : > { %v11624_v46 = vpop.f32.mrf.mxu0 }
 0x6cc   : > { %v17338_v8 = vadd.f32 %v11734_v22, %v9748_v0  ;;  %v11625_v20 = vadd.f32 %v11624_v46, %v11623_v38  ;;  %v11736_v52 = vpop.f32.mrf.mxu1 }
 0x6cd   : > { %v11737_v28 = vadd.f32 %v11736_v52, %v11735_v49  ;;  %v11626_v6 = vpop.f32.mrf.mxu0 }
 0x6ce   : > { %v9751_v50 = vadd.f32 %v11625_v20, %v17159_v63  ;;  %v11738_v53 = vpop.f32.mrf.mxu1 }
 0x6cf   : > { %v11627_v14 = vpop.f32.mrf.mxu0 }
 0x6d0   : > { %v17341_v34 = vadd.f32 %v11737_v28, %v9751_v50  ;;  %v11628_v44 = vadd.f32 %v11627_v14, %v11626_v6  ;;  %v11739_v42 = vpop.f32.mrf.mxu1 }
 0x6d1   : > { %v11740_v45 = vadd.f32 %v11739_v42, %v11738_v53  ;;  %v11629_v35 = vpop.f32.mrf.mxu0 }
 0x6d2   : > { %v9756_v19 = vadd.f32 %v11628_v44, %v17159_v63  ;;  %v11741_v25 = vpop.f32.mrf.mxu1 }
 0x6d3   : > { %v11630_v15 = vpop.f32.mrf.mxu0 }
 0x6d4   : > { %v17344_v18 = vadd.f32 %v11740_v45, %v9756_v19  ;;  %v11631_v31 = vadd.f32 %v11630_v15, %v11629_v35  ;;  %v11742_v12 = vpop.f32.mrf.mxu1 }
 0x6d5   : > { %v11743_v3 = vadd.f32 %v11742_v12, %v11741_v25  ;;  %v11632_v11 = vpop.f32.mrf.mxu0 }
 0x6d6   : > { %v9759_v27 = vadd.f32 %v11631_v31, %v17159_v63  ;;  %v11744_v62 = vpop.f32.mrf.mxu1 }
 0x6d7   : > { %v11633_v2 = vpop.f32.mrf.mxu0 }
 0x6d8   : > { %v17347_v24 = vadd.f32 %v11743_v3, %v9759_v27  ;;  %v11634_v43 = vadd.f32 %v11633_v2, %v11632_v11  ;;  %v11745_v5 = vpop.f32.mrf.mxu1 }
 0x6d9   : > { %v11746_v21 = vadd.f32 %v11745_v5, %v11744_v62  ;;  %v11635_v47 = vpop.f32.mrf.mxu0 }
 0x6da   : > { %v9764_v33 = vadd.f32 %v11634_v43, %v17159_v63  ;;  %v11747_v30 = vpop.f32.mrf.mxu1 }
 0x6db   : > { %v11636_v55 = vpop.f32.mrf.mxu0 }
 0x6dc   : > { %v17350_v10 = vadd.f32 %v11746_v21, %v9764_v33  ;;  %v11637_v4 = vadd.f32 %v11636_v55, %v11635_v47  ;;  %v11748_v36 = vpop.f32.mrf.mxu1 }
 0x6dd   : > { %v11749_v51 = vadd.f32 %v11748_v36, %v11747_v30  ;;  %v11638_v57 = vpop.f32.mrf.mxu0 }
 0x6de   : > { %v9767_v40 = vadd.f32 %v11637_v4, %v17159_v63  ;;  %v11750_v39 = vpop.f32.mrf.mxu1 }
 0x6df   : > { %v11639_v41 = vpop.f32.mrf.mxu0 }
 0x6e0   : > { %v17353_v23 = vadd.f32 %v11749_v51, %v9767_v40  ;;  %v11640_v61 = vadd.f32 %v11639_v41, %v11638_v57  ;;  %v11751_v22 = vpop.f32.mrf.mxu1 }
 0x6e1   : > { %v11752_v38 = vadd.f32 %v11751_v22, %v11750_v39  ;;  %v11641_v0 = vpop.f32.mrf.mxu0 }
 0x6e2   : > { %v9772_v49 = vadd.f32 %v11640_v61, %v17159_v63  ;;  %v11753_v46 = vpop.f32.mrf.mxu1 }
 0x6e3   : > { %v11642_v20 = vpop.f32.mrf.mxu0 }
 0x6e4   : > { %v17356_v52 = vadd.f32 %v11752_v38, %v9772_v49  ;;  %v11643_v28 = vadd.f32 %v11642_v20, %v11641_v0  ;;  %v11754_v6 = vpop.f32.mrf.mxu1 }
 0x6e5   : > { %v11755_v50 = vadd.f32 %v11754_v6, %v11753_v46  ;;  %v11644_v53 = vpop.f32.mrf.mxu0 }
 0x6e6   : > { %v9775_v14 = vadd.f32 %v11643_v28, %v17159_v63  ;;  %v11756_v44 = vpop.f32.mrf.mxu1 }
 0x6e7   : > { %v11645_v42 = vpop.f32.mrf.mxu0 }
 0x6e8   : > { %v17359_v45 = vadd.f32 %v11755_v50, %v9775_v14  ;;  %v11646_v35 = vadd.f32 %v11645_v42, %v11644_v53  ;;  %v11757_v19 = vpop.f32.mrf.mxu1 }
 0x6e9   : > { %v11758_v25 = vadd.f32 %v11757_v19, %v11756_v44  ;;  %v11647_v15 = vpop.f32.mrf.mxu0 }
 0x6ea   : > { %v9780_v31 = vadd.f32 %v11646_v35, %v17159_v63  ;;  %v11759_v12 = vpop.f32.mrf.mxu1 }
 0x6eb   : > { %v11648_v3 = vpop.f32.mrf.mxu0 }
 0x6ec   : > { %v17362_v11 = vadd.f32 %v11758_v25, %v9780_v31  ;;  %v11649_v27 = vadd.f32 %v11648_v3, %v11647_v15  ;;  %v11760_v62 = vpop.f32.mrf.mxu1 }
 0x6ed   : > { %v11761_v2 = vadd.f32 %v11760_v62, %v11759_v12  ;;  %v11650_v43 = vpop.f32.mrf.mxu0 }
 0x6ee   : > { %v9783_v5 = vadd.f32 %v11649_v27, %v17159_v63  ;;  %v11762_v21 = vpop.f32.mrf.mxu1 }
 0x6ef   : > { %v11651_v47 = vpop.f32.mrf.mxu0 }
 0x6f0   : > { %v17365_v33 = vadd.f32 %v11761_v2, %v9783_v5  ;;  %v11652_v30 = vadd.f32 %v11651_v47, %v11650_v43  ;;  %v11763_v55 = vpop.f32.mrf.mxu1 }
 0x6f1   : > { %v11764_v4 = vadd.f32 %v11763_v55, %v11762_v21  ;;  %v11653_v36 = vpop.f32.mrf.mxu0 }
 0x6f2   : > { %v9788_v51 = vadd.f32 %v11652_v30, %v17159_v63  ;;  %v11765_v57 = vpop.f32.mrf.mxu1 }
 0x6f3   : > { %v11654_v40 = vpop.f32.mrf.mxu0 }
 0x6f4   : > { %v17368_v39 = vadd.f32 %v11764_v4, %v9788_v51  ;;  %v11655_v41 = vadd.f32 %v11654_v40, %v11653_v36  ;;  %v11766_v61 = vpop.f32.mrf.mxu1 }
 0x6f5   : > { %v11767_v22 = vadd.f32 %v11766_v61, %v11765_v57  ;;  %v11656_v38 = vpop.f32.mrf.mxu0 }
 0x6f6   : > { %v9791_v0 = vadd.f32 %v11655_v41, %v17159_v63  ;;  %v11768_v49 = vpop.f32.mrf.mxu1 }
 0x6f7   : > { %v11657_v46 = vpop.f32.mrf.mxu0 }
 0x6f8   : > { %v17371_v20 = vadd.f32 %v11767_v22, %v9791_v0  ;;  %v11658_v28 = vadd.f32 %v11657_v46, %v11656_v38  ;;  %v11769_v6 = vpop.f32.mrf.mxu1 }
 0x6f9   : > { %v11770_v50 = vadd.f32 %v11769_v6, %v11768_v49  ;;  %v11659_v53 = vpop.f32.mrf.mxu0 }
 0x6fa   : > { %v9796_v14 = vadd.f32 %v11658_v28, %v17159_v63  ;;  %v11771_v44 = vpop.f32.mrf.mxu1 }
 0x6fb   : > { %v11660_v42 = vpop.f32.mrf.mxu0 }
 0x6fc   : > { %v17374_v35 = vadd.f32 %v11770_v50, %v9796_v14  ;;  %v11661_v19 = vadd.f32 %v11660_v42, %v11659_v53  ;;  %v11772_v25 = vpop.f32.mrf.mxu1 }
 0x6fd   : > { %v11773_v15 = vadd.f32 %v11772_v25, %v11771_v44  ;;  %v11662_v31 = vpop.f32.mrf.mxu0 }
 0x6fe   : > { %v9799_v12 = vadd.f32 %v11661_v19, %v17159_v63  ;;  %v11774_v3 = vpop.f32.mrf.mxu1 }
 0x6ff   : > { %v11663_v27 = vpop.f32.mrf.mxu0 }
 0x700   : > { %v17377_v62 = vadd.f32 %v11773_v15, %v9799_v12  ;;  %v11664_v2 = vadd.f32 %v11663_v27, %v11662_v31  ;;  %v11775_v43 = vpop.f32.mrf.mxu1 }
 0x701   : > { %v11776_v5 = vadd.f32 %v11775_v43, %v11774_v3  ;;  %v11665_v21 = vpop.f32.mrf.mxu0 }
 0x702   : > { %v9804_v47 = vadd.f32 %v11664_v2, %v17159_v63  ;;  %v11777_v30 = vpop.f32.mrf.mxu1 }
 0x703   : > { %v11666_v55 = vpop.f32.mrf.mxu0 }
 0x704   : > { %v17380_v4 = vadd.f32 %v11776_v5, %v9804_v47  ;;  %v11667_v36 = vadd.f32 %v11666_v55, %v11665_v21  ;;  %v11778_v51 = vpop.f32.mrf.mxu1 }
 0x705   : > { %v11779_v57 = vadd.f32 %v11778_v51, %v11777_v30  ;;  %v11796_v40 = vpop.f32.mrf.mxu0 }
 0x706   : > { %v9807_v41 = vadd.f32 %v11667_v36, %v17159_v63  ;;  %v11908_v61 = vpop.f32.mrf.mxu1 }
 0x707   : > { %v11797_v22 = vpop.f32.mrf.mxu0 }
 0x708   : > { %v17383_v38 = vadd.f32 %v11779_v57, %v9807_v41  ;;  %v11798_v0 = vadd.f32 %v11797_v22, %v11796_v40  ;;  %v11909_v49 = vpop.f32.mrf.mxu1 }
 0x709   : > { %v11799_v46 = vpop.f32.mrf.mxu0  ;;  %v11910_v42 = vadd.f32 %v11909_v49, %v11908_v61 }
 0x70a   : > { %v11911_v28 = vpop.f32.mrf.mxu1  ;;  %v10006_v50 = vadd.f32 %v11798_v0, %v17178_v9 }
 0x70b   : > { %v11800_v6 = vpop.f32.mrf.mxu0 }
 0x70c   : > { %v11801_v53 = vadd.f32 %v11800_v6, %v11799_v46  ;;  %v11912_v14 = vpop.f32.mrf.mxu1  ;;  %v10167_v31 = vadd.f32 %v11910_v42, %v10006_v50 }
 0x70d   : > { %v11802_v44 = vpop.f32.mrf.mxu0  ;;  %v11913_v63 = vadd.f32 %v11912_v14, %v11911_v28 }
 0x70e   : > { %v10009_v19 = vadd.f32 %v11801_v53, %v17195_v59  ;;  %v11914_v25 = vpop.f32.mrf.mxu1 }
 0x70f   : > { %v11803_v15 = vpop.f32.mrf.mxu0 }
 0x710   : > { %v10170_v12 = vadd.f32 %v11913_v63, %v10009_v19  ;;  %v11804_v3 = vadd.f32 %v11803_v15, %v11802_v44  ;;  %v11915_v27 = vpop.f32.mrf.mxu1 }
 0x711   : > { %v11805_v2 = vpop.f32.mrf.mxu0  ;;  %v11916_v55 = vadd.f32 %v11915_v27, %v11914_v25 }
 0x712   : > { %v11464_v43 = vpack.c.bf16 %v10170_v12, %v10167_v31  ;;  %v11917_v5 = vpop.f32.mrf.mxu1  ;;  %v10014_v9 = vadd.f32 %v11804_v3, %v17204_v1 }
 0x713   : > { %v11806_v21 = vpop.f32.mrf.mxu0 }
 0x714   : > { %11465 = vst [vmem:[%s17390_s16] sm:$0xff] %v11464_v43   ;;  %v11807_v59 = vadd.f32 %v11806_v21, %v11805_v2  ;;  %v11918_v47 = vpop.f32.mrf.mxu1  ;;  %v10175_v41 = vadd.f32 %v11916_v55, %v10014_v9 }
 0x715   : > { %v11808_v30 = vpop.f32.mrf.mxu0  ;;  %v11919_v51 = vadd.f32 %v11918_v47, %v11917_v5 }
 0x716   : > { %v10017_v36 = vadd.f32 %v11807_v59, %v17221_v13  ;;  %v11920_v57 = vpop.f32.mrf.mxu1 }
 0x717   : > { %v11809_v40 = vpop.f32.mrf.mxu0 }
 0x718   : > { %v10178_v61 = vadd.f32 %v11919_v51, %v10017_v36  ;;  %v11810_v22 = vadd.f32 %v11809_v40, %v11808_v30  ;;  %v11921_v0 = vpop.f32.mrf.mxu1 }
 0x719   : > { %v11811_v49 = vpop.f32.mrf.mxu0  ;;  %v11922_v44 = vadd.f32 %v11921_v0, %v11920_v57 }
 0x71a   : > { %v11469_v46 = vpack.c.bf16 %v10178_v61, %v10175_v41  ;;  %v11923_v28 = vpop.f32.mrf.mxu1  ;;  %v10022_v1 = vadd.f32 %v11810_v22, %v17230_v32 }
 0x71b   : > { %v11812_v6 = vpop.f32.mrf.mxu0 }
 0x71c   : > { %11541 = vst [vmem:[%s17390_s16 + $0x8] sm:$0xff] %v11469_v46   ;;  %v11813_v50 = vadd.f32 %v11812_v6, %v11811_v49  ;;  %v11924_v53 = vpop.f32.mrf.mxu1  ;;  %v10183_v25 = vadd.f32 %v11922_v44, %v10022_v1 }
 0x71d   : > { %v11814_v14 = vpop.f32.mrf.mxu0  ;;  %v11925_v42 = vadd.f32 %v11924_v53, %v11923_v28 }
 0x71e   : > { %v10025_v13 = vadd.f32 %v11813_v50, %v17247_v54  ;;  %v11926_v19 = vpop.f32.mrf.mxu1 }
 0x71f   : > { %v11815_v63 = vpop.f32.mrf.mxu0 }
 0x720   : > { %v10186_v15 = vadd.f32 %v11925_v42, %v10025_v13  ;;  %v11816_v31 = vadd.f32 %v11815_v63, %v11814_v14  ;;  %v11927_v12 = vpop.f32.mrf.mxu1 }
 0x721   : > { %v11817_v3 = vpop.f32.mrf.mxu0  ;;  %v11928_v59 = vadd.f32 %v11927_v12, %v11926_v19 }
 0x722   : > { %v11474_v27 = vpack.c.bf16 %v10186_v15, %v10183_v25  ;;  %v11929_v2 = vpop.f32.mrf.mxu1  ;;  %v10030_v32 = vadd.f32 %v11816_v31, %v17256_v37 }
 0x723   : > { %v11818_v43 = vpop.f32.mrf.mxu0 }
 0x724   : > { %11542 = vst [vmem:[%s17390_s16 + $0x10] sm:$0xff] %v11474_v27   ;;  %v11819_v5 = vadd.f32 %v11818_v43, %v11817_v3  ;;  %v11930_v21 = vpop.f32.mrf.mxu1  ;;  %v10191_v36 = vadd.f32 %v11928_v59, %v10030_v32 }
 0x725   : > { %v11820_v9 = vpop.f32.mrf.mxu0  ;;  %v11931_v47 = vadd.f32 %v11930_v21, %v11929_v2 }
 0x726   : > { %v10033_v54 = vadd.f32 %v11819_v5, %v17273_v16  ;;  %v11932_v30 = vpop.f32.mrf.mxu1 }
 0x727   : > { %v11821_v55 = vpop.f32.mrf.mxu0 }
 0x728   : > { %v10194_v51 = vadd.f32 %v11931_v47, %v10033_v54  ;;  %v11822_v57 = vadd.f32 %v11821_v55, %v11820_v9  ;;  %v11933_v40 = vpop.f32.mrf.mxu1 }
 0x729   : > { %v11823_v41 = vpop.f32.mrf.mxu0  ;;  %v11934_v6 = vadd.f32 %v11933_v40, %v11932_v30 }
 0x72a   : > { %v11479_v61 = vpack.c.bf16 %v10194_v51, %v10191_v36  ;;  %v11935_v22 = vpop.f32.mrf.mxu1  ;;  %v10038_v37 = vadd.f32 %v11822_v57, %v17282_v58 }
 0x72b   : > { %v11824_v0 = vpop.f32.mrf.mxu0 }
 0x72c   : > { %11543 = vst [vmem:[%s17390_s16 + $0x18] sm:$0xff] %v11479_v61   ;;  %v11825_v49 = vadd.f32 %v11824_v0, %v11823_v41  ;;  %v11936_v46 = vpop.f32.mrf.mxu1  ;;  %v10199_v14 = vadd.f32 %v11934_v6, %v10038_v37 }
 0x72d   : > { %v11826_v28 = vpop.f32.mrf.mxu0  ;;  %v11937_v1 = vadd.f32 %v11936_v46, %v11935_v22 }
 0x72e   : > { %v10041_v16 = vadd.f32 %v11825_v49, %v17299_v7  ;;  %v11938_v50 = vpop.f32.mrf.mxu1 }
 0x72f   : > { %v11827_v53 = vpop.f32.mrf.mxu0 }
 0x730   : > { %v10202_v44 = vadd.f32 %v11937_v1, %v10041_v16  ;;  %v11828_v13 = vadd.f32 %v11827_v53, %v11826_v28  ;;  %v11939_v42 = vpop.f32.mrf.mxu1 }
 0x731   : > { %v11829_v19 = vpop.f32.mrf.mxu0  ;;  %v11940_v27 = vadd.f32 %v11939_v42, %v11938_v50 }
 0x732   : > { %v11484_v63 = vpack.c.bf16 %v10202_v44, %v10199_v14  ;;  %v11941_v25 = vpop.f32.mrf.mxu1  ;;  %v10046_v58 = vadd.f32 %v11828_v13, %v17308_v56 }
 0x733   : > { %v11830_v15 = vpop.f32.mrf.mxu0 }
 0x734   : > { %11544 = vst [vmem:[%s17390_s16 + $0x20] sm:$0xff] %v11484_v63   ;;  %v11831_v31 = vadd.f32 %v11830_v15, %v11829_v19  ;;  %v11942_v12 = vpop.f32.mrf.mxu1  ;;  %v10207_v5 = vadd.f32 %v11940_v27, %v10046_v58 }
 0x735   : > { %v11832_v3 = vpop.f32.mrf.mxu0  ;;  %v11943_v2 = vadd.f32 %v11942_v12, %v11941_v25 }
 0x736   : > { %v10049_v7 = vadd.f32 %v11831_v31, %v17321_v60  ;;  %v11944_v43 = vpop.f32.mrf.mxu1 }
 0x737   : > { %v11833_v32 = vpop.f32.mrf.mxu0 }
 0x738   : > { %v10210_v21 = vadd.f32 %v11943_v2, %v10049_v7  ;;  %v11834_v9 = vadd.f32 %v11833_v32, %v11832_v3  ;;  %v11945_v59 = vpop.f32.mrf.mxu1 }
 0x739   : > { %v11835_v54 = vpop.f32.mrf.mxu0  ;;  %v11946_v40 = vadd.f32 %v11945_v59, %v11944_v43 }
 0x73a   : > { %v11489_v47 = vpack.c.bf16 %v10210_v21, %v10207_v5  ;;  %v11947_v30 = vpop.f32.mrf.mxu1  ;;  %v10054_v56 = vadd.f32 %v11834_v9, %v17326_v48 }
 0x73b   : > { %v11836_v55 = vpop.f32.mrf.mxu0 }
 0x73c   : > { %11545 = vst [vmem:[%s17390_s16 + $0x28] sm:$0xff] %v11489_v47   ;;  %v11837_v36 = vadd.f32 %v11836_v55, %v11835_v54  ;;  %v11948_v51 = vpop.f32.mrf.mxu1  ;;  %v10215_v0 = vadd.f32 %v11946_v40, %v10054_v56 }
 0x73d   : > { %v11838_v57 = vpop.f32.mrf.mxu0  ;;  %v11949_v41 = vadd.f32 %v11948_v51, %v11947_v30 }
 0x73e   : > { %v10057_v60 = vadd.f32 %v11837_v36, %v17329_v29  ;;  %v11950_v61 = vpop.f32.mrf.mxu1 }
 0x73f   : > { %v11839_v22 = vpop.f32.mrf.mxu0 }
 0x740   : > { %v10218_v37 = vadd.f32 %v11949_v41, %v10057_v60  ;;  %v11840_v49 = vadd.f32 %v11839_v22, %v11838_v57  ;;  %v11951_v46 = vpop.f32.mrf.mxu1 }
 0x741   : > { %v11841_v28 = vpop.f32.mrf.mxu0  ;;  %v11952_v44 = vadd.f32 %v11951_v46, %v11950_v61 }
 0x742   : > { %v11494_v6 = vpack.c.bf16 %v10218_v37, %v10215_v0  ;;  %v11953_v16 = vpop.f32.mrf.mxu1  ;;  %v10062_v48 = vadd.f32 %v11840_v49, %v17332_v26 }
 0x743   : > { %v11842_v1 = vpop.f32.mrf.mxu0 }
 0x744   : > { %11546 = vst [vmem:[%s17390_s16 + $0x30] sm:$0xff] %v11494_v6   ;;  %v11843_v50 = vadd.f32 %v11842_v1, %v11841_v28  ;;  %v11954_v53 = vpop.f32.mrf.mxu1  ;;  %v10223_v63 = vadd.f32 %v11952_v44, %v10062_v48 }
 0x745   : > { %v11844_v14 = vpop.f32.mrf.mxu0  ;;  %v11955_v13 = vadd.f32 %v11954_v53, %v11953_v16 }
 0x746   : > { %v10065_v29 = vadd.f32 %v11843_v50, %v17335_v17  ;;  %v11956_v42 = vpop.f32.mrf.mxu1 }
 0x747   : > { %v11845_v19 = vpop.f32.mrf.mxu0 }
 0x748   : > { %v10226_v25 = vadd.f32 %v11955_v13, %v10065_v29  ;;  %v11846_v15 = vadd.f32 %v11845_v19, %v11844_v14  ;;  %v11957_v58 = vpop.f32.mrf.mxu1 }
 0x749   : > { %v11847_v31 = vpop.f32.mrf.mxu0  ;;  %v11958_v32 = vadd.f32 %v11957_v58, %v11956_v42 }
 0x74a   : > { %v11499_v12 = vpack.c.bf16 %v10226_v25, %v10223_v63  ;;  %v11959_v3 = vpop.f32.mrf.mxu1  ;;  %v10070_v26 = vadd.f32 %v11846_v15, %v17338_v8 }
 0x74b   : > { %v11848_v27 = vpop.f32.mrf.mxu0 }
 0x74c   : > { %11547 = vst [vmem:[%s17390_s16 + $0x38] sm:$0xff] %v11499_v12   ;;  %v11849_v7 = vadd.f32 %v11848_v27, %v11847_v31  ;;  %v11960_v2 = vpop.f32.mrf.mxu1  ;;  %v10231_v59 = vadd.f32 %v11958_v32, %v10070_v26 }
 0x74d   : > { %v11850_v43 = vpop.f32.mrf.mxu0  ;;  %v11961_v5 = vadd.f32 %v11960_v2, %v11959_v3 }
 0x74e   : > { %v10073_v17 = vadd.f32 %v11849_v7, %v17341_v34  ;;  %v11962_v21 = vpop.f32.mrf.mxu1 }
 0x74f   : > { %v11851_v9 = vpop.f32.mrf.mxu0 }
 0x750   : > { %v10234_v54 = vadd.f32 %v11961_v5, %v10073_v17  ;;  %v11852_v47 = vadd.f32 %v11851_v9, %v11850_v43  ;;  %v11963_v30 = vpop.f32.mrf.mxu1 }
 0x751   : > { %v11853_v55 = vpop.f32.mrf.mxu0  ;;  %v11964_v41 = vadd.f32 %v11963_v30, %v11962_v21 }
 0x752   : > { %v11504_v56 = vpack.c.bf16 %v10234_v54, %v10231_v59  ;;  %v11965_v36 = vpop.f32.mrf.mxu1  ;;  %v10078_v8 = vadd.f32 %v11852_v47, %v17344_v18 }
 0x753   : > { %v11854_v51 = vpop.f32.mrf.mxu0 }
 0x754   : > { %11548 = vst [vmem:[%s17390_s16 + $0x40] sm:$0xff] %v11504_v56   ;;  %v11855_v57 = vadd.f32 %v11854_v51, %v11853_v55  ;;  %v11966_v40 = vpop.f32.mrf.mxu1  ;;  %v10239_v37 = vadd.f32 %v11964_v41, %v10078_v8 }
 0x755   : > { %v11856_v60 = vpop.f32.mrf.mxu0  ;;  %v11967_v61 = vadd.f32 %v11966_v40, %v11965_v36 }
 0x756   : > { %v10081_v34 = vadd.f32 %v11855_v57, %v17347_v24  ;;  %v11968_v22 = vpop.f32.mrf.mxu1 }
 0x757   : > { %v11857_v0 = vpop.f32.mrf.mxu0 }
 0x758   : > { %v10242_v49 = vadd.f32 %v11967_v61, %v10081_v34  ;;  %v11858_v46 = vadd.f32 %v11857_v0, %v11856_v60  ;;  %v11969_v28 = vpop.f32.mrf.mxu1 }
 0x759   : > { %v11859_v6 = vpop.f32.mrf.mxu0  ;;  %v11970_v44 = vadd.f32 %v11969_v28, %v11968_v22 }
 0x75a   : > { %v11509_v16 = vpack.c.bf16 %v10242_v49, %v10239_v37  ;;  %v11971_v1 = vpop.f32.mrf.mxu1  ;;  %v10086_v18 = vadd.f32 %v11858_v46, %v17350_v10 }
 0x75b   : > { %v11860_v48 = vpop.f32.mrf.mxu0 }
 0x75c   : > { %11549 = vst [vmem:[%s17390_s16 + $0x48] sm:$0xff] %v11509_v16   ;;  %v11861_v50 = vadd.f32 %v11860_v48, %v11859_v6  ;;  %v11972_v53 = vpop.f32.mrf.mxu1  ;;  %v10247_v19 = vadd.f32 %v11970_v44, %v10086_v18 }
 0x75d   : > { %v11862_v14 = vpop.f32.mrf.mxu0  ;;  %v11973_v29 = vadd.f32 %v11972_v53, %v11971_v1 }
 0x75e   : > { %v10089_v24 = vadd.f32 %v11861_v50, %v17353_v23  ;;  %v11974_v13 = vpop.f32.mrf.mxu1 }
 0x75f   : > { %v11863_v42 = vpop.f32.mrf.mxu0 }
 0x760   : > { %v10250_v63 = vadd.f32 %v11973_v29, %v10089_v24  ;;  %v11864_v25 = vadd.f32 %v11863_v42, %v11862_v14  ;;  %v11975_v15 = vpop.f32.mrf.mxu1 }
 0x761   : > { %v11865_v58 = vpop.f32.mrf.mxu0  ;;  %v11976_v2 = vadd.f32 %v11975_v15, %v11974_v13 }
 0x762   : > { %v11514_v31 = vpack.c.bf16 %v10250_v63, %v10247_v19  ;;  %v11977_v12 = vpop.f32.mrf.mxu1  ;;  %v10094_v10 = vadd.f32 %v11864_v25, %v17356_v52 }
 0x763   : > { %v11866_v3 = vpop.f32.mrf.mxu0 }
 0x764   : > { %11550 = vst [vmem:[%s17390_s16 + $0x50] sm:$0xff] %v11514_v31   ;;  %v11867_v27 = vadd.f32 %v11866_v3, %v11865_v58  ;;  %v11978_v26 = vpop.f32.mrf.mxu1  ;;  %v10255_v5 = vadd.f32 %v11976_v2, %v10094_v10 }
 0x765   : > { %v11868_v7 = vpop.f32.mrf.mxu0  ;;  %v11979_v43 = vadd.f32 %v11978_v26, %v11977_v12 }
 0x766   : > { %v10097_v23 = vadd.f32 %v11867_v27, %v17359_v45  ;;  %v11980_v32 = vpop.f32.mrf.mxu1 }
 0x767   : > { %v11869_v17 = vpop.f32.mrf.mxu0 }
 0x768   : > { %v10258_v21 = vadd.f32 %v11979_v43, %v10097_v23  ;;  %v11870_v9 = vadd.f32 %v11869_v17, %v11868_v7  ;;  %v11981_v59 = vpop.f32.mrf.mxu1 }
 0x769   : > { %v11871_v54 = vpop.f32.mrf.mxu0  ;;  %v11982_v8 = vadd.f32 %v11981_v59, %v11980_v32 }
 0x76a   : > { %v11519_v47 = vpack.c.bf16 %v10258_v21, %v10255_v5  ;;  %v11983_v30 = vpop.f32.mrf.mxu1  ;;  %v10102_v52 = vadd.f32 %v11870_v9, %v17362_v11 }
 0x76b   : > { %v11872_v55 = vpop.f32.mrf.mxu0 }
 0x76c   : > { %11551 = vst [vmem:[%s17390_s16 + $0x58] sm:$0xff] %v11519_v47   ;;  %v11873_v56 = vadd.f32 %v11872_v55, %v11871_v54  ;;  %v11984_v36 = vpop.f32.mrf.mxu1  ;;  %v10263_v41 = vadd.f32 %v11982_v8, %v10102_v52 }
 0x76d   : > { %v11874_v51 = vpop.f32.mrf.mxu0  ;;  %v11985_v57 = vadd.f32 %v11984_v36, %v11983_v30 }
 0x76e   : > { %v10105_v45 = vadd.f32 %v11873_v56, %v17365_v33  ;;  %v11986_v40 = vpop.f32.mrf.mxu1 }
 0x76f   : > { %v11875_v60 = vpop.f32.mrf.mxu0 }
 0x770   : > { %v10266_v34 = vadd.f32 %v11985_v57, %v10105_v45  ;;  %v11876_v61 = vadd.f32 %v11875_v60, %v11874_v51  ;;  %v11987_v22 = vpop.f32.mrf.mxu1 }
 0x771   : > { %v11877_v0 = vpop.f32.mrf.mxu0  ;;  %v11988_v1 = vadd.f32 %v11987_v22, %v11986_v40 }
 0x772   : > { %v11524_v37 = vpack.c.bf16 %v10266_v34, %v10263_v41  ;;  %v11989_v49 = vpop.f32.mrf.mxu1  ;;  %v10110_v11 = vadd.f32 %v11876_v61, %v17368_v39 }
 0x773   : > { %v11878_v46 = vpop.f32.mrf.mxu0 }
 0x774   : > { %11552 = vst [vmem:[%s17390_s16 + $0x60] sm:$0xff] %v11524_v37   ;;  %v11879_v28 = vadd.f32 %v11878_v46, %v11877_v0  ;;  %v11990_v6 = vpop.f32.mrf.mxu1  ;;  %v10271_v53 = vadd.f32 %v11988_v1, %v10110_v11 }
 0x775   : > { %v11880_v16 = vpop.f32.mrf.mxu0  ;;  %v11991_v48 = vadd.f32 %v11990_v6, %v11989_v49 }
 0x776   : > { %v10113_v33 = vadd.f32 %v11879_v28, %v17371_v20  ;;  %v11992_v18 = vpop.f32.mrf.mxu1 }
 0x777   : > { %v11881_v50 = vpop.f32.mrf.mxu0 }
 0x778   : > { %v10274_v14 = vadd.f32 %v11991_v48, %v10113_v33  ;;  %v11882_v44 = vadd.f32 %v11881_v50, %v11880_v16  ;;  %v11993_v24 = vpop.f32.mrf.mxu1 }
 0x779   : > { %v11883_v29 = vpop.f32.mrf.mxu0  ;;  %v11994_v58 = vadd.f32 %v11993_v24, %v11992_v18 }
 0x77a   : > { %v11529_v13 = vpack.c.bf16 %v10274_v14, %v10271_v53  ;;  %v11995_v42 = vpop.f32.mrf.mxu1  ;;  %v10118_v39 = vadd.f32 %v11882_v44, %v17374_v35 }
 0x77b   : > { %v11884_v19 = vpop.f32.mrf.mxu0 }
 0x77c   : > { %11553 = vst [vmem:[%s17390_s16 + $0x68] sm:$0xff] %v11529_v13   ;;  %v11885_v63 = vadd.f32 %v11884_v19, %v11883_v29  ;;  %v11996_v25 = vpop.f32.mrf.mxu1  ;;  %v10279_v10 = vadd.f32 %v11994_v58, %v10118_v39 }
 0x77d   : > { %v11886_v15 = vpop.f32.mrf.mxu0  ;;  %v11997_v31 = vadd.f32 %v11996_v25, %v11995_v42 }
 0x77e   : > { %v10121_v20 = vadd.f32 %v11885_v63, %v17377_v62  ;;  %v11998_v12 = vpop.f32.mrf.mxu1 }
 0x77f   : > { %v11887_v3 = vpop.f32.mrf.mxu0 }
 0x780   : > { %v10282_v27 = vadd.f32 %v11997_v31, %v10121_v20  ;;  %v11888_v26 = vadd.f32 %v11887_v3, %v11886_v15  ;;  %v11999_v7 = vpop.f32.mrf.mxu1 }
 0x781   : > { %v11889_v2 = vpop.f32.mrf.mxu0  ;;  %v12000_v5 = vadd.f32 %v11999_v7, %v11998_v12 }
 0x782   : > { %v11534_v23 = vpack.c.bf16 %v10282_v27, %v10279_v10  ;;  %v12001_v43 = vpop.f32.mrf.mxu1  ;;  %v10126_v32 = vadd.f32 %v11888_v26, %v17380_v4 }
 0x783   : > { %v11890_v35 = vpop.f32.mrf.mxu0 }
 0x784   : > { %11554 = vst [vmem:[%s17390_s16 + $0x70] sm:$0xff] %v11534_v23   ;;  %v11891_v17 = vadd.f32 %v11890_v35, %v11889_v2  ;;  %v12002_v62 = vpop.f32.mrf.mxu1  ;;  %v10287_v59 = vadd.f32 %v12000_v5, %v10126_v32 }
 0x785   : > { %v12003_v9 = vadd.f32 %v12002_v62, %v12001_v43 }
 0x786   : > { %v10129_v21 = vadd.f32 %v11891_v17, %v17383_v38 }
 0x788   : > { %v10290_v54 = vadd.f32 %v12003_v9, %v10129_v21 }
 0x78a   : > { %v11539_v4 = vpack.c.bf16 %v10290_v54, %v10287_v59 }
 0x78c   : > { %11555 = vst [vmem:[%s17390_s16 + $0x78] sm:$0xff] %v11539_v4  }
 0x78d   : > { %12406 = shalt.err (!%p12403_p10)
}
 0x78e   : > { %s12407_s23 = scalar_lea.hbm %s17442_s20, 2048  ;;  %s12411_s14 = scalar_lea.hbm %s17496_s7, 4096 }
 0x78f   : > { %p12408_p7 = scmp.ne.s32.totalorder %s17442_s20, %s12407_s23  ;;  %p12412_p11 = scmp.lt.s32.totalorder %s17442_s20, %s17496_s7 }
 0x790   : > { %p12413_p0 = scmp.lt.s32.totalorder %s12411_s14, %s12407_s23 }
 0x791   : > { %p12409_p8 = pnand %p12408_p7, %p19376_p3 }
 0x792   : > { %p12414_p1 = por %p12413_p0, %p12412_p11 }
 0x793   : > { %p12410_p12 = pneg %p12409_p8 }
 0x795   : > { %p12415_p2 = pnand %p12414_p1, %p12410_p12 }
 0x797   : > { %12418 = shalt.err (!%p12415_p2)
}
 0x798   : > { %s12484_s15 = smov 64   ;;  %s12485_s22 = smov 4  }
 0x799   : > { %12028 = dma.vmem_to_hbm [thread:$0]  (%p19376_p3), %s17444_s29, 2048, %s17442_s20, %s17449_s13, %s12484_s15, %s12484_s15, %s12485_s22  }
 0x79a PF: > { %p12065_p9 = scmp.ge.s32.totalorder %s12469_s27, 2  ;;  %s10482_s18 = sand.u32 1, %s12457_s24  }
 0x79b   : > { %p19377_p4 = scmp.ne.s32.totalorder %s17964_s12, 0  ;;  %s10483_s28 = scalar_lea.sflag [#allocation4], %s10482_s18 }
 0x79d   : > { %p12050_p5 = pnand %p12065_p9, %p19377_p4 }
 0x79f   : > { %p12051_p6 = pneg %p12050_p5 }
 0x7a1   : > { %12452 = dma.done.wait (%p12051_p6), %s10483_s28, 2048  }
 0x7a2   : > { %12454 = vsyncadd (%p12051_p6), %s10483_s28, 4294965248  ;;  %p21_p13 = scmp.ge.s32.totalorder %s12551_s30, 4   ;;  %s19378_s24 = smov %s12461_s25 }
 0x7a3   : > { %s19379_s25 = smov %s12465_s26  ;;  %s19380_s26 = smov %s12562_s10 }
 0x7a4   : > { %s19381_s27 = smov %s12551_s30  ;;  %23 = sbr.rel (!%p21_p13) target bundleno = 7 (0x7), region = 108 }
 0x7a9   :  { %10488 = vsyncpa [#allocation3], 1 }
 0x7aa   :  { %10490 = vsyncpa [#allocation3 + $0x1], 1 }
 0x7ab   :  { %10491 = vsyncpa [#allocation6], 1 }
 0x7ac   :  { %10492 = vsyncpa [#allocation9], 1 }
 0x7ad   :  { %10493 = vsyncpa [#allocation12], 1 }
 0x7ae   :  { %10494 = vsyncpa [#allocation4], 1 }
 0x7af   :  { %10496 = vsyncpa [#allocation4 + $0x1], 1 }

</bundles_post_ra>
